<compile_context>
chip_gen: v5e
topology: v5e:2x2
jax: 0.10.0
libtpu: 0.0.40
codegen_flags: <defaults>
</compile_context>

<pallas_src>
import functools

import jax
import jax.numpy as jnp
from jax import lax
from jax.experimental import pallas as pl
from jax.experimental.pallas import tpu as pltpu


# ----------------------------------------------------------------------------
# Fused Pallas kernel: the entire encoder forward pass
# ----------------------------------------------------------------------------
def _fused_encoder_kernel(p1_ref, w1_ref, w2_ref, b2_ref, wl_ref, bl_ref,
                          o_ref, l1pad_ref, im2_ref, a2_ref, *, n_batch):
    f32 = jnp.float32
    npool = n_batch * 144                      # pooled layer-1 rows (N * 12 * 12)

    # ---- stage 1: conv1 for all 4 pool corners in ONE matmul -------------------
    # p1 rows: [N*144 pool cells | edge positions (BN stats only) | zero pad];
    # lanes: 4 corner patches (4*16) + 4 bias-indicator columns.  W1 is the
    # matching 68x64 block-diagonal weight with the conv1 bias folded into rows
    # 64..67, so zero-padded rows / corners contribute exactly 0 to the BN sums.
    y1 = jnp.dot(p1_ref[...], w1_ref[...], preferred_element_type=f32)   # (R1, 64)

    # ---- BatchNorm2d(16, eps=1e-4, affine=False): fused sum / sum-of-squares,
    #      folded across the 4 corner lane blocks (count = N*25*25) -------------
    inv_cnt1 = 1.0 / float(n_batch * 625)
    s1 = jnp.sum(y1, axis=0, keepdims=True)                              # (1, 64)
    q1 = jnp.sum(y1 * y1, axis=0, keepdims=True)                         # (1, 64)
    s1 = s1[:, 0:16] + s1[:, 16:32] + s1[:, 32:48] + s1[:, 48:64]        # (1, 16)
    q1 = q1[:, 0:16] + q1[:, 16:32] + q1[:, 32:48] + q1[:, 48:64]
    mean1 = s1 * inv_cnt1
    var1 = q1 * inv_cnt1 - mean1 * mean1
    scale1 = lax.rsqrt(var1 + 1e-4)
    mean1 = jnp.concatenate([mean1] * 4, axis=1)                         # (1, 64)
    scale1 = jnp.concatenate([scale1] * 4, axis=1)
    a1 = (y1 - mean1) * scale1
    a1 = jnp.where(a1 >= 0, a1, 0.01 * a1)                               # LeakyReLU

    # ---- MaxPool2d(2,2): max over the 4 corner lane blocks (pool-cell rows) ----
    a1m = a1[0:npool, :]
    l1 = jnp.maximum(jnp.maximum(a1m[:, 0:16], a1m[:, 16:32]),
                     jnp.maximum(a1m[:, 32:48], a1m[:, 48:64]))          # (N*144, 16)

    # ---- stage 2: conv2 as ONE (N*144, 256) @ (256, 8) matmul ------------------
    # Pay the sublane-unaligned relayout once: copy each of the 16 shifted row
    # windows of the zero-padded layer-1 into an aligned tap-major im2col scratch.
    l1pad_ref[0:npool, :] = l1
    l1pad_ref[npool:npool + 40, :] = jnp.zeros((40, 16), f32)
    for t in range(16):
        shift = (t // 4) * 12 + (t % 4)
        im2_ref[:, t * 16:(t + 1) * 16] = l1pad_ref[shift:shift + npool, :]
    f = jnp.dot(im2_ref[...], w2_ref[...],
                preferred_element_type=f32) + b2_ref[...]                # (N*144, 8)

    # ---- BatchNorm2d(8): masked batch stats over the valid 9x9 positions -------
    # Validity mask generated in-kernel from an iota (float floor-division trick,
    # no vector integer div/mod needed); rows with h>8 or w>8 read across sample
    # boundaries / into the zero pad and are excluded here and never pooled.
    r = lax.broadcasted_iota(jnp.int32, (npool, 1), 0).astype(f32)
    r_mod = r - 144.0 * jnp.floor((r + 0.5) * (1.0 / 144.0))             # r % 144
    hh = jnp.floor((r_mod + 0.5) * (1.0 / 12.0))
    ww = r_mod - 12.0 * hh
    valid = jnp.where(jnp.logical_and(hh < 8.5, ww < 8.5), 1.0, 0.0)     # (N*144,1)
    inv_cnt2 = 1.0 / float(n_batch * 81)
    fm = f * valid
    mean2 = jnp.sum(fm, axis=0, keepdims=True) * inv_cnt2
    var2 = jnp.sum(fm * f, axis=0, keepdims=True) * inv_cnt2 - mean2 * mean2
    a2 = (f - mean2) * lax.rsqrt(var2 + 1e-4)
    a2 = jnp.where(a2 >= 0, a2, 0.01 * a2)                               # LeakyReLU
    a2_ref[...] = a2

    # ---- MaxPool2d(2,2) + flatten into a lane-dense (N, 128) operand -----------
    # Per pooled cell (a, b): 4 strided reads (stride = 144 rows per sample) grab
    # the corner rows for every sample at once; the 16 (N, 8) maxima are packed
    # into lanes so the Linear sees a fully lane-dense K=128 operand.
    blocks = []
    for a in range(4):
        for b in range(4):
            base = (2 * a) * 12 + 2 * b
            c00 = a2_ref[pl.ds(base, n_batch, stride=144), :]
            c01 = a2_ref[pl.ds(base + 1, n_batch, stride=144), :]
            c10 = a2_ref[pl.ds(base + 12, n_batch, stride=144), :]
            c11 = a2_ref[pl.ds(base + 13, n_batch, stride=144), :]
            blocks.append(jnp.maximum(jnp.maximum(c00, c01),
                                      jnp.maximum(c10, c11)))            # (N, 8)
    p2 = jnp.concatenate(blocks, axis=1)                                 # (N, 128)

    # ---- Linear(128, 64): ONE K=128 matmul -------------------------------------
    o_ref[...] = jnp.dot(p2, wl_ref[...],
                         preferred_element_type=f32) + bl_ref[...]


# ----------------------------------------------------------------------------
# Host-side (XLA) glue: corner-packed conv1 im2col + weight repacking
# ----------------------------------------------------------------------------
def _prepare_inputs(x_nchw, params):
    N = x_nchw.shape[0]
    f32 = jnp.float32
    x = x_nchw[:, 0, :, :].astype(f32)                                   # (N, 28, 28)

    # conv1 im2col patches, tap order t = i*4 + j (Cin == 1)
    taps = [x[:, i:i + 25, j:j + 25] for i in range(4) for j in range(4)]
    patches = jnp.stack(taps, axis=-1)                                   # (N,25,25,16)

    # Main rows (one per MaxPool-1 cell): the 4 pool corners packed into lanes,
    # plus 4 bias-indicator columns (1 => real position, 0 => padding).
    main = patches[:, :24, :24, :].reshape(N, 12, 2, 12, 2, 16)
    main = jnp.transpose(main, (0, 1, 3, 2, 4, 5)).reshape(N * 144, 64)
    main = jnp.concatenate([main, jnp.ones((N * 144, 4), f32)], axis=1)

    # Edge rows (oh==24 or ow==24): only feed BN1 statistics; 4 positions / row.
    edge = jnp.concatenate([patches[:, 24, :, :].reshape(N * 25, 16),
                            patches[:, :24, 24, :].reshape(N * 24, 16)], axis=0)
    n_edge = 49 * N
    e_rows = -(-n_edge // 4)
    pad = e_rows * 4 - n_edge
    edge = jnp.concatenate([edge, jnp.zeros((pad, 16), f32)], axis=0)
    ind = jnp.concatenate([jnp.ones((n_edge,), f32), jnp.zeros((pad,), f32)])
    edge = jnp.concatenate([edge.reshape(e_rows, 64), ind.reshape(e_rows, 4)],
                           axis=1)

    r1 = N * 144 + e_rows
    r1_pad = -(-r1 // 8) * 8
    p1 = jnp.concatenate([main, edge, jnp.zeros((r1_pad - r1, 68), f32)], axis=0)

    # conv1 weight -> 64x64 block diagonal (one 16x16 block per pool corner),
    # with the conv1 bias folded in via the 4 indicator rows.
    w1m = jnp.transpose(params["w1"], (2, 3, 1, 0)).reshape(16, 16)
    b1 = params["b1"].reshape(1, 16)
    eye4 = jnp.eye(4, dtype=f32)
    w1_big = jnp.concatenate([jnp.kron(eye4, w1m), jnp.kron(eye4, b1)], axis=0)

    # conv2 weight -> (tap*cin, cout) for the single K=256 matmul.
    w2m = jnp.transpose(params["w2"], (2, 3, 1, 0)).reshape(256, 8)
    b2 = params["b2"].reshape(1, 8)

    # Linear weight permuted to the kernel's (spatial q = a*4+b, channel) order.
    wlp = jnp.transpose(params["wl"].reshape(64, 8, 16), (2, 1, 0)).reshape(128, 64)
    bl = params["bl"].reshape(1, 64)

    return p1, w1_big, w2m, b2, wlp, bl


@jax.jit
def mnist_encoder_simple(x_nchw, params):
    N = x_nchw.shape[0]
    npool = N * 144
    inputs = _prepare_inputs(x_nchw, params)
    vmem = pl.BlockSpec(memory_space=pltpu.MemorySpace.VMEM)
    return pl.pallas_call(
        functools.partial(_fused_encoder_kernel, n_batch=N),
        out_shape=jax.ShapeDtypeStruct((N, 64), jnp.float32),
        in_specs=[vmem] * len(inputs),
        out_specs=vmem,
        scratch_shapes=[
            pltpu.VMEM((npool + 40, 16), jnp.float32),   # zero-padded layer-1
            pltpu.VMEM((npool, 256), jnp.float32),       # aligned conv2 im2col
            pltpu.VMEM((npool, 8), jnp.float32),         # post-BN2 activations
        ],
        compiler_params=pltpu.CompilerParams(vmem_limit_bytes=32 * 1024 * 1024),
    )(*inputs)
    # TODO(synk): for large batches, add a batch grid (2-way "parallel" on v7x)
    # with a two-phase BN-statistics pass so per-step VMEM stays bounded.


# ----------------------------------------------------------------------------
# Deterministic parameter init (PyTorch-style uniform, synthetic weights)
# ----------------------------------------------------------------------------
def init_params(key):
    ks = jax.random.split(key, 6)

    def u(k, shape, fan_in):
        bound = 1.0 / jnp.sqrt(float(fan_in))
        return jax.random.uniform(k, shape, jnp.float32, -bound, bound)

    return dict(
        w1=u(ks[0], (16, 1, 4, 4), 1 * 4 * 4),
        b1=u(ks[1], (16,), 1 * 4 * 4),
        w2=u(ks[2], (8, 16, 4, 4), 16 * 4 * 4),
        b2=u(ks[3], (8,), 16 * 4 * 4),
        wl=u(ks[4], (64, 128), 128),
        bl=u(ks[5], (64,), 128),
    )


# ----------------------------------------------------------------------------
# Pure-JAX reference (for verification only)
# ----------------------------------------------------------------------------
def reference_forward(x_nchw, params):
    def bn_lrelu_pool_ref(y):
        mean = jnp.mean(y, axis=(0, 2, 3), keepdims=True)
        var = jnp.mean(jnp.square(y - mean), axis=(0, 2, 3), keepdims=True)
        y = (y - mean) * lax.rsqrt(var + 1e-4)
        y = jnp.where(y >= 0, y, 0.01 * y)
        return lax.reduce_window(y, -jnp.inf, lax.max,
                                 (1, 1, 2, 2), (1, 1, 2, 2), "VALID")

    dn = ("NCHW", "OIHW", "NCHW")
    y = lax.conv_general_dilated(x_nchw, params["w1"], (1, 1), "VALID",
                                 dimension_numbers=dn)
    y = bn_lrelu_pool_ref(y + params["b1"][None, :, None, None])
    y = lax.conv_general_dilated(y, params["w2"], (1, 1), "VALID",
                                 dimension_numbers=dn)
    y = bn_lrelu_pool_ref(y + params["b2"][None, :, None, None])
    flat = y.reshape(y.shape[0], -1)
    return flat @ params["wl"].T + params["bl"]


if __name__ == "__main__":
    key = jax.random.PRNGKey(0)
    k_x, k_p = jax.random.split(key)
    params = init_params(k_p)
    # MNIST-sized input: Linear(8*4*4, 64) fixes the spatial size to 28x28; batch=2.
    x = jax.random.normal(k_x, (2, 1, 28, 28), jnp.float32)

    out = jax.block_until_ready(mnist_encoder_simple(x, params))
    assert out.shape == (2, 64), out.shape

    ref = reference_forward(x, params)
    max_err = float(jnp.max(jnp.abs(out - ref)))
    assert jnp.allclose(out, ref, atol=1e-3, rtol=1e-3), max_err

    print("KERNEL_OK")
</pallas_src>

<mosaic_0001>
module attributes {stable_mosaic.version = 11 : i64} {
  func.func @_fused_encoder_kernel(%arg0: memref<320x68xf32, #tpu.memory_space<vmem>>, %arg1: memref<68x64xf32, #tpu.memory_space<vmem>>, %arg2: memref<256x8xf32, #tpu.memory_space<vmem>>, %arg3: memref<1x8xf32, #tpu.memory_space<vmem>>, %arg4: memref<128x64xf32, #tpu.memory_space<vmem>>, %arg5: memref<1x64xf32, #tpu.memory_space<vmem>>, %arg6: memref<2x64xf32, #tpu.memory_space<vmem>>, %arg7: memref<328x16xf32, #tpu.memory_space<vmem>>, %arg8: memref<288x256xf32, #tpu.memory_space<vmem>>, %arg9: memref<288x8xf32, #tpu.memory_space<vmem>>) attributes {dimension_semantics = [], scalar_prefetch = 0 : i64, scratch_operands = 3 : i64, tpu.core_type = #tpu.core_type<tc>} {
    %c0 = arith.constant 0 : index
    %c0_0 = arith.constant 0 : index
    %0 = vector.load %arg0[%c0, %c0_0] : memref<320x68xf32, #tpu.memory_space<vmem>>, vector<320x68xf32>
    %c0_1 = arith.constant 0 : index
    %c0_2 = arith.constant 0 : index
    %1 = vector.load %arg1[%c0_1, %c0_2] : memref<68x64xf32, #tpu.memory_space<vmem>>, vector<68x64xf32>
    %cst = arith.constant dense<0.000000e+00> : vector<320x64xf32>
    %2 = tpu.matmul %0, %1, %cst {dimension_numbers = #tpu.dot_dimension_numbers<[1], [0], [0], [1], [0, 0, 1, 1], [], []>} : vector<320x68xf32>, vector<68x64xf32>, vector<320x64xf32> -> vector<320x64xf32>
    %cst_3 = arith.constant dense<0.000000e+00> : vector<64xf32>
    %3 = vector.multi_reduction <add>, %2, %cst_3 [0] : vector<320x64xf32> to vector<64xf32>
    %4 = vector.shape_cast %3 : vector<64xf32> to vector<1x64xf32>
    %5 = arith.mulf %2, %2 : vector<320x64xf32>
    %cst_4 = arith.constant dense<0.000000e+00> : vector<64xf32>
    %6 = vector.multi_reduction <add>, %5, %cst_4 [0] : vector<320x64xf32> to vector<64xf32>
    %7 = vector.shape_cast %6 : vector<64xf32> to vector<1x64xf32>
    %8 = vector.extract_strided_slice %4 {offsets = [0, 0], sizes = [1, 16], strides = [1, 1]} : vector<1x64xf32> to vector<1x16xf32>
    %9 = vector.extract_strided_slice %4 {offsets = [0, 16], sizes = [1, 16], strides = [1, 1]} : vector<1x64xf32> to vector<1x16xf32>
    %10 = arith.addf %8, %9 : vector<1x16xf32>
    %11 = vector.extract_strided_slice %4 {offsets = [0, 32], sizes = [1, 16], strides = [1, 1]} : vector<1x64xf32> to vector<1x16xf32>
    %12 = arith.addf %10, %11 : vector<1x16xf32>
    %13 = vector.extract_strided_slice %4 {offsets = [0, 48], sizes = [1, 16], strides = [1, 1]} : vector<1x64xf32> to vector<1x16xf32>
    %14 = arith.addf %12, %13 : vector<1x16xf32>
    %15 = vector.extract_strided_slice %7 {offsets = [0, 0], sizes = [1, 16], strides = [1, 1]} : vector<1x64xf32> to vector<1x16xf32>
    %16 = vector.extract_strided_slice %7 {offsets = [0, 16], sizes = [1, 16], strides = [1, 1]} : vector<1x64xf32> to vector<1x16xf32>
    %17 = arith.addf %15, %16 : vector<1x16xf32>
    %18 = vector.extract_strided_slice %7 {offsets = [0, 32], sizes = [1, 16], strides = [1, 1]} : vector<1x64xf32> to vector<1x16xf32>
    %19 = arith.addf %17, %18 : vector<1x16xf32>
    %20 = vector.extract_strided_slice %7 {offsets = [0, 48], sizes = [1, 16], strides = [1, 1]} : vector<1x64xf32> to vector<1x16xf32>
    %21 = arith.addf %19, %20 : vector<1x16xf32>
    %cst_5 = arith.constant 8.000000e-04 : f32
    %22 = vector.broadcast %cst_5 : f32 to vector<1x16xf32>
    %23 = arith.mulf %14, %22 : vector<1x16xf32>
    %cst_6 = arith.constant 8.000000e-04 : f32
    %24 = vector.broadcast %cst_6 : f32 to vector<1x16xf32>
    %25 = arith.mulf %21, %24 : vector<1x16xf32>
    %26 = arith.mulf %23, %23 : vector<1x16xf32>
    %27 = arith.subf %25, %26 : vector<1x16xf32>
    %cst_7 = arith.constant 9.99999974E-5 : f32
    %28 = vector.broadcast %cst_7 : f32 to vector<1x16xf32>
    %29 = arith.addf %27, %28 : vector<1x16xf32>
    %30 = math.rsqrt %29 : vector<1x16xf32>
    %31 = tpu.concatenate %23, %23, %23, %23 in 1 : vector<1x16xf32>, vector<1x16xf32>, vector<1x16xf32>, vector<1x16xf32> -> vector<1x64xf32>
    %32 = tpu.concatenate %30, %30, %30, %30 in 1 : vector<1x16xf32>, vector<1x16xf32>, vector<1x16xf32>, vector<1x16xf32> -> vector<1x64xf32>
    %33 = vector.broadcast %31 : vector<1x64xf32> to vector<320x64xf32>
    %34 = arith.subf %2, %33 : vector<320x64xf32>
    %35 = vector.broadcast %32 : vector<1x64xf32> to vector<320x64xf32>
    %36 = arith.mulf %34, %35 : vector<320x64xf32>
    %cst_8 = arith.constant 0.000000e+00 : f32
    %37 = vector.broadcast %cst_8 : f32 to vector<320x64xf32>
    %38 = arith.cmpf oge, %36, %37 : vector<320x64xf32>
    %cst_9 = arith.constant 0.00999999977 : f32
    %39 = vector.broadcast %cst_9 : f32 to vector<320x64xf32>
    %40 = arith.mulf %39, %36 : vector<320x64xf32>
    %41 = arith.select %38, %36, %40 : vector<320x64xi1>, vector<320x64xf32>
    %42 = vector.extract_strided_slice %41 {offsets = [0, 0], sizes = [288, 64], strides = [1, 1]} : vector<320x64xf32> to vector<288x64xf32>
    %43 = vector.extract_strided_slice %42 {offsets = [0, 0], sizes = [288, 16], strides = [1, 1]} : vector<288x64xf32> to vector<288x16xf32>
    %44 = vector.extract_strided_slice %42 {offsets = [0, 16], sizes = [288, 16], strides = [1, 1]} : vector<288x64xf32> to vector<288x16xf32>
    %45 = arith.maximumf %43, %44 : vector<288x16xf32>
    %46 = vector.extract_strided_slice %42 {offsets = [0, 32], sizes = [288, 16], strides = [1, 1]} : vector<288x64xf32> to vector<288x16xf32>
    %47 = vector.extract_strided_slice %42 {offsets = [0, 48], sizes = [288, 16], strides = [1, 1]} : vector<288x64xf32> to vector<288x16xf32>
    %48 = arith.maximumf %46, %47 : vector<288x16xf32>
    %49 = arith.maximumf %45, %48 : vector<288x16xf32>
    %c0_10 = arith.constant 0 : index
    %c0_11 = arith.constant 0 : index
    %50 = vector.load %arg7[%c0_10, %c0_11] : memref<328x16xf32, #tpu.memory_space<vmem>>, vector<288x16xf32>
    tpu.vector_store %arg7[%c0_10, %c0_11], %49 {strides = array<i32>} : memref<328x16xf32, #tpu.memory_space<vmem>>, vector<288x16xf32>,
    %cst_12 = arith.constant 0.000000e+00 : f32
    %51 = vector.broadcast %cst_12 : f32 to vector<40x16xf32>
    %c288 = arith.constant 288 : index
    %c0_13 = arith.constant 0 : index
    %52 = vector.load %arg7[%c288, %c0_13] : memref<328x16xf32, #tpu.memory_space<vmem>>, vector<40x16xf32>
    tpu.vector_store %arg7[%c288, %c0_13], %51 {strides = array<i32>} : memref<328x16xf32, #tpu.memory_space<vmem>>, vector<40x16xf32>,
    %c0_14 = arith.constant 0 : index
    %c0_15 = arith.constant 0 : index
    %53 = vector.load %arg7[%c0_14, %c0_15] : memref<328x16xf32, #tpu.memory_space<vmem>>, vector<288x16xf32>
    %c0_16 = arith.constant 0 : index
    %c0_17 = arith.constant 0 : index
    %54 = vector.load %arg8[%c0_16, %c0_17] : memref<288x256xf32, #tpu.memory_space<vmem>>, vector<288x16xf32>
    tpu.vector_store %arg8[%c0_16, %c0_17], %53 {strides = array<i32>} : memref<288x256xf32, #tpu.memory_space<vmem>>, vector<288x16xf32>,
    %c1 = arith.constant 1 : index
    %c0_18 = arith.constant 0 : index
    %55 = vector.load %arg7[%c1, %c0_18] : memref<328x16xf32, #tpu.memory_space<vmem>>, vector<288x16xf32>
    %c0_19 = arith.constant 0 : index
    %c16 = arith.constant 16 : index
    %56 = vector.load %arg8[%c0_19, %c16] : memref<288x256xf32, #tpu.memory_space<vmem>>, vector<288x16xf32>
    tpu.vector_store %arg8[%c0_19, %c16], %55 {strides = array<i32>} : memref<288x256xf32, #tpu.memory_space<vmem>>, vector<288x16xf32>,
    %c2 = arith.constant 2 : index
    %c0_20 = arith.constant 0 : index
    %57 = vector.load %arg7[%c2, %c0_20] : memref<328x16xf32, #tpu.memory_space<vmem>>, vector<288x16xf32>
    %c0_21 = arith.constant 0 : index
    %c32 = arith.constant 32 : index
    %58 = vector.load %arg8[%c0_21, %c32] : memref<288x256xf32, #tpu.memory_space<vmem>>, vector<288x16xf32>
    tpu.vector_store %arg8[%c0_21, %c32], %57 {strides = array<i32>} : memref<288x256xf32, #tpu.memory_space<vmem>>, vector<288x16xf32>,
    %c3 = arith.constant 3 : index
    %c0_22 = arith.constant 0 : index
    %59 = vector.load %arg7[%c3, %c0_22] : memref<328x16xf32, #tpu.memory_space<vmem>>, vector<288x16xf32>
    %c0_23 = arith.constant 0 : index
    %c48 = arith.constant 48 : index
    %60 = vector.load %arg8[%c0_23, %c48] : memref<288x256xf32, #tpu.memory_space<vmem>>, vector<288x16xf32>
    tpu.vector_store %arg8[%c0_23, %c48], %59 {strides = array<i32>} : memref<288x256xf32, #tpu.memory_space<vmem>>, vector<288x16xf32>,
    %c12 = arith.constant 12 : index
    %c0_24 = arith.constant 0 : index
    %61 = vector.load %arg7[%c12, %c0_24] : memref<328x16xf32, #tpu.memory_space<vmem>>, vector<288x16xf32>
    %c0_25 = arith.constant 0 : index
    %c64 = arith.constant 64 : index
    %62 = vector.load %arg8[%c0_25, %c64] : memref<288x256xf32, #tpu.memory_space<vmem>>, vector<288x16xf32>
    tpu.vector_store %arg8[%c0_25, %c64], %61 {strides = array<i32>} : memref<288x256xf32, #tpu.memory_space<vmem>>, vector<288x16xf32>,
    %c13 = arith.constant 13 : index
    %c0_26 = arith.constant 0 : index
    %63 = vector.load %arg7[%c13, %c0_26] : memref<328x16xf32, #tpu.memory_space<vmem>>, vector<288x16xf32>
    %c0_27 = arith.constant 0 : index
    %c80 = arith.constant 80 : index
    %64 = vector.load %arg8[%c0_27, %c80] : memref<288x256xf32, #tpu.memory_space<vmem>>, vector<288x16xf32>
    tpu.vector_store %arg8[%c0_27, %c80], %63 {strides = array<i32>} : memref<288x256xf32, #tpu.memory_space<vmem>>, vector<288x16xf32>,
    %c14 = arith.constant 14 : index
    %c0_28 = arith.constant 0 : index
    %65 = vector.load %arg7[%c14, %c0_28] : memref<328x16xf32, #tpu.memory_space<vmem>>, vector<288x16xf32>
    %c0_29 = arith.constant 0 : index
    %c96 = arith.constant 96 : index
    %66 = vector.load %arg8[%c0_29, %c96] : memref<288x256xf32, #tpu.memory_space<vmem>>, vector<288x16xf32>
    tpu.vector_store %arg8[%c0_29, %c96], %65 {strides = array<i32>} : memref<288x256xf32, #tpu.memory_space<vmem>>, vector<288x16xf32>,
    %c15 = arith.constant 15 : index
    %c0_30 = arith.constant 0 : index
    %67 = vector.load %arg7[%c15, %c0_30] : memref<328x16xf32, #tpu.memory_space<vmem>>, vector<288x16xf32>
    %c0_31 = arith.constant 0 : index
    %c112 = arith.constant 112 : index
    %68 = vector.load %arg8[%c0_31, %c112] : memref<288x256xf32, #tpu.memory_space<vmem>>, vector<288x16xf32>
    tpu.vector_store %arg8[%c0_31, %c112], %67 {strides = array<i32>} : memref<288x256xf32, #tpu.memory_space<vmem>>, vector<288x16xf32>,
    %c24 = arith.constant 24 : index
    %c0_32 = arith.constant 0 : index
    %69 = vector.load %arg7[%c24, %c0_32] : memref<328x16xf32, #tpu.memory_space<vmem>>, vector<288x16xf32>
    %c0_33 = arith.constant 0 : index
    %c128 = arith.constant 128 : index
    %70 = vector.load %arg8[%c0_33, %c128] : memref<288x256xf32, #tpu.memory_space<vmem>>, vector<288x16xf32>
    tpu.vector_store %arg8[%c0_33, %c128], %69 {strides = array<i32>} : memref<288x256xf32, #tpu.memory_space<vmem>>, vector<288x16xf32>,
    %c25 = arith.constant 25 : index
    %c0_34 = arith.constant 0 : index
    %71 = vector.load %arg7[%c25, %c0_34] : memref<328x16xf32, #tpu.memory_space<vmem>>, vector<288x16xf32>
    %c0_35 = arith.constant 0 : index
    %c144 = arith.constant 144 : index
    %72 = vector.load %arg8[%c0_35, %c144] : memref<288x256xf32, #tpu.memory_space<vmem>>, vector<288x16xf32>
    tpu.vector_store %arg8[%c0_35, %c144], %71 {strides = array<i32>} : memref<288x256xf32, #tpu.memory_space<vmem>>, vector<288x16xf32>,
    %c26 = arith.constant 26 : index
    %c0_36 = arith.constant 0 : index
    %73 = vector.load %arg7[%c26, %c0_36] : memref<328x16xf32, #tpu.memory_space<vmem>>, vector<288x16xf32>
    %c0_37 = arith.constant 0 : index
    %c160 = arith.constant 160 : index
    %74 = vector.load %arg8[%c0_37, %c160] : memref<288x256xf32, #tpu.memory_space<vmem>>, vector<288x16xf32>
    tpu.vector_store %arg8[%c0_37, %c160], %73 {strides = array<i32>} : memref<288x256xf32, #tpu.memory_space<vmem>>, vector<288x16xf32>,
    %c27 = arith.constant 27 : index
    %c0_38 = arith.constant 0 : index
    %75 = vector.load %arg7[%c27, %c0_38] : memref<328x16xf32, #tpu.memory_space<vmem>>, vector<288x16xf32>
    %c0_39 = arith.constant 0 : index
    %c176 = arith.constant 176 : index
    %76 = vector.load %arg8[%c0_39, %c176] : memref<288x256xf32, #tpu.memory_space<vmem>>, vector<288x16xf32>
    tpu.vector_store %arg8[%c0_39, %c176], %75 {strides = array<i32>} : memref<288x256xf32, #tpu.memory_space<vmem>>, vector<288x16xf32>,
    %c36 = arith.constant 36 : index
    %c0_40 = arith.constant 0 : index
    %77 = vector.load %arg7[%c36, %c0_40] : memref<328x16xf32, #tpu.memory_space<vmem>>, vector<288x16xf32>
    %c0_41 = arith.constant 0 : index
    %c192 = arith.constant 192 : index
    %78 = vector.load %arg8[%c0_41, %c192] : memref<288x256xf32, #tpu.memory_space<vmem>>, vector<288x16xf32>
    tpu.vector_store %arg8[%c0_41, %c192], %77 {strides = array<i32>} : memref<288x256xf32, #tpu.memory_space<vmem>>, vector<288x16xf32>,
    %c37 = arith.constant 37 : index
    %c0_42 = arith.constant 0 : index
    %79 = vector.load %arg7[%c37, %c0_42] : memref<328x16xf32, #tpu.memory_space<vmem>>, vector<288x16xf32>
    %c0_43 = arith.constant 0 : index
    %c208 = arith.constant 208 : index
    %80 = vector.load %arg8[%c0_43, %c208] : memref<288x256xf32, #tpu.memory_space<vmem>>, vector<288x16xf32>
    tpu.vector_store %arg8[%c0_43, %c208], %79 {strides = array<i32>} : memref<288x256xf32, #tpu.memory_space<vmem>>, vector<288x16xf32>,
    %c38 = arith.constant 38 : index
    %c0_44 = arith.constant 0 : index
    %81 = vector.load %arg7[%c38, %c0_44] : memref<328x16xf32, #tpu.memory_space<vmem>>, vector<288x16xf32>
    %c0_45 = arith.constant 0 : index
    %c224 = arith.constant 224 : index
    %82 = vector.load %arg8[%c0_45, %c224] : memref<288x256xf32, #tpu.memory_space<vmem>>, vector<288x16xf32>
    tpu.vector_store %arg8[%c0_45, %c224], %81 {strides = array<i32>} : memref<288x256xf32, #tpu.memory_space<vmem>>, vector<288x16xf32>,
    %c39 = arith.constant 39 : index
    %c0_46 = arith.constant 0 : index
    %83 = vector.load %arg7[%c39, %c0_46] : memref<328x16xf32, #tpu.memory_space<vmem>>, vector<288x16xf32>
    %c0_47 = arith.constant 0 : index
    %c240 = arith.constant 240 : index
    %84 = vector.load %arg8[%c0_47, %c240] : memref<288x256xf32, #tpu.memory_space<vmem>>, vector<288x16xf32>
    tpu.vector_store %arg8[%c0_47, %c240], %83 {strides = array<i32>} : memref<288x256xf32, #tpu.memory_space<vmem>>, vector<288x16xf32>,
    %c0_48 = arith.constant 0 : index
    %c0_49 = arith.constant 0 : index
    %85 = vector.load %arg8[%c0_48, %c0_49] : memref<288x256xf32, #tpu.memory_space<vmem>>, vector<288x256xf32>
    %c0_50 = arith.constant 0 : index
    %c0_51 = arith.constant 0 : index
    %86 = vector.load %arg2[%c0_50, %c0_51] : memref<256x8xf32, #tpu.memory_space<vmem>>, vector<256x8xf32>
    %cst_52 = arith.constant dense<0.000000e+00> : vector<288x8xf32>
    %87 = tpu.matmul %85, %86, %cst_52 {dimension_numbers = #tpu.dot_dimension_numbers<[1], [0], [0], [1], [0, 0, 1, 1], [], []>} : vector<288x256xf32>, vector<256x8xf32>, vector<288x8xf32> -> vector<288x8xf32>
    %c0_53 = arith.constant 0 : index
    %c0_54 = arith.constant 0 : index
    %88 = vector.load %arg3[%c0_53, %c0_54] : memref<1x8xf32, #tpu.memory_space<vmem>>, vector<1x8xf32>
    %89 = vector.broadcast %88 : vector<1x8xf32> to vector<288x8xf32>
    %90 = arith.addf %87, %89 : vector<288x8xf32>
    %91 = tpu.iota {dimensions = array<i32: 0>} : vector<288x1xi32>
    %92 = arith.sitofp %91 : vector<288x1xi32> to vector<288x1xf32>
    %cst_55 = arith.constant 5.000000e-01 : f32
    %93 = vector.broadcast %cst_55 : f32 to vector<288x1xf32>
    %94 = arith.addf %92, %93 : vector<288x1xf32>
    %cst_56 = arith.constant 0.0069444445 : f32
    %95 = vector.broadcast %cst_56 : f32 to vector<288x1xf32>
    %96 = arith.mulf %94, %95 : vector<288x1xf32>
    %97 = math.floor %96 : vector<288x1xf32>
    %cst_57 = arith.constant 1.440000e+02 : f32
    %98 = vector.broadcast %cst_57 : f32 to vector<288x1xf32>
    %99 = arith.mulf %98, %97 : vector<288x1xf32>
    %100 = arith.subf %92, %99 : vector<288x1xf32>
    %cst_58 = arith.constant 5.000000e-01 : f32
    %101 = vector.broadcast %cst_58 : f32 to vector<288x1xf32>
    %102 = arith.addf %100, %101 : vector<288x1xf32>
    %cst_59 = arith.constant 0.0833333358 : f32
    %103 = vector.broadcast %cst_59 : f32 to vector<288x1xf32>
    %104 = arith.mulf %102, %103 : vector<288x1xf32>
    %105 = math.floor %104 : vector<288x1xf32>
    %cst_60 = arith.constant 1.200000e+01 : f32
    %106 = vector.broadcast %cst_60 : f32 to vector<288x1xf32>
    %107 = arith.mulf %106, %105 : vector<288x1xf32>
    %108 = arith.subf %100, %107 : vector<288x1xf32>
    %cst_61 = arith.constant 8.500000e+00 : f32
    %109 = vector.broadcast %cst_61 : f32 to vector<288x1xf32>
    %110 = arith.cmpf olt, %105, %109 : vector<288x1xf32>
    %cst_62 = arith.constant 8.500000e+00 : f32
    %111 = vector.broadcast %cst_62 : f32 to vector<288x1xf32>
    %112 = arith.cmpf olt, %108, %111 : vector<288x1xf32>
    %113 = arith.andi %110, %112 : vector<288x1xi1>
    %cst_63 = arith.constant 1.000000e+00 : f32
    %cst_64 = arith.constant 0.000000e+00 : f32
    %114 = vector.broadcast %cst_63 : f32 to vector<288x1xf32>
    %115 = vector.broadcast %cst_64 : f32 to vector<288x1xf32>
    %116 = arith.select %113, %114, %115 : vector<288x1xi1>, vector<288x1xf32>
    %117 = vector.broadcast %116 : vector<288x1xf32> to vector<288x8xf32>
    %118 = arith.mulf %90, %117 : vector<288x8xf32>
    %cst_65 = arith.constant dense<0.000000e+00> : vector<8xf32>
    %119 = vector.multi_reduction <add>, %118, %cst_65 [0] : vector<288x8xf32> to vector<8xf32>
    %120 = vector.shape_cast %119 : vector<8xf32> to vector<1x8xf32>
    %cst_66 = arith.constant 0.00617283955 : f32
    %121 = vector.broadcast %cst_66 : f32 to vector<1x8xf32>
    %122 = arith.mulf %120, %121 : vector<1x8xf32>
    %123 = arith.mulf %118, %90 : vector<288x8xf32>
    %cst_67 = arith.constant dense<0.000000e+00> : vector<8xf32>
    %124 = vector.multi_reduction <add>, %123, %cst_67 [0] : vector<288x8xf32> to vector<8xf32>
    %125 = vector.shape_cast %124 : vector<8xf32> to vector<1x8xf32>
    %cst_68 = arith.constant 0.00617283955 : f32
    %126 = vector.broadcast %cst_68 : f32 to vector<1x8xf32>
    %127 = arith.mulf %125, %126 : vector<1x8xf32>
    %128 = arith.mulf %122, %122 : vector<1x8xf32>
    %129 = arith.subf %127, %128 : vector<1x8xf32>
    %130 = vector.broadcast %122 : vector<1x8xf32> to vector<288x8xf32>
    %131 = arith.subf %90, %130 : vector<288x8xf32>
    %cst_69 = arith.constant 9.99999974E-5 : f32
    %132 = vector.broadcast %cst_69 : f32 to vector<1x8xf32>
    %133 = arith.addf %129, %132 : vector<1x8xf32>
    %134 = math.rsqrt %133 : vector<1x8xf32>
    %135 = vector.broadcast %134 : vector<1x8xf32> to vector<288x8xf32>
    %136 = arith.mulf %131, %135 : vector<288x8xf32>
    %cst_70 = arith.constant 0.000000e+00 : f32
    %137 = vector.broadcast %cst_70 : f32 to vector<288x8xf32>
    %138 = arith.cmpf oge, %136, %137 : vector<288x8xf32>
    %cst_71 = arith.constant 0.00999999977 : f32
    %139 = vector.broadcast %cst_71 : f32 to vector<288x8xf32>
    %140 = arith.mulf %139, %136 : vector<288x8xf32>
    %141 = arith.select %138, %136, %140 : vector<288x8xi1>, vector<288x8xf32>
    %c0_72 = arith.constant 0 : index
    %c0_73 = arith.constant 0 : index
    %142 = vector.load %arg9[%c0_72, %c0_73] : memref<288x8xf32, #tpu.memory_space<vmem>>, vector<288x8xf32>
    tpu.vector_store %arg9[%c0_72, %c0_73], %141 {strides = array<i32>} : memref<288x8xf32, #tpu.memory_space<vmem>>, vector<288x8xf32>,
    %c0_74 = arith.constant 0 : index
    %c0_75 = arith.constant 0 : index
    %143 = tpu.strided_load %arg9[%c0_74, %c0_75] {strides = array<i32: 144, 1>} : memref<288x8xf32, #tpu.memory_space<vmem>>, vector<2x8xf32>
    %c1_76 = arith.constant 1 : index
    %c0_77 = arith.constant 0 : index
    %144 = tpu.strided_load %arg9[%c1_76, %c0_77] {strides = array<i32: 144, 1>} : memref<288x8xf32, #tpu.memory_space<vmem>>, vector<2x8xf32>
    %c12_78 = arith.constant 12 : index
    %c0_79 = arith.constant 0 : index
    %145 = tpu.strided_load %arg9[%c12_78, %c0_79] {strides = array<i32: 144, 1>} : memref<288x8xf32, #tpu.memory_space<vmem>>, vector<2x8xf32>
    %c13_80 = arith.constant 13 : index
    %c0_81 = arith.constant 0 : index
    %146 = tpu.strided_load %arg9[%c13_80, %c0_81] {strides = array<i32: 144, 1>} : memref<288x8xf32, #tpu.memory_space<vmem>>, vector<2x8xf32>
    %147 = arith.maximumf %143, %144 : vector<2x8xf32>
    %148 = arith.maximumf %145, %146 : vector<2x8xf32>
    %149 = arith.maximumf %147, %148 : vector<2x8xf32>
    %c2_82 = arith.constant 2 : index
    %c0_83 = arith.constant 0 : index
    %150 = tpu.strided_load %arg9[%c2_82, %c0_83] {strides = array<i32: 144, 1>} : memref<288x8xf32, #tpu.memory_space<vmem>>, vector<2x8xf32>
    %c3_84 = arith.constant 3 : index
    %c0_85 = arith.constant 0 : index
    %151 = tpu.strided_load %arg9[%c3_84, %c0_85] {strides = array<i32: 144, 1>} : memref<288x8xf32, #tpu.memory_space<vmem>>, vector<2x8xf32>
    %c14_86 = arith.constant 14 : index
    %c0_87 = arith.constant 0 : index
    %152 = tpu.strided_load %arg9[%c14_86, %c0_87] {strides = array<i32: 144, 1>} : memref<288x8xf32, #tpu.memory_space<vmem>>, vector<2x8xf32>
    %c15_88 = arith.constant 15 : index
    %c0_89 = arith.constant 0 : index
    %153 = tpu.strided_load %arg9[%c15_88, %c0_89] {strides = array<i32: 144, 1>} : memref<288x8xf32, #tpu.memory_space<vmem>>, vector<2x8xf32>
    %154 = arith.maximumf %150, %151 : vector<2x8xf32>
    %155 = arith.maximumf %152, %153 : vector<2x8xf32>
    %156 = arith.maximumf %154, %155 : vector<2x8xf32>
    %c4 = arith.constant 4 : index
    %c0_90 = arith.constant 0 : index
    %157 = tpu.strided_load %arg9[%c4, %c0_90] {strides = array<i32: 144, 1>} : memref<288x8xf32, #tpu.memory_space<vmem>>, vector<2x8xf32>
    %c5 = arith.constant 5 : index
    %c0_91 = arith.constant 0 : index
    %158 = tpu.strided_load %arg9[%c5, %c0_91] {strides = array<i32: 144, 1>} : memref<288x8xf32, #tpu.memory_space<vmem>>, vector<2x8xf32>
    %c16_92 = arith.constant 16 : index
    %c0_93 = arith.constant 0 : index
    %159 = tpu.strided_load %arg9[%c16_92, %c0_93] {strides = array<i32: 144, 1>} : memref<288x8xf32, #tpu.memory_space<vmem>>, vector<2x8xf32>
    %c17 = arith.constant 17 : index
    %c0_94 = arith.constant 0 : index
    %160 = tpu.strided_load %arg9[%c17, %c0_94] {strides = array<i32: 144, 1>} : memref<288x8xf32, #tpu.memory_space<vmem>>, vector<2x8xf32>
    %161 = arith.maximumf %157, %158 : vector<2x8xf32>
    %162 = arith.maximumf %159, %160 : vector<2x8xf32>
    %163 = arith.maximumf %161, %162 : vector<2x8xf32>
    %c6 = arith.constant 6 : index
    %c0_95 = arith.constant 0 : index
    %164 = tpu.strided_load %arg9[%c6, %c0_95] {strides = array<i32: 144, 1>} : memref<288x8xf32, #tpu.memory_space<vmem>>, vector<2x8xf32>
    %c7 = arith.constant 7 : index
    %c0_96 = arith.constant 0 : index
    %165 = tpu.strided_load %arg9[%c7, %c0_96] {strides = array<i32: 144, 1>} : memref<288x8xf32, #tpu.memory_space<vmem>>, vector<2x8xf32>
    %c18 = arith.constant 18 : index
    %c0_97 = arith.constant 0 : index
    %166 = tpu.strided_load %arg9[%c18, %c0_97] {strides = array<i32: 144, 1>} : memref<288x8xf32, #tpu.memory_space<vmem>>, vector<2x8xf32>
    %c19 = arith.constant 19 : index
    %c0_98 = arith.constant 0 : index
    %167 = tpu.strided_load %arg9[%c19, %c0_98] {strides = array<i32: 144, 1>} : memref<288x8xf32, #tpu.memory_space<vmem>>, vector<2x8xf32>
    %168 = arith.maximumf %164, %165 : vector<2x8xf32>
    %169 = arith.maximumf %166, %167 : vector<2x8xf32>
    %170 = arith.maximumf %168, %169 : vector<2x8xf32>
    %c24_99 = arith.constant 24 : index
    %c0_100 = arith.constant 0 : index
    %171 = tpu.strided_load %arg9[%c24_99, %c0_100] {strides = array<i32: 144, 1>} : memref<288x8xf32, #tpu.memory_space<vmem>>, vector<2x8xf32>
    %c25_101 = arith.constant 25 : index
    %c0_102 = arith.constant 0 : index
    %172 = tpu.strided_load %arg9[%c25_101, %c0_102] {strides = array<i32: 144, 1>} : memref<288x8xf32, #tpu.memory_space<vmem>>, vector<2x8xf32>
    %c36_103 = arith.constant 36 : index
    %c0_104 = arith.constant 0 : index
    %173 = tpu.strided_load %arg9[%c36_103, %c0_104] {strides = array<i32: 144, 1>} : memref<288x8xf32, #tpu.memory_space<vmem>>, vector<2x8xf32>
    %c37_105 = arith.constant 37 : index
    %c0_106 = arith.constant 0 : index
    %174 = tpu.strided_load %arg9[%c37_105, %c0_106] {strides = array<i32: 144, 1>} : memref<288x8xf32, #tpu.memory_space<vmem>>, vector<2x8xf32>
    %175 = arith.maximumf %171, %172 : vector<2x8xf32>
    %176 = arith.maximumf %173, %174 : vector<2x8xf32>
    %177 = arith.maximumf %175, %176 : vector<2x8xf32>
    %c26_107 = arith.constant 26 : index
    %c0_108 = arith.constant 0 : index
    %178 = tpu.strided_load %arg9[%c26_107, %c0_108] {strides = array<i32: 144, 1>} : memref<288x8xf32, #tpu.memory_space<vmem>>, vector<2x8xf32>
    %c27_109 = arith.constant 27 : index
    %c0_110 = arith.constant 0 : index
    %179 = tpu.strided_load %arg9[%c27_109, %c0_110] {strides = array<i32: 144, 1>} : memref<288x8xf32, #tpu.memory_space<vmem>>, vector<2x8xf32>
    %c38_111 = arith.constant 38 : index
    %c0_112 = arith.constant 0 : index
    %180 = tpu.strided_load %arg9[%c38_111, %c0_112] {strides = array<i32: 144, 1>} : memref<288x8xf32, #tpu.memory_space<vmem>>, vector<2x8xf32>
    %c39_113 = arith.constant 39 : index
    %c0_114 = arith.constant 0 : index
    %181 = tpu.strided_load %arg9[%c39_113, %c0_114] {strides = array<i32: 144, 1>} : memref<288x8xf32, #tpu.memory_space<vmem>>, vector<2x8xf32>
    %182 = arith.maximumf %178, %179 : vector<2x8xf32>
    %183 = arith.maximumf %180, %181 : vector<2x8xf32>
    %184 = arith.maximumf %182, %183 : vector<2x8xf32>
    %c28 = arith.constant 28 : index
    %c0_115 = arith.constant 0 : index
    %185 = tpu.strided_load %arg9[%c28, %c0_115] {strides = array<i32: 144, 1>} : memref<288x8xf32, #tpu.memory_space<vmem>>, vector<2x8xf32>
    %c29 = arith.constant 29 : index
    %c0_116 = arith.constant 0 : index
    %186 = tpu.strided_load %arg9[%c29, %c0_116] {strides = array<i32: 144, 1>} : memref<288x8xf32, #tpu.memory_space<vmem>>, vector<2x8xf32>
    %c40 = arith.constant 40 : index
    %c0_117 = arith.constant 0 : index
    %187 = tpu.strided_load %arg9[%c40, %c0_117] {strides = array<i32: 144, 1>} : memref<288x8xf32, #tpu.memory_space<vmem>>, vector<2x8xf32>
    %c41 = arith.constant 41 : index
    %c0_118 = arith.constant 0 : index
    %188 = tpu.strided_load %arg9[%c41, %c0_118] {strides = array<i32: 144, 1>} : memref<288x8xf32, #tpu.memory_space<vmem>>, vector<2x8xf32>
    %189 = arith.maximumf %185, %186 : vector<2x8xf32>
    %190 = arith.maximumf %187, %188 : vector<2x8xf32>
    %191 = arith.maximumf %189, %190 : vector<2x8xf32>
    %c30 = arith.constant 30 : index
    %c0_119 = arith.constant 0 : index
    %192 = tpu.strided_load %arg9[%c30, %c0_119] {strides = array<i32: 144, 1>} : memref<288x8xf32, #tpu.memory_space<vmem>>, vector<2x8xf32>
    %c31 = arith.constant 31 : index
    %c0_120 = arith.constant 0 : index
    %193 = tpu.strided_load %arg9[%c31, %c0_120] {strides = array<i32: 144, 1>} : memref<288x8xf32, #tpu.memory_space<vmem>>, vector<2x8xf32>
    %c42 = arith.constant 42 : index
    %c0_121 = arith.constant 0 : index
    %194 = tpu.strided_load %arg9[%c42, %c0_121] {strides = array<i32: 144, 1>} : memref<288x8xf32, #tpu.memory_space<vmem>>, vector<2x8xf32>
    %c43 = arith.constant 43 : index
    %c0_122 = arith.constant 0 : index
    %195 = tpu.strided_load %arg9[%c43, %c0_122] {strides = array<i32: 144, 1>} : memref<288x8xf32, #tpu.memory_space<vmem>>, vector<2x8xf32>
    %196 = arith.maximumf %192, %193 : vector<2x8xf32>
    %197 = arith.maximumf %194, %195 : vector<2x8xf32>
    %198 = arith.maximumf %196, %197 : vector<2x8xf32>
    %c48_123 = arith.constant 48 : index
    %c0_124 = arith.constant 0 : index
    %199 = tpu.strided_load %arg9[%c48_123, %c0_124] {strides = array<i32: 144, 1>} : memref<288x8xf32, #tpu.memory_space<vmem>>, vector<2x8xf32>
    %c49 = arith.constant 49 : index
    %c0_125 = arith.constant 0 : index
    %200 = tpu.strided_load %arg9[%c49, %c0_125] {strides = array<i32: 144, 1>} : memref<288x8xf32, #tpu.memory_space<vmem>>, vector<2x8xf32>
    %c60 = arith.constant 60 : index
    %c0_126 = arith.constant 0 : index
    %201 = tpu.strided_load %arg9[%c60, %c0_126] {strides = array<i32: 144, 1>} : memref<288x8xf32, #tpu.memory_space<vmem>>, vector<2x8xf32>
    %c61 = arith.constant 61 : index
    %c0_127 = arith.constant 0 : index
    %202 = tpu.strided_load %arg9[%c61, %c0_127] {strides = array<i32: 144, 1>} : memref<288x8xf32, #tpu.memory_space<vmem>>, vector<2x8xf32>
    %203 = arith.maximumf %199, %200 : vector<2x8xf32>
    %204 = arith.maximumf %201, %202 : vector<2x8xf32>
    %205 = arith.maximumf %203, %204 : vector<2x8xf32>
    %c50 = arith.constant 50 : index
    %c0_128 = arith.constant 0 : index
    %206 = tpu.strided_load %arg9[%c50, %c0_128] {strides = array<i32: 144, 1>} : memref<288x8xf32, #tpu.memory_space<vmem>>, vector<2x8xf32>
    %c51 = arith.constant 51 : index
    %c0_129 = arith.constant 0 : index
    %207 = tpu.strided_load %arg9[%c51, %c0_129] {strides = array<i32: 144, 1>} : memref<288x8xf32, #tpu.memory_space<vmem>>, vector<2x8xf32>
    %c62 = arith.constant 62 : index
    %c0_130 = arith.constant 0 : index
    %208 = tpu.strided_load %arg9[%c62, %c0_130] {strides = array<i32: 144, 1>} : memref<288x8xf32, #tpu.memory_space<vmem>>, vector<2x8xf32>
    %c63 = arith.constant 63 : index
    %c0_131 = arith.constant 0 : index
    %209 = tpu.strided_load %arg9[%c63, %c0_131] {strides = array<i32: 144, 1>} : memref<288x8xf32, #tpu.memory_space<vmem>>, vector<2x8xf32>
    %210 = arith.maximumf %206, %207 : vector<2x8xf32>
    %211 = arith.maximumf %208, %209 : vector<2x8xf32>
    %212 = arith.maximumf %210, %211 : vector<2x8xf32>
    %c52 = arith.constant 52 : index
    %c0_132 = arith.constant 0 : index
    %213 = tpu.strided_load %arg9[%c52, %c0_132] {strides = array<i32: 144, 1>} : memref<288x8xf32, #tpu.memory_space<vmem>>, vector<2x8xf32>
    %c53 = arith.constant 53 : index
    %c0_133 = arith.constant 0 : index
    %214 = tpu.strided_load %arg9[%c53, %c0_133] {strides = array<i32: 144, 1>} : memref<288x8xf32, #tpu.memory_space<vmem>>, vector<2x8xf32>
    %c64_134 = arith.constant 64 : index
    %c0_135 = arith.constant 0 : index
    %215 = tpu.strided_load %arg9[%c64_134, %c0_135] {strides = array<i32: 144, 1>} : memref<288x8xf32, #tpu.memory_space<vmem>>, vector<2x8xf32>
    %c65 = arith.constant 65 : index
    %c0_136 = arith.constant 0 : index
    %216 = tpu.strided_load %arg9[%c65, %c0_136] {strides = array<i32: 144, 1>} : memref<288x8xf32, #tpu.memory_space<vmem>>, vector<2x8xf32>
    %217 = arith.maximumf %213, %214 : vector<2x8xf32>
    %218 = arith.maximumf %215, %216 : vector<2x8xf32>
    %219 = arith.maximumf %217, %218 : vector<2x8xf32>
    %c54 = arith.constant 54 : index
    %c0_137 = arith.constant 0 : index
    %220 = tpu.strided_load %arg9[%c54, %c0_137] {strides = array<i32: 144, 1>} : memref<288x8xf32, #tpu.memory_space<vmem>>, vector<2x8xf32>
    %c55 = arith.constant 55 : index
    %c0_138 = arith.constant 0 : index
    %221 = tpu.strided_load %arg9[%c55, %c0_138] {strides = array<i32: 144, 1>} : memref<288x8xf32, #tpu.memory_space<vmem>>, vector<2x8xf32>
    %c66 = arith.constant 66 : index
    %c0_139 = arith.constant 0 : index
    %222 = tpu.strided_load %arg9[%c66, %c0_139] {strides = array<i32: 144, 1>} : memref<288x8xf32, #tpu.memory_space<vmem>>, vector<2x8xf32>
    %c67 = arith.constant 67 : index
    %c0_140 = arith.constant 0 : index
    %223 = tpu.strided_load %arg9[%c67, %c0_140] {strides = array<i32: 144, 1>} : memref<288x8xf32, #tpu.memory_space<vmem>>, vector<2x8xf32>
    %224 = arith.maximumf %220, %221 : vector<2x8xf32>
    %225 = arith.maximumf %222, %223 : vector<2x8xf32>
    %226 = arith.maximumf %224, %225 : vector<2x8xf32>
    %c72 = arith.constant 72 : index
    %c0_141 = arith.constant 0 : index
    %227 = tpu.strided_load %arg9[%c72, %c0_141] {strides = array<i32: 144, 1>} : memref<288x8xf32, #tpu.memory_space<vmem>>, vector<2x8xf32>
    %c73 = arith.constant 73 : index
    %c0_142 = arith.constant 0 : index
    %228 = tpu.strided_load %arg9[%c73, %c0_142] {strides = array<i32: 144, 1>} : memref<288x8xf32, #tpu.memory_space<vmem>>, vector<2x8xf32>
    %c84 = arith.constant 84 : index
    %c0_143 = arith.constant 0 : index
    %229 = tpu.strided_load %arg9[%c84, %c0_143] {strides = array<i32: 144, 1>} : memref<288x8xf32, #tpu.memory_space<vmem>>, vector<2x8xf32>
    %c85 = arith.constant 85 : index
    %c0_144 = arith.constant 0 : index
    %230 = tpu.strided_load %arg9[%c85, %c0_144] {strides = array<i32: 144, 1>} : memref<288x8xf32, #tpu.memory_space<vmem>>, vector<2x8xf32>
    %231 = arith.maximumf %227, %228 : vector<2x8xf32>
    %232 = arith.maximumf %229, %230 : vector<2x8xf32>
    %233 = arith.maximumf %231, %232 : vector<2x8xf32>
    %c74 = arith.constant 74 : index
    %c0_145 = arith.constant 0 : index
    %234 = tpu.strided_load %arg9[%c74, %c0_145] {strides = array<i32: 144, 1>} : memref<288x8xf32, #tpu.memory_space<vmem>>, vector<2x8xf32>
    %c75 = arith.constant 75 : index
    %c0_146 = arith.constant 0 : index
    %235 = tpu.strided_load %arg9[%c75, %c0_146] {strides = array<i32: 144, 1>} : memref<288x8xf32, #tpu.memory_space<vmem>>, vector<2x8xf32>
    %c86 = arith.constant 86 : index
    %c0_147 = arith.constant 0 : index
    %236 = tpu.strided_load %arg9[%c86, %c0_147] {strides = array<i32: 144, 1>} : memref<288x8xf32, #tpu.memory_space<vmem>>, vector<2x8xf32>
    %c87 = arith.constant 87 : index
    %c0_148 = arith.constant 0 : index
    %237 = tpu.strided_load %arg9[%c87, %c0_148] {strides = array<i32: 144, 1>} : memref<288x8xf32, #tpu.memory_space<vmem>>, vector<2x8xf32>
    %238 = arith.maximumf %234, %235 : vector<2x8xf32>
    %239 = arith.maximumf %236, %237 : vector<2x8xf32>
    %240 = arith.maximumf %238, %239 : vector<2x8xf32>
    %c76 = arith.constant 76 : index
    %c0_149 = arith.constant 0 : index
    %241 = tpu.strided_load %arg9[%c76, %c0_149] {strides = array<i32: 144, 1>} : memref<288x8xf32, #tpu.memory_space<vmem>>, vector<2x8xf32>
    %c77 = arith.constant 77 : index
    %c0_150 = arith.constant 0 : index
    %242 = tpu.strided_load %arg9[%c77, %c0_150] {strides = array<i32: 144, 1>} : memref<288x8xf32, #tpu.memory_space<vmem>>, vector<2x8xf32>
    %c88 = arith.constant 88 : index
    %c0_151 = arith.constant 0 : index
    %243 = tpu.strided_load %arg9[%c88, %c0_151] {strides = array<i32: 144, 1>} : memref<288x8xf32, #tpu.memory_space<vmem>>, vector<2x8xf32>
    %c89 = arith.constant 89 : index
    %c0_152 = arith.constant 0 : index
    %244 = tpu.strided_load %arg9[%c89, %c0_152] {strides = array<i32: 144, 1>} : memref<288x8xf32, #tpu.memory_space<vmem>>, vector<2x8xf32>
    %245 = arith.maximumf %241, %242 : vector<2x8xf32>
    %246 = arith.maximumf %243, %244 : vector<2x8xf32>
    %247 = arith.maximumf %245, %246 : vector<2x8xf32>
    %c78 = arith.constant 78 : index
    %c0_153 = arith.constant 0 : index
    %248 = tpu.strided_load %arg9[%c78, %c0_153] {strides = array<i32: 144, 1>} : memref<288x8xf32, #tpu.memory_space<vmem>>, vector<2x8xf32>
    %c79 = arith.constant 79 : index
    %c0_154 = arith.constant 0 : index
    %249 = tpu.strided_load %arg9[%c79, %c0_154] {strides = array<i32: 144, 1>} : memref<288x8xf32, #tpu.memory_space<vmem>>, vector<2x8xf32>
    %c90 = arith.constant 90 : index
    %c0_155 = arith.constant 0 : index
    %250 = tpu.strided_load %arg9[%c90, %c0_155] {strides = array<i32: 144, 1>} : memref<288x8xf32, #tpu.memory_space<vmem>>, vector<2x8xf32>
    %c91 = arith.constant 91 : index
    %c0_156 = arith.constant 0 : index
    %251 = tpu.strided_load %arg9[%c91, %c0_156] {strides = array<i32: 144, 1>} : memref<288x8xf32, #tpu.memory_space<vmem>>, vector<2x8xf32>
    %252 = arith.maximumf %248, %249 : vector<2x8xf32>
    %253 = arith.maximumf %250, %251 : vector<2x8xf32>
    %254 = arith.maximumf %252, %253 : vector<2x8xf32>
    %255 = tpu.concatenate %149, %156, %163, %170, %177, %184, %191, %198, %205, %212, %219, %226, %233, %240, %247, %254 in 1 : vector<2x8xf32>, vector<2x8xf32>, vector<2x8xf32>, vector<2x8xf32>, vector<2x8xf32>, vector<2x8xf32>, vector<2x8xf32>, vector<2x8xf32>, vector<2x8xf32>, vector<2x8xf32>, vector<2x8xf32>, vector<2x8xf32>, vector<2x8xf32>, vector<2x8xf32>, vector<2x8xf32>, vector<2x8xf32> -> vector<2x128xf32>
    %c0_157 = arith.constant 0 : index
    %c0_158 = arith.constant 0 : index
    %256 = vector.load %arg4[%c0_157, %c0_158] : memref<128x64xf32, #tpu.memory_space<vmem>>, vector<128x64xf32>
    %cst_159 = arith.constant dense<0.000000e+00> : vector<2x64xf32>
    %257 = tpu.matmul %255, %256, %cst_159 {dimension_numbers = #tpu.dot_dimension_numbers<[1], [0], [0], [1], [0, 0, 1, 1], [], []>} : vector<2x128xf32>, vector<128x64xf32>, vector<2x64xf32> -> vector<2x64xf32>
    %c0_160 = arith.constant 0 : index
    %c0_161 = arith.constant 0 : index
    %258 = vector.load %arg5[%c0_160, %c0_161] : memref<1x64xf32, #tpu.memory_space<vmem>>, vector<1x64xf32>
    %259 = vector.broadcast %258 : vector<1x64xf32> to vector<2x64xf32>
    %260 = arith.addf %257, %259 : vector<2x64xf32>
    %c0_162 = arith.constant 0 : index
    %c0_163 = arith.constant 0 : index
    %261 = vector.load %arg6[%c0_162, %c0_163] : memref<2x64xf32, #tpu.memory_space<vmem>>, vector<2x64xf32>
    tpu.vector_store %arg6[%c0_162, %c0_163], %260 {strides = array<i32>} : memref<2x64xf32, #tpu.memory_space<vmem>>, vector<2x64xf32>,
    return
  }
}

</mosaic_0001>

<bundles_post_ra>
// kernel: squeeze.4
= control target key start
LH: loop header
LB: loop body
LE: loop exit
PB: predicated region body
PF: predicated region fallthrough
CT: control target
= control target key end

     0   :  { %vm68_vm0 = vcmask 1047556   ;;  %vm70_vm1 = vcmask 203776   ;;  %vm89_vm2 = vcmask 408776   ;;  %s195_s0 = inlined_call_operand.vmem [shape: f32[2,1,25,16], index: 0, kind: input, shape index: {}]   ;;  %s196_s1 = inlined_call_operand.vmem [shape: f32[50,16], index: 1, kind: output, shape index: {}]  }
   0x1   :  { %v110_v0 = vld [vmem:[%s195_s0 + $0xe] sm:$0x3]  ;;  %v111_v1 = vld [vmem:[%s195_s0 + $0xc] sm:$0x3]  ;;  %v112_v2 = vld [vmem:[%s195_s0 + $0xa] sm:$0x3] }
   0x2   :  { %39 = vst [vmem:[#allocation0 + $0x38] sm:$0x3] %v110_v0  ;;  %v113_v3 = vld [vmem:[%s195_s0 + $0x8] sm:$0x3]  ;;  %v114_v4 = vld [vmem:[%s195_s0 + $0x6] sm:$0x3] }
   0x3   :  { %43 = vst [vmem:[#allocation0 + $0x30] sm:$0x3] %v111_v1  ;;  %v115_v5 = vld [vmem:[%s195_s0 + $0x4] sm:$0x3]  ;;  %v116_v6 = vld [vmem:[%s195_s0 + $0x2] sm:$0x3] }
   0x4   :  { %47 = vst [vmem:[#allocation0 + $0x28] sm:$0x3] %v112_v2  ;;  %v64_v7 = vld [vmem:[%s195_s0] sm:$0x3]  ;;  %v102_v8 = vld [vmem:[%s195_s0 + $0x1e] sm:$0x3] }
   0x5   :  { %51 = vst [vmem:[#allocation0 + $0x20] sm:$0x3] %v113_v3  ;;  %v103_v9 = vld [vmem:[%s195_s0 + $0x1c] sm:$0x3]  ;;  %v104_v10 = vld [vmem:[%s195_s0 + $0x1a] sm:$0x3] }
   0x6   :  { %55 = vst [vmem:[#allocation0 + $0x18] sm:$0x3] %v114_v4  ;;  %v105_v11 = vld [vmem:[%s195_s0 + $0x18] sm:$0x3]  ;;  %v106_v12 = vld [vmem:[%s195_s0 + $0x16] sm:$0x3] }
   0x7   :  { %59 = vst [vmem:[#allocation0 + $0x10] sm:$0x3] %v115_v5  ;;  %v107_v13 = vld [vmem:[%s195_s0 + $0x14] sm:$0x3]  ;;  %v108_v14 = vld [vmem:[%s195_s0 + $0x12] sm:$0x3] }
   0x8   :  { %63 = vst [vmem:[#allocation0 + $0x8] sm:$0x3] %v116_v6  ;;  %v109_v15 = vld [vmem:[%s195_s0 + $0x10] sm:$0x3]  ;;  %s120_s0 = smov 25  }
   0x9   :  { %65 = vst [vmem:[#allocation0] sm:$0x3] %v64_v7 }
   0xa   :  { %7 = vst [vmem:[#allocation0 + $0x78] sm:$0x3] %v102_v8 }
   0xb   :  { %11 = vst [vmem:[#allocation0 + $0x70] sm:$0x3] %v103_v9 }
   0xc   :  { %15 = vst [vmem:[#allocation0 + $0x68] sm:$0x3] %v104_v10  ;;  %v84_v16 = vld [vmem:[#allocation0 + $0x1] ss:$8 sm:$0xf0]  }
   0xd   :  { %19 = vst [vmem:[#allocation0 + $0x60] sm:$0x3] %v105_v11  ;;  %v67_v23 = vld [vmem:[#allocation0] ss:$8 sm:$0xf0]  }
   0xe   :  { %23 = vst [vmem:[#allocation0 + $0x58] sm:$0x3] %v106_v12 }
   0xf   :  { %27 = vst [vmem:[#allocation0 + $0x50] sm:$0x3] %v107_v13 }
  0x10   :  { %v82_v17 = vld [vmem:[#allocation0 + $0x1] ss:$8 sm:$0xf]   ;;  %31 = vst [vmem:[#allocation0 + $0x48] sm:$0x3] %v108_v14 }
  0x11   :  { %v86_v18 = vsel %vm68_vm0, %v84_v16, %v82_v17  ;;  %35 = vst [vmem:[#allocation0 + $0x40] sm:$0x3] %v109_v15  ;;  %v66_v22 = vld [vmem:[#allocation0] ss:$8 sm:$0xf]  }
  0x12   :  { %87 = vrot.lane.b32.xlu0 %v86_v18, %s120_s0  ;;  %v69_v24 = vsel %vm68_vm0, %v67_v23, %v66_v22 }
  0x13   :  { %71 = vst.msk [vmem:[%s196_s1] sm:$0xff] %vm70_vm1, %v69_v24  }
  0x14   :  { %v94_v19 = vld [vmem:[#allocation0 + $0x41] ss:$8 sm:$0xf0]   ;;  %v75_v26 = vld [vmem:[#allocation0 + $0x40] ss:$8 sm:$0xf0]  }
  0x18   :  { %v92_v20 = vld [vmem:[#allocation0 + $0x41] ss:$8 sm:$0xf]   ;;  %v73_v25 = vld [vmem:[#allocation0 + $0x40] ss:$8 sm:$0xf]  }
  0x19   :  { %v96_v21 = vsel %vm68_vm0, %v94_v19, %v92_v20  ;;  %v77_v27 = vsel %vm68_vm0, %v75_v26, %v73_v25 }
  0x1a   :  { %97 = vrot.lane.b32.xlu0 %v96_v21, %s120_s0  ;;  %117 = vst.msk [vmem:[%s196_s1 + $0x8] sm:$0xff] %vm70_vm1, %v77_v27  }
  0x84   :  { %v88_v28 = vpop.permute.xlu0 %87  }
  0x85   :  { %90 = vst.msk [vmem:[%s196_s1] sm:$0xff] %vm89_vm2, %v88_v28  }
  0x8c   :  { %v98_v29 = vpop.permute.xlu0 %97  }
  0x8d   :  { %118 = vst.msk [vmem:[%s196_s1 + $0x8] sm:$0xff] %vm89_vm2, %v98_v29  }

// kernel: squeeze.5
= control target key start
LH: loop header
LB: loop body
LE: loop exit
PB: predicated region body
PF: predicated region fallthrough
CT: control target
= control target key end

     0   :  { %vm68_vm0 = vcmask 1047556   ;;  %vm70_vm1 = vcmask 195584   ;;  %vm89_vm2 = vcmask 392384   ;;  %s195_s0 = inlined_call_operand.vmem [shape: f32[2,24,1,16], index: 0, kind: input, shape index: {}]   ;;  %s196_s1 = inlined_call_operand.vmem [shape: f32[48,16], index: 1, kind: output, shape index: {}]  }
   0x1   :  { %v110_v0 = vld [vmem:[%s195_s0 + $0xe] sm:$0x3]  ;;  %v111_v1 = vld [vmem:[%s195_s0 + $0xc] sm:$0x3]  ;;  %v112_v2 = vld [vmem:[%s195_s0 + $0xa] sm:$0x3] }
   0x2   :  { %39 = vst [vmem:[#allocation0 + $0x38] sm:$0x3] %v110_v0  ;;  %v113_v3 = vld [vmem:[%s195_s0 + $0x8] sm:$0x3]  ;;  %v114_v4 = vld [vmem:[%s195_s0 + $0x6] sm:$0x3] }
   0x3   :  { %43 = vst [vmem:[#allocation0 + $0x30] sm:$0x3] %v111_v1  ;;  %v115_v5 = vld [vmem:[%s195_s0 + $0x4] sm:$0x3]  ;;  %v116_v6 = vld [vmem:[%s195_s0 + $0x2] sm:$0x3] }
   0x4   :  { %47 = vst [vmem:[#allocation0 + $0x28] sm:$0x3] %v112_v2  ;;  %v64_v7 = vld [vmem:[%s195_s0] sm:$0x3]  ;;  %v102_v8 = vld [vmem:[%s195_s0 + $0x1e] sm:$0x3] }
   0x5   :  { %51 = vst [vmem:[#allocation0 + $0x20] sm:$0x3] %v113_v3  ;;  %v103_v9 = vld [vmem:[%s195_s0 + $0x1c] sm:$0x3]  ;;  %v104_v10 = vld [vmem:[%s195_s0 + $0x1a] sm:$0x3] }
   0x6   :  { %55 = vst [vmem:[#allocation0 + $0x18] sm:$0x3] %v114_v4  ;;  %v105_v11 = vld [vmem:[%s195_s0 + $0x18] sm:$0x3]  ;;  %v106_v12 = vld [vmem:[%s195_s0 + $0x16] sm:$0x3] }
   0x7   :  { %59 = vst [vmem:[#allocation0 + $0x10] sm:$0x3] %v115_v5  ;;  %v107_v13 = vld [vmem:[%s195_s0 + $0x14] sm:$0x3]  ;;  %v108_v14 = vld [vmem:[%s195_s0 + $0x12] sm:$0x3] }
   0x8   :  { %63 = vst [vmem:[#allocation0 + $0x8] sm:$0x3] %v116_v6  ;;  %v109_v15 = vld [vmem:[%s195_s0 + $0x10] sm:$0x3]  ;;  %s120_s0 = smov 24  }
   0x9   :  { %65 = vst [vmem:[#allocation0] sm:$0x3] %v64_v7 }
   0xa   :  { %7 = vst [vmem:[#allocation0 + $0x78] sm:$0x3] %v102_v8 }
   0xb   :  { %11 = vst [vmem:[#allocation0 + $0x70] sm:$0x3] %v103_v9 }
   0xc   :  { %15 = vst [vmem:[#allocation0 + $0x68] sm:$0x3] %v104_v10  ;;  %v84_v16 = vld [vmem:[#allocation0 + $0x1] ss:$8 sm:$0xf0]  }
   0xd   :  { %19 = vst [vmem:[#allocation0 + $0x60] sm:$0x3] %v105_v11  ;;  %v67_v23 = vld [vmem:[#allocation0] ss:$8 sm:$0xf0]  }
   0xe   :  { %23 = vst [vmem:[#allocation0 + $0x58] sm:$0x3] %v106_v12 }
   0xf   :  { %27 = vst [vmem:[#allocation0 + $0x50] sm:$0x3] %v107_v13 }
  0x10   :  { %v82_v17 = vld [vmem:[#allocation0 + $0x1] ss:$8 sm:$0xf]   ;;  %31 = vst [vmem:[#allocation0 + $0x48] sm:$0x3] %v108_v14 }
  0x11   :  { %v86_v18 = vsel %vm68_vm0, %v84_v16, %v82_v17  ;;  %35 = vst [vmem:[#allocation0 + $0x40] sm:$0x3] %v109_v15  ;;  %v66_v22 = vld [vmem:[#allocation0] ss:$8 sm:$0xf]  }
  0x12   :  { %87 = vrot.lane.b32.xlu0 %v86_v18, %s120_s0  ;;  %v69_v24 = vsel %vm68_vm0, %v67_v23, %v66_v22 }
  0x13   :  { %71 = vst.msk [vmem:[%s196_s1] sm:$0xff] %vm70_vm1, %v69_v24  }
  0x14   :  { %v94_v19 = vld [vmem:[#allocation0 + $0x41] ss:$8 sm:$0xf0]   ;;  %v75_v26 = vld [vmem:[#allocation0 + $0x40] ss:$8 sm:$0xf0]  }
  0x18   :  { %v92_v20 = vld [vmem:[#allocation0 + $0x41] ss:$8 sm:$0xf]   ;;  %v73_v25 = vld [vmem:[#allocation0 + $0x40] ss:$8 sm:$0xf]  }
  0x19   :  { %v96_v21 = vsel %vm68_vm0, %v94_v19, %v92_v20  ;;  %v77_v27 = vsel %vm68_vm0, %v75_v26, %v73_v25 }
  0x1a   :  { %97 = vrot.lane.b32.xlu0 %v96_v21, %s120_s0  ;;  %117 = vst.msk [vmem:[%s196_s1 + $0x8] sm:$0xff] %vm70_vm1, %v77_v27  }
  0x84   :  { %v88_v28 = vpop.permute.xlu0 %87  }
  0x85   :  { %90 = vst.msk [vmem:[%s196_s1] sm:$0xff] %vm89_vm2, %v88_v28  }
  0x8c   :  { %v98_v29 = vpop.permute.xlu0 %97  }
  0x8d   :  { %118 = vst.msk [vmem:[%s196_s1 + $0x8] sm:$0xff] %vm89_vm2, %v98_v29  }

// kernel: mnist_encoder_simple.1
= control target key start
LH: loop header
LB: loop body
LE: loop exit
PB: predicated region body
PF: predicated region fallthrough
CT: control target
= control target key end

     0   :  { %vm194_vm0 = vcmask 1043456   ;;  %s10220_s0 = inlined_call_operand.vmem [shape: f32[320,68], index: 0, kind: input, shape index: {}]   ;;  %s10221_s1 = inlined_call_operand.vmem [shape: f32[68,64], index: 1, kind: input, shape index: {}]   ;;  %s10222_s2 = inlined_call_operand.vmem [shape: f32[256,8], index: 2, kind: input, shape index: {}]   ;;  %s10223_s3 = inlined_call_operand.vmem [shape: f32[1,8], index: 3, kind: input, shape index: {}]   ;;  %s10224_s4 = inlined_call_operand.vmem [shape: f32[128,64], index: 4, kind: input, shape index: {}]   ;;  %s10225_s5 = inlined_call_operand.vmem [shape: f32[1,64], index: 5, kind: input, shape index: {}]   ;;  %s10226_s6 = inlined_call_operand.hbm [shape: f32[2,64], index: 6, kind: output, shape index: {}]  }
   0x1   :  { %v72_v0 = vld [vmem:[%s10221_s1 + $0x40] sm:$0xf]  ;;  %v71_v1 = vld [vmem:[%s10221_s1 + $0x38] sm:$0xff]  ;;  %v70_v2 = vld [vmem:[%s10221_s1 + $0x30] sm:$0xff] }
   0x2   :  { %6085 = vmatpush.msk.msra.mxu0 %vm194_vm0, %v72_v0  ;;  %6126 = vmatpush.msk.msra.mxu3 %vm194_vm0, %v72_v0  ;;  %v69_v3 = vld [vmem:[%s10221_s1 + $0x28] sm:$0xff] }
   0x4   :  { %206 = vmatpush.msra.mxu0 %v71_v1  ;;  %6127 = vmatpush.msra.mxu3 %v71_v1 }
   0x6   :  { %207 = vmatpush.msra.mxu0 %v70_v2  ;;  %6128 = vmatpush.msra.mxu3 %v70_v2 }
   0x7   :  { %11 = vsyncpa [#allocation6], 0  ;;  %v68_v4 = vld [vmem:[%s10221_s1 + $0x20] sm:$0xff]  ;;  %v67_v5 = vld [vmem:[%s10221_s1 + $0x18] sm:$0xff]  ;;  %vm73_vm1 = vcmask 556032   ;;  %vm10229_vm2 = vcmask 523264  }
   0x8   :  { %208 = vmatpush.msra.mxu0 %v69_v3  ;;  %6129 = vmatpush.msra.mxu3 %v69_v3  ;;  %v66_v6 = vld [vmem:[%s10221_s1 + $0x10] sm:$0xff]  ;;  %v65_v7 = vld [vmem:[%s10221_s1 + $0x8] sm:$0xff]  ;;  %v64_v8 = vld [vmem:[%s10221_s1] sm:$0xff]  ;;  %vm597_vm3 = vcmask 130048   ;;  %s6220_s20 = smov 80   ;;  %s6221_s1 = smov 96  }
   0x9   :  { %v24_v9 = vld [vmem:[%s10220_s0] sm:$0xff]  ;;  %v25_v10 = vld [vmem:[%s10220_s0 + $0x8] sm:$0xff]  ;;  %v26_v11 = vld [vmem:[%s10220_s0 + $0x10] sm:$0xff]  ;;  %s6222_s21 = smov 112   ;;  %s6223_s22 = smov 48   ;;  %vm599_vm7 = vcmask 261120  }
   0xa   :  { %209 = vmatpush.msra.mxu0 %v68_v4  ;;  %6130 = vmatpush.msra.mxu3 %v68_v4  ;;  %v27_v12 = vld [vmem:[%s10220_s0 + $0x18] sm:$0xff]  ;;  %v28_v13 = vld [vmem:[%s10220_s0 + $0x20] sm:$0xff]  ;;  %v29_v14 = vld [vmem:[%s10220_s0 + $0x28] sm:$0xff]  ;;  %s6224_s23 = smov 32   ;;  %s6225_s24 = smov 16   ;;  %vm601_vm8 = vcmask 392192  }
   0xb   :  { %v30_v15 = vld [vmem:[%s10220_s0 + $0x30] sm:$0xff]  ;;  %v31_v16 = vld [vmem:[%s10220_s0 + $0x38] sm:$0xff]  ;;  %v32_v17 = vld [vmem:[%s10220_s0 + $0x40] sm:$0xff]  ;;  %s6227_s13 = smov 8   ;;  %s6230_s17 = smov 56  }
   0xc   :  { %210 = vmatpush.msra.mxu0 %v67_v5  ;;  %6131 = vmatpush.msra.mxu3 %v67_v5  ;;  %v33_v18 = vld [vmem:[%s10220_s0 + $0x48] sm:$0xff]  ;;  %v34_v19 = vld [vmem:[%s10220_s0 + $0x50] sm:$0xff]  ;;  %v35_v20 = vld [vmem:[%s10220_s0 + $0x58] sm:$0xff]  ;;  %s6233_s18 = smov 104   ;;  %s6234_s25 = smov [#allocation5]  }
   0xd   :  { %v36_v21 = vld [vmem:[%s10220_s0 + $0x60] sm:$0xff]  ;;  %v37_v22 = vld [vmem:[%s10220_s0 + $0x68] sm:$0xff]  ;;  %v38_v23 = vld [vmem:[%s10220_s0 + $0x70] sm:$0xff]  ;;  %s6076_s28 = sshll.u32 %s10226_s6, 4  ;;  %s6077_s28 = int_to_ptr.hbm [resolvable:$true] %s6076_s28 }
   0xe   :  { %211 = vmatpush.msra.mxu0 %v66_v6  ;;  %6132 = vmatpush.msra.mxu3 %v66_v6  ;;  %v39_v24 = vld [vmem:[%s10220_s0 + $0x78] sm:$0xff]  ;;  %v40_v26 = vld [vmem:[%s10220_s0 + $0x80] sm:$0xff]  ;;  %v41_v28 = vld [vmem:[%s10220_s0 + $0x88] sm:$0xff] }
   0xf   :  { %v42_v30 = vld [vmem:[%s10220_s0 + $0x90] sm:$0xff]  ;;  %v43_v33 = vld [vmem:[%s10220_s0 + $0x98] sm:$0xff]  ;;  %v44_v36 = vld [vmem:[%s10220_s0 + $0xa0] sm:$0xff] }
  0x10   :  { %212 = vmatpush.msra.mxu0 %v65_v7  ;;  %6133 = vmatpush.msra.mxu3 %v65_v7  ;;  %v54_v31 = vld [vmem:[%s10220_s0 + $0xf0] sm:$0xff]  ;;  %v55_v34 = vld [vmem:[%s10220_s0 + $0xf8] sm:$0xff]  ;;  %v56_v37 = vld [vmem:[%s10220_s0 + $0x100] sm:$0xff] }
  0x11   :  { %v45_v39 = vld [vmem:[%s10220_s0 + $0xa8] sm:$0xff]  ;;  %v46_v42 = vld [vmem:[%s10220_s0 + $0xb0] sm:$0xff]  ;;  %v47_v45 = vld [vmem:[%s10220_s0 + $0xb8] sm:$0xff] }
  0x12   :  { %213 = vmatpush.msra.mxu0 %v64_v8  ;;  %6134 = vmatpush.msra.mxu3 %v64_v8  ;;  %v57_v40 = vld [vmem:[%s10220_s0 + $0x108] sm:$0xff]  ;;  %v58_v43 = vld [vmem:[%s10220_s0 + $0x110] sm:$0xff]  ;;  %v59_v46 = vld [vmem:[%s10220_s0 + $0x118] sm:$0xff] }
  0x13   :  { %6086 = vmatmul.msk.f32.vlgmr.msra.gmra.mxu0 %vm73_vm1, %v24_v9  ;;  %6116 = vmatmul.msk.f32.vlgmr.msra.gmra.mxu3 %vm73_vm1, %v54_v31  ;;  %v48_v48 = vld [vmem:[%s10220_s0 + $0xc0] sm:$0xff]  ;;  %v49_v51 = vld [vmem:[%s10220_s0 + $0xc8] sm:$0xff]  ;;  %v50_v54 = vld [vmem:[%s10220_s0 + $0xd0] sm:$0xff] }
  0x14   :  { %v60_v49 = vld [vmem:[%s10220_s0 + $0x120] sm:$0xff]  ;;  %v61_v52 = vld [vmem:[%s10220_s0 + $0x128] sm:$0xff]  ;;  %v62_v55 = vld [vmem:[%s10220_s0 + $0x130] sm:$0xff] }
  0x15   :  { %v51_v57 = vld [vmem:[%s10220_s0 + $0xd8] sm:$0xff]  ;;  %v52_v60 = vld [vmem:[%s10220_s0 + $0xe0] sm:$0xff]  ;;  %v53_v62 = vld [vmem:[%s10220_s0 + $0xe8] sm:$0xff] }
  0x16   :  { %v63_v58 = vld [vmem:[%s10220_s0 + $0x138] sm:$0xff]  ;;  %s6219_s0 = smov 64  }
  0x1b   :  { %6087 = vmatmul.msk.f32.gmra.mxu0 %vm73_vm1, %v25_v10  ;;  %6117 = vmatmul.msk.f32.gmra.mxu3 %vm73_vm1, %v55_v34 }
  0x23   :  { %6088 = vmatmul.msk.f32.gmra.mxu0 %vm73_vm1, %v26_v11  ;;  %6118 = vmatmul.msk.f32.gmra.mxu3 %vm73_vm1, %v56_v37 }
  0x2b   :  { %6089 = vmatmul.msk.f32.gmra.mxu0 %vm73_vm1, %v27_v12  ;;  %6119 = vmatmul.msk.f32.gmra.mxu3 %vm73_vm1, %v57_v40 }
  0x33   :  { %6090 = vmatmul.msk.f32.gmra.mxu0 %vm73_vm1, %v28_v13  ;;  %6120 = vmatmul.msk.f32.gmra.mxu3 %vm73_vm1, %v58_v43 }
  0x3b   :  { %6091 = vmatmul.msk.f32.gmra.mxu0 %vm73_vm1, %v29_v14  ;;  %6121 = vmatmul.msk.f32.gmra.mxu3 %vm73_vm1, %v59_v46 }
  0x43   :  { %6092 = vmatmul.msk.f32.gmra.mxu0 %vm73_vm1, %v30_v15  ;;  %6122 = vmatmul.msk.f32.gmra.mxu3 %vm73_vm1, %v60_v49 }
  0x4b   :  { %6093 = vmatmul.msk.f32.gmra.mxu0 %vm73_vm1, %v31_v16  ;;  %6123 = vmatmul.msk.f32.gmra.mxu3 %vm73_vm1, %v61_v52 }
  0x53   :  { %6094 = vmatmul.msk.f32.gmra.mxu0 %vm73_vm1, %v32_v17  ;;  %6124 = vmatmul.msk.f32.gmra.mxu3 %vm73_vm1, %v62_v55 }
  0x5b   :  { %6095 = vmatmul.msk.f32.gmra.mxu0 %vm73_vm1, %v33_v18  ;;  %6125 = vmatmul.msk.f32.gmra.mxu3 %vm73_vm1, %v63_v58 }
  0x63   :  { %6096 = vmatmul.msk.f32.gmra.mxu0 %vm73_vm1, %v34_v19 }
  0x6b   :  { %6097 = vmatmul.msk.f32.gmra.mxu0 %vm73_vm1, %v35_v20 }
  0x73   :  { %6098 = vmatmul.msk.f32.gmra.mxu0 %vm73_vm1, %v36_v21 }
  0x7b   :  { %6099 = vmatmul.msk.f32.gmra.mxu0 %vm73_vm1, %v37_v22 }
  0x83   :  { %6100 = vmatmul.msk.f32.gmra.mxu0 %vm73_vm1, %v38_v23 }
  0x8b   :  { %6101 = vmatmul.msk.f32.gmra.mxu0 %vm73_vm1, %v39_v24 }
  0x90   :  { %v6361_v25 = vpop.f32.mrf.mxu0 }
  0x91   :  { %v421_v10 = vmul.f32 %v6361_v25, %v6361_v25  ;;  %v336_v15 = vsel %vm10229_vm2, %v6361_v25, 0.0 }
  0x93   :  { %6102 = vmatmul.msk.f32.gmra.mxu0 %vm73_vm1, %v40_v26  ;;  %v461_v20 = vsel %vm10229_vm2, %v421_v10, 0.0 }
  0x96   :  { %v6497_v5 = vpop.f32.mrf.mxu3 }
  0x98   :  { %v6367_v27 = vpop.f32.mrf.mxu0 }
  0x99   :  { %v422_v9 = vmul.f32 %v6367_v27, %v6367_v27  ;;  %v337_v11 = vsel %vm10229_vm2, %v6367_v27, 0.0 }
  0x9a   :  { %v338_v19 = vadd.f32 %v337_v11, %v336_v15 }
  0x9b   :  { %6103 = vmatmul.msk.f32.gmra.mxu0 %vm73_vm1, %v41_v28  ;;  %v462_v16 = vsel %vm10229_vm2, %v422_v9, 0.0 }
  0x9c   :  { %v463_v24 = vadd.f32 %v462_v16, %v461_v20 }
  0x9e   :  { %v6501_v7 = vpop.f32.mrf.mxu3 }
  0xa0   :  { %v6373_v29 = vpop.f32.mrf.mxu0 }
  0xa1   :  { %v423_v12 = vmul.f32 %v6373_v29, %v6373_v29  ;;  %v339_v17 = vsel %vm10229_vm2, %v6373_v29, 0.0 }
  0xa2   :  { %v340_v26 = vadd.f32 %v339_v17, %v338_v19 }
  0xa3   :  { %6104 = vmatmul.msk.f32.gmra.mxu0 %vm73_vm1, %v42_v30  ;;  %v464_v21 = vsel %vm10229_vm2, %v423_v12, 0.0 }
  0xa6   :  { %v6515_v14 = vpop.f32.mrf.mxu3 }
  0xa8   :  { %v6383_v32 = vpop.f32.mrf.mxu0 }
  0xa9   :  { %v424_v18 = vmul.f32 %v6383_v32, %v6383_v32  ;;  %v341_v22 = vsel %vm10229_vm2, %v6383_v32, 0.0 }
  0xaa   :  { %v342_v34 = vadd.f32 %v341_v22, %v340_v26 }
  0xab   :  { %6105 = vmatmul.msk.f32.gmra.mxu0 %vm73_vm1, %v43_v33  ;;  %v466_v28 = vsel %vm10229_vm2, %v424_v18, 0.0  ;;  %v465_v33 = vadd.f32 %v464_v21, %v463_v24 }
  0xad   :  { %v467_v40 = vadd.f32 %v466_v28, %v465_v33 }
  0xae   :  { %v6547_v52 = vpop.f32.mrf.mxu3 }
  0xb0   :  { %v6393_v35 = vpop.f32.mrf.mxu0 }
  0xb1   :  { %v425_v23 = vmul.f32 %v6393_v35, %v6393_v35  ;;  %v343_v30 = vsel %vm10229_vm2, %v6393_v35, 0.0 }
  0xb3   :  { %6106 = vmatmul.msk.f32.gmra.mxu0 %vm73_vm1, %v44_v36  ;;  %v468_v36 = vsel %vm10229_vm2, %v425_v23, 0.0 }
  0xb4   :  { %v469_v49 = vadd.f32 %v468_v36, %v467_v40 }
  0xb8   :  { %v6403_v38 = vpop.f32.mrf.mxu0 }
  0xb9   :  { %v426_v31 = vmul.f32 %v6403_v38, %v6403_v38  ;;  %v345_v37 = vsel %vm10229_vm2, %v6403_v38, 0.0 }
  0xbb   :  { %6107 = vmatmul.msk.f32.gmra.mxu0 %vm73_vm1, %v45_v39 }
  0xc0   :  { %v6413_v41 = vpop.f32.mrf.mxu0 }
  0xc1   :  { %v427_v39 = vmul.f32 %v6413_v41, %v6413_v41  ;;  %v347_v46 = vsel %vm10229_vm2, %v6413_v41, 0.0 }
  0xc3   :  { %6108 = vmatmul.msk.f32.gmra.mxu0 %vm73_vm1, %v46_v42  ;;  %v344_v42 = vadd.f32 %v343_v30, %v342_v34 }
  0xc8   :  { %v6423_v44 = vpop.f32.mrf.mxu0 }
  0xc9   :  { %v349_v55 = vsel %vm10229_vm2, %v6423_v44, 0.0 }
  0xcb   :  { %6109 = vmatmul.msk.f32.gmra.mxu0 %vm73_vm1, %v47_v45  ;;  %v470_v45 = vsel %vm10229_vm2, %v426_v31, 0.0 }
  0xd0   :  { %v6433_v47 = vpop.f32.mrf.mxu0 }
  0xd1   :  { %v351_v9 = vsel %vm10229_vm2, %v6433_v47, 0.0 }
  0xd3   :  { %6110 = vmatmul.msk.f32.gmra.mxu0 %vm73_vm1, %v48_v48  ;;  %v428_v48 = vmul.f32 %v6423_v44, %v6423_v44 }
  0xd8   :  { %v6443_v50 = vpop.f32.mrf.mxu0 }
  0xd9   :  { %v430_v10 = vmul.f32 %v6443_v50, %v6443_v50  ;;  %v353_v16 = vsel %vm10229_vm2, %v6443_v50, 0.0 }
  0xdb   :  { %6111 = vmatmul.msk.f32.gmra.mxu0 %vm73_vm1, %v49_v51  ;;  %v346_v51 = vadd.f32 %v345_v37, %v344_v42  ;;  %v478_v22 = vsel %vm10229_vm2, %v430_v10, 0.0  ;;  %v6577_v37 = vpop.f32.mrf.mxu3 }
  0xdd   :  { %v348_v58 = vadd.f32 %v347_v46, %v346_v51  ;;  %v10231_v46 = vmov 0.0  }
  0xde   :  { %1194 = vst.msk [vmem:[#allocation2 + $0x120] sm:$0xff] %vm597_vm3, %v10231_v46 }
  0xdf   :  { %v350_v12 = vadd.f32 %v349_v55, %v348_v58  ;;  %1195 = vst.msk [vmem:[#allocation2 + $0x128] sm:$0xff] %vm597_vm3, %v10231_v46 }
  0xe0   :  { %v6453_v53 = vpop.f32.mrf.mxu0  ;;  %1196 = vst.msk [vmem:[#allocation2 + $0x130] sm:$0xff] %vm597_vm3, %v10231_v46 }
  0xe1   :  { %v431_v17 = vmul.f32 %v6453_v53, %v6453_v53  ;;  %v352_v19 = vadd.f32 %v351_v9, %v350_v12  ;;  %v355_v23 = vsel %vm10229_vm2, %v6453_v53, 0.0  ;;  %1197 = vst.msk [vmem:[#allocation2 + $0x138] sm:$0xff] %vm597_vm3, %v10231_v46 }
  0xe2   :  { %1198 = vst.msk [vmem:[#allocation2 + $0x140] sm:$0xff] %vm597_vm3, %v10231_v46 }
  0xe3   :  { %6112 = vmatmul.msk.f32.gmra.mxu0 %vm73_vm1, %v50_v54  ;;  %v472_v54 = vsel %vm10229_vm2, %v427_v39, 0.0  ;;  %v354_v26 = vadd.f32 %v353_v16, %v352_v19  ;;  %v480_v28 = vsel %vm10229_vm2, %v431_v17, 0.0 }
  0xe5   :  { %v356_v34 = vadd.f32 %v355_v23, %v354_v26 }
  0xe6   :  { %v1957_v26 = vld [vmem:[#allocation2 + $0x124] sm:$0xff] }
  0xe7   :  { %2064 = vrot.lane.b32.xlu2 %v1957_v26, %s6219_s0 }
  0xe8   :  { %v6463_v56 = vpop.f32.mrf.mxu0 }
  0xe9   :  { %v432_v20 = vmul.f32 %v6463_v56, %v6463_v56  ;;  %v357_v30 = vsel %vm10229_vm2, %v6463_v56, 0.0 }
  0xeb   :  { %6113 = vmatmul.msk.f32.gmra.mxu0 %vm73_vm1, %v51_v57  ;;  %v429_v57 = vmul.f32 %v6433_v47, %v6433_v47  ;;  %v482_v36 = vsel %vm10229_vm2, %v432_v20, 0.0 }
  0xed   :  { %v476_v15 = vsel %vm10229_vm2, %v429_v57, 0.0 }
  0xf0   :  { %v6473_v59 = vpop.f32.mrf.mxu0 }
  0xf1   :  { %v433_v31 = vmul.f32 %v6473_v59, %v6473_v59  ;;  %v359_v39 = vsel %vm10229_vm2, %v6473_v59, 0.0 }
  0xf3   :  { %6114 = vmatmul.msk.f32.gmra.mxu0 %vm73_vm1, %v52_v60  ;;  %v471_v60 = vadd.f32 %v470_v45, %v469_v49  ;;  %v358_v45 = vadd.f32 %v357_v30, %v356_v34 }
  0xf5   :  { %v473_v11 = vadd.f32 %v472_v54, %v471_v60  ;;  %v360_v55 = vadd.f32 %v359_v39, %v358_v45 }
  0xf8   :  { %v6479_v61 = vpop.f32.mrf.mxu0 }
  0xf9   :  { %v434_v40 = vmul.f32 %v6479_v61, %v6479_v61  ;;  %v361_v49 = vsel %vm10229_vm2, %v6479_v61, 0.0 }
  0xfa   :  { %v362_v10 = vadd.f32 %v361_v49, %v360_v55 }
  0xfb   :  { %6115 = vmatmul.msk.f32.gmra.mxu0 %vm73_vm1, %v53_v62  ;;  %v474_v62 = vsel %vm10229_vm2, %v428_v48, 0.0  ;;  %v484_v48 = vsel %vm10229_vm2, %v433_v31, 0.0  ;;  %v486_v58 = vsel %vm10229_vm2, %v434_v40, 0.0 }
  0xfc   :  { %v475_v18 = vadd.f32 %v474_v62, %v473_v11 }
  0xfe   :  { %v477_v24 = vadd.f32 %v476_v15, %v475_v18 }
 0x100   :  { %v6485_v63 = vpop.f32.mrf.mxu0  ;;  %v479_v33 = vadd.f32 %v478_v22, %v477_v24  ;;  %v6615_v24 = vpop.f32.mrf.mxu3 }
 0x101   :  { %v435_v51 = vmul.f32 %v6485_v63, %v6485_v63  ;;  %v363_v60 = vsel %vm10229_vm2, %v6485_v63, 0.0 }
 0x102   :  { %v481_v42 = vadd.f32 %v480_v28, %v479_v33  ;;  %v364_v17 = vadd.f32 %v363_v60, %v362_v10  ;;  %v2174_v10 = vld [vmem:[#allocation2 + $0x125] sm:$0xff] }
 0x103   :  { %v488_v11 = vsel %vm10229_vm2, %v435_v51, 0.0  ;;  %2281 = vrot.lane.b32.xlu2 %v2174_v10, %s6220_s20 }
 0x104   :  { %v483_v54 = vadd.f32 %v482_v36, %v481_v42 }
 0x106   :  { %v485_v9 = vadd.f32 %v484_v48, %v483_v54 }
 0x108   :  { %v6487_v0 = vpop.f32.mrf.mxu0  ;;  %v487_v16 = vadd.f32 %v486_v58, %v485_v9 }
 0x109   :  { %v436_v62 = vmul.f32 %v6487_v0, %v6487_v0  ;;  %v365_v12 = vsel %vm10229_vm2, %v6487_v0, 0.0 }
 0x10a   :  { %v489_v22 = vadd.f32 %v488_v11, %v487_v16  ;;  %v366_v23 = vadd.f32 %v365_v12, %v364_v17 }
 0x10b   :  { %v490_v18 = vsel %vm10229_vm2, %v436_v62, 0.0 }
 0x10c   :  { %v491_v33 = vadd.f32 %v490_v18, %v489_v22  ;;  %v6648_v22 = vpop.f32.mrf.mxu3 }
 0x110   :  { %v6489_v1 = vpop.f32.mrf.mxu0 }
 0x111   :  { %v437_v15 = vmul.f32 %v6489_v1, %v6489_v1  ;;  %v367_v19 = vsel %vm10229_vm2, %v6489_v1, 0.0 }
 0x112   :  { %v368_v34 = vadd.f32 %v367_v19, %v366_v23 }
 0x113   :  { %v492_v28 = vsel %vm10229_vm2, %v437_v15, 0.0 }
 0x114   :  { %v493_v45 = vadd.f32 %v492_v28, %v491_v33 }
 0x118   :  { %v6491_v2 = vpop.f32.mrf.mxu0 }
 0x119   :  { %v438_v20 = vmul.f32 %v6491_v2, %v6491_v2  ;;  %v369_v30 = vsel %vm10229_vm2, %v6491_v2, 0.0 }
 0x11a   :  { %v370_v48 = vadd.f32 %v369_v30, %v368_v34 }
 0x11b   :  { %v494_v39 = vsel %vm10229_vm2, %v438_v20, 0.0 }
 0x11c   :  { %v495_v55 = vadd.f32 %v494_v39, %v493_v45 }
 0x120   :  { %v6493_v3 = vpop.f32.mrf.mxu0 }
 0x121   :  { %v439_v31 = vmul.f32 %v6493_v3, %v6493_v3  ;;  %v371_v40 = vsel %vm10229_vm2, %v6493_v3, 0.0 }
 0x122   :  { %v372_v58 = vadd.f32 %v371_v40, %v370_v48 }
 0x123   :  { %v496_v49 = vsel %vm10229_vm2, %v439_v31, 0.0 }
 0x124   :  { %v497_v11 = vadd.f32 %v496_v49, %v495_v55 }
 0x128   :  { %v6495_v4 = vpop.f32.mrf.mxu0 }
 0x129   :  { %v440_v42 = vmul.f32 %v6495_v4, %v6495_v4  ;;  %v373_v51 = vsel %vm10229_vm2, %v6495_v4, 0.0 }
 0x12a   :  { %v374_v12 = vadd.f32 %v373_v51, %v372_v58  ;;  %v2391_v51 = vld [vmem:[#allocation2 + $0x126] sm:$0xff] }
 0x12b   :  { %v498_v60 = vsel %vm10229_vm2, %v440_v42, 0.0  ;;  %2498 = vrot.lane.b32.xlu2 %v2391_v51, %s6221_s1 }
 0x12c   :  { %v499_v18 = vadd.f32 %v498_v60, %v497_v11 }
 0x130   :  { %v6499_v6 = vpop.f32.mrf.mxu0 }
 0x131   :  { %v441_v54 = vmul.f32 %v6499_v6, %v6499_v6  ;;  %v375_v62 = vsel %vm10229_vm2, %v6499_v6, 0.0 }
 0x132   :  { %v376_v19 = vadd.f32 %v375_v62, %v374_v12 }
 0x133   :  { %v500_v15 = vsel %vm10229_vm2, %v441_v54, 0.0 }
 0x134   :  { %v501_v30 = vadd.f32 %v500_v15, %v499_v18 }
 0x138   :  { %v6503_v8 = vpop.f32.mrf.mxu0 }
 0x139   :  { %v442_v9 = vmul.f32 %v6503_v8, %v6503_v8  ;;  %v377_v16 = vsel %vm10229_vm2, %v6503_v8, 0.0 }
 0x13a   :  { %v378_v31 = vadd.f32 %v377_v16, %v376_v19  ;;  %v326_v19 = vpop.f32.mrf.mxu3 }
 0x13b   :  { %v502_v23 = vsel %vm10229_vm2, %v442_v9, 0.0 }
 0x13c   :  { %v503_v40 = vadd.f32 %v502_v23, %v501_v30 }
 0x140   :  { %v6513_v13 = vpop.f32.mrf.mxu0 }
 0x141   :  { %v443_v17 = vmul.f32 %v6513_v13, %v6513_v13  ;;  %v379_v26 = vsel %vm10229_vm2, %v6513_v13, 0.0 }
 0x142   :  { %v380_v42 = vadd.f32 %v379_v26, %v378_v31 }
 0x143   :  { %v504_v33 = vsel %vm10229_vm2, %v443_v17, 0.0 }
 0x144   :  { %v505_v54 = vadd.f32 %v504_v33, %v503_v40 }
 0x148   :  { %v6540_v43 = vpop.f32.mrf.mxu0 }
 0x149   :  { %v444_v28 = vmul.f32 %v6540_v43, %v6540_v43  ;;  %v381_v34 = vsel %vm10229_vm2, %v6540_v43, 0.0 }
 0x14a   :  { %v382_v55 = vadd.f32 %v381_v34, %v380_v42 }
 0x14b   :  { %v506_v45 = vsel %vm10229_vm2, %v444_v28, 0.0 }
 0x14c   :  { %v507_v9 = vadd.f32 %v506_v45, %v505_v54  ;;  %v451_v54 = vmul.f32 %v6497_v5, %v6497_v5 }
 0x150   :  { %v6566_v21 = vpop.f32.mrf.mxu0 }
 0x151   :  { %v445_v39 = vmul.f32 %v6566_v21, %v6566_v21  ;;  %v383_v48 = vsel %vm10229_vm2, %v6566_v21, 0.0 }
 0x152   :  { %v384_v10 = vadd.f32 %v383_v48, %v382_v55 }
 0x153   :  { %v508_v58 = vsel %vm10229_vm2, %v445_v39, 0.0  ;;  %v2608_v39 = vld [vmem:[#allocation2 + $0x127] sm:$0xff] }
 0x154   :  { %v509_v17 = vadd.f32 %v508_v58, %v507_v9  ;;  %2715 = vrot.lane.b32.xlu2 %v2608_v39, %s6222_s21  ;;  %v452_v9 = vmul.f32 %v6501_v7, %v6501_v7 }
 0x158   :  { %v6592_v57 = vpop.f32.mrf.mxu0 }
 0x159   :  { %v446_v49 = vmul.f32 %v6592_v57, %v6592_v57  ;;  %v385_v60 = vsel %vm10229_vm2, %v6592_v57, 0.0 }
 0x15a   :  { %v386_v18 = vadd.f32 %v385_v60, %v384_v10  ;;  %v395_v10 = vsel %vm10229_vm2, %v6497_v5, 0.0 }
 0x15b   :  { %v510_v12 = vsel %vm10229_vm2, %v446_v49, 0.0 }
 0x15c   :  { %v511_v30 = vadd.f32 %v510_v12, %v509_v17  ;;  %v329_v17 = vpop.f32.mrf.mxu3 }
 0x160   :  { %v6623_v36 = vpop.f32.mrf.mxu0 }
 0x161   :  { %v447_v62 = vmul.f32 %v6623_v36, %v6623_v36  ;;  %v387_v15 = vsel %vm10229_vm2, %v6623_v36, 0.0 }
 0x162   :  { %v388_v31 = vadd.f32 %v387_v15, %v386_v18  ;;  %v397_v18 = vsel %vm10229_vm2, %v6501_v7, 0.0 }
 0x163   :  { %v512_v23 = vsel %vm10229_vm2, %v447_v62, 0.0 }
 0x164   :  { %v513_v40 = vadd.f32 %v512_v23, %v511_v30  ;;  %v453_v23 = vmul.f32 %v6515_v14, %v6515_v14 }
 0x168   :  { %v6646_v20 = vpop.f32.mrf.mxu0 }
 0x169   :  { %v448_v16 = vmul.f32 %v6646_v20, %v6646_v20  ;;  %v389_v26 = vsel %vm10229_vm2, %v6646_v20, 0.0 }
 0x16a   :  { %v390_v42 = vadd.f32 %v389_v26, %v388_v31  ;;  %v520_v26 = vsel %vm10229_vm2, %v451_v54, 0.0  ;;  %v522_v31 = vsel %vm10229_vm2, %v452_v9, 0.0 }
 0x16b   :  { %v514_v33 = vsel %vm10229_vm2, %v448_v16, 0.0 }
 0x16c   :  { %v515_v48 = vadd.f32 %v514_v33, %v513_v40  ;;  %v399_v33 = vsel %vm10229_vm2, %v6515_v14, 0.0 }
 0x170   :  { %v6671_v11 = vpop.f32.mrf.mxu0 }
 0x171   :  { %v449_v28 = vmul.f32 %v6671_v11, %v6671_v11  ;;  %v391_v34 = vsel %vm10229_vm2, %v6671_v11, 0.0 }
 0x172   :  { %v392_v49 = vadd.f32 %v391_v34, %v390_v42  ;;  %v454_v34 = vmul.f32 %v6547_v52, %v6547_v52  ;;  %v524_v42 = vsel %vm10229_vm2, %v453_v23, 0.0  ;;  %v332_v23 = vpop.f32.mrf.mxu3 }
 0x173   :  { %v516_v45 = vsel %vm10229_vm2, %v449_v28, 0.0 }
 0x174   :  { %v517_v60 = vadd.f32 %v516_v45, %v515_v48  ;;  %v401_v45 = vsel %vm10229_vm2, %v6547_v52, 0.0  ;;  %v455_v48 = vmul.f32 %v6577_v37, %v6577_v37 }
 0x178   :  { %v6688_v51 = vpop.f32.mrf.mxu0 }
 0x179   :  { %v393_v55 = vsel %vm10229_vm2, %v6688_v51, 0.0  ;;  %v450_v58 = vmul.f32 %v6688_v51, %v6688_v51 }
 0x17a   :  { %v394_v62 = vadd.f32 %v393_v55, %v392_v49  ;;  %v526_v55 = vsel %vm10229_vm2, %v454_v34, 0.0 }
 0x17b   :  { %v518_v12 = vsel %vm10229_vm2, %v450_v58, 0.0  ;;  %v403_v58 = vsel %vm10229_vm2, %v6577_v37, 0.0 }
 0x17c   :  { %v396_v15 = vadd.f32 %v395_v10, %v394_v62  ;;  %v519_v16 = vadd.f32 %v518_v12, %v517_v60  ;;  %v456_v60 = vmul.f32 %v6615_v24, %v6615_v24  ;;  %v528_v10 = vsel %vm10229_vm2, %v455_v48, 0.0 }
 0x17d   :  { %v405_v12 = vsel %vm10229_vm2, %v6615_v24, 0.0 }
 0x17e   :  { %v398_v28 = vadd.f32 %v397_v18, %v396_v15  ;;  %v521_v30 = vadd.f32 %v520_v26, %v519_v16  ;;  %v457_v15 = vmul.f32 %v6648_v22, %v6648_v22  ;;  %v530_v26 = vsel %vm10229_vm2, %v456_v60, 0.0 }
 0x180   :  { %v400_v39 = vadd.f32 %v399_v33, %v398_v28  ;;  %v523_v40 = vadd.f32 %v522_v31, %v521_v30  ;;  %v407_v28 = vsel %vm10229_vm2, %v6648_v22, 0.0  ;;  %v458_v30 = vmul.f32 %v326_v19, %v326_v19 }
 0x181   :  { %v532_v34 = vsel %vm10229_vm2, %v457_v15, 0.0 }
 0x182   :  { %v525_v49 = vadd.f32 %v524_v42, %v523_v40  ;;  %v402_v54 = vadd.f32 %v401_v45, %v400_v39  ;;  %v409_v39 = vsel %vm10229_vm2, %v326_v19, 0.0  ;;  %v459_v40 = vmul.f32 %v329_v17, %v329_v17 }
 0x183   :  { %v460_v42 = vmul.f32 %v332_v23, %v332_v23 }
 0x184   :  { %v404_v62 = vadd.f32 %v403_v58, %v402_v54  ;;  %v527_v9 = vadd.f32 %v526_v55, %v525_v49  ;;  %v534_v49 = vsel %vm10229_vm2, %v458_v30, 0.0  ;;  %v411_v54 = vsel %vm10229_vm2, %v329_v17, 0.0 }
 0x185   :  { %v413_v55 = vsel %vm10229_vm2, %v332_v23, 0.0  ;;  %v536_v22 = vsel %vm10229_vm2, %v459_v40, 0.0 }
 0x186   :  { %v406_v16 = vadd.f32 %v405_v12, %v404_v62  ;;  %v529_v18 = vadd.f32 %v528_v10, %v527_v9  ;;  %v538_v62 = vsel %vm10229_vm2, %v460_v42, 0.0 }
 0x188   :  { %v408_v31 = vadd.f32 %v407_v28, %v406_v16  ;;  %v531_v33 = vadd.f32 %v530_v26, %v529_v18 }
 0x18a   :  { %v410_v45 = vadd.f32 %v409_v39, %v408_v31  ;;  %v533_v48 = vadd.f32 %v532_v34, %v531_v33  ;;  %v6742_v39 = vpop.permute.xlu2 %2064 }
 0x18c   :  { %v535_v58 = vadd.f32 %v534_v49, %v533_v48  ;;  %v412_v60 = vadd.f32 %v411_v54, %v410_v45 }
 0x18e   :  { %v537_v9 = vadd.f32 %v536_v22, %v535_v58  ;;  %v414_v10 = vadd.f32 %v413_v55, %v412_v60 }
 0x190   :  { %v415_v12 = vrot.slane %v414_v10, 4  ;;  %v539_v19 = vadd.f32 %v538_v62, %v537_v9 }
 0x192   :  { %v416_v15 = vadd.f32 %v415_v12, %v414_v10  ;;  %v540_v16 = vrot.slane %v539_v19, 4  ;;  %v6744_v40 = vpop.permute.xlu2 %2281 }
 0x194   :  { %v417_v18 = vrot.slane %v416_v15, 2  ;;  %v541_v26 = vadd.f32 %v540_v16, %v539_v19 }
 0x196   :  { %v418_v28 = vadd.f32 %v417_v18, %v416_v15  ;;  %v542_v30 = vrot.slane %v541_v26, 2 }
 0x198   :  { %v419_v31 = vrot.slane %v418_v28, 1  ;;  %v543_v17 = vadd.f32 %v542_v30, %v541_v26 }
 0x19a   :  { %v420_v33 = vadd.f32 %v419_v31, %v418_v28  ;;  %v544_v23 = vrot.slane %v543_v17, 1  ;;  %v6746_v42 = vpop.permute.xlu2 %2498 }
 0x19c   :  { %555 = vrot.lane.b32.xlu1 %v420_v33, %s6220_s20  ;;  %547 = vrot.lane.b32.xlu0 %v420_v33, %s6222_s21  ;;  %v545_v34 = vadd.f32 %v544_v23, %v543_v17 }
 0x19e   :  { %564 = vrot.lane.b32.xlu2 %v545_v34, %s6221_s1 }
 0x1a4   :  { %560 = vrot.lane.b32.xlu1 %v545_v34, %s6222_s21  ;;  %551 = vrot.lane.b32.xlu0 %v420_v33, %s6221_s1 }
 0x1a6   :  { %568 = vrot.lane.b32.xlu2 %v545_v34, %s6220_s20 }
 0x1ae   :  { %v6748_v45 = vpop.permute.xlu2 %2715 }
 0x1f8   :  { %v565_v54 = vpop.permute.xlu2 %564 }
 0x200   :  { %v569_v12 = vpop.permute.xlu2 %568 }
 0x20e   :  { %v556_v48 = vpop.permute.xlu1 %555  ;;  %v548_v49 = vpop.permute.xlu0 %547 }
 0x20f   :  { %v550_v55 = vadd.f32 %v548_v49, %v420_v33 }
 0x216   :  { %v561_v58 = vpop.permute.xlu1 %560  ;;  %v552_v60 = vpop.permute.xlu0 %551 }
 0x217   :  { %v563_v22 = vadd.f32 %v561_v58, %v545_v34  ;;  %v554_v62 = vadd.f32 %v552_v60, %v550_v55 }
 0x219   :  { %v567_v9 = vadd.f32 %v565_v54, %v563_v22  ;;  %v558_v10 = vadd.f32 %v556_v48, %v554_v62 }
 0x21b   :  { %v571_v19 = vadd.f32 %v569_v12, %v567_v9  ;;  %v572_v15 = vmul.f32 0.0008, %v558_v10 }
 0x21d   :  { %v573_v16 = vmul.f32 0.0008, %v571_v19  ;;  %594 = vrot.lane.b32.xlu2 %v572_v15, %s6223_s22  ;;  %591 = vrot.lane.b32.xlu1 %v572_v15, %s6224_s23  ;;  %v574_v18 = vmul.f32 %v572_v15, %v572_v15 }
 0x21e   :  { %588 = vrot.lane.b32.xlu0 %v572_v15, %s6225_s24 }
 0x21f   :  { %v575_v26 = vsub.f32 %v573_v16, %v574_v18 }
 0x221   :  { %v576_v28 = vadd.f32 0.0001, %v575_v26 }
 0x223   :  { %6186 = vrsqrt.f32 %v576_v28  ;;  %vm583_vm5 = vweird.f32 %v576_v28 }
 0x229   :  { %v6187_v30 = vpop.eup %6186 }
 0x22a   :  { %v578_v31 = vmul.f32 %v6187_v30, %v576_v28  ;;  %vm584_vm4 = vweird.f32 %v6187_v30 }
 0x22b   :  { %vm585_vm6 = vmor %vm583_vm5, %vm584_vm4 }
 0x22c   :  { %v579_v17 = vmul.f32 %v6187_v30, %v578_v31 }
 0x22e   :  { %v580_v33 = vmul.f32 0.5, %v579_v17 }
 0x230   :  { %v581_v23 = vsub.f32 1.5, %v580_v33 }
 0x232   :  { %v582_v34 = vmul.f32 %v6187_v30, %v581_v23 }
 0x234   :  { %v586_v48 = vsel %vm585_vm6, %v6187_v30, %v582_v34 }
 0x235   :  { %610 = vrot.lane.b32.xlu2 %v586_v48, %s6223_s22  ;;  %607 = vrot.lane.b32.xlu1 %v586_v48, %s6224_s23 }
 0x236   :  { %604 = vrot.lane.b32.xlu0 %v586_v48, %s6225_s24 }
 0x277   :  { %v595_v55 = vpop.permute.xlu2 %594 }
 0x28f   :  { %v592_v49 = vpop.permute.xlu1 %591  ;;  %v611_v12 = vpop.permute.xlu2 %610 }
 0x290   :  { %v589_v54 = vpop.permute.xlu0 %588 }
 0x291   :  { %v598_v58 = vsel %vm597_vm3, %v572_v15, %v589_v54 }
 0x292   :  { %v600_v60 = vsel %vm599_vm7, %v598_v58, %v592_v49 }
 0x293   :  { %v602_v62 = vsel %vm601_vm8, %v600_v60, %v595_v55 }
 0x294   :  { %v6761_v16 = vperm.slane %v602_v62, 0 }
 0x296   :  { %v617_v15 = vsub.f32 %v6361_v25, %v6761_v16  ;;  %v618_v28 = vsub.f32 %v6367_v27, %v6761_v16  ;;  %v619_v30 = vsub.f32 %v6373_v29, %v6761_v16  ;;  %v641_v31 = vsub.f32 %v6566_v21, %v6761_v16 }
 0x297   :  { %v642_v17 = vsub.f32 %v6592_v57, %v6761_v16  ;;  %v643_v33 = vsub.f32 %v6623_v36, %v6761_v16  ;;  %v644_v23 = vsub.f32 %v6646_v20, %v6761_v16  ;;  %v645_v25 = vsub.f32 %v6671_v11, %v6761_v16 }
 0x298   :  { %v646_v27 = vsub.f32 %v6688_v51, %v6761_v16  ;;  %v650_v29 = vsub.f32 %v6547_v52, %v6761_v16  ;;  %v651_v21 = vsub.f32 %v6577_v37, %v6761_v16  ;;  %v652_v57 = vsub.f32 %v6615_v24, %v6761_v16 }
 0x299   :  { %v620_v54 = vsub.f32 %v6383_v32, %v6761_v16  ;;  %v621_v60 = vsub.f32 %v6393_v35, %v6761_v16 }
 0x2a7   :  { %v608_v22 = vpop.permute.xlu1 %607 }
 0x2a8   :  { %v605_v9 = vpop.permute.xlu0 %604 }
 0x2a9   :  { %v613_v10 = vsel %vm597_vm3, %v586_v48, %v605_v9 }
 0x2aa   :  { %v614_v19 = vsel %vm599_vm7, %v613_v10, %v608_v22  ;;  %v622_v22 = vsub.f32 %v6403_v38, %v6761_v16 }
 0x2ab   :  { %v615_v18 = vsel %vm601_vm8, %v614_v19, %v611_v12 }
 0x2ac   :  { %v6764_v26 = vperm.slane %v615_v18, 0 }
 0x2ae   :  { %v6791_v36 = vmul.f32 %v6764_v26, %v641_v31  ;;  %v6794_v20 = vmul.f32 %v6764_v26, %v642_v17  ;;  %v6797_v11 = vmul.f32 %v6764_v26, %v643_v33  ;;  %v6800_v51 = vmul.f32 %v6764_v26, %v644_v23 }
 0x2af   :  { %v6803_v52 = vmul.f32 %v6764_v26, %v645_v25  ;;  %v6806_v37 = vmul.f32 %v6764_v26, %v646_v27  ;;  %v6809_v24 = vmul.f32 %v6764_v26, %v650_v29  ;;  %v6812_v34 = vmul.f32 %v6764_v26, %v651_v21 }
 0x2b0   :  { %v6815_v48 = vmul.f32 %v6764_v26, %v652_v57  ;;  %v656_v49 = vmul.f32 %v6764_v26, %v619_v30  ;;  %v655_v55 = vmul.f32 %v6764_v26, %v618_v28  ;;  %v654_v58 = vmul.f32 %v6764_v26, %v617_v15 }
 0x2b1   :  { %v659_v32 = vmul.f32 %v6764_v26, %v622_v22  ;;  %v658_v35 = vmul.f32 %v6764_v26, %v621_v60  ;;  %v657_v38 = vmul.f32 %v6764_v26, %v620_v54  ;;  %v625_v31 = vsub.f32 %v6433_v47, %v6761_v16 }
 0x2b2   :  { %vm692_vm9 = vcmp.ge.f32.partialorder %v656_v49, 0.0  ;;  %v728_v62 = vmul.f32 0.01, %v656_v49  ;;  %vm691_vm10 = vcmp.ge.f32.partialorder %v655_v55, 0.0  ;;  %v727_v9 = vmul.f32 0.01, %v655_v55 }
 0x2b3   :  { %vm690_vm11 = vcmp.ge.f32.partialorder %v654_v58, 0.0  ;;  %v726_v10 = vmul.f32 0.01, %v654_v58  ;;  %v731_v15 = vmul.f32 0.01, %v659_v32  ;;  %vm695_vm12 = vcmp.ge.f32.partialorder %v659_v32, 0.0 }
 0x2b4   :  { %v6826_v12 = vsel %vm692_vm9, %v656_v49, %v728_v62  ;;  %v6831_v19 = vsel %vm691_vm10, %v655_v55, %v727_v9  ;;  %v730_v28 = vmul.f32 0.01, %v658_v35  ;;  %v729_v30 = vmul.f32 0.01, %v657_v38 }
 0x2b5   :  { %838 = vrot.lane.b32.xlu2 %v6826_v12, %s6222_s21  ;;  %v6833_v18 = vsel %vm690_vm11, %v654_v58, %v726_v10  ;;  %836 = vrot.lane.b32.xlu1 %v6831_v19, %s6222_s21  ;;  %vm694_vm13 = vcmp.ge.f32.partialorder %v658_v35, 0.0  ;;  %vm693_vm14 = vcmp.ge.f32.partialorder %v657_v38, 0.0  ;;  %v623_v17 = vsub.f32 %v6413_v41, %v6761_v16 }
 0x2b6   :  { %834 = vrot.lane.b32.xlu0 %v6833_v18, %s6222_s21  ;;  %v624_v33 = vsub.f32 %v6423_v44, %v6761_v16  ;;  %v662_v23 = vmul.f32 %v6764_v26, %v625_v31  ;;  %v6848_v25 = vsel %vm695_vm12, %v659_v32, %v731_v15  ;;  %v6854_v47 = vsel %vm694_vm13, %v658_v35, %v730_v28 }
 0x2b7   :  { %v660_v27 = vmul.f32 %v6764_v26, %v623_v17  ;;  %v6856_v21 = vsel %vm693_vm14, %v657_v38, %v729_v30  ;;  %v628_v49 = vsub.f32 %v6463_v56, %v6761_v16  ;;  %v626_v54 = vsub.f32 %v6443_v50, %v6761_v16 }
 0x2b8   :  { %v661_v29 = vmul.f32 %v6764_v26, %v624_v33  ;;  %v734_v41 = vmul.f32 0.01, %v662_v23  ;;  %vm698_vm15 = vcmp.ge.f32.partialorder %v662_v23, 0.0  ;;  %v627_v55 = vsub.f32 %v6453_v53, %v6761_v16 }
 0x2b9   :  { %v732_v57 = vmul.f32 0.01, %v660_v27  ;;  %vm696_vm1 = vcmp.ge.f32.partialorder %v660_v27, 0.0  ;;  %v665_v58 = vmul.f32 %v6764_v26, %v628_v49  ;;  %v663_v22 = vmul.f32 %v6764_v26, %v626_v54 }
 0x2ba   :  { %v733_v44 = vmul.f32 0.01, %v661_v29  ;;  %vm697_vm0 = vcmp.ge.f32.partialorder %v661_v29, 0.0  ;;  %v6869_v60 = vsel %vm698_vm15, %v662_v23, %v734_v41  ;;  %v664_v62 = vmul.f32 %v6764_v26, %v627_v55 }
 0x2bb   :  { %v6877_v9 = vsel %vm696_vm1, %v660_v27, %v732_v57  ;;  %v647_v50 = vsub.f32 %v6497_v5, %v6761_v16  ;;  %v648_v53 = vsub.f32 %v6501_v7, %v6761_v16  ;;  %v649_v10 = vsub.f32 %v6515_v14, %v6761_v16 }
 0x2bc   :  { %v6875_v56 = vsel %vm697_vm0, %v661_v29, %v733_v44  ;;  %v737_v32 = vmul.f32 0.01, %v665_v58  ;;  %vm701_vm4 = vcmp.ge.f32.partialorder %v665_v58, 0.0  ;;  %v736_v7 = vmul.f32 0.01, %v664_v62 }
 0x2bd   :  { %844 = vrot.lane.b32.xlu2 %v6848_v25, %s6222_s21  ;;  %842 = vrot.lane.b32.xlu1 %v6854_v47, %s6222_s21  ;;  %v6890_v35 = vmul.f32 %v6764_v26, %v649_v10  ;;  %v6893_v38 = vmul.f32 %v6764_v26, %v648_v53  ;;  %v6896_v5 = vmul.f32 %v6764_v26, %v647_v50  ;;  %v735_v15 = vmul.f32 0.01, %v663_v22 }
 0x2be   :  { %840 = vrot.lane.b32.xlu0 %v6856_v21, %s6222_s21  ;;  %v631_v14 = vsub.f32 %v6485_v63, %v6761_v16  ;;  %vm700_vm5 = vcmp.ge.f32.partialorder %v664_v62, 0.0  ;;  %vm699_vm6 = vcmp.ge.f32.partialorder %v663_v22, 0.0  ;;  %v629_v28 = vsub.f32 %v6473_v59, %v6761_v16 }
 0x2bf   :  { %v630_v30 = vsub.f32 %v6479_v61, %v6761_v16  ;;  %v6905_v17 = vsel %vm701_vm4, %v665_v58, %v737_v32  ;;  %v6911_v63 = vsel %vm700_vm5, %v664_v62, %v736_v7  ;;  %v6913_v27 = vsel %vm699_vm6, %v663_v22, %v735_v15 }
 0x2c0   :  { %v668_v31 = vmul.f32 %v6764_v26, %v631_v14  ;;  %v666_v33 = vmul.f32 %v6764_v26, %v629_v28  ;;  %v634_v41 = vsub.f32 %v6491_v2, %v6761_v16  ;;  %v632_v44 = vsub.f32 %v6487_v0, %v6761_v16 }
 0x2c1   :  { %v667_v23 = vmul.f32 %v6764_v26, %v630_v30  ;;  %v633_v57 = vsub.f32 %v6489_v1, %v6761_v16  ;;  %v637_v50 = vsub.f32 %v6499_v6, %v6761_v16  ;;  %v635_v53 = vsub.f32 %v6493_v3, %v6761_v16 }
 0x2c2   :  { %v740_v59 = vmul.f32 0.01, %v668_v31  ;;  %vm704_vm9 = vcmp.ge.f32.partialorder %v668_v31, 0.0  ;;  %v738_v29 = vmul.f32 0.01, %v666_v33  ;;  %vm702_vm11 = vcmp.ge.f32.partialorder %v666_v33, 0.0 }
 0x2c3   :  { %v739_v61 = vmul.f32 0.01, %v667_v23  ;;  %vm703_vm10 = vcmp.ge.f32.partialorder %v667_v23, 0.0  ;;  %v671_v49 = vmul.f32 %v6764_v26, %v634_v41  ;;  %v669_v55 = vmul.f32 %v6764_v26, %v632_v44 }
 0x2c4   :  { %v6926_v54 = vsel %vm704_vm9, %v668_v31, %v740_v59  ;;  %v670_v58 = vmul.f32 %v6764_v26, %v633_v57  ;;  %v6934_v22 = vsel %vm702_vm11, %v666_v33, %v738_v29  ;;  %v636_v10 = vsub.f32 %v6495_v4, %v6761_v16 }
 0x2c5   :  { %850 = vrot.lane.b32.xlu2 %v6869_v60, %s6222_s21  ;;  %848 = vrot.lane.b32.xlu1 %v6875_v56, %s6222_s21  ;;  %v6932_v2 = vsel %vm703_vm10, %v667_v23, %v739_v61  ;;  %v743_v0 = vmul.f32 0.01, %v671_v49  ;;  %vm707_vm12 = vcmp.ge.f32.partialorder %v671_v49, 0.0  ;;  %v741_v62 = vmul.f32 0.01, %v669_v55 }
 0x2c6   :  { %846 = vrot.lane.b32.xlu0 %v6877_v9, %s6222_s21  ;;  %v742_v1 = vmul.f32 0.01, %v670_v58  ;;  %vm706_vm13 = vcmp.ge.f32.partialorder %v670_v58, 0.0  ;;  %vm705_vm14 = vcmp.ge.f32.partialorder %v669_v55, 0.0  ;;  %v674_v32 = vmul.f32 %v6764_v26, %v637_v50 }
 0x2c7   :  { %v6947_v7 = vsel %vm707_vm12, %v671_v49, %v743_v0  ;;  %v672_v15 = vmul.f32 %v6764_v26, %v635_v53  ;;  %v673_v14 = vmul.f32 %v6764_v26, %v636_v10  ;;  %v6955_v28 = vsel %vm705_vm14, %v669_v55, %v741_v62 }
 0x2c8   :  { %v6953_v6 = vsel %vm706_vm13, %v670_v58, %v742_v1  ;;  %v746_v3 = vmul.f32 0.01, %v674_v32  ;;  %vm710_vm15 = vcmp.ge.f32.partialorder %v674_v32, 0.0  ;;  %v640_v31 = vsub.f32 %v6540_v43, %v6761_v16 }
 0x2c9   :  { %v745_v4 = vmul.f32 0.01, %v673_v14  ;;  %v744_v30 = vmul.f32 0.01, %v672_v15  ;;  %vm709_vm0 = vcmp.ge.f32.partialorder %v673_v14, 0.0  ;;  %vm708_vm1 = vcmp.ge.f32.partialorder %v672_v15, 0.0 }
 0x2ca   :  { %v638_v33 = vsub.f32 %v6503_v8, %v6761_v16  ;;  %v639_v23 = vsub.f32 %v6513_v13, %v6761_v16  ;;  %v677_v59 = vmul.f32 %v6764_v26, %v640_v31  ;;  %v6968_v61 = vsel %vm710_vm15, %v674_v32, %v746_v3 }
 0x2cb   :  { %v6974_v43 = vsel %vm709_vm0, %v673_v14, %v745_v4  ;;  %v6976_v44 = vsel %vm708_vm1, %v672_v15, %v744_v30  ;;  %v752_v55 = vmul.f32 0.01, %v6797_v11  ;;  %vm716_vm9 = vcmp.ge.f32.partialorder %v6797_v11, 0.0 }
 0x2cc   :  { %v675_v29 = vmul.f32 %v6764_v26, %v638_v33  ;;  %v676_v41 = vmul.f32 %v6764_v26, %v639_v23  ;;  %v749_v8 = vmul.f32 0.01, %v677_v59  ;;  %vm713_vm4 = vcmp.ge.f32.partialorder %v677_v59, 0.0 }
 0x2cd   :  { %856 = vrot.lane.b32.xlu2 %v6905_v17, %s6222_s21  ;;  %854 = vrot.lane.b32.xlu1 %v6911_v63, %s6222_s21  ;;  %v751_v58 = vmul.f32 0.01, %v6794_v20  ;;  %v750_v0 = vmul.f32 0.01, %v6791_v36  ;;  %vm715_vm10 = vcmp.ge.f32.partialorder %v6794_v20, 0.0  ;;  %vm714_vm11 = vcmp.ge.f32.partialorder %v6791_v36, 0.0 }
 0x2ce   :  { %852 = vrot.lane.b32.xlu0 %v6913_v27, %s6222_s21  ;;  %v748_v13 = vmul.f32 0.01, %v676_v41  ;;  %v747_v16 = vmul.f32 0.01, %v675_v29  ;;  %vm712_vm5 = vcmp.ge.f32.partialorder %v676_v41, 0.0  ;;  %vm711_vm6 = vcmp.ge.f32.partialorder %v675_v29, 0.0 }
 0x2cf   :  { %v6982_v26 = vsel %vm713_vm4, %v677_v59, %v749_v8  ;;  %v7001_v1 = vsel %vm716_vm9, %v6797_v11, %v752_v55  ;;  %v7006_v62 = vsel %vm715_vm10, %v6794_v20, %v751_v58  ;;  %v7009_v50 = vsel %vm714_vm11, %v6791_v36, %v750_v0 }
 0x2d0   :  { %v6986_v57 = vsel %vm712_vm5, %v676_v41, %v748_v13  ;;  %v6988_v49 = vsel %vm711_vm6, %v675_v29, %v747_v16  ;;  %v755_v53 = vmul.f32 0.01, %v6806_v37  ;;  %vm719_vm12 = vcmp.ge.f32.partialorder %v6806_v37, 0.0 }
 0x2d1   :  { %v754_v11 = vmul.f32 0.01, %v6803_v52  ;;  %v753_v10 = vmul.f32 0.01, %v6800_v51  ;;  %vm718_vm13 = vcmp.ge.f32.partialorder %v6803_v52, 0.0  ;;  %vm717_vm14 = vcmp.ge.f32.partialorder %v6800_v51, 0.0 }
 0x2d2   :  { %v7022_v36 = vsel %vm719_vm12, %v6806_v37, %v755_v53  ;;  %v758_v15 = vmul.f32 0.01, %v6890_v35  ;;  %vm722_vm15 = vcmp.ge.f32.partialorder %v6890_v35, 0.0  ;;  %v757_v37 = vmul.f32 0.01, %v6893_v38 }
 0x2d3   :  { %v7027_v20 = vsel %vm718_vm13, %v6803_v52, %v754_v11  ;;  %v7030_v32 = vsel %vm717_vm14, %v6800_v51, %v753_v10  ;;  %v756_v14 = vmul.f32 0.01, %v6896_v5  ;;  %vm721_vm0 = vcmp.ge.f32.partialorder %v6893_v38, 0.0 }
 0x2d4   :  { %vm720_vm1 = vcmp.ge.f32.partialorder %v6896_v5, 0.0  ;;  %v7043_v51 = vsel %vm722_vm15, %v6890_v35, %v758_v15  ;;  %v7048_v52 = vsel %vm721_vm0, %v6893_v38, %v757_v37  ;;  %v761_v4 = vmul.f32 0.01, %v6815_v48 }
 0x2d5   :  { %862 = vrot.lane.b32.xlu2 %v6926_v54, %s6222_s21  ;;  %860 = vrot.lane.b32.xlu1 %v6932_v2, %s6222_s21  ;;  %v7051_v3 = vsel %vm720_vm1, %v6896_v5, %v756_v14  ;;  %vm725_vm4 = vcmp.ge.f32.partialorder %v6815_v48, 0.0  ;;  %v760_v35 = vmul.f32 0.01, %v6812_v34  ;;  %v759_v30 = vmul.f32 0.01, %v6809_v24 }
 0x2d6   :  { %858 = vrot.lane.b32.xlu0 %v6934_v22, %s6222_s21  ;;  %vm724_vm5 = vcmp.ge.f32.partialorder %v6812_v34, 0.0  ;;  %vm723_vm6 = vcmp.ge.f32.partialorder %v6809_v24, 0.0  ;;  %v7064_v38 = vsel %vm725_vm4, %v6815_v48, %v761_v4  ;;  %vm1451_vm9 = vcmask 261248  }
 0x2d7   :  { %v7069_v5 = vsel %vm724_vm5, %v6812_v34, %v760_v35  ;;  %v7072_v31 = vsel %vm723_vm6, %v6809_v24, %v759_v30  ;;  %vm1668_vm10 = vcmask 392448   ;;  %vm1885_vm11 = vcmask 523648  }
 0x2d8   :  { %vm2102_vm12 = vcmask 654848   ;;  %vm2319_vm13 = vcmask 786048   ;;  %vm2536_vm14 = vcmask 917248   ;;  %vm2753_vm15 = vcmask 1048448  }
 0x2dd   :  { %868 = vrot.lane.b32.xlu2 %v6947_v7, %s6222_s21  ;;  %866 = vrot.lane.b32.xlu1 %v6953_v6, %s6222_s21 }
 0x2de   :  { %864 = vrot.lane.b32.xlu0 %v6955_v28, %s6222_s21 }
 0x2e5   :  { %874 = vrot.lane.b32.xlu2 %v6968_v61, %s6222_s21  ;;  %872 = vrot.lane.b32.xlu1 %v6974_v43, %s6222_s21 }
 0x2e6   :  { %870 = vrot.lane.b32.xlu0 %v6976_v44, %s6222_s21 }
 0x2ed   :  { %880 = vrot.lane.b32.xlu2 %v6982_v26, %s6222_s21  ;;  %878 = vrot.lane.b32.xlu1 %v6986_v57, %s6222_s21 }
 0x2ee   :  { %876 = vrot.lane.b32.xlu0 %v6988_v49, %s6222_s21 }
 0x2f5   :  { %886 = vrot.lane.b32.xlu2 %v7001_v1, %s6222_s21  ;;  %884 = vrot.lane.b32.xlu1 %v7006_v62, %s6222_s21 }
 0x2f6   :  { %882 = vrot.lane.b32.xlu0 %v7009_v50, %s6222_s21 }
 0x2fd   :  { %892 = vrot.lane.b32.xlu2 %v7022_v36, %s6222_s21  ;;  %890 = vrot.lane.b32.xlu1 %v7027_v20, %s6222_s21 }
 0x2fe   :  { %888 = vrot.lane.b32.xlu0 %v7030_v32, %s6222_s21 }
 0x305   :  { %898 = vrot.lane.b32.xlu2 %v7043_v51, %s6222_s21  ;;  %896 = vrot.lane.b32.xlu1 %v7048_v52, %s6222_s21 }
 0x306   :  { %894 = vrot.lane.b32.xlu0 %v7051_v3, %s6222_s21 }
 0x30d   :  { %904 = vrot.lane.b32.xlu2 %v7064_v38, %s6222_s21  ;;  %902 = vrot.lane.b32.xlu1 %v7069_v5, %s6222_s21 }
 0x30e   :  { %900 = vrot.lane.b32.xlu0 %v7072_v31, %s6222_s21 }
 0x30f   :  { %v839_v33 = vpop.permute.xlu2 %838 }
 0x310   :  { %v7079_v23 = vmax.f32 %v6826_v12, %v839_v33 }
 0x315   :  { %1018 = vrot.lane.b32.xlu2 %v7079_v23, %s6221_s1 }
 0x317   :  { %v845_v48 = vpop.permute.xlu2 %844 }
 0x318   :  { %v7084_v34 = vmax.f32 %v6848_v25, %v845_v48 }
 0x31d   :  { %1024 = vrot.lane.b32.xlu2 %v7084_v34, %s6221_s1 }
 0x31f   :  { %v851_v24 = vpop.permute.xlu2 %850 }
 0x320   :  { %v7089_v59 = vmax.f32 %v6869_v60, %v851_v24 }
 0x325   :  { %1030 = vrot.lane.b32.xlu2 %v7089_v59, %s6221_s1 }
 0x327   :  { %v857_v29 = vpop.permute.xlu2 %856  ;;  %v837_v12 = vpop.permute.xlu1 %836 }
 0x328   :  { %v835_v41 = vpop.permute.xlu0 %834  ;;  %v7094_v8 = vmax.f32 %v6831_v19, %v837_v12  ;;  %v7100_v25 = vmax.f32 %v6905_v17, %v857_v29 }
 0x329   :  { %v7097_v13 = vmax.f32 %v6833_v18, %v835_v41 }
 0x32a   :  { %1016 = vrot.lane.b32.xlu1 %v7094_v8, %s6221_s1 }
 0x32b   :  { %1014 = vrot.lane.b32.xlu0 %v7097_v13, %s6221_s1 }
 0x32d   :  { %1036 = vrot.lane.b32.xlu2 %v7100_v25, %s6221_s1 }
 0x32f   :  { %v863_v60 = vpop.permute.xlu2 %862  ;;  %v843_v16 = vpop.permute.xlu1 %842 }
 0x330   :  { %v841_v55 = vpop.permute.xlu0 %840  ;;  %v7109_v19 = vmax.f32 %v6854_v47, %v843_v16  ;;  %v7115_v17 = vmax.f32 %v6926_v54, %v863_v60 }
 0x331   :  { %v7112_v18 = vmax.f32 %v6856_v21, %v841_v55 }
 0x332   :  { %1022 = vrot.lane.b32.xlu1 %v7109_v19, %s6221_s1 }
 0x333   :  { %1020 = vrot.lane.b32.xlu0 %v7112_v18, %s6221_s1 }
 0x335   :  { %1042 = vrot.lane.b32.xlu2 %v7115_v17, %s6221_s1 }
 0x337   :  { %v869_v58 = vpop.permute.xlu2 %868  ;;  %v849_v0 = vpop.permute.xlu1 %848 }
 0x338   :  { %v847_v53 = vpop.permute.xlu0 %846  ;;  %v7124_v47 = vmax.f32 %v6875_v56, %v849_v0  ;;  %v7130_v54 = vmax.f32 %v6947_v7, %v869_v58 }
 0x339   :  { %v7127_v21 = vmax.f32 %v6877_v9, %v847_v53 }
 0x33a   :  { %1028 = vrot.lane.b32.xlu1 %v7124_v47, %s6221_s1 }
 0x33b   :  { %1026 = vrot.lane.b32.xlu0 %v7127_v21, %s6221_s1 }
 0x33d   :  { %1048 = vrot.lane.b32.xlu2 %v7130_v54, %s6221_s1 }
 0x33f   :  { %v875_v11 = vpop.permute.xlu2 %874  ;;  %v855_v10 = vpop.permute.xlu1 %854 }
 0x340   :  { %v853_v15 = vpop.permute.xlu0 %852  ;;  %v7139_v56 = vmax.f32 %v6911_v63, %v855_v10  ;;  %v7145_v7 = vmax.f32 %v6968_v61, %v875_v11 }
 0x341   :  { %v7142_v9 = vmax.f32 %v6913_v27, %v853_v15 }
 0x342   :  { %1034 = vrot.lane.b32.xlu1 %v7139_v56, %s6221_s1 }
 0x343   :  { %1032 = vrot.lane.b32.xlu0 %v7142_v9, %s6221_s1 }
 0x345   :  { %1054 = vrot.lane.b32.xlu2 %v7145_v7, %s6221_s1 }
 0x347   :  { %v881_v37 = vpop.permute.xlu2 %880  ;;  %v861_v14 = vpop.permute.xlu1 %860 }
 0x348   :  { %v859_v4 = vpop.permute.xlu0 %858  ;;  %v7154_v63 = vmax.f32 %v6932_v2, %v861_v14  ;;  %v7160_v61 = vmax.f32 %v6982_v26, %v881_v37 }
 0x349   :  { %v7157_v27 = vmax.f32 %v6934_v22, %v859_v4 }
 0x34a   :  { %1040 = vrot.lane.b32.xlu1 %v7154_v63, %s6221_s1 }
 0x34b   :  { %1038 = vrot.lane.b32.xlu0 %v7157_v27, %s6221_s1 }
 0x34d   :  { %1060 = vrot.lane.b32.xlu2 %v7160_v61, %s6221_s1 }
 0x34f   :  { %v887_v35 = vpop.permute.xlu2 %886  ;;  %v867_v30 = vpop.permute.xlu1 %866 }
 0x350   :  { %v865_v33 = vpop.permute.xlu0 %864  ;;  %v7169_v2 = vmax.f32 %v6953_v6, %v867_v30  ;;  %v7175_v26 = vmax.f32 %v7001_v1, %v887_v35 }
 0x351   :  { %v7172_v22 = vmax.f32 %v6955_v28, %v865_v33 }
 0x352   :  { %1046 = vrot.lane.b32.xlu1 %v7169_v2, %s6221_s1 }
 0x353   :  { %1044 = vrot.lane.b32.xlu0 %v7172_v22, %s6221_s1 }
 0x355   :  { %1066 = vrot.lane.b32.xlu2 %v7175_v26, %s6221_s1 }
 0x357   :  { %v893_v48 = vpop.permute.xlu2 %892  ;;  %v873_v24 = vpop.permute.xlu1 %872 }
 0x358   :  { %v871_v29 = vpop.permute.xlu0 %870  ;;  %v7184_v6 = vmax.f32 %v6974_v43, %v873_v24  ;;  %v7190_v1 = vmax.f32 %v7022_v36, %v893_v48 }
 0x359   :  { %v7187_v28 = vmax.f32 %v6976_v44, %v871_v29 }
 0x35a   :  { %1052 = vrot.lane.b32.xlu1 %v7184_v6, %s6221_s1 }
 0x35b   :  { %1050 = vrot.lane.b32.xlu0 %v7187_v28, %s6221_s1 }
 0x35d   :  { %1072 = vrot.lane.b32.xlu2 %v7190_v1, %s6221_s1 }
 0x35f   :  { %v899_v12 = vpop.permute.xlu2 %898  ;;  %v879_v41 = vpop.permute.xlu1 %878 }
 0x360   :  { %v877_v60 = vpop.permute.xlu0 %876  ;;  %v7199_v43 = vmax.f32 %v6986_v57, %v879_v41  ;;  %v7205_v36 = vmax.f32 %v7043_v51, %v899_v12 }
 0x361   :  { %v7202_v44 = vmax.f32 %v6988_v49, %v877_v60 }
 0x362   :  { %1058 = vrot.lane.b32.xlu1 %v7199_v43, %s6221_s1 }
 0x363   :  { %1056 = vrot.lane.b32.xlu0 %v7202_v44, %s6221_s1 }
 0x365   :  { %1078 = vrot.lane.b32.xlu2 %v7205_v36, %s6221_s1 }
 0x367   :  { %v905_v16 = vpop.permute.xlu2 %904  ;;  %v885_v55 = vpop.permute.xlu1 %884 }
 0x368   :  { %v883_v58 = vpop.permute.xlu0 %882  ;;  %v7214_v57 = vmax.f32 %v7006_v62, %v885_v55  ;;  %v7220_v51 = vmax.f32 %v7064_v38, %v905_v16 }
 0x369   :  { %v7217_v49 = vmax.f32 %v7009_v50, %v883_v58 }
 0x36a   :  { %1064 = vrot.lane.b32.xlu1 %v7214_v57, %s6221_s1 }
 0x36b   :  { %1062 = vrot.lane.b32.xlu0 %v7217_v49, %s6221_s1 }
 0x36d   :  { %1084 = vrot.lane.b32.xlu2 %v7220_v51, %s6221_s1 }
 0x36f   :  { %v1019_v0 = vpop.permute.xlu2 %1018  ;;  %v891_v62 = vpop.permute.xlu1 %890 }
 0x370   :  { %v1124_v53 = vmax.f32 %v7079_v23, %v1019_v0  ;;  %v889_v11 = vpop.permute.xlu0 %888  ;;  %v7230_v50 = vmax.f32 %v7027_v20, %v891_v62 }
 0x371   :  { %v7233_v38 = vmax.f32 %v7030_v32, %v889_v11 }
 0x372   :  { %1160 = vst.msk [vmem:[#allocation2 + $0x10] sm:$0xff] %vm597_vm3, %v1124_v53  ;;  %1070 = vrot.lane.b32.xlu1 %v7230_v50, %s6221_s1 }
 0x373   :  { %1068 = vrot.lane.b32.xlu0 %v7233_v38, %s6221_s1 }
 0x377   :  { %v1025_v10 = vpop.permute.xlu2 %1024  ;;  %v897_v23 = vpop.permute.xlu1 %896 }
 0x378   :  { %v1127_v15 = vmax.f32 %v7084_v34, %v1025_v10  ;;  %v895_v37 = vpop.permute.xlu0 %894  ;;  %v7242_v14 = vmax.f32 %v7048_v52, %v897_v23 }
 0x379   :  { %v7245_v20 = vmax.f32 %v7051_v3, %v895_v37  ;;  %v1201_v32 = vld [vmem:[#allocation2 + $0x10] sm:$0xff] }
 0x37a   :  { %1163 = vst.msk [vmem:[#allocation2 + $0x28] sm:$0xff] %vm597_vm3, %v1127_v15  ;;  %1076 = vrot.lane.b32.xlu1 %v7242_v14, %s6221_s1 }
 0x37b   :  { %1074 = vrot.lane.b32.xlu0 %v7245_v20, %s6221_s1  ;;  %1237 = vst.msk [vmem:[#allocation3 + $0x20] sm:$0xff] %vm597_vm3, %v1201_v32 }
 0x37f   :  { %v1031_v34 = vpop.permute.xlu2 %1030  ;;  %v903_v35 = vpop.permute.xlu1 %902 }
 0x380   :  { %v1130_v4 = vmax.f32 %v7089_v59, %v1031_v34  ;;  %v901_v52 = vpop.permute.xlu0 %900  ;;  %v7255_v30 = vmax.f32 %v7069_v5, %v903_v35 }
 0x381   :  { %v7258_v3 = vmax.f32 %v7072_v31, %v901_v52  ;;  %v1204_v33 = vld [vmem:[#allocation2 + $0x28] sm:$0xff] }
 0x382   :  { %1166 = vst.msk [vmem:[#allocation2 + $0x40] sm:$0xff] %vm597_vm3, %v1130_v4  ;;  %1082 = vrot.lane.b32.xlu1 %v7255_v30, %s6221_s1 }
 0x383   :  { %1080 = vrot.lane.b32.xlu0 %v7258_v3, %s6221_s1  ;;  %1240 = vst.msk [vmem:[#allocation3 + $0x50] sm:$0xff] %vm597_vm3, %v1204_v33 }
 0x387   :  { %v1037_v59 = vpop.permute.xlu2 %1036 }
 0x388   :  { %v1133_v48 = vmax.f32 %v7100_v25, %v1037_v59 }
 0x389   :  { %v1207_v24 = vld [vmem:[#allocation2 + $0x40] sm:$0xff] }
 0x38a   :  { %1169 = vst.msk [vmem:[#allocation2 + $0x58] sm:$0xff] %vm597_vm3, %v1133_v48 }
 0x38b   :  { %1243 = vst.msk [vmem:[#allocation3 + $0x80] sm:$0xff] %vm597_vm3, %v1207_v24 }
 0x38f   :  { %v1043_v5 = vpop.permute.xlu2 %1042 }
 0x390   :  { %v1136_v31 = vmax.f32 %v7115_v17, %v1043_v5 }
 0x391   :  { %v1210_v29 = vld [vmem:[#allocation2 + $0x58] sm:$0xff] }
 0x392   :  { %1172 = vst.msk [vmem:[#allocation2 + $0x70] sm:$0xff] %vm597_vm3, %v1136_v31 }
 0x393   :  { %1246 = vst.msk [vmem:[#allocation3 + $0xb0] sm:$0xff] %vm597_vm3, %v1210_v29 }
 0x397   :  { %v1049_v12 = vpop.permute.xlu2 %1048 }
 0x398   :  { %v1139_v41 = vmax.f32 %v7130_v54, %v1049_v12 }
 0x399   :  { %v1213_v60 = vld [vmem:[#allocation2 + $0x70] sm:$0xff] }
 0x39a   :  { %1175 = vst.msk [vmem:[#allocation2 + $0x88] sm:$0xff] %vm597_vm3, %v1139_v41 }
 0x39b   :  { %1249 = vst.msk [vmem:[#allocation3 + $0xe0] sm:$0xff] %vm597_vm3, %v1213_v60 }
 0x39c   :  { %v1017_v25 = vpop.permute.xlu1 %1016 }
 0x39d   :  { %v1015_v16 = vpop.permute.xlu0 %1014  ;;  %v1123_v55 = vmax.f32 %v7094_v8, %v1017_v25 }
 0x39e   :  { %v1122_v58 = vmax.f32 %v7097_v13, %v1015_v16 }
 0x39f   :  { %v1055_v17 = vpop.permute.xlu2 %1054  ;;  %1159 = vst.msk [vmem:[#allocation2 + $0x8] sm:$0xff] %vm597_vm3, %v1123_v55 }
 0x3a0   :  { %v1142_v0 = vmax.f32 %v7145_v7, %v1055_v17  ;;  %1158 = vst.msk [vmem:[#allocation2] sm:$0xff] %vm597_vm3, %v1122_v58 }
 0x3a1   :  { %v1216_v53 = vld [vmem:[#allocation2 + $0x88] sm:$0xff] }
 0x3a2   :  { %1178 = vst.msk [vmem:[#allocation2 + $0xa0] sm:$0xff] %vm597_vm3, %v1142_v0 }
 0x3a3   :  { %1252 = vst.msk [vmem:[#allocation3 + $0x110] sm:$0xff] %vm597_vm3, %v1216_v53 }
 0x3a4   :  { %v1023_v54 = vpop.permute.xlu1 %1022 }
 0x3a5   :  { %v1021_v62 = vpop.permute.xlu0 %1020  ;;  %v1126_v11 = vmax.f32 %v7109_v19, %v1023_v54 }
 0x3a6   :  { %v1125_v8 = vmax.f32 %v7112_v18, %v1021_v62  ;;  %v1272_v13 = vld [vmem:[#allocation2 + $0x9] sm:$0xff] }
 0x3a7   :  { %v1061_v10 = vpop.permute.xlu2 %1060  ;;  %1162 = vst.msk [vmem:[#allocation2 + $0x20] sm:$0xff] %vm597_vm3, %v1126_v11  ;;  %1345 = vrot.lane.b32.xlu1 %v1272_v13, %s6225_s24  ;;  %v1271_v7 = vld [vmem:[#allocation2 + $0x1] sm:$0xff] }
 0x3a8   :  { %v1145_v15 = vmax.f32 %v7160_v61, %v1061_v10  ;;  %v1200_v23 = vld [vmem:[#allocation2 + $0x8] sm:$0xff]  ;;  %1161 = vst.msk [vmem:[#allocation2 + $0x18] sm:$0xff] %vm597_vm3, %v1125_v8  ;;  %1343 = vrot.lane.b32.xlu0 %v1271_v7, %s6225_s24  ;;  %v1199_v37 = vld [vmem:[#allocation2] sm:$0xff] }
 0x3a9   :  { %v1219_v19 = vld [vmem:[#allocation2 + $0xa0] sm:$0xff]  ;;  %1236 = vst.msk [vmem:[#allocation3 + $0x10] sm:$0xff] %vm597_vm3, %v1200_v23 }
 0x3aa   :  { %1181 = vst.msk [vmem:[#allocation2 + $0xb8] sm:$0xff] %vm597_vm3, %v1145_v15 }
 0x3ab   :  { %1235 = vst.msk [vmem:[#allocation3] sm:$0xff] %vm597_vm3, %v1199_v37 }
 0x3ac   :  { %v1029_v18 = vpop.permute.xlu1 %1028  ;;  %1255 = vst.msk [vmem:[#allocation3 + $0x140] sm:$0xff] %vm597_vm3, %v1219_v19 }
 0x3ad   :  { %v1027_v32 = vpop.permute.xlu0 %1026  ;;  %v1129_v61 = vmax.f32 %v7124_v47, %v1029_v18 }
 0x3ae   :  { %v1128_v34 = vmax.f32 %v7127_v21, %v1027_v32  ;;  %v1275_v35 = vld [vmem:[#allocation2 + $0x21] sm:$0xff] }
 0x3af   :  { %v1067_v4 = vpop.permute.xlu2 %1066  ;;  %1165 = vst.msk [vmem:[#allocation2 + $0x38] sm:$0xff] %vm597_vm3, %v1129_v61  ;;  %1351 = vrot.lane.b32.xlu1 %v1275_v35, %s6225_s24  ;;  %v1274_v33 = vld [vmem:[#allocation2 + $0x19] sm:$0xff]  ;;  %v1273_v59 = vld [vmem:[#allocation2 + $0x11] sm:$0xff] }
 0x3b0   :  { %v1148_v52 = vmax.f32 %v7175_v26, %v1067_v4  ;;  %v1203_v48 = vld [vmem:[#allocation2 + $0x20] sm:$0xff]  ;;  %1164 = vst.msk [vmem:[#allocation2 + $0x30] sm:$0xff] %vm597_vm3, %v1128_v34  ;;  %1349 = vrot.lane.b32.xlu0 %v1274_v33, %s6225_s24  ;;  %1347 = vrot.lane.b32.xlu2 %v1273_v59, %s6225_s24  ;;  %v1202_v47 = vld [vmem:[#allocation2 + $0x18] sm:$0xff] }
 0x3b1   :  { %v1222_v21 = vld [vmem:[#allocation2 + $0xb8] sm:$0xff]  ;;  %1239 = vst.msk [vmem:[#allocation3 + $0x40] sm:$0xff] %vm597_vm3, %v1203_v48 }
 0x3b2   :  { %1184 = vst.msk [vmem:[#allocation2 + $0xd0] sm:$0xff] %vm597_vm3, %v1148_v52 }
 0x3b3   :  { %1238 = vst.msk [vmem:[#allocation3 + $0x30] sm:$0xff] %vm597_vm3, %v1202_v47 }
 0x3b4   :  { %v1035_v26 = vpop.permute.xlu1 %1034  ;;  %1258 = vst.msk [vmem:[#allocation3 + $0x170] sm:$0xff] %vm597_vm3, %v1222_v21 }
 0x3b5   :  { %v1033_v24 = vpop.permute.xlu0 %1032  ;;  %v1132_v5 = vmax.f32 %v7139_v56, %v1035_v26 }
 0x3b6   :  { %v1131_v31 = vmax.f32 %v7142_v9, %v1033_v24  ;;  %v1278_v12 = vld [vmem:[#allocation2 + $0x39] sm:$0xff] }
 0x3b7   :  { %v1073_v29 = vpop.permute.xlu2 %1072  ;;  %1168 = vst.msk [vmem:[#allocation2 + $0x50] sm:$0xff] %vm597_vm3, %v1132_v5  ;;  %1357 = vrot.lane.b32.xlu1 %v1278_v12, %s6225_s24  ;;  %v1277_v60 = vld [vmem:[#allocation2 + $0x31] sm:$0xff]  ;;  %v1276_v25 = vld [vmem:[#allocation2 + $0x29] sm:$0xff] }
 0x3b8   :  { %v1151_v41 = vmax.f32 %v7190_v1, %v1073_v29  ;;  %v1206_v16 = vld [vmem:[#allocation2 + $0x38] sm:$0xff]  ;;  %1167 = vst.msk [vmem:[#allocation2 + $0x48] sm:$0xff] %vm597_vm3, %v1131_v31  ;;  %1355 = vrot.lane.b32.xlu0 %v1277_v60, %s6225_s24  ;;  %1353 = vrot.lane.b32.xlu2 %v1276_v25, %s6225_s24  ;;  %v1205_v56 = vld [vmem:[#allocation2 + $0x30] sm:$0xff] }
 0x3b9   :  { %v1225_v9 = vld [vmem:[#allocation2 + $0xd0] sm:$0xff]  ;;  %1242 = vst.msk [vmem:[#allocation3 + $0x70] sm:$0xff] %vm597_vm3, %v1206_v16 }
 0x3ba   :  { %1187 = vst.msk [vmem:[#allocation2 + $0xe8] sm:$0xff] %vm597_vm3, %v1151_v41 }
 0x3bb   :  { %1241 = vst.msk [vmem:[#allocation3 + $0x60] sm:$0xff] %vm597_vm3, %v1205_v56 }
 0x3bc   :  { %v1041_v1 = vpop.permute.xlu1 %1040  ;;  %1261 = vst.msk [vmem:[#allocation3 + $0x1a0] sm:$0xff] %vm597_vm3, %v1225_v9 }
 0x3bd   :  { %v1039_v55 = vpop.permute.xlu0 %1038  ;;  %v1135_v58 = vmax.f32 %v7154_v63, %v1041_v1 }
 0x3be   :  { %v1134_v17 = vmax.f32 %v7157_v27, %v1039_v55  ;;  %v1281_v53 = vld [vmem:[#allocation2 + $0x51] sm:$0xff] }
 0x3bf   :  { %v1079_v0 = vpop.permute.xlu2 %1078  ;;  %1171 = vst.msk [vmem:[#allocation2 + $0x68] sm:$0xff] %vm597_vm3, %v1135_v58  ;;  %1363 = vrot.lane.b32.xlu1 %v1281_v53, %s6225_s24  ;;  %v1280_v62 = vld [vmem:[#allocation2 + $0x49] sm:$0xff]  ;;  %v1279_v11 = vld [vmem:[#allocation2 + $0x41] sm:$0xff] }
 0x3c0   :  { %v1154_v54 = vmax.f32 %v7205_v36, %v1079_v0  ;;  %v1209_v8 = vld [vmem:[#allocation2 + $0x50] sm:$0xff]  ;;  %1170 = vst.msk [vmem:[#allocation2 + $0x60] sm:$0xff] %vm597_vm3, %v1134_v17  ;;  %1361 = vrot.lane.b32.xlu0 %v1280_v62, %s6225_s24  ;;  %1359 = vrot.lane.b32.xlu2 %v1279_v11, %s6225_s24  ;;  %v1208_v63 = vld [vmem:[#allocation2 + $0x48] sm:$0xff] }
 0x3c1   :  { %v1228_v27 = vld [vmem:[#allocation2 + $0xe8] sm:$0xff]  ;;  %1245 = vst.msk [vmem:[#allocation3 + $0xa0] sm:$0xff] %vm597_vm3, %v1209_v8 }
 0x3c2   :  { %1190 = vst.msk [vmem:[#allocation2 + $0x100] sm:$0xff] %vm597_vm3, %v1154_v54 }
 0x3c3   :  { %1244 = vst.msk [vmem:[#allocation3 + $0x90] sm:$0xff] %vm597_vm3, %v1208_v63 }
 0x3c4   :  { %v1047_v36 = vpop.permute.xlu1 %1046  ;;  %1264 = vst.msk [vmem:[#allocation3 + $0x1d0] sm:$0xff] %vm597_vm3, %v1228_v27 }
 0x3c5   :  { %v1045_v10 = vpop.permute.xlu0 %1044  ;;  %v1138_v13 = vmax.f32 %v7169_v2, %v1047_v36 }
 0x3c6   :  { %v1137_v15 = vmax.f32 %v7172_v22, %v1045_v10  ;;  %v1284_v23 = vld [vmem:[#allocation2 + $0x69] sm:$0xff] }
 0x3c7   :  { %v1085_v7 = vpop.permute.xlu2 %1084  ;;  %1174 = vst.msk [vmem:[#allocation2 + $0x80] sm:$0xff] %vm597_vm3, %v1138_v13  ;;  %1369 = vrot.lane.b32.xlu1 %v1284_v23, %s6225_s24  ;;  %v1283_v19 = vld [vmem:[#allocation2 + $0x61] sm:$0xff]  ;;  %v1282_v18 = vld [vmem:[#allocation2 + $0x59] sm:$0xff] }
 0x3c8   :  { %v1157_v37 = vmax.f32 %v7220_v51, %v1085_v7  ;;  %v1212_v32 = vld [vmem:[#allocation2 + $0x68] sm:$0xff]  ;;  %1173 = vst.msk [vmem:[#allocation2 + $0x78] sm:$0xff] %vm597_vm3, %v1137_v15  ;;  %1367 = vrot.lane.b32.xlu0 %v1283_v19, %s6225_s24  ;;  %1365 = vrot.lane.b32.xlu2 %v1282_v18, %s6225_s24  ;;  %v1211_v2 = vld [vmem:[#allocation2 + $0x60] sm:$0xff] }
 0x3c9   :  { %v1231_v22 = vld [vmem:[#allocation2 + $0x100] sm:$0xff]  ;;  %1248 = vst.msk [vmem:[#allocation3 + $0xd0] sm:$0xff] %vm597_vm3, %v1212_v32 }
 0x3ca   :  { %1193 = vst.msk [vmem:[#allocation2 + $0x118] sm:$0xff] %vm597_vm3, %v1157_v37 }
 0x3cb   :  { %1247 = vst.msk [vmem:[#allocation3 + $0xc0] sm:$0xff] %vm597_vm3, %v1211_v2 }
 0x3cc   :  { %v1053_v51 = vpop.permute.xlu1 %1052  ;;  %1267 = vst.msk [vmem:[#allocation3 + $0x200] sm:$0xff] %vm597_vm3, %v1231_v22 }
 0x3cd   :  { %v1051_v61 = vpop.permute.xlu0 %1050  ;;  %v1141_v34 = vmax.f32 %v7184_v6, %v1053_v51 }
 0x3ce   :  { %v1140_v4 = vmax.f32 %v7187_v28, %v1051_v61  ;;  %v1287_v35 = vld [vmem:[#allocation2 + $0x81] sm:$0xff]  ;;  %v1489_v61 = vld [vmem:[#allocation2 + $0xa] sm:$0xff] }
 0x3cf   :  { %v1215_v52 = vld [vmem:[#allocation2 + $0x80] sm:$0xff]  ;;  %1177 = vst.msk [vmem:[#allocation2 + $0x98] sm:$0xff] %vm597_vm3, %v1141_v34  ;;  %1375 = vrot.lane.b32.xlu1 %v1287_v35, %s6225_s24  ;;  %v1285_v59 = vld [vmem:[#allocation2 + $0x71] sm:$0xff] }
 0x3d0   :  { %v1286_v33 = vld [vmem:[#allocation2 + $0x79] sm:$0xff]  ;;  %1176 = vst.msk [vmem:[#allocation2 + $0x90] sm:$0xff] %vm597_vm3, %v1140_v4  ;;  %1371 = vrot.lane.b32.xlu2 %v1285_v59, %s6225_s24  ;;  %v1488_v34 = vld [vmem:[#allocation2 + $0x2] sm:$0xff] }
 0x3d1   :  { %1373 = vrot.lane.b32.xlu0 %v1286_v33, %s6225_s24  ;;  %v1214_v48 = vld [vmem:[#allocation2 + $0x78] sm:$0xff]  ;;  %1251 = vst.msk [vmem:[#allocation3 + $0x100] sm:$0xff] %vm597_vm3, %v1215_v52  ;;  %v2792_v52 = vld [vmem:[#allocation2 + $0x28] sm:$0xff]  ;;  %v2795_v33 = vld [vmem:[#allocation2 + $0x40] sm:$0xff] }
 0x3d2   :  { %v1234_v6 = vld [vmem:[#allocation2 + $0x118] sm:$0xff]  ;;  %1250 = vst.msk [vmem:[#allocation3 + $0xf0] sm:$0xff] %vm597_vm3, %v1214_v48  ;;  %v2801_v48 = vld [vmem:[#allocation2 + $0x70] sm:$0xff] }
 0x3d3   :  { %1270 = vst.msk [vmem:[#allocation3 + $0x230] sm:$0xff] %vm597_vm3, %v1234_v6  ;;  %v1306_v4 = vld [vmem:[#allocation2 + $0x119] sm:$0xff]  ;;  %v2804_v6 = vld [vmem:[#allocation2 + $0x88] sm:$0xff] }
 0x3d4   :  { %v1059_v28 = vpop.permute.xlu1 %1058  ;;  %v2798_v59 = vld [vmem:[#allocation2 + $0x58] sm:$0xff]  ;;  %2828 = vst.msk [vmem:[#allocation3 + $0x28] sm:$0xff] %vm597_vm3, %v2792_v52 }
 0x3d5   :  { %v1057_v47 = vpop.permute.xlu0 %1056  ;;  %v1144_v21 = vmax.f32 %v7199_v43, %v1059_v28  ;;  %2831 = vst.msk [vmem:[#allocation3 + $0x58] sm:$0xff] %vm597_vm3, %v2795_v33  ;;  %v1492_v28 = vld [vmem:[#allocation2 + $0x22] sm:$0xff] }
 0x3d6   :  { %v1143_v26 = vmax.f32 %v7202_v44, %v1057_v47  ;;  %v1290_v24 = vld [vmem:[#allocation2 + $0x99] sm:$0xff]  ;;  %2834 = vst.msk [vmem:[#allocation3 + $0x88] sm:$0xff] %vm597_vm3, %v2798_v59 }
 0x3d7   :  { %v1218_v5 = vld [vmem:[#allocation2 + $0x98] sm:$0xff]  ;;  %1180 = vst.msk [vmem:[#allocation2 + $0xb0] sm:$0xff] %vm597_vm3, %v1144_v21  ;;  %1381 = vrot.lane.b32.xlu1 %v1290_v24, %s6225_s24  ;;  %v1288_v29 = vld [vmem:[#allocation2 + $0x89] sm:$0xff]  ;;  %v2807_v24 = vld [vmem:[#allocation2 + $0xa0] sm:$0xff] }
 0x3d8   :  { %v1289_v31 = vld [vmem:[#allocation2 + $0x91] sm:$0xff]  ;;  %1179 = vst.msk [vmem:[#allocation2 + $0xa8] sm:$0xff] %vm597_vm3, %v1143_v26  ;;  %1377 = vrot.lane.b32.xlu2 %v1288_v29, %s6225_s24  ;;  %v1491_v47 = vld [vmem:[#allocation2 + $0x1a] sm:$0xff] }
 0x3d9   :  { %1379 = vrot.lane.b32.xlu0 %v1289_v31, %s6225_s24  ;;  %v1217_v12 = vld [vmem:[#allocation2 + $0x90] sm:$0xff]  ;;  %1254 = vst.msk [vmem:[#allocation3 + $0x130] sm:$0xff] %vm597_vm3, %v1218_v5  ;;  %v1495_v5 = vld [vmem:[#allocation2 + $0x3a] sm:$0xff] }
 0x3da   :  { %1253 = vst.msk [vmem:[#allocation3 + $0x120] sm:$0xff] %vm597_vm3, %v1217_v12  ;;  %v1490_v21 = vld [vmem:[#allocation2 + $0x12] sm:$0xff]  ;;  %v1493_v29 = vld [vmem:[#allocation2 + $0x2a] sm:$0xff] }
 0x3db   :  { %2837 = vst.msk [vmem:[#allocation3 + $0xb8] sm:$0xff] %vm597_vm3, %v2801_v48  ;;  %v1494_v31 = vld [vmem:[#allocation2 + $0x32] sm:$0xff] }
 0x3dc   :  { %v1065_v43 = vpop.permute.xlu1 %1064  ;;  %2840 = vst.msk [vmem:[#allocation3 + $0xe8] sm:$0xff] %vm597_vm3, %v2804_v6  ;;  %v2805_v48 = vld [vmem:[#allocation2 + $0x90] sm:$0xff] }
 0x3dd   :  { %v1063_v44 = vpop.permute.xlu0 %1062  ;;  %v1147_v41 = vmax.f32 %v7214_v57, %v1065_v43  ;;  %2843 = vst.msk [vmem:[#allocation3 + $0x118] sm:$0xff] %vm597_vm3, %v2807_v24 }
 0x3de   :  { %v1146_v60 = vmax.f32 %v7217_v49, %v1063_v44  ;;  %v1293_v25 = vld [vmem:[#allocation2 + $0xb1] sm:$0xff]  ;;  %2841 = vst.msk [vmem:[#allocation3 + $0xf8] sm:$0xff] %vm597_vm3, %v2805_v48 }
 0x3df   :  { %v1221_v16 = vld [vmem:[#allocation2 + $0xb0] sm:$0xff]  ;;  %1183 = vst.msk [vmem:[#allocation2 + $0xc8] sm:$0xff] %vm597_vm3, %v1147_v41  ;;  %1387 = vrot.lane.b32.xlu1 %v1293_v25, %s6225_s24  ;;  %v1291_v9 = vld [vmem:[#allocation2 + $0xa1] sm:$0xff]  ;;  %v2790_v25 = vld [vmem:[#allocation2 + $0x18] sm:$0xff] }
 0x3e0   :  { %v1292_v56 = vld [vmem:[#allocation2 + $0xa9] sm:$0xff]  ;;  %1182 = vst.msk [vmem:[#allocation2 + $0xc0] sm:$0xff] %vm597_vm3, %v1146_v60  ;;  %1383 = vrot.lane.b32.xlu2 %v1291_v9, %s6225_s24  ;;  %v2791_v41 = vld [vmem:[#allocation2 + $0x20] sm:$0xff]  ;;  %v2810_v60 = vld [vmem:[#allocation2 + $0xb8] sm:$0xff] }
 0x3e1   :  { %1385 = vrot.lane.b32.xlu0 %v1292_v56, %s6225_s24  ;;  %v1220_v1 = vld [vmem:[#allocation2 + $0xa8] sm:$0xff]  ;;  %1257 = vst.msk [vmem:[#allocation3 + $0x160] sm:$0xff] %vm597_vm3, %v1221_v16  ;;  %v1498_v16 = vld [vmem:[#allocation2 + $0x52] sm:$0xff] }
 0x3e2   :  { %1256 = vst.msk [vmem:[#allocation3 + $0x150] sm:$0xff] %vm597_vm3, %v1220_v1  ;;  %v1497_v56 = vld [vmem:[#allocation2 + $0x4a] sm:$0xff]  ;;  %v1496_v9 = vld [vmem:[#allocation2 + $0x42] sm:$0xff] }
 0x3e3   :  { %2827 = vst.msk [vmem:[#allocation3 + $0x18] sm:$0xff] %vm597_vm3, %v2791_v41  ;;  %v1718_v48 = vld [vmem:[#allocation2 + $0x6b] sm:$0xff] }
 0x3e4   :  { %v1071_v57 = vpop.permute.xlu1 %1070  ;;  %2846 = vst.msk [vmem:[#allocation3 + $0x148] sm:$0xff] %vm597_vm3, %v2810_v60 }
 0x3e5   :  { %v1069_v49 = vpop.permute.xlu0 %1068  ;;  %v1150_v55 = vmax.f32 %v7230_v50, %v1071_v57  ;;  %2826 = vst.msk [vmem:[#allocation3 + $0x8] sm:$0xff] %vm597_vm3, %v2790_v25 }
 0x3e6   :  { %v1149_v58 = vmax.f32 %v7233_v38, %v1069_v49  ;;  %v1296_v17 = vld [vmem:[#allocation2 + $0xc9] sm:$0xff] }
 0x3e7   :  { %v1224_v0 = vld [vmem:[#allocation2 + $0xc8] sm:$0xff]  ;;  %1186 = vst.msk [vmem:[#allocation2 + $0xe0] sm:$0xff] %vm597_vm3, %v1150_v55  ;;  %1393 = vrot.lane.b32.xlu1 %v1296_v17, %s6225_s24  ;;  %v1294_v54 = vld [vmem:[#allocation2 + $0xb9] sm:$0xff]  ;;  %v2793_v17 = vld [vmem:[#allocation2 + $0x30] sm:$0xff] }
 0x3e8   :  { %v1295_v53 = vld [vmem:[#allocation2 + $0xc1] sm:$0xff]  ;;  %1185 = vst.msk [vmem:[#allocation2 + $0xd8] sm:$0xff] %vm597_vm3, %v1149_v58  ;;  %1389 = vrot.lane.b32.xlu2 %v1294_v54, %s6225_s24  ;;  %v2794_v55 = vld [vmem:[#allocation2 + $0x38] sm:$0xff]  ;;  %v2813_v58 = vld [vmem:[#allocation2 + $0xd0] sm:$0xff] }
 0x3e9   :  { %1391 = vrot.lane.b32.xlu0 %v1295_v53, %s6225_s24  ;;  %v1223_v62 = vld [vmem:[#allocation2 + $0xc0] sm:$0xff]  ;;  %1260 = vst.msk [vmem:[#allocation3 + $0x190] sm:$0xff] %vm597_vm3, %v1224_v0  ;;  %v1501_v0 = vld [vmem:[#allocation2 + $0x6a] sm:$0xff] }
 0x3ea   :  { %1259 = vst.msk [vmem:[#allocation3 + $0x180] sm:$0xff] %vm597_vm3, %v1223_v62  ;;  %v1500_v53 = vld [vmem:[#allocation2 + $0x62] sm:$0xff]  ;;  %v1499_v54 = vld [vmem:[#allocation2 + $0x5a] sm:$0xff]  ;;  %v1513_v6 = vld [vmem:[#allocation2 + $0xca] sm:$0xff] }
 0x3eb   :  { %2830 = vst.msk [vmem:[#allocation3 + $0x48] sm:$0xff] %vm597_vm3, %v2794_v55 }
 0x3ec   :  { %v1077_v50 = vpop.permute.xlu1 %1076  ;;  %2849 = vst.msk [vmem:[#allocation3 + $0x178] sm:$0xff] %vm597_vm3, %v2813_v58 }
 0x3ed   :  { %v1075_v38 = vpop.permute.xlu0 %1074  ;;  %v1153_v11 = vmax.f32 %v7242_v14, %v1077_v50  ;;  %2829 = vst.msk [vmem:[#allocation3 + $0x38] sm:$0xff] %vm597_vm3, %v2793_v17 }
 0x3ee   :  { %v1152_v8 = vmax.f32 %v7245_v20, %v1075_v38  ;;  %v1299_v63 = vld [vmem:[#allocation2 + $0xe1] sm:$0xff] }
 0x3ef   :  { %v1227_v27 = vld [vmem:[#allocation2 + $0xe0] sm:$0xff]  ;;  %1189 = vst.msk [vmem:[#allocation2 + $0xf8] sm:$0xff] %vm597_vm3, %v1153_v11  ;;  %1399 = vrot.lane.b32.xlu1 %v1299_v63, %s6225_s24  ;;  %v1297_v10 = vld [vmem:[#allocation2 + $0xd1] sm:$0xff]  ;;  %v2796_v63 = vld [vmem:[#allocation2 + $0x48] sm:$0xff] }
 0x3f0   :  { %v1298_v36 = vld [vmem:[#allocation2 + $0xd9] sm:$0xff]  ;;  %1188 = vst.msk [vmem:[#allocation2 + $0xf0] sm:$0xff] %vm597_vm3, %v1152_v8  ;;  %1395 = vrot.lane.b32.xlu2 %v1297_v10, %s6225_s24  ;;  %v2797_v11 = vld [vmem:[#allocation2 + $0x50] sm:$0xff]  ;;  %v2816_v8 = vld [vmem:[#allocation2 + $0xe8] sm:$0xff] }
 0x3f1   :  { %1397 = vrot.lane.b32.xlu0 %v1298_v36, %s6225_s24  ;;  %v1226_v13 = vld [vmem:[#allocation2 + $0xd8] sm:$0xff]  ;;  %1263 = vst.msk [vmem:[#allocation3 + $0x1c0] sm:$0xff] %vm597_vm3, %v1227_v27  ;;  %v1504_v27 = vld [vmem:[#allocation2 + $0x82] sm:$0xff] }
 0x3f2   :  { %1262 = vst.msk [vmem:[#allocation3 + $0x1b0] sm:$0xff] %vm597_vm3, %v1226_v13  ;;  %v1503_v36 = vld [vmem:[#allocation2 + $0x7a] sm:$0xff]  ;;  %v1502_v10 = vld [vmem:[#allocation2 + $0x72] sm:$0xff]  ;;  %v2800_v13 = vld [vmem:[#allocation2 + $0x68] sm:$0xff] }
 0x3f3   :  { %2833 = vst.msk [vmem:[#allocation3 + $0x78] sm:$0xff] %vm597_vm3, %v2797_v11  ;;  %v2814_v17 = vld [vmem:[#allocation2 + $0xd8] sm:$0xff] }
 0x3f4   :  { %v1083_v14 = vpop.permute.xlu1 %1082  ;;  %2852 = vst.msk [vmem:[#allocation3 + $0x1a8] sm:$0xff] %vm597_vm3, %v2816_v8 }
 0x3f5   :  { %v1081_v20 = vpop.permute.xlu0 %1080  ;;  %v1156_v15 = vmax.f32 %v7255_v30, %v1083_v14  ;;  %2832 = vst.msk [vmem:[#allocation3 + $0x68] sm:$0xff] %vm597_vm3, %v2796_v63  ;;  %v1706_v63 = vld [vmem:[#allocation2 + $0xb] sm:$0xff] }
 0x3f6   :  { %v1155_v7 = vmax.f32 %v7258_v3, %v1081_v20  ;;  %v1302_v23 = vld [vmem:[#allocation2 + $0xf9] sm:$0xff]  ;;  %2836 = vst.msk [vmem:[#allocation3 + $0xa8] sm:$0xff] %vm597_vm3, %v2800_v13 }
 0x3f7   :  { %v1230_v37 = vld [vmem:[#allocation2 + $0xf8] sm:$0xff]  ;;  %1192 = vst.msk [vmem:[#allocation2 + $0x110] sm:$0xff] %vm597_vm3, %v1156_v15  ;;  %1405 = vrot.lane.b32.xlu1 %v1302_v23, %s6225_s24  ;;  %v1300_v18 = vld [vmem:[#allocation2 + $0xe9] sm:$0xff]  ;;  %v2799_v23 = vld [vmem:[#allocation2 + $0x60] sm:$0xff] }
 0x3f8   :  { %v1301_v19 = vld [vmem:[#allocation2 + $0xf1] sm:$0xff]  ;;  %1191 = vst.msk [vmem:[#allocation2 + $0x108] sm:$0xff] %vm597_vm3, %v1155_v7  ;;  %1401 = vrot.lane.b32.xlu2 %v1300_v18, %s6225_s24  ;;  %v2819_v7 = vld [vmem:[#allocation2 + $0x100] sm:$0xff] }
 0x3f9   :  { %1403 = vrot.lane.b32.xlu0 %v1301_v19, %s6225_s24  ;;  %v1229_v32 = vld [vmem:[#allocation2 + $0xf0] sm:$0xff]  ;;  %1266 = vst.msk [vmem:[#allocation3 + $0x1f0] sm:$0xff] %vm597_vm3, %v1230_v37  ;;  %v1507_v37 = vld [vmem:[#allocation2 + $0x9a] sm:$0xff] }
 0x3fa   :  { %1265 = vst.msk [vmem:[#allocation3 + $0x1e0] sm:$0xff] %vm597_vm3, %v1229_v32  ;;  %v1506_v19 = vld [vmem:[#allocation2 + $0x92] sm:$0xff]  ;;  %v1505_v18 = vld [vmem:[#allocation2 + $0x8a] sm:$0xff]  ;;  %v2803_v32 = vld [vmem:[#allocation2 + $0x80] sm:$0xff] }
 0x3fb   :  { %2855 = vst.msk [vmem:[#allocation3 + $0x1d8] sm:$0xff] %vm597_vm3, %v2819_v7  ;;  %v2817_v8 = vld [vmem:[#allocation2 + $0xf0] sm:$0xff]  ;;  %v1709_v7 = vld [vmem:[#allocation2 + $0x23] sm:$0xff] }
 0x3fc   :  { %2835 = vst.msk [vmem:[#allocation3 + $0x98] sm:$0xff] %vm597_vm3, %v2799_v23  ;;  %v1708_v23 = vld [vmem:[#allocation2 + $0x1b] sm:$0xff] }
 0x3fd   :  { %2839 = vst.msk [vmem:[#allocation3 + $0xd8] sm:$0xff] %vm597_vm3, %v2803_v32 }
 0x3fe   :  { %v1305_v30 = vld [vmem:[#allocation2 + $0x111] sm:$0xff]  ;;  %2850 = vst.msk [vmem:[#allocation3 + $0x188] sm:$0xff] %vm597_vm3, %v2814_v17 }
 0x3ff   :  { %v1233_v3 = vld [vmem:[#allocation2 + $0x110] sm:$0xff]  ;;  %1411 = vrot.lane.b32.xlu1 %v1305_v30, %s6225_s24  ;;  %v1303_v22 = vld [vmem:[#allocation2 + $0x101] sm:$0xff]  ;;  %2853 = vst.msk [vmem:[#allocation3 + $0x1b8] sm:$0xff] %vm597_vm3, %v2817_v8 }
 0x400   :  { %v1304_v2 = vld [vmem:[#allocation2 + $0x109] sm:$0xff]  ;;  %1269 = vst.msk [vmem:[#allocation3 + $0x220] sm:$0xff] %vm597_vm3, %v1233_v3  ;;  %1407 = vrot.lane.b32.xlu2 %v1303_v22, %s6225_s24  ;;  %v2822_v22 = vld [vmem:[#allocation2 + $0x118] sm:$0xff] }
 0x401   :  { %1409 = vrot.lane.b32.xlu0 %v1304_v2, %s6225_s24  ;;  %v1232_v51 = vld [vmem:[#allocation2 + $0x108] sm:$0xff]  ;;  %2858 = vst.msk [vmem:[#allocation3 + $0x208] sm:$0xff] %vm597_vm3, %v2822_v22  ;;  %v1731_v8 = vld [vmem:[#allocation2 + $0xd3] sm:$0xff] }
 0x402   :  { %1268 = vst.msk [vmem:[#allocation3 + $0x210] sm:$0xff] %vm597_vm3, %v1232_v51  ;;  %v2802_v51 = vld [vmem:[#allocation2 + $0x78] sm:$0xff]  ;;  %v1730_v17 = vld [vmem:[#allocation2 + $0xcb] sm:$0xff] }
 0x403   :  { %2838 = vst.msk [vmem:[#allocation3 + $0xc8] sm:$0xff] %vm597_vm3, %v2802_v51 }
 0x407   :  { %1562 = vrot.lane.b32.xlu1 %v1489_v61, %s6224_s23  ;;  %v1510_v61 = vld [vmem:[#allocation2 + $0xb2] sm:$0xff] }
 0x408   :  { %1413 = vrot.lane.b32.xlu2 %v1306_v4, %s6225_s24  ;;  %v1508_v4 = vld [vmem:[#allocation2 + $0xa2] sm:$0xff] }
 0x409   :  { %1560 = vrot.lane.b32.xlu0 %v1488_v34, %s6224_s23  ;;  %v1509_v34 = vld [vmem:[#allocation2 + $0xaa] sm:$0xff] }
 0x40a   :  { %v1348_v35 = vpop.permute.xlu2 %1347 }
 0x40b   :  { %1454 = vst.msk [vmem:[#allocation3 + $0x20] sm:$0xff] %vm1451_vm9, %v1348_v35  ;;  %v2806_v35 = vld [vmem:[#allocation2 + $0x98] sm:$0xff] }
 0x40c   :  { %2842 = vst.msk [vmem:[#allocation3 + $0x108] sm:$0xff] %vm597_vm3, %v2806_v35  ;;  %v1713_v35 = vld [vmem:[#allocation2 + $0x43] sm:$0xff] }
 0x40f   :  { %1568 = vrot.lane.b32.xlu1 %v1492_v28, %s6224_s23  ;;  %v1512_v28 = vld [vmem:[#allocation2 + $0xc2] sm:$0xff] }
 0x410   :  { %1564 = vrot.lane.b32.xlu2 %v1490_v21, %s6224_s23  ;;  %v2809_v21 = vld [vmem:[#allocation2 + $0xb0] sm:$0xff] }
 0x411   :  { %1566 = vrot.lane.b32.xlu0 %v1491_v47, %s6224_s23  ;;  %v1511_v47 = vld [vmem:[#allocation2 + $0xba] sm:$0xff]  ;;  %2845 = vst.msk [vmem:[#allocation3 + $0x138] sm:$0xff] %vm597_vm3, %v2809_v21 }
 0x412   :  { %v1354_v26 = vpop.permute.xlu2 %1353 }
 0x413   :  { %1457 = vst.msk [vmem:[#allocation3 + $0x50] sm:$0xff] %vm1451_vm9, %v1354_v26 }
 0x417   :  { %1574 = vrot.lane.b32.xlu1 %v1495_v5, %s6224_s23 }
 0x418   :  { %1570 = vrot.lane.b32.xlu2 %v1493_v29, %s6224_s23  ;;  %v1516_v29 = vld [vmem:[#allocation2 + $0xe2] sm:$0xff] }
 0x419   :  { %1572 = vrot.lane.b32.xlu0 %v1494_v31, %s6224_s23  ;;  %v1346_v12 = vpop.permute.xlu1 %1345  ;;  %v2808_v31 = vld [vmem:[#allocation2 + $0xa8] sm:$0xff] }
 0x41a   :  { %1453 = vst.msk [vmem:[#allocation3 + $0x10] sm:$0xff] %vm1451_vm9, %v1346_v12  ;;  %v1360_v43 = vpop.permute.xlu2 %1359  ;;  %v1344_v44 = vpop.permute.xlu0 %1343  ;;  %v1515_v12 = vld [vmem:[#allocation2 + $0xda] sm:$0xff] }
 0x41b   :  { %1460 = vst.msk [vmem:[#allocation3 + $0x80] sm:$0xff] %vm1451_vm9, %v1360_v43  ;;  %v1514_v43 = vld [vmem:[#allocation2 + $0xd2] sm:$0xff] }
 0x41c   :  { %1452 = vst.msk [vmem:[#allocation3] sm:$0xff] %vm1451_vm9, %v1344_v44  ;;  %v2812_v44 = vld [vmem:[#allocation2 + $0xc8] sm:$0xff] }
 0x41d   :  { %2844 = vst.msk [vmem:[#allocation3 + $0x128] sm:$0xff] %vm597_vm3, %v2808_v31  ;;  %v1719_v31 = vld [vmem:[#allocation2 + $0x73] sm:$0xff] }
 0x41e   :  { %2848 = vst.msk [vmem:[#allocation3 + $0x168] sm:$0xff] %vm597_vm3, %v2812_v44  ;;  %v1724_v44 = vld [vmem:[#allocation2 + $0x9b] sm:$0xff] }
 0x41f   :  { %1580 = vrot.lane.b32.xlu1 %v1498_v16, %s6224_s23  ;;  %v2811_v16 = vld [vmem:[#allocation2 + $0xc0] sm:$0xff] }
 0x420   :  { %1576 = vrot.lane.b32.xlu2 %v1496_v9, %s6224_s23  ;;  %2847 = vst.msk [vmem:[#allocation3 + $0x158] sm:$0xff] %vm597_vm3, %v2811_v16  ;;  %v1518_v9 = vld [vmem:[#allocation2 + $0xf2] sm:$0xff] }
 0x421   :  { %1578 = vrot.lane.b32.xlu0 %v1497_v56, %s6224_s23  ;;  %v1352_v1 = vpop.permute.xlu1 %1351  ;;  %v1519_v56 = vld [vmem:[#allocation2 + $0xfa] sm:$0xff] }
 0x422   :  { %1456 = vst.msk [vmem:[#allocation3 + $0x40] sm:$0xff] %vm1451_vm9, %v1352_v1  ;;  %v1366_v57 = vpop.permute.xlu2 %1365  ;;  %v1350_v49 = vpop.permute.xlu0 %1349  ;;  %v1517_v1 = vld [vmem:[#allocation2 + $0xea] sm:$0xff] }
 0x423   :  { %1463 = vst.msk [vmem:[#allocation3 + $0xb0] sm:$0xff] %vm1451_vm9, %v1366_v57  ;;  %v2815_v57 = vld [vmem:[#allocation2 + $0xe0] sm:$0xff] }
 0x424   :  { %1455 = vst.msk [vmem:[#allocation3 + $0x30] sm:$0xff] %vm1451_vm9, %v1350_v49 }
 0x425   :  { %2851 = vst.msk [vmem:[#allocation3 + $0x198] sm:$0xff] %vm597_vm3, %v2815_v57  ;;  %v1725_v57 = vld [vmem:[#allocation2 + $0xa3] sm:$0xff] }
 0x427   :  { %1586 = vrot.lane.b32.xlu1 %v1501_v0, %s6224_s23  ;;  %v1522_v0 = vld [vmem:[#allocation2 + $0x112] sm:$0xff] }
 0x428   :  { %1582 = vrot.lane.b32.xlu2 %v1499_v54, %s6224_s23  ;;  %v1520_v54 = vld [vmem:[#allocation2 + $0x102] sm:$0xff] }
 0x429   :  { %1584 = vrot.lane.b32.xlu0 %v1500_v53, %s6224_s23  ;;  %v1358_v62 = vpop.permute.xlu1 %1357  ;;  %v1521_v53 = vld [vmem:[#allocation2 + $0x10a] sm:$0xff] }
 0x42a   :  { %1459 = vst.msk [vmem:[#allocation3 + $0x70] sm:$0xff] %vm1451_vm9, %v1358_v62  ;;  %v1372_v50 = vpop.permute.xlu2 %1371  ;;  %v1356_v38 = vpop.permute.xlu0 %1355  ;;  %v2818_v62 = vld [vmem:[#allocation2 + $0xf8] sm:$0xff] }
 0x42b   :  { %1466 = vst.msk [vmem:[#allocation3 + $0xe0] sm:$0xff] %vm1451_vm9, %v1372_v50 }
 0x42c   :  { %1458 = vst.msk [vmem:[#allocation3 + $0x60] sm:$0xff] %vm1451_vm9, %v1356_v38 }
 0x42d   :  { %2854 = vst.msk [vmem:[#allocation3 + $0x1c8] sm:$0xff] %vm597_vm3, %v2818_v62 }
 0x42f   :  { %1592 = vrot.lane.b32.xlu1 %v1504_v27, %s6224_s23  ;;  %v1705_v27 = vld [vmem:[#allocation2 + $0x3] sm:$0xff] }
 0x430   :  { %1588 = vrot.lane.b32.xlu2 %v1502_v10, %s6224_s23  ;;  %v2821_v10 = vld [vmem:[#allocation2 + $0x110] sm:$0xff] }
 0x431   :  { %1590 = vrot.lane.b32.xlu0 %v1503_v36, %s6224_s23  ;;  %v1364_v14 = vpop.permute.xlu1 %1363  ;;  %v1523_v36 = vld [vmem:[#allocation2 + $0x11a] sm:$0xff]  ;;  %2857 = vst.msk [vmem:[#allocation3 + $0x1f8] sm:$0xff] %vm597_vm3, %v2821_v10 }
 0x432   :  { %1462 = vst.msk [vmem:[#allocation3 + $0xa0] sm:$0xff] %vm1451_vm9, %v1364_v14  ;;  %v1378_v20 = vpop.permute.xlu2 %1377  ;;  %v1362_v15 = vpop.permute.xlu0 %1361  ;;  %v1736_v10 = vld [vmem:[#allocation2 + $0xfb] sm:$0xff] }
 0x433   :  { %1469 = vst.msk [vmem:[#allocation3 + $0x110] sm:$0xff] %vm1451_vm9, %v1378_v20 }
 0x434   :  { %1461 = vst.msk [vmem:[#allocation3 + $0x90] sm:$0xff] %vm1451_vm9, %v1362_v15  ;;  %v2820_v15 = vld [vmem:[#allocation2 + $0x108] sm:$0xff] }
 0x435   :  { %2856 = vst.msk [vmem:[#allocation3 + $0x1e8] sm:$0xff] %vm597_vm3, %v2820_v15 }
 0x437   :  { %1598 = vrot.lane.b32.xlu1 %v1507_v37, %s6224_s23  ;;  %v1707_v37 = vld [vmem:[#allocation2 + $0x13] sm:$0xff] }
 0x438   :  { %1594 = vrot.lane.b32.xlu2 %v1505_v18, %s6224_s23 }
 0x439   :  { %1596 = vrot.lane.b32.xlu0 %v1506_v19, %s6224_s23  ;;  %v1370_v30 = vpop.permute.xlu1 %1369 }
 0x43a   :  { %1465 = vst.msk [vmem:[#allocation3 + $0xd0] sm:$0xff] %vm1451_vm9, %v1370_v30  ;;  %v1384_v3 = vpop.permute.xlu2 %1383  ;;  %v1368_v2 = vpop.permute.xlu0 %1367  ;;  %v1712_v30 = vld [vmem:[#allocation2 + $0x3b] sm:$0xff] }
 0x43b   :  { %1472 = vst.msk [vmem:[#allocation3 + $0x140] sm:$0xff] %vm1451_vm9, %v1384_v3  ;;  %v1711_v3 = vld [vmem:[#allocation2 + $0x33] sm:$0xff] }
 0x43c   :  { %1464 = vst.msk [vmem:[#allocation3 + $0xc0] sm:$0xff] %vm1451_vm9, %v1368_v2  ;;  %v1710_v2 = vld [vmem:[#allocation2 + $0x2b] sm:$0xff] }
 0x43f   :  { %1604 = vrot.lane.b32.xlu1 %v1510_v61, %s6224_s23 }
 0x440   :  { %1600 = vrot.lane.b32.xlu2 %v1508_v4, %s6224_s23  ;;  %v1714_v4 = vld [vmem:[#allocation2 + $0x4b] sm:$0xff] }
 0x441   :  { %1602 = vrot.lane.b32.xlu0 %v1509_v34, %s6224_s23  ;;  %v1376_v52 = vpop.permute.xlu1 %1375  ;;  %v1715_v34 = vld [vmem:[#allocation2 + $0x53] sm:$0xff] }
 0x442   :  { %1468 = vst.msk [vmem:[#allocation3 + $0x100] sm:$0xff] %vm1451_vm9, %v1376_v52  ;;  %v1390_v33 = vpop.permute.xlu2 %1389 }
 0x443   :  { %v1374_v59 = vpop.permute.xlu0 %1373  ;;  %1475 = vst.msk [vmem:[#allocation3 + $0x170] sm:$0xff] %vm1451_vm9, %v1390_v33 }
 0x444   :  { %1467 = vst.msk [vmem:[#allocation3 + $0xf0] sm:$0xff] %vm1451_vm9, %v1374_v59 }
 0x447   :  { %1610 = vrot.lane.b32.xlu1 %v1513_v6, %s6224_s23  ;;  %v1717_v6 = vld [vmem:[#allocation2 + $0x63] sm:$0xff] }
 0x448   :  { %1606 = vrot.lane.b32.xlu2 %v1511_v47, %s6224_s23 }
 0x449   :  { %1608 = vrot.lane.b32.xlu0 %v1512_v28, %s6224_s23  ;;  %v1382_v26 = vpop.permute.xlu1 %1381  ;;  %v1716_v28 = vld [vmem:[#allocation2 + $0x5b] sm:$0xff] }
 0x44a   :  { %1471 = vst.msk [vmem:[#allocation3 + $0x130] sm:$0xff] %vm1451_vm9, %v1382_v26  ;;  %v1396_v24 = vpop.permute.xlu2 %1395 }
 0x44b   :  { %v1380_v5 = vpop.permute.xlu0 %1379  ;;  %1478 = vst.msk [vmem:[#allocation3 + $0x1a0] sm:$0xff] %vm1451_vm9, %v1396_v24  ;;  %v1721_v24 = vld [vmem:[#allocation2 + $0x83] sm:$0xff] }
 0x44c   :  { %1470 = vst.msk [vmem:[#allocation3 + $0x120] sm:$0xff] %vm1451_vm9, %v1380_v5  ;;  %v1720_v5 = vld [vmem:[#allocation2 + $0x7b] sm:$0xff] }
 0x44f   :  { %1616 = vrot.lane.b32.xlu1 %v1516_v29, %s6224_s23 }
 0x450   :  { %1612 = vrot.lane.b32.xlu2 %v1514_v43, %s6224_s23 }
 0x451   :  { %1614 = vrot.lane.b32.xlu0 %v1515_v12, %s6224_s23  ;;  %v1388_v41 = vpop.permute.xlu1 %1387 }
 0x452   :  { %1474 = vst.msk [vmem:[#allocation3 + $0x160] sm:$0xff] %vm1451_vm9, %v1388_v41  ;;  %v1402_v60 = vpop.permute.xlu2 %1401  ;;  %v1723_v41 = vld [vmem:[#allocation2 + $0x93] sm:$0xff] }
 0x453   :  { %v1386_v25 = vpop.permute.xlu0 %1385  ;;  %1481 = vst.msk [vmem:[#allocation3 + $0x1d0] sm:$0xff] %vm1451_vm9, %v1402_v60  ;;  %v1722_v60 = vld [vmem:[#allocation2 + $0x8b] sm:$0xff] }
 0x454   :  { %1473 = vst.msk [vmem:[#allocation3 + $0x150] sm:$0xff] %vm1451_vm9, %v1386_v25 }
 0x457   :  { %1622 = vrot.lane.b32.xlu1 %v1519_v56, %s6224_s23 }
 0x458   :  { %1618 = vrot.lane.b32.xlu2 %v1517_v1, %s6224_s23  ;;  %v1726_v1 = vld [vmem:[#allocation2 + $0xab] sm:$0xff] }
 0x459   :  { %1620 = vrot.lane.b32.xlu0 %v1518_v9, %s6224_s23  ;;  %v1394_v49 = vpop.permute.xlu1 %1393  ;;  %v1727_v9 = vld [vmem:[#allocation2 + $0xb3] sm:$0xff] }
 0x45a   :  { %1477 = vst.msk [vmem:[#allocation3 + $0x190] sm:$0xff] %vm1451_vm9, %v1394_v49  ;;  %v1408_v55 = vpop.permute.xlu2 %1407 }
 0x45b   :  { %v1392_v58 = vpop.permute.xlu0 %1391  ;;  %1484 = vst.msk [vmem:[#allocation3 + $0x200] sm:$0xff] %vm1451_vm9, %v1408_v55 }
 0x45c   :  { %1476 = vst.msk [vmem:[#allocation3 + $0x180] sm:$0xff] %vm1451_vm9, %v1392_v58 }
 0x45f   :  { %1628 = vrot.lane.b32.xlu1 %v1522_v0, %s6224_s23  ;;  %v1729_v0 = vld [vmem:[#allocation2 + $0xc3] sm:$0xff] }
 0x460   :  { %1624 = vrot.lane.b32.xlu2 %v1520_v54, %s6224_s23 }
 0x461   :  { %1626 = vrot.lane.b32.xlu0 %v1521_v53, %s6224_s23  ;;  %v1400_v50 = vpop.permute.xlu1 %1399  ;;  %v1728_v53 = vld [vmem:[#allocation2 + $0xbb] sm:$0xff] }
 0x462   :  { %1480 = vst.msk [vmem:[#allocation3 + $0x1c0] sm:$0xff] %vm1451_vm9, %v1400_v50  ;;  %v1414_v38 = vpop.permute.xlu2 %1413 }
 0x463   :  { %v1398_v11 = vpop.permute.xlu0 %1397  ;;  %1487 = vst.msk [vmem:[#allocation3 + $0x230] sm:$0xff] %vm1451_vm9, %v1414_v38  ;;  %v1733_v38 = vld [vmem:[#allocation2 + $0xe3] sm:$0xff] }
 0x464   :  { %1479 = vst.msk [vmem:[#allocation3 + $0x1b0] sm:$0xff] %vm1451_vm9, %v1398_v11  ;;  %v1732_v11 = vld [vmem:[#allocation2 + $0xdb] sm:$0xff] }
 0x467   :  { %1779 = vrot.lane.b32.xlu1 %v1706_v63, %s6223_s22 }
 0x468   :  { %1630 = vrot.lane.b32.xlu2 %v1523_v36, %s6224_s23 }
 0x469   :  { %1777 = vrot.lane.b32.xlu0 %v1705_v27, %s6223_s22  ;;  %v1406_v13 = vpop.permute.xlu1 %1405 }
 0x46a   :  { %1483 = vst.msk [vmem:[#allocation3 + $0x1f0] sm:$0xff] %vm1451_vm9, %v1406_v13  ;;  %v1565_v14 = vpop.permute.xlu2 %1564  ;;  %v1735_v13 = vld [vmem:[#allocation2 + $0xf3] sm:$0xff] }
 0x46b   :  { %v1404_v20 = vpop.permute.xlu0 %1403  ;;  %1671 = vst.msk [vmem:[#allocation3 + $0x20] sm:$0xff] %vm1668_vm10, %v1565_v14  ;;  %v1734_v14 = vld [vmem:[#allocation2 + $0xeb] sm:$0xff] }
 0x46c   :  { %1482 = vst.msk [vmem:[#allocation3 + $0x1e0] sm:$0xff] %vm1451_vm9, %v1404_v20 }
 0x46f   :  { %1785 = vrot.lane.b32.xlu1 %v1709_v7, %s6223_s22 }
 0x470   :  { %1781 = vrot.lane.b32.xlu2 %v1707_v37, %s6223_s22  ;;  %v1738_v37 = vld [vmem:[#allocation2 + $0x10b] sm:$0xff] }
 0x471   :  { %1783 = vrot.lane.b32.xlu0 %v1708_v23, %s6223_s22  ;;  %v1412_v19 = vpop.permute.xlu1 %1411  ;;  %v1739_v23 = vld [vmem:[#allocation2 + $0x113] sm:$0xff] }
 0x472   :  { %1486 = vst.msk [vmem:[#allocation3 + $0x220] sm:$0xff] %vm1451_vm9, %v1412_v19  ;;  %v1571_v18 = vpop.permute.xlu2 %1570  ;;  %v1737_v19 = vld [vmem:[#allocation2 + $0x103] sm:$0xff] }
 0x473   :  { %v1410_v32 = vpop.permute.xlu0 %1409  ;;  %1674 = vst.msk [vmem:[#allocation3 + $0x50] sm:$0xff] %vm1668_vm10, %v1571_v18 }
 0x474   :  { %1485 = vst.msk [vmem:[#allocation3 + $0x210] sm:$0xff] %vm1451_vm9, %v1410_v32 }
 0x477   :  { %1791 = vrot.lane.b32.xlu1 %v1712_v30, %s6223_s22 }
 0x478   :  { %1787 = vrot.lane.b32.xlu2 %v1710_v2, %s6223_s22  ;;  %v1922_v2 = vld [vmem:[#allocation2 + $0xc] sm:$0xff] }
 0x479   :  { %1789 = vrot.lane.b32.xlu0 %v1711_v3, %s6223_s22  ;;  %v1563_v22 = vpop.permute.xlu1 %1562  ;;  %v1923_v3 = vld [vmem:[#allocation2 + $0x14] sm:$0xff] }
 0x47a   :  { %1670 = vst.msk [vmem:[#allocation3 + $0x10] sm:$0xff] %vm1668_vm10, %v1563_v22  ;;  %v1577_v51 = vpop.permute.xlu2 %1576  ;;  %v1740_v22 = vld [vmem:[#allocation2 + $0x11b] sm:$0xff] }
 0x47b   :  { %v1561_v61 = vpop.permute.xlu0 %1560  ;;  %1677 = vst.msk [vmem:[#allocation3 + $0x80] sm:$0xff] %vm1668_vm10, %v1577_v51 }
 0x47c   :  { %1669 = vst.msk [vmem:[#allocation3] sm:$0xff] %vm1668_vm10, %v1561_v61 }
 0x47f   :  { %1797 = vrot.lane.b32.xlu1 %v1715_v34, %s6223_s22 }
 0x480   :  { %1793 = vrot.lane.b32.xlu2 %v1713_v35, %s6223_s22  ;;  %v1925_v35 = vld [vmem:[#allocation2 + $0x24] sm:$0xff] }
 0x481   :  { %1795 = vrot.lane.b32.xlu0 %v1714_v4, %s6223_s22  ;;  %v1569_v52 = vpop.permute.xlu1 %1568  ;;  %v1926_v4 = vld [vmem:[#allocation2 + $0x2c] sm:$0xff] }
 0x482   :  { %1673 = vst.msk [vmem:[#allocation3 + $0x40] sm:$0xff] %vm1668_vm10, %v1569_v52  ;;  %v1583_v33 = vpop.permute.xlu2 %1582  ;;  %v1924_v52 = vld [vmem:[#allocation2 + $0x1c] sm:$0xff] }
 0x483   :  { %v1567_v59 = vpop.permute.xlu0 %1566  ;;  %1680 = vst.msk [vmem:[#allocation3 + $0xb0] sm:$0xff] %vm1668_vm10, %v1583_v33 }
 0x484   :  { %1672 = vst.msk [vmem:[#allocation3 + $0x30] sm:$0xff] %vm1668_vm10, %v1567_v59 }
 0x487   :  { %1803 = vrot.lane.b32.xlu1 %v1718_v48, %s6223_s22 }
 0x488   :  { %1799 = vrot.lane.b32.xlu2 %v1716_v28, %s6223_s22  ;;  %v1928_v28 = vld [vmem:[#allocation2 + $0x3c] sm:$0xff] }
 0x489   :  { %1801 = vrot.lane.b32.xlu0 %v1717_v6, %s6223_s22  ;;  %v1575_v47 = vpop.permute.xlu1 %1574  ;;  %v1929_v6 = vld [vmem:[#allocation2 + $0x44] sm:$0xff] }
 0x48a   :  { %1676 = vst.msk [vmem:[#allocation3 + $0x70] sm:$0xff] %vm1668_vm10, %v1575_v47  ;;  %v1589_v21 = vpop.permute.xlu2 %1588  ;;  %v1927_v47 = vld [vmem:[#allocation2 + $0x34] sm:$0xff] }
 0x48b   :  { %v1573_v26 = vpop.permute.xlu0 %1572  ;;  %1683 = vst.msk [vmem:[#allocation3 + $0xe0] sm:$0xff] %vm1668_vm10, %v1589_v21 }
 0x48c   :  { %1675 = vst.msk [vmem:[#allocation3 + $0x60] sm:$0xff] %vm1668_vm10, %v1573_v26 }
 0x48f   :  { %1809 = vrot.lane.b32.xlu1 %v1721_v24, %s6223_s22 }
 0x490   :  { %1805 = vrot.lane.b32.xlu2 %v1719_v31, %s6223_s22  ;;  %v1931_v31 = vld [vmem:[#allocation2 + $0x54] sm:$0xff] }
 0x491   :  { %1807 = vrot.lane.b32.xlu0 %v1720_v5, %s6223_s22  ;;  %v1581_v29 = vpop.permute.xlu1 %1580  ;;  %v1932_v5 = vld [vmem:[#allocation2 + $0x5c] sm:$0xff] }
 0x492   :  { %1679 = vst.msk [vmem:[#allocation3 + $0xa0] sm:$0xff] %vm1668_vm10, %v1581_v29  ;;  %v1595_v12 = vpop.permute.xlu2 %1594  ;;  %v1930_v29 = vld [vmem:[#allocation2 + $0x4c] sm:$0xff] }
 0x493   :  { %v1579_v43 = vpop.permute.xlu0 %1578  ;;  %1686 = vst.msk [vmem:[#allocation3 + $0x110] sm:$0xff] %vm1668_vm10, %v1595_v12 }
 0x494   :  { %1678 = vst.msk [vmem:[#allocation3 + $0x90] sm:$0xff] %vm1668_vm10, %v1579_v43 }
 0x497   :  { %1815 = vrot.lane.b32.xlu1 %v1724_v44, %s6223_s22 }
 0x498   :  { %1811 = vrot.lane.b32.xlu2 %v1722_v60, %s6223_s22  ;;  %v1934_v60 = vld [vmem:[#allocation2 + $0x6c] sm:$0xff] }
 0x499   :  { %1813 = vrot.lane.b32.xlu0 %v1723_v41, %s6223_s22  ;;  %v1587_v25 = vpop.permute.xlu1 %1586  ;;  %v1935_v41 = vld [vmem:[#allocation2 + $0x74] sm:$0xff] }
 0x49a   :  { %1682 = vst.msk [vmem:[#allocation3 + $0xd0] sm:$0xff] %vm1668_vm10, %v1587_v25  ;;  %v1601_v16 = vpop.permute.xlu2 %1600  ;;  %v1933_v25 = vld [vmem:[#allocation2 + $0x64] sm:$0xff] }
 0x49b   :  { %v1585_v56 = vpop.permute.xlu0 %1584  ;;  %1689 = vst.msk [vmem:[#allocation3 + $0x140] sm:$0xff] %vm1668_vm10, %v1601_v16 }
 0x49c   :  { %1681 = vst.msk [vmem:[#allocation3 + $0xc0] sm:$0xff] %vm1668_vm10, %v1585_v56 }
 0x49f   :  { %1821 = vrot.lane.b32.xlu1 %v1727_v9, %s6223_s22 }
 0x4a0   :  { %1817 = vrot.lane.b32.xlu2 %v1725_v57, %s6223_s22  ;;  %v1937_v57 = vld [vmem:[#allocation2 + $0x84] sm:$0xff] }
 0x4a1   :  { %1819 = vrot.lane.b32.xlu0 %v1726_v1, %s6223_s22  ;;  %v1593_v49 = vpop.permute.xlu1 %1592  ;;  %v1938_v1 = vld [vmem:[#allocation2 + $0x8c] sm:$0xff] }
 0x4a2   :  { %1685 = vst.msk [vmem:[#allocation3 + $0x100] sm:$0xff] %vm1668_vm10, %v1593_v49  ;;  %v1607_v55 = vpop.permute.xlu2 %1606  ;;  %v1936_v49 = vld [vmem:[#allocation2 + $0x7c] sm:$0xff] }
 0x4a3   :  { %v1591_v58 = vpop.permute.xlu0 %1590  ;;  %1692 = vst.msk [vmem:[#allocation3 + $0x170] sm:$0xff] %vm1668_vm10, %v1607_v55 }
 0x4a4   :  { %1684 = vst.msk [vmem:[#allocation3 + $0xf0] sm:$0xff] %vm1668_vm10, %v1591_v58 }
 0x4a7   :  { %1827 = vrot.lane.b32.xlu1 %v1730_v17, %s6223_s22 }
 0x4a8   :  { %1823 = vrot.lane.b32.xlu2 %v1728_v53, %s6223_s22  ;;  %v1940_v53 = vld [vmem:[#allocation2 + $0x9c] sm:$0xff] }
 0x4a9   :  { %1825 = vrot.lane.b32.xlu0 %v1729_v0, %s6223_s22  ;;  %v1599_v54 = vpop.permute.xlu1 %1598  ;;  %v1941_v0 = vld [vmem:[#allocation2 + $0xa4] sm:$0xff] }
 0x4aa   :  { %1688 = vst.msk [vmem:[#allocation3 + $0x130] sm:$0xff] %vm1668_vm10, %v1599_v54  ;;  %v1613_v62 = vpop.permute.xlu2 %1612  ;;  %v1939_v54 = vld [vmem:[#allocation2 + $0x94] sm:$0xff] }
 0x4ab   :  { %v1597_v50 = vpop.permute.xlu0 %1596  ;;  %1695 = vst.msk [vmem:[#allocation3 + $0x1a0] sm:$0xff] %vm1668_vm10, %v1613_v62 }
 0x4ac   :  { %1687 = vst.msk [vmem:[#allocation3 + $0x120] sm:$0xff] %vm1668_vm10, %v1597_v50 }
 0x4af   :  { %1833 = vrot.lane.b32.xlu1 %v1733_v38, %s6223_s22 }
 0x4b0   :  { %1829 = vrot.lane.b32.xlu2 %v1731_v8, %s6223_s22  ;;  %v1943_v8 = vld [vmem:[#allocation2 + $0xb4] sm:$0xff] }
 0x4b1   :  { %1831 = vrot.lane.b32.xlu0 %v1732_v11, %s6223_s22  ;;  %v1605_v63 = vpop.permute.xlu1 %1604  ;;  %v1944_v11 = vld [vmem:[#allocation2 + $0xbc] sm:$0xff] }
 0x4b2   :  { %1691 = vst.msk [vmem:[#allocation3 + $0x160] sm:$0xff] %vm1668_vm10, %v1605_v63  ;;  %v1619_v27 = vpop.permute.xlu2 %1618  ;;  %v1942_v63 = vld [vmem:[#allocation2 + $0xac] sm:$0xff] }
 0x4b3   :  { %v1603_v36 = vpop.permute.xlu0 %1602  ;;  %1698 = vst.msk [vmem:[#allocation3 + $0x1d0] sm:$0xff] %vm1668_vm10, %v1619_v27 }
 0x4b4   :  { %1690 = vst.msk [vmem:[#allocation3 + $0x150] sm:$0xff] %vm1668_vm10, %v1603_v36 }
 0x4b7   :  { %1839 = vrot.lane.b32.xlu1 %v1736_v10, %s6223_s22 }
 0x4b8   :  { %1835 = vrot.lane.b32.xlu2 %v1734_v14, %s6223_s22  ;;  %v1946_v14 = vld [vmem:[#allocation2 + $0xcc] sm:$0xff] }
 0x4b9   :  { %1837 = vrot.lane.b32.xlu0 %v1735_v13, %s6223_s22  ;;  %v1611_v20 = vpop.permute.xlu1 %1610  ;;  %v1947_v13 = vld [vmem:[#allocation2 + $0xd4] sm:$0xff] }
 0x4ba   :  { %1694 = vst.msk [vmem:[#allocation3 + $0x190] sm:$0xff] %vm1668_vm10, %v1611_v20  ;;  %v1625_v15 = vpop.permute.xlu2 %1624  ;;  %v1945_v20 = vld [vmem:[#allocation2 + $0xc4] sm:$0xff] }
 0x4bb   :  { %v1609_v7 = vpop.permute.xlu0 %1608  ;;  %1701 = vst.msk [vmem:[#allocation3 + $0x200] sm:$0xff] %vm1668_vm10, %v1625_v15 }
 0x4bc   :  { %1693 = vst.msk [vmem:[#allocation3 + $0x180] sm:$0xff] %vm1668_vm10, %v1609_v7 }
 0x4bf   :  { %1845 = vrot.lane.b32.xlu1 %v1739_v23, %s6223_s22 }
 0x4c0   :  { %1841 = vrot.lane.b32.xlu2 %v1737_v19, %s6223_s22  ;;  %v1949_v19 = vld [vmem:[#allocation2 + $0xe4] sm:$0xff] }
 0x4c1   :  { %1843 = vrot.lane.b32.xlu0 %v1738_v37, %s6223_s22  ;;  %v1617_v18 = vpop.permute.xlu1 %1616  ;;  %v1950_v37 = vld [vmem:[#allocation2 + $0xec] sm:$0xff] }
 0x4c2   :  { %1697 = vst.msk [vmem:[#allocation3 + $0x1c0] sm:$0xff] %vm1668_vm10, %v1617_v18  ;;  %v1631_v32 = vpop.permute.xlu2 %1630  ;;  %v1948_v18 = vld [vmem:[#allocation2 + $0xdc] sm:$0xff] }
 0x4c3   :  { %v1615_v30 = vpop.permute.xlu0 %1614  ;;  %1704 = vst.msk [vmem:[#allocation3 + $0x230] sm:$0xff] %vm1668_vm10, %v1631_v32 }
 0x4c4   :  { %1696 = vst.msk [vmem:[#allocation3 + $0x1b0] sm:$0xff] %vm1668_vm10, %v1615_v30 }
 0x4c7   :  { %1996 = vrot.lane.b32.xlu1 %v1923_v3, %s6219_s0 }
 0x4c8   :  { %1847 = vrot.lane.b32.xlu2 %v1740_v22, %s6223_s22  ;;  %v1952_v22 = vld [vmem:[#allocation2 + $0xfc] sm:$0xff] }
 0x4c9   :  { %1994 = vrot.lane.b32.xlu0 %v1922_v2, %s6219_s0  ;;  %v1623_v51 = vpop.permute.xlu1 %1622  ;;  %v1953_v2 = vld [vmem:[#allocation2 + $0x104] sm:$0xff] }
 0x4ca   :  { %1700 = vst.msk [vmem:[#allocation3 + $0x1f0] sm:$0xff] %vm1668_vm10, %v1623_v51  ;;  %v1782_v61 = vpop.permute.xlu2 %1781  ;;  %v1951_v51 = vld [vmem:[#allocation2 + $0xf4] sm:$0xff] }
 0x4cb   :  { %v1621_v34 = vpop.permute.xlu0 %1620  ;;  %1888 = vst.msk [vmem:[#allocation3 + $0x20] sm:$0xff] %vm1885_vm11, %v1782_v61 }
 0x4cc   :  { %1699 = vst.msk [vmem:[#allocation3 + $0x1e0] sm:$0xff] %vm1668_vm10, %v1621_v34 }
 0x4cf   :  { %2002 = vrot.lane.b32.xlu1 %v1926_v4, %s6219_s0 }
 0x4d0   :  { %1998 = vrot.lane.b32.xlu2 %v1924_v52, %s6219_s0  ;;  %v1955_v52 = vld [vmem:[#allocation2 + $0x114] sm:$0xff] }
 0x4d1   :  { %2000 = vrot.lane.b32.xlu0 %v1925_v35, %s6219_s0  ;;  %v1629_v33 = vpop.permute.xlu1 %1628  ;;  %v1956_v35 = vld [vmem:[#allocation2 + $0x11c] sm:$0xff] }
 0x4d2   :  { %1703 = vst.msk [vmem:[#allocation3 + $0x220] sm:$0xff] %vm1668_vm10, %v1629_v33  ;;  %v1788_v59 = vpop.permute.xlu2 %1787  ;;  %v1954_v33 = vld [vmem:[#allocation2 + $0x10c] sm:$0xff] }
 0x4d3   :  { %v1627_v48 = vpop.permute.xlu0 %1626  ;;  %1891 = vst.msk [vmem:[#allocation3 + $0x50] sm:$0xff] %vm1885_vm11, %v1788_v59 }
 0x4d4   :  { %1702 = vst.msk [vmem:[#allocation3 + $0x210] sm:$0xff] %vm1668_vm10, %v1627_v48 }
 0x4d7   :  { %2008 = vrot.lane.b32.xlu1 %v1929_v6, %s6219_s0 }
 0x4d8   :  { %2004 = vrot.lane.b32.xlu2 %v1927_v47, %s6219_s0  ;;  %v2139_v47 = vld [vmem:[#allocation2 + $0xd] sm:$0xff] }
 0x4d9   :  { %2006 = vrot.lane.b32.xlu0 %v1928_v28, %s6219_s0  ;;  %v1780_v21 = vpop.permute.xlu1 %1779  ;;  %v2140_v28 = vld [vmem:[#allocation2 + $0x15] sm:$0xff] }
 0x4da   :  { %1887 = vst.msk [vmem:[#allocation3 + $0x10] sm:$0xff] %vm1885_vm11, %v1780_v21  ;;  %v1794_v26 = vpop.permute.xlu2 %1793  ;;  %v2141_v21 = vld [vmem:[#allocation2 + $0x1d] sm:$0xff] }
 0x4db   :  { %v1778_v24 = vpop.permute.xlu0 %1777  ;;  %1894 = vst.msk [vmem:[#allocation3 + $0x80] sm:$0xff] %vm1885_vm11, %v1794_v26 }
 0x4dc   :  { %1886 = vst.msk [vmem:[#allocation3] sm:$0xff] %vm1885_vm11, %v1778_v24  ;;  %v2142_v24 = vld [vmem:[#allocation2 + $0x25] sm:$0xff] }
 0x4df   :  { %2014 = vrot.lane.b32.xlu1 %v1932_v5, %s6219_s0 }
 0x4e0   :  { %2010 = vrot.lane.b32.xlu2 %v1930_v29, %s6219_s0 }
 0x4e1   :  { %2012 = vrot.lane.b32.xlu0 %v1931_v31, %s6219_s0  ;;  %v1786_v12 = vpop.permute.xlu1 %1785 }
 0x4e2   :  { %1890 = vst.msk [vmem:[#allocation3 + $0x40] sm:$0xff] %vm1885_vm11, %v1786_v12  ;;  %v1800_v43 = vpop.permute.xlu2 %1799  ;;  %v2146_v12 = vld [vmem:[#allocation2 + $0x45] sm:$0xff] }
 0x4e3   :  { %v1784_v44 = vpop.permute.xlu0 %1783  ;;  %1897 = vst.msk [vmem:[#allocation3 + $0xb0] sm:$0xff] %vm1885_vm11, %v1800_v43  ;;  %v2147_v43 = vld [vmem:[#allocation2 + $0x4d] sm:$0xff] }
 0x4e4   :  { %1889 = vst.msk [vmem:[#allocation3 + $0x30] sm:$0xff] %vm1885_vm11, %v1784_v44  ;;  %v2145_v44 = vld [vmem:[#allocation2 + $0x3d] sm:$0xff] }
 0x4e7   :  { %2020 = vrot.lane.b32.xlu1 %v1935_v41, %s6219_s0 }
 0x4e8   :  { %2016 = vrot.lane.b32.xlu2 %v1933_v25, %s6219_s0 }
 0x4e9   :  { %2018 = vrot.lane.b32.xlu0 %v1934_v60, %s6219_s0  ;;  %v1792_v16 = vpop.permute.xlu1 %1791 }
 0x4ea   :  { %1893 = vst.msk [vmem:[#allocation3 + $0x70] sm:$0xff] %vm1885_vm11, %v1792_v16  ;;  %v1806_v56 = vpop.permute.xlu2 %1805  ;;  %v2149_v16 = vld [vmem:[#allocation2 + $0x5d] sm:$0xff] }
 0x4eb   :  { %v1790_v9 = vpop.permute.xlu0 %1789  ;;  %1900 = vst.msk [vmem:[#allocation3 + $0xe0] sm:$0xff] %vm1885_vm11, %v1806_v56  ;;  %v2150_v56 = vld [vmem:[#allocation2 + $0x65] sm:$0xff] }
 0x4ec   :  { %1892 = vst.msk [vmem:[#allocation3 + $0x60] sm:$0xff] %vm1885_vm11, %v1790_v9  ;;  %v2148_v9 = vld [vmem:[#allocation2 + $0x55] sm:$0xff] }
 0x4ef   :  { %2026 = vrot.lane.b32.xlu1 %v1938_v1, %s6219_s0 }
 0x4f0   :  { %2022 = vrot.lane.b32.xlu2 %v1936_v49, %s6219_s0 }
 0x4f1   :  { %2024 = vrot.lane.b32.xlu0 %v1937_v57, %s6219_s0  ;;  %v1798_v55 = vpop.permute.xlu1 %1797 }
 0x4f2   :  { %1896 = vst.msk [vmem:[#allocation3 + $0xa0] sm:$0xff] %vm1885_vm11, %v1798_v55  ;;  %v1812_v58 = vpop.permute.xlu2 %1811  ;;  %v2152_v55 = vld [vmem:[#allocation2 + $0x75] sm:$0xff] }
 0x4f3   :  { %v1796_v17 = vpop.permute.xlu0 %1795  ;;  %1903 = vst.msk [vmem:[#allocation3 + $0x110] sm:$0xff] %vm1885_vm11, %v1812_v58  ;;  %v2153_v58 = vld [vmem:[#allocation2 + $0x7d] sm:$0xff] }
 0x4f4   :  { %1895 = vst.msk [vmem:[#allocation3 + $0x90] sm:$0xff] %vm1885_vm11, %v1796_v17  ;;  %v2151_v17 = vld [vmem:[#allocation2 + $0x6d] sm:$0xff] }
 0x4f7   :  { %2032 = vrot.lane.b32.xlu1 %v1941_v0, %s6219_s0 }
 0x4f8   :  { %2028 = vrot.lane.b32.xlu2 %v1939_v54, %s6219_s0 }
 0x4f9   :  { %2030 = vrot.lane.b32.xlu0 %v1940_v53, %s6219_s0  ;;  %v1804_v62 = vpop.permute.xlu1 %1803 }
 0x4fa   :  { %1899 = vst.msk [vmem:[#allocation3 + $0xd0] sm:$0xff] %vm1885_vm11, %v1804_v62  ;;  %v1818_v50 = vpop.permute.xlu2 %1817  ;;  %v2155_v62 = vld [vmem:[#allocation2 + $0x8d] sm:$0xff] }
 0x4fb   :  { %v1802_v38 = vpop.permute.xlu0 %1801  ;;  %1906 = vst.msk [vmem:[#allocation3 + $0x140] sm:$0xff] %vm1885_vm11, %v1818_v50  ;;  %v2156_v50 = vld [vmem:[#allocation2 + $0x95] sm:$0xff] }
 0x4fc   :  { %1898 = vst.msk [vmem:[#allocation3 + $0xc0] sm:$0xff] %vm1885_vm11, %v1802_v38  ;;  %v2154_v38 = vld [vmem:[#allocation2 + $0x85] sm:$0xff] }
 0x4ff   :  { %2038 = vrot.lane.b32.xlu1 %v1944_v11, %s6219_s0 }
 0x500   :  { %2034 = vrot.lane.b32.xlu2 %v1942_v63, %s6219_s0 }
 0x501   :  { %2036 = vrot.lane.b32.xlu0 %v1943_v8, %s6219_s0  ;;  %v1810_v27 = vpop.permute.xlu1 %1809 }
 0x502   :  { %1902 = vst.msk [vmem:[#allocation3 + $0x100] sm:$0xff] %vm1885_vm11, %v1810_v27  ;;  %v1824_v36 = vpop.permute.xlu2 %1823  ;;  %v2158_v27 = vld [vmem:[#allocation2 + $0xa5] sm:$0xff] }
 0x503   :  { %v1808_v10 = vpop.permute.xlu0 %1807  ;;  %1909 = vst.msk [vmem:[#allocation3 + $0x170] sm:$0xff] %vm1885_vm11, %v1824_v36  ;;  %v2159_v36 = vld [vmem:[#allocation2 + $0xad] sm:$0xff] }
 0x504   :  { %1901 = vst.msk [vmem:[#allocation3 + $0xf0] sm:$0xff] %vm1885_vm11, %v1808_v10  ;;  %v2157_v10 = vld [vmem:[#allocation2 + $0x9d] sm:$0xff] }
 0x507   :  { %2044 = vrot.lane.b32.xlu1 %v1947_v13, %s6219_s0 }
 0x508   :  { %2040 = vrot.lane.b32.xlu2 %v1945_v20, %s6219_s0 }
 0x509   :  { %2042 = vrot.lane.b32.xlu0 %v1946_v14, %s6219_s0  ;;  %v1816_v15 = vpop.permute.xlu1 %1815 }
 0x50a   :  { %1905 = vst.msk [vmem:[#allocation3 + $0x130] sm:$0xff] %vm1885_vm11, %v1816_v15  ;;  %v1830_v7 = vpop.permute.xlu2 %1829  ;;  %v2161_v15 = vld [vmem:[#allocation2 + $0xbd] sm:$0xff] }
 0x50b   :  { %v1814_v23 = vpop.permute.xlu0 %1813  ;;  %1912 = vst.msk [vmem:[#allocation3 + $0x1a0] sm:$0xff] %vm1885_vm11, %v1830_v7  ;;  %v2162_v7 = vld [vmem:[#allocation2 + $0xc5] sm:$0xff] }
 0x50c   :  { %1904 = vst.msk [vmem:[#allocation3 + $0x120] sm:$0xff] %vm1885_vm11, %v1814_v23  ;;  %v2160_v23 = vld [vmem:[#allocation2 + $0xb5] sm:$0xff] }
 0x50f   :  { %2050 = vrot.lane.b32.xlu1 %v1950_v37, %s6219_s0 }
 0x510   :  { %2046 = vrot.lane.b32.xlu2 %v1948_v18, %s6219_s0 }
 0x511   :  { %2048 = vrot.lane.b32.xlu0 %v1949_v19, %s6219_s0  ;;  %v1822_v32 = vpop.permute.xlu1 %1821 }
 0x512   :  { %1908 = vst.msk [vmem:[#allocation3 + $0x160] sm:$0xff] %vm1885_vm11, %v1822_v32  ;;  %v1836_v30 = vpop.permute.xlu2 %1835  ;;  %v2164_v32 = vld [vmem:[#allocation2 + $0xd5] sm:$0xff] }
 0x513   :  { %v1820_v3 = vpop.permute.xlu0 %1819  ;;  %1915 = vst.msk [vmem:[#allocation3 + $0x1d0] sm:$0xff] %vm1885_vm11, %v1836_v30  ;;  %v2165_v30 = vld [vmem:[#allocation2 + $0xdd] sm:$0xff] }
 0x514   :  { %1907 = vst.msk [vmem:[#allocation3 + $0x150] sm:$0xff] %vm1885_vm11, %v1820_v3  ;;  %v2163_v3 = vld [vmem:[#allocation2 + $0xcd] sm:$0xff] }
 0x517   :  { %2056 = vrot.lane.b32.xlu1 %v1953_v2, %s6219_s0 }
 0x518   :  { %2052 = vrot.lane.b32.xlu2 %v1951_v51, %s6219_s0 }
 0x519   :  { %2054 = vrot.lane.b32.xlu0 %v1952_v22, %s6219_s0  ;;  %v1828_v61 = vpop.permute.xlu1 %1827 }
 0x51a   :  { %1911 = vst.msk [vmem:[#allocation3 + $0x190] sm:$0xff] %vm1885_vm11, %v1828_v61  ;;  %v1842_v34 = vpop.permute.xlu2 %1841  ;;  %v2167_v61 = vld [vmem:[#allocation2 + $0xed] sm:$0xff] }
 0x51b   :  { %v1826_v4 = vpop.permute.xlu0 %1825  ;;  %1918 = vst.msk [vmem:[#allocation3 + $0x200] sm:$0xff] %vm1885_vm11, %v1842_v34  ;;  %v2168_v34 = vld [vmem:[#allocation2 + $0xf5] sm:$0xff] }
 0x51c   :  { %1910 = vst.msk [vmem:[#allocation3 + $0x180] sm:$0xff] %vm1885_vm11, %v1826_v4  ;;  %v2166_v4 = vld [vmem:[#allocation2 + $0xe5] sm:$0xff] }
 0x51f   :  { %2062 = vrot.lane.b32.xlu1 %v1956_v35, %s6219_s0 }
 0x520   :  { %2058 = vrot.lane.b32.xlu2 %v1954_v33, %s6219_s0 }
 0x521   :  { %2060 = vrot.lane.b32.xlu0 %v1955_v52, %s6219_s0  ;;  %v1834_v59 = vpop.permute.xlu1 %1833 }
 0x522   :  { %1914 = vst.msk [vmem:[#allocation3 + $0x1c0] sm:$0xff] %vm1885_vm11, %v1834_v59  ;;  %v1848_v48 = vpop.permute.xlu2 %1847  ;;  %v2170_v59 = vld [vmem:[#allocation2 + $0x105] sm:$0xff] }
 0x523   :  { %v1832_v6 = vpop.permute.xlu0 %1831  ;;  %1921 = vst.msk [vmem:[#allocation3 + $0x230] sm:$0xff] %vm1885_vm11, %v1848_v48  ;;  %v2171_v48 = vld [vmem:[#allocation2 + $0x10d] sm:$0xff] }
 0x524   :  { %2138 = vst.msk [vmem:[#allocation3 + $0x230] sm:$0xff] %vm2102_vm12, %v6742_v39 }
 0x525   :  { %2355 = vst.msk [vmem:[#allocation3 + $0x230] sm:$0xff] %vm2319_vm13, %v6744_v40 }
 0x526   :  { %2572 = vst.msk [vmem:[#allocation3 + $0x230] sm:$0xff] %vm2536_vm14, %v6746_v42  ;;  %v2143_v42 = vld [vmem:[#allocation2 + $0x2d] sm:$0xff] }
 0x527   :  { %2789 = vst.msk [vmem:[#allocation3 + $0x230] sm:$0xff] %vm2753_vm15, %v6748_v45  ;;  %2213 = vrot.lane.b32.xlu1 %v2140_v28, %s6220_s20  ;;  %v2144_v45 = vld [vmem:[#allocation2 + $0x35] sm:$0xff] }
 0x528   :  { %1913 = vst.msk [vmem:[#allocation3 + $0x1b0] sm:$0xff] %vm1885_vm11, %v1832_v6  ;;  %2215 = vrot.lane.b32.xlu2 %v2141_v21, %s6220_s20  ;;  %v2169_v6 = vld [vmem:[#allocation2 + $0xfd] sm:$0xff] }
 0x529   :  { %2211 = vrot.lane.b32.xlu0 %v2139_v47, %s6220_s20  ;;  %v1840_v39 = vpop.permute.xlu1 %1839 }
 0x52a   :  { %1917 = vst.msk [vmem:[#allocation3 + $0x1f0] sm:$0xff] %vm1885_vm11, %v1840_v39  ;;  %v1999_v40 = vpop.permute.xlu2 %1998  ;;  %v2173_v39 = vld [vmem:[#allocation2 + $0x11d] sm:$0xff] }
 0x52b   :  { %v1838_v26 = vpop.permute.xlu0 %1837  ;;  %2105 = vst.msk [vmem:[#allocation3 + $0x20] sm:$0xff] %vm2102_vm12, %v1999_v40  ;;  %v2358_v40 = vld [vmem:[#allocation2 + $0x1e] sm:$0xff] }
 0x52c   :  { %1916 = vst.msk [vmem:[#allocation3 + $0x1e0] sm:$0xff] %vm1885_vm11, %v1838_v26  ;;  %v2172_v26 = vld [vmem:[#allocation2 + $0x115] sm:$0xff] }
 0x52f   :  { %2219 = vrot.lane.b32.xlu1 %v2143_v42, %s6220_s20 }
 0x530   :  { %2221 = vrot.lane.b32.xlu2 %v2144_v45, %s6220_s20 }
 0x531   :  { %2217 = vrot.lane.b32.xlu0 %v2142_v24, %s6220_s20  ;;  %v1846_v5 = vpop.permute.xlu1 %1845 }
 0x532   :  { %1920 = vst.msk [vmem:[#allocation3 + $0x220] sm:$0xff] %vm1885_vm11, %v1846_v5  ;;  %v2005_v31 = vpop.permute.xlu2 %2004  ;;  %v2357_v5 = vld [vmem:[#allocation2 + $0x16] sm:$0xff] }
 0x533   :  { %v1844_v29 = vpop.permute.xlu0 %1843  ;;  %2108 = vst.msk [vmem:[#allocation3 + $0x50] sm:$0xff] %vm2102_vm12, %v2005_v31  ;;  %v2361_v31 = vld [vmem:[#allocation2 + $0x36] sm:$0xff] }
 0x534   :  { %1919 = vst.msk [vmem:[#allocation3 + $0x210] sm:$0xff] %vm1885_vm11, %v1844_v29  ;;  %v2356_v29 = vld [vmem:[#allocation2 + $0xe] sm:$0xff] }
 0x537   :  { %2225 = vrot.lane.b32.xlu1 %v2146_v12, %s6220_s20 }
 0x538   :  { %2227 = vrot.lane.b32.xlu2 %v2147_v43, %s6220_s20 }
 0x539   :  { %2223 = vrot.lane.b32.xlu0 %v2145_v44, %s6220_s20  ;;  %v1997_v41 = vpop.permute.xlu1 %1996 }
 0x53a   :  { %2104 = vst.msk [vmem:[#allocation3 + $0x10] sm:$0xff] %vm2102_vm12, %v1997_v41  ;;  %v2011_v60 = vpop.permute.xlu2 %2010  ;;  %v2360_v41 = vld [vmem:[#allocation2 + $0x2e] sm:$0xff] }
 0x53b   :  { %v1995_v25 = vpop.permute.xlu0 %1994  ;;  %2111 = vst.msk [vmem:[#allocation3 + $0x80] sm:$0xff] %vm2102_vm12, %v2011_v60  ;;  %v2364_v60 = vld [vmem:[#allocation2 + $0x4e] sm:$0xff] }
 0x53c   :  { %2103 = vst.msk [vmem:[#allocation3] sm:$0xff] %vm2102_vm12, %v1995_v25  ;;  %v2359_v25 = vld [vmem:[#allocation2 + $0x26] sm:$0xff] }
 0x53f   :  { %2231 = vrot.lane.b32.xlu1 %v2149_v16, %s6220_s20 }
 0x540   :  { %2233 = vrot.lane.b32.xlu2 %v2150_v56, %s6220_s20 }
 0x541   :  { %2229 = vrot.lane.b32.xlu0 %v2148_v9, %s6220_s20  ;;  %v2003_v1 = vpop.permute.xlu1 %2002 }
 0x542   :  { %2107 = vst.msk [vmem:[#allocation3 + $0x40] sm:$0xff] %vm2102_vm12, %v2003_v1  ;;  %v2017_v57 = vpop.permute.xlu2 %2016  ;;  %v2363_v1 = vld [vmem:[#allocation2 + $0x46] sm:$0xff] }
 0x543   :  { %v2001_v49 = vpop.permute.xlu0 %2000  ;;  %2114 = vst.msk [vmem:[#allocation3 + $0xb0] sm:$0xff] %vm2102_vm12, %v2017_v57  ;;  %v2367_v57 = vld [vmem:[#allocation2 + $0x66] sm:$0xff] }
 0x544   :  { %2106 = vst.msk [vmem:[#allocation3 + $0x30] sm:$0xff] %vm2102_vm12, %v2001_v49  ;;  %v2362_v49 = vld [vmem:[#allocation2 + $0x3e] sm:$0xff] }
 0x547   :  { %2237 = vrot.lane.b32.xlu1 %v2152_v55, %s6220_s20 }
 0x548   :  { %2239 = vrot.lane.b32.xlu2 %v2153_v58, %s6220_s20 }
 0x549   :  { %2235 = vrot.lane.b32.xlu0 %v2151_v17, %s6220_s20  ;;  %v2009_v0 = vpop.permute.xlu1 %2008 }
 0x54a   :  { %2110 = vst.msk [vmem:[#allocation3 + $0x70] sm:$0xff] %vm2102_vm12, %v2009_v0  ;;  %v2023_v53 = vpop.permute.xlu2 %2022  ;;  %v2366_v0 = vld [vmem:[#allocation2 + $0x5e] sm:$0xff] }
 0x54b   :  { %v2007_v54 = vpop.permute.xlu0 %2006  ;;  %2117 = vst.msk [vmem:[#allocation3 + $0xe0] sm:$0xff] %vm2102_vm12, %v2023_v53  ;;  %v2370_v53 = vld [vmem:[#allocation2 + $0x7e] sm:$0xff] }
 0x54c   :  { %2109 = vst.msk [vmem:[#allocation3 + $0x60] sm:$0xff] %vm2102_vm12, %v2007_v54  ;;  %v2365_v54 = vld [vmem:[#allocation2 + $0x56] sm:$0xff] }
 0x54f   :  { %2243 = vrot.lane.b32.xlu1 %v2155_v62, %s6220_s20 }
 0x550   :  { %2245 = vrot.lane.b32.xlu2 %v2156_v50, %s6220_s20 }
 0x551   :  { %2241 = vrot.lane.b32.xlu0 %v2154_v38, %s6220_s20  ;;  %v2015_v11 = vpop.permute.xlu1 %2014 }
 0x552   :  { %2113 = vst.msk [vmem:[#allocation3 + $0xa0] sm:$0xff] %vm2102_vm12, %v2015_v11  ;;  %v2029_v8 = vpop.permute.xlu2 %2028  ;;  %v2369_v11 = vld [vmem:[#allocation2 + $0x76] sm:$0xff] }
 0x553   :  { %v2013_v63 = vpop.permute.xlu0 %2012  ;;  %2120 = vst.msk [vmem:[#allocation3 + $0x110] sm:$0xff] %vm2102_vm12, %v2029_v8  ;;  %v2373_v8 = vld [vmem:[#allocation2 + $0x96] sm:$0xff] }
 0x554   :  { %2112 = vst.msk [vmem:[#allocation3 + $0x90] sm:$0xff] %vm2102_vm12, %v2013_v63  ;;  %v2368_v63 = vld [vmem:[#allocation2 + $0x6e] sm:$0xff] }
 0x557   :  { %2249 = vrot.lane.b32.xlu1 %v2158_v27, %s6220_s20 }
 0x558   :  { %2251 = vrot.lane.b32.xlu2 %v2159_v36, %s6220_s20 }
 0x559   :  { %2247 = vrot.lane.b32.xlu0 %v2157_v10, %s6220_s20  ;;  %v2021_v13 = vpop.permute.xlu1 %2020 }
 0x55a   :  { %2116 = vst.msk [vmem:[#allocation3 + $0xd0] sm:$0xff] %vm2102_vm12, %v2021_v13  ;;  %v2035_v14 = vpop.permute.xlu2 %2034  ;;  %v2372_v13 = vld [vmem:[#allocation2 + $0x8e] sm:$0xff] }
 0x55b   :  { %v2019_v20 = vpop.permute.xlu0 %2018  ;;  %2123 = vst.msk [vmem:[#allocation3 + $0x140] sm:$0xff] %vm2102_vm12, %v2035_v14  ;;  %v2376_v14 = vld [vmem:[#allocation2 + $0xae] sm:$0xff] }
 0x55c   :  { %2115 = vst.msk [vmem:[#allocation3 + $0xc0] sm:$0xff] %vm2102_vm12, %v2019_v20  ;;  %v2371_v20 = vld [vmem:[#allocation2 + $0x86] sm:$0xff] }
 0x55f   :  { %2255 = vrot.lane.b32.xlu1 %v2161_v15, %s6220_s20 }
 0x560   :  { %2257 = vrot.lane.b32.xlu2 %v2162_v7, %s6220_s20 }
 0x561   :  { %2253 = vrot.lane.b32.xlu0 %v2160_v23, %s6220_s20  ;;  %v2027_v37 = vpop.permute.xlu1 %2026 }
 0x562   :  { %2119 = vst.msk [vmem:[#allocation3 + $0x100] sm:$0xff] %vm2102_vm12, %v2027_v37  ;;  %v2041_v19 = vpop.permute.xlu2 %2040  ;;  %v2375_v37 = vld [vmem:[#allocation2 + $0xa6] sm:$0xff] }
 0x563   :  { %v2025_v18 = vpop.permute.xlu0 %2024  ;;  %2126 = vst.msk [vmem:[#allocation3 + $0x170] sm:$0xff] %vm2102_vm12, %v2041_v19  ;;  %v2379_v19 = vld [vmem:[#allocation2 + $0xc6] sm:$0xff] }
 0x564   :  { %2118 = vst.msk [vmem:[#allocation3 + $0xf0] sm:$0xff] %vm2102_vm12, %v2025_v18  ;;  %v2374_v18 = vld [vmem:[#allocation2 + $0x9e] sm:$0xff] }
 0x567   :  { %2261 = vrot.lane.b32.xlu1 %v2164_v32, %s6220_s20 }
 0x568   :  { %2263 = vrot.lane.b32.xlu2 %v2165_v30, %s6220_s20 }
 0x569   :  { %2259 = vrot.lane.b32.xlu0 %v2163_v3, %s6220_s20  ;;  %v2033_v2 = vpop.permute.xlu1 %2032 }
 0x56a   :  { %2122 = vst.msk [vmem:[#allocation3 + $0x130] sm:$0xff] %vm2102_vm12, %v2033_v2  ;;  %v2047_v22 = vpop.permute.xlu2 %2046  ;;  %v2378_v2 = vld [vmem:[#allocation2 + $0xbe] sm:$0xff] }
 0x56b   :  { %v2031_v51 = vpop.permute.xlu0 %2030  ;;  %2129 = vst.msk [vmem:[#allocation3 + $0x1a0] sm:$0xff] %vm2102_vm12, %v2047_v22  ;;  %v2382_v22 = vld [vmem:[#allocation2 + $0xde] sm:$0xff] }
 0x56c   :  { %2121 = vst.msk [vmem:[#allocation3 + $0x120] sm:$0xff] %vm2102_vm12, %v2031_v51  ;;  %v2377_v51 = vld [vmem:[#allocation2 + $0xb6] sm:$0xff] }
 0x56f   :  { %2267 = vrot.lane.b32.xlu1 %v2167_v61, %s6220_s20 }
 0x570   :  { %2269 = vrot.lane.b32.xlu2 %v2168_v34, %s6220_s20 }
 0x571   :  { %2265 = vrot.lane.b32.xlu0 %v2166_v4, %s6220_s20  ;;  %v2039_v35 = vpop.permute.xlu1 %2038 }
 0x572   :  { %2125 = vst.msk [vmem:[#allocation3 + $0x160] sm:$0xff] %vm2102_vm12, %v2039_v35  ;;  %v2053_v52 = vpop.permute.xlu2 %2052  ;;  %v2381_v35 = vld [vmem:[#allocation2 + $0xd6] sm:$0xff] }
 0x573   :  { %v2037_v33 = vpop.permute.xlu0 %2036  ;;  %2132 = vst.msk [vmem:[#allocation3 + $0x1d0] sm:$0xff] %vm2102_vm12, %v2053_v52  ;;  %v2385_v52 = vld [vmem:[#allocation2 + $0xf6] sm:$0xff] }
 0x574   :  { %2124 = vst.msk [vmem:[#allocation3 + $0x150] sm:$0xff] %vm2102_vm12, %v2037_v33  ;;  %v2380_v33 = vld [vmem:[#allocation2 + $0xce] sm:$0xff] }
 0x577   :  { %2273 = vrot.lane.b32.xlu1 %v2170_v59, %s6220_s20 }
 0x578   :  { %2275 = vrot.lane.b32.xlu2 %v2171_v48, %s6220_s20 }
 0x579   :  { %2271 = vrot.lane.b32.xlu0 %v2169_v6, %s6220_s20  ;;  %v2045_v28 = vpop.permute.xlu1 %2044 }
 0x57a   :  { %2128 = vst.msk [vmem:[#allocation3 + $0x190] sm:$0xff] %vm2102_vm12, %v2045_v28  ;;  %v2059_v47 = vpop.permute.xlu2 %2058  ;;  %v2384_v28 = vld [vmem:[#allocation2 + $0xee] sm:$0xff] }
 0x57b   :  { %v2043_v21 = vpop.permute.xlu0 %2042  ;;  %2135 = vst.msk [vmem:[#allocation3 + $0x200] sm:$0xff] %vm2102_vm12, %v2059_v47  ;;  %v2388_v47 = vld [vmem:[#allocation2 + $0x10e] sm:$0xff] }
 0x57c   :  { %2127 = vst.msk [vmem:[#allocation3 + $0x180] sm:$0xff] %vm2102_vm12, %v2043_v21  ;;  %v2383_v21 = vld [vmem:[#allocation2 + $0xe6] sm:$0xff] }
 0x57f   :  { %2279 = vrot.lane.b32.xlu1 %v2173_v39, %s6220_s20 }
 0x580   :  { %2432 = vrot.lane.b32.xlu2 %v2358_v40, %s6221_s1 }
 0x581   :  { %2277 = vrot.lane.b32.xlu0 %v2172_v26, %s6220_s20  ;;  %v2051_v42 = vpop.permute.xlu1 %2050 }
 0x582   :  { %2131 = vst.msk [vmem:[#allocation3 + $0x1c0] sm:$0xff] %vm2102_vm12, %v2051_v42  ;;  %v2216_v45 = vpop.permute.xlu2 %2215  ;;  %v2387_v42 = vld [vmem:[#allocation2 + $0x106] sm:$0xff] }
 0x583   :  { %v2049_v24 = vpop.permute.xlu0 %2048  ;;  %2322 = vst.msk [vmem:[#allocation3 + $0x20] sm:$0xff] %vm2319_vm13, %v2216_v45  ;;  %v2575_v45 = vld [vmem:[#allocation2 + $0x1f] sm:$0xff] }
 0x584   :  { %2130 = vst.msk [vmem:[#allocation3 + $0x1b0] sm:$0xff] %vm2102_vm12, %v2049_v24  ;;  %v2386_v24 = vld [vmem:[#allocation2 + $0xfe] sm:$0xff] }
 0x587   :  { %2430 = vrot.lane.b32.xlu1 %v2357_v5, %s6221_s1 }
 0x588   :  { %2438 = vrot.lane.b32.xlu2 %v2361_v31, %s6221_s1 }
 0x589   :  { %2428 = vrot.lane.b32.xlu0 %v2356_v29, %s6221_s1  ;;  %v2057_v12 = vpop.permute.xlu1 %2056 }
 0x58a   :  { %2134 = vst.msk [vmem:[#allocation3 + $0x1f0] sm:$0xff] %vm2102_vm12, %v2057_v12  ;;  %v2222_v43 = vpop.permute.xlu2 %2221  ;;  %v2390_v12 = vld [vmem:[#allocation2 + $0x11e] sm:$0xff] }
 0x58b   :  { %v2055_v44 = vpop.permute.xlu0 %2054  ;;  %2325 = vst.msk [vmem:[#allocation3 + $0x50] sm:$0xff] %vm2319_vm13, %v2222_v43  ;;  %v7793_v43 = vld [vmem:[#allocation2 + $0x37] sm:$0xff] }
 0x58c   :  { %2133 = vst.msk [vmem:[#allocation3 + $0x1e0] sm:$0xff] %vm2102_vm12, %v2055_v44  ;;  %v2389_v44 = vld [vmem:[#allocation2 + $0x116] sm:$0xff] }
 0x58f   :  { %2436 = vrot.lane.b32.xlu1 %v2360_v41, %s6221_s1 }
 0x590   :  { %2444 = vrot.lane.b32.xlu2 %v2364_v60, %s6221_s1 }
 0x591   :  { %2434 = vrot.lane.b32.xlu0 %v2359_v25, %s6221_s1  ;;  %v2063_v16 = vpop.permute.xlu1 %2062 }
 0x592   :  { %2137 = vst.msk [vmem:[#allocation3 + $0x220] sm:$0xff] %vm2102_vm12, %v2063_v16  ;;  %v2228_v56 = vpop.permute.xlu2 %2227  ;;  %v2574_v16 = vld [vmem:[#allocation2 + $0x17] sm:$0xff] }
 0x593   :  { %v2061_v9 = vpop.permute.xlu0 %2060  ;;  %2328 = vst.msk [vmem:[#allocation3 + $0x80] sm:$0xff] %vm2319_vm13, %v2228_v56  ;;  %v2581_v56 = vld [vmem:[#allocation2 + $0x4f] sm:$0xff] }
 0x594   :  { %2136 = vst.msk [vmem:[#allocation3 + $0x210] sm:$0xff] %vm2102_vm12, %v2061_v9  ;;  %v2573_v9 = vld [vmem:[#allocation2 + $0xf] sm:$0xff] }
 0x597   :  { %2442 = vrot.lane.b32.xlu1 %v2363_v1, %s6221_s1 }
 0x598   :  { %2450 = vrot.lane.b32.xlu2 %v2367_v57, %s6221_s1 }
 0x599   :  { %2440 = vrot.lane.b32.xlu0 %v2362_v49, %s6221_s1  ;;  %v2214_v55 = vpop.permute.xlu1 %2213 }
 0x59a   :  { %2321 = vst.msk [vmem:[#allocation3 + $0x10] sm:$0xff] %vm2319_vm13, %v2214_v55  ;;  %v2234_v58 = vpop.permute.xlu2 %2233  ;;  %v7807_v55 = vld [vmem:[#allocation2 + $0x2f] sm:$0xff] }
 0x59b   :  { %v2212_v17 = vpop.permute.xlu0 %2211  ;;  %2331 = vst.msk [vmem:[#allocation3 + $0xb0] sm:$0xff] %vm2319_vm13, %v2234_v58  ;;  %v2584_v58 = vld [vmem:[#allocation2 + $0x67] sm:$0xff] }
 0x59c   :  { %2320 = vst.msk [vmem:[#allocation3] sm:$0xff] %vm2319_vm13, %v2212_v17  ;;  %v7811_v17 = vld [vmem:[#allocation2 + $0x27] sm:$0xff] }
 0x59f   :  { %2448 = vrot.lane.b32.xlu1 %v2366_v0, %s6221_s1 }
 0x5a0   :  { %2456 = vrot.lane.b32.xlu2 %v2370_v53, %s6221_s1 }
 0x5a1   :  { %2446 = vrot.lane.b32.xlu0 %v2365_v54, %s6221_s1  ;;  %v2220_v62 = vpop.permute.xlu1 %2219 }
 0x5a2   :  { %2324 = vst.msk [vmem:[#allocation3 + $0x40] sm:$0xff] %vm2319_vm13, %v2220_v62  ;;  %v2240_v50 = vpop.permute.xlu2 %2239  ;;  %v2580_v62 = vld [vmem:[#allocation2 + $0x47] sm:$0xff] }
 0x5a3   :  { %v2218_v38 = vpop.permute.xlu0 %2217  ;;  %2334 = vst.msk [vmem:[#allocation3 + $0xe0] sm:$0xff] %vm2319_vm13, %v2240_v50  ;;  %v2587_v50 = vld [vmem:[#allocation2 + $0x7f] sm:$0xff] }
 0x5a4   :  { %2323 = vst.msk [vmem:[#allocation3 + $0x30] sm:$0xff] %vm2319_vm13, %v2218_v38  ;;  %v2579_v38 = vld [vmem:[#allocation2 + $0x3f] sm:$0xff] }
 0x5a7   :  { %2454 = vrot.lane.b32.xlu1 %v2369_v11, %s6221_s1 }
 0x5a8   :  { %2462 = vrot.lane.b32.xlu2 %v2373_v8, %s6221_s1 }
 0x5a9   :  { %2452 = vrot.lane.b32.xlu0 %v2368_v63, %s6221_s1  ;;  %v2226_v27 = vpop.permute.xlu1 %2225 }
 0x5aa   :  { %2327 = vst.msk [vmem:[#allocation3 + $0x70] sm:$0xff] %vm2319_vm13, %v2226_v27  ;;  %v2246_v36 = vpop.permute.xlu2 %2245  ;;  %v2583_v27 = vld [vmem:[#allocation2 + $0x5f] sm:$0xff] }
 0x5ab   :  { %v2224_v10 = vpop.permute.xlu0 %2223  ;;  %2337 = vst.msk [vmem:[#allocation3 + $0x110] sm:$0xff] %vm2319_vm13, %v2246_v36  ;;  %v2590_v36 = vld [vmem:[#allocation2 + $0x97] sm:$0xff] }
 0x5ac   :  { %2326 = vst.msk [vmem:[#allocation3 + $0x60] sm:$0xff] %vm2319_vm13, %v2224_v10  ;;  %v2582_v10 = vld [vmem:[#allocation2 + $0x57] sm:$0xff] }
 0x5af   :  { %2460 = vrot.lane.b32.xlu1 %v2372_v13, %s6221_s1 }
 0x5b0   :  { %2468 = vrot.lane.b32.xlu2 %v2376_v14, %s6221_s1 }
 0x5b1   :  { %2458 = vrot.lane.b32.xlu0 %v2371_v20, %s6221_s1  ;;  %v2232_v15 = vpop.permute.xlu1 %2231 }
 0x5b2   :  { %2330 = vst.msk [vmem:[#allocation3 + $0xa0] sm:$0xff] %vm2319_vm13, %v2232_v15  ;;  %v2252_v7 = vpop.permute.xlu2 %2251  ;;  %v2586_v15 = vld [vmem:[#allocation2 + $0x77] sm:$0xff] }
 0x5b3   :  { %v2230_v23 = vpop.permute.xlu0 %2229  ;;  %2340 = vst.msk [vmem:[#allocation3 + $0x140] sm:$0xff] %vm2319_vm13, %v2252_v7  ;;  %v2593_v7 = vld [vmem:[#allocation2 + $0xaf] sm:$0xff] }
 0x5b4   :  { %2329 = vst.msk [vmem:[#allocation3 + $0x90] sm:$0xff] %vm2319_vm13, %v2230_v23  ;;  %v2585_v23 = vld [vmem:[#allocation2 + $0x6f] sm:$0xff] }
 0x5b7   :  { %2466 = vrot.lane.b32.xlu1 %v2375_v37, %s6221_s1 }
 0x5b8   :  { %2474 = vrot.lane.b32.xlu2 %v2379_v19, %s6221_s1 }
 0x5b9   :  { %2464 = vrot.lane.b32.xlu0 %v2374_v18, %s6221_s1  ;;  %v2238_v32 = vpop.permute.xlu1 %2237 }
 0x5ba   :  { %2333 = vst.msk [vmem:[#allocation3 + $0xd0] sm:$0xff] %vm2319_vm13, %v2238_v32  ;;  %v2258_v30 = vpop.permute.xlu2 %2257  ;;  %v2589_v32 = vld [vmem:[#allocation2 + $0x8f] sm:$0xff] }
 0x5bb   :  { %v2236_v3 = vpop.permute.xlu0 %2235  ;;  %2343 = vst.msk [vmem:[#allocation3 + $0x170] sm:$0xff] %vm2319_vm13, %v2258_v30  ;;  %v2596_v30 = vld [vmem:[#allocation2 + $0xc7] sm:$0xff] }
 0x5bc   :  { %2332 = vst.msk [vmem:[#allocation3 + $0xc0] sm:$0xff] %vm2319_vm13, %v2236_v3  ;;  %v2588_v3 = vld [vmem:[#allocation2 + $0x87] sm:$0xff] }
 0x5bf   :  { %2472 = vrot.lane.b32.xlu1 %v2378_v2, %s6221_s1 }
 0x5c0   :  { %2480 = vrot.lane.b32.xlu2 %v2382_v22, %s6221_s1 }
 0x5c1   :  { %2470 = vrot.lane.b32.xlu0 %v2377_v51, %s6221_s1  ;;  %v2244_v61 = vpop.permute.xlu1 %2243 }
 0x5c2   :  { %2336 = vst.msk [vmem:[#allocation3 + $0x100] sm:$0xff] %vm2319_vm13, %v2244_v61  ;;  %v2264_v34 = vpop.permute.xlu2 %2263  ;;  %v2592_v61 = vld [vmem:[#allocation2 + $0xa7] sm:$0xff] }
 0x5c3   :  { %v2242_v4 = vpop.permute.xlu0 %2241  ;;  %2346 = vst.msk [vmem:[#allocation3 + $0x1a0] sm:$0xff] %vm2319_vm13, %v2264_v34  ;;  %v2599_v34 = vld [vmem:[#allocation2 + $0xdf] sm:$0xff] }
 0x5c4   :  { %2335 = vst.msk [vmem:[#allocation3 + $0xf0] sm:$0xff] %vm2319_vm13, %v2242_v4  ;;  %v2591_v4 = vld [vmem:[#allocation2 + $0x9f] sm:$0xff] }
 0x5c7   :  { %2478 = vrot.lane.b32.xlu1 %v2381_v35, %s6221_s1 }
 0x5c8   :  { %2486 = vrot.lane.b32.xlu2 %v2385_v52, %s6221_s1 }
 0x5c9   :  { %2476 = vrot.lane.b32.xlu0 %v2380_v33, %s6221_s1  ;;  %v2250_v59 = vpop.permute.xlu1 %2249 }
 0x5ca   :  { %2339 = vst.msk [vmem:[#allocation3 + $0x130] sm:$0xff] %vm2319_vm13, %v2250_v59  ;;  %v2270_v48 = vpop.permute.xlu2 %2269  ;;  %v2595_v59 = vld [vmem:[#allocation2 + $0xbf] sm:$0xff] }
 0x5cb   :  { %v2248_v6 = vpop.permute.xlu0 %2247  ;;  %2349 = vst.msk [vmem:[#allocation3 + $0x1d0] sm:$0xff] %vm2319_vm13, %v2270_v48  ;;  %v2602_v48 = vld [vmem:[#allocation2 + $0xf7] sm:$0xff] }
 0x5cc   :  { %2338 = vst.msk [vmem:[#allocation3 + $0x120] sm:$0xff] %vm2319_vm13, %v2248_v6  ;;  %v2594_v6 = vld [vmem:[#allocation2 + $0xb7] sm:$0xff] }
 0x5cf   :  { %2484 = vrot.lane.b32.xlu1 %v2384_v28, %s6221_s1 }
 0x5d0   :  { %2492 = vrot.lane.b32.xlu2 %v2388_v47, %s6221_s1 }
 0x5d1   :  { %2482 = vrot.lane.b32.xlu0 %v2383_v21, %s6221_s1  ;;  %v2256_v39 = vpop.permute.xlu1 %2255 }
 0x5d2   :  { %2342 = vst.msk [vmem:[#allocation3 + $0x160] sm:$0xff] %vm2319_vm13, %v2256_v39  ;;  %v2276_v40 = vpop.permute.xlu2 %2275  ;;  %v4461_v39 = vld [vmem:[%s10222_s2 + $0x78] sm:$0xff] }
 0x5d3   :  { %v2254_v26 = vpop.permute.xlu0 %2253  ;;  %2352 = vst.msk [vmem:[#allocation3 + $0x200] sm:$0xff] %vm2319_vm13, %v2276_v40  ;;  %v4460_v40 = vld [vmem:[%s10222_s2 + $0x70] sm:$0xff]  ;;  %4482 = vmatpush.msra.mxu1 %v4461_v39  ;;  %6135 = vmatpush.msrb.mxu3 %v4461_v39  ;;  %v2871_v39 = vld [vmem:[#allocation2 + $0x61] sm:$0xff] }
 0x5d4   :  { %2341 = vst.msk [vmem:[#allocation3 + $0x150] sm:$0xff] %vm2319_vm13, %v2254_v26  ;;  %v2598_v26 = vld [vmem:[#allocation2 + $0xd7] sm:$0xff] }
 0x5d5   :  { %4483 = vmatpush.msra.mxu1 %v4460_v40  ;;  %6136 = vmatpush.msrb.mxu3 %v4460_v40 }
 0x5d7   :  { %2490 = vrot.lane.b32.xlu1 %v2387_v42, %s6221_s1  ;;  %v4459_v42 = vld [vmem:[%s10222_s2 + $0x68] sm:$0xff] }
 0x5d8   :  { %2649 = vrot.lane.b32.xlu2 %v2575_v45, %s6222_s21  ;;  %v2605_v45 = vld [vmem:[#allocation2 + $0x10f] sm:$0xff]  ;;  %4484 = vmatpush.msra.mxu1 %v4459_v42 }
 0x5d9   :  { %2488 = vrot.lane.b32.xlu0 %v2386_v24, %s6221_s1  ;;  %v2262_v5 = vpop.permute.xlu1 %2261  ;;  %v2597_v24 = vld [vmem:[#allocation2 + $0xcf] sm:$0xff]  ;;  %6137 = vmatpush.msrb.mxu3 %v4459_v42 }
 0x5da   :  { %2345 = vst.msk [vmem:[#allocation3 + $0x190] sm:$0xff] %vm2319_vm13, %v2262_v5  ;;  %v2433_v31 = vpop.permute.xlu2 %2432  ;;  %v4458_v5 = vld [vmem:[%s10222_s2 + $0x60] sm:$0xff] }
 0x5db   :  { %v2260_v29 = vpop.permute.xlu0 %2259  ;;  %2539 = vst.msk [vmem:[#allocation3 + $0x20] sm:$0xff] %vm2536_vm14, %v2433_v31  ;;  %4485 = vmatpush.msra.mxu1 %v4458_v5  ;;  %6138 = vmatpush.msrb.mxu3 %v4458_v5  ;;  %v2885_v5 = vld [vmem:[#allocation2 + $0xd1] sm:$0xff] }
 0x5dc   :  { %2344 = vst.msk [vmem:[#allocation3 + $0x180] sm:$0xff] %vm2319_vm13, %v2260_v29 }
 0x5df   :  { %2496 = vrot.lane.b32.xlu1 %v2390_v12, %s6221_s1 }
 0x5e0   :  { %2655 = vrot.lane.b32.xlu2 %v7793_v43, %s6222_s21 }
 0x5e1   :  { %2494 = vrot.lane.b32.xlu0 %v2389_v44, %s6221_s1  ;;  %v2268_v41 = vpop.permute.xlu1 %2267  ;;  %v4457_v44 = vld [vmem:[%s10222_s2 + $0x58] sm:$0xff] }
 0x5e2   :  { %2348 = vst.msk [vmem:[#allocation3 + $0x1c0] sm:$0xff] %vm2319_vm13, %v2268_v41  ;;  %v2439_v60 = vpop.permute.xlu2 %2438  ;;  %v4456_v41 = vld [vmem:[%s10222_s2 + $0x50] sm:$0xff]  ;;  %4486 = vmatpush.msra.mxu1 %v4457_v44  ;;  %6139 = vmatpush.msrb.mxu3 %v4457_v44 }
 0x5e3   :  { %v2266_v25 = vpop.permute.xlu0 %2265  ;;  %2542 = vst.msk [vmem:[#allocation3 + $0x50] sm:$0xff] %vm2536_vm14, %v2439_v60  ;;  %v2601_v60 = vld [vmem:[#allocation2 + $0xef] sm:$0xff] }
 0x5e4   :  { %2347 = vst.msk [vmem:[#allocation3 + $0x1b0] sm:$0xff] %vm2319_vm13, %v2266_v25  ;;  %v4455_v25 = vld [vmem:[%s10222_s2 + $0x48] sm:$0xff]  ;;  %4487 = vmatpush.msra.mxu1 %v4456_v41  ;;  %6140 = vmatpush.msrb.mxu3 %v4456_v41 }
 0x5e6   :  { %4488 = vmatpush.msra.mxu1 %v4455_v25  ;;  %6141 = vmatpush.msrb.mxu3 %v4455_v25  ;;  %v2888_v25 = vld [vmem:[#allocation2 + $0xe9] sm:$0xff] }
 0x5e7   :  { %2647 = vrot.lane.b32.xlu1 %v2574_v16, %s6222_s21  ;;  %v2864_v16 = vld [vmem:[#allocation2 + $0x29] sm:$0xff] }
 0x5e8   :  { %2661 = vrot.lane.b32.xlu2 %v2581_v56, %s6222_s21  ;;  %v2600_v56 = vld [vmem:[#allocation2 + $0xe7] sm:$0xff] }
 0x5e9   :  { %2645 = vrot.lane.b32.xlu0 %v2573_v9, %s6222_s21  ;;  %v2274_v1 = vpop.permute.xlu1 %2273  ;;  %v4454_v9 = vld [vmem:[%s10222_s2 + $0x40] sm:$0xff] }
 0x5ea   :  { %2351 = vst.msk [vmem:[#allocation3 + $0x1f0] sm:$0xff] %vm2319_vm13, %v2274_v1  ;;  %v2445_v57 = vpop.permute.xlu2 %2444  ;;  %4489 = vmatpush.msra.mxu1 %v4454_v9  ;;  %6142 = vmatpush.msrb.mxu3 %v4454_v9 }
 0x5eb   :  { %v2272_v49 = vpop.permute.xlu0 %2271  ;;  %2545 = vst.msk [vmem:[#allocation3 + $0x80] sm:$0xff] %vm2536_vm14, %v2445_v57 }
 0x5ec   :  { %2350 = vst.msk [vmem:[#allocation3 + $0x1e0] sm:$0xff] %vm2319_vm13, %v2272_v49 }
 0x5ef   :  { %2653 = vrot.lane.b32.xlu1 %v7807_v55, %s6222_s21 }
 0x5f0   :  { %2667 = vrot.lane.b32.xlu2 %v2584_v58, %s6222_s21  ;;  %v4453_v58 = vld [vmem:[%s10222_s2 + $0x38] sm:$0xff] }
 0x5f1   :  { %2651 = vrot.lane.b32.xlu0 %v7811_v17, %s6222_s21  ;;  %v2280_v0 = vpop.permute.xlu1 %2279  ;;  %4490 = vmatpush.msra.mxu1 %v4453_v58 }
 0x5f2   :  { %2354 = vst.msk [vmem:[#allocation3 + $0x220] sm:$0xff] %vm2319_vm13, %v2280_v0  ;;  %v2451_v53 = vpop.permute.xlu2 %2450  ;;  %v4452_v0 = vld [vmem:[%s10222_s2 + $0x30] sm:$0xff]  ;;  %6143 = vmatpush.msrb.mxu3 %v4453_v58  ;;  %v2891_v58 = vld [vmem:[#allocation2 + $0x101] sm:$0xff] }
 0x5f3   :  { %v2278_v54 = vpop.permute.xlu0 %2277  ;;  %2548 = vst.msk [vmem:[#allocation3 + $0xb0] sm:$0xff] %vm2536_vm14, %v2451_v53  ;;  %v2604_v53 = vld [vmem:[#allocation2 + $0x107] sm:$0xff]  ;;  %4491 = vmatpush.msra.mxu1 %v4452_v0 }
 0x5f4   :  { %2353 = vst.msk [vmem:[#allocation3 + $0x210] sm:$0xff] %vm2319_vm13, %v2278_v54  ;;  %v4451_v54 = vld [vmem:[%s10222_s2 + $0x28] sm:$0xff]  ;;  %6144 = vmatpush.msrb.mxu3 %v4452_v0 }
 0x5f5   :  { %4492 = vmatpush.msra.mxu1 %v4451_v54  ;;  %v2880_v0 = vld [vmem:[#allocation2 + $0xa9] sm:$0xff] }
 0x5f6   :  { %6145 = vmatpush.msrb.mxu3 %v4451_v54 }
 0x5f7   :  { %2659 = vrot.lane.b32.xlu1 %v2580_v62, %s6222_s21  ;;  %v2867_v62 = vld [vmem:[#allocation2 + $0x41] sm:$0xff] }
 0x5f8   :  { %2673 = vrot.lane.b32.xlu2 %v2587_v50, %s6222_s21  ;;  %v2603_v50 = vld [vmem:[#allocation2 + $0xff] sm:$0xff] }
 0x5f9   :  { %2657 = vrot.lane.b32.xlu0 %v2579_v38, %s6222_s21  ;;  %v2431_v11 = vpop.permute.xlu1 %2430  ;;  %v4450_v38 = vld [vmem:[%s10222_s2 + $0x20] sm:$0xff] }
 0x5fa   :  { %2538 = vst.msk [vmem:[#allocation3 + $0x10] sm:$0xff] %vm2536_vm14, %v2431_v11  ;;  %v2457_v8 = vpop.permute.xlu2 %2456  ;;  %4493 = vmatpush.msra.mxu1 %v4450_v38  ;;  %6146 = vmatpush.msrb.mxu3 %v4450_v38  ;;  %v2884_v38 = vld [vmem:[#allocation2 + $0xc9] sm:$0xff] }
 0x5fb   :  { %v2429_v63 = vpop.permute.xlu0 %2428  ;;  %2551 = vst.msk [vmem:[#allocation3 + $0xe0] sm:$0xff] %vm2536_vm14, %v2457_v8 }
 0x5fc   :  { %2537 = vst.msk [vmem:[#allocation3] sm:$0xff] %vm2536_vm14, %v2429_v63 }
 0x5ff   :  { %2665 = vrot.lane.b32.xlu1 %v2583_v27, %s6222_s21  ;;  %v4449_v27 = vld [vmem:[%s10222_s2 + $0x18] sm:$0xff] }
 0x600   :  { %2679 = vrot.lane.b32.xlu2 %v2590_v36, %s6222_s21  ;;  %v4448_v36 = vld [vmem:[%s10222_s2 + $0x10] sm:$0xff]  ;;  %4494 = vmatpush.msra.mxu1 %v4449_v27 }
 0x601   :  { %2663 = vrot.lane.b32.xlu0 %v2582_v10, %s6222_s21  ;;  %v2437_v13 = vpop.permute.xlu1 %2436  ;;  %v2607_v10 = vld [vmem:[#allocation2 + $0x11f] sm:$0xff]  ;;  %6147 = vmatpush.msrb.mxu3 %v4449_v27 }
 0x602   :  { %2541 = vst.msk [vmem:[#allocation3 + $0x40] sm:$0xff] %vm2536_vm14, %v2437_v13  ;;  %v2463_v14 = vpop.permute.xlu2 %2462  ;;  %v4447_v13 = vld [vmem:[%s10222_s2 + $0x8] sm:$0xff]  ;;  %4495 = vmatpush.msra.mxu1 %v4448_v36 }
 0x603   :  { %v2435_v20 = vpop.permute.xlu0 %2434  ;;  %2554 = vst.msk [vmem:[#allocation3 + $0x110] sm:$0xff] %vm2536_vm14, %v2463_v14  ;;  %v2870_v14 = vld [vmem:[#allocation2 + $0x59] sm:$0xff]  ;;  %6148 = vmatpush.msrb.mxu3 %v4448_v36 }
 0x604   :  { %2540 = vst.msk [vmem:[#allocation3 + $0x30] sm:$0xff] %vm2536_vm14, %v2435_v20  ;;  %v2606_v20 = vld [vmem:[#allocation2 + $0x117] sm:$0xff]  ;;  %4496 = vmatpush.msra.mxu1 %v4447_v13 }
 0x605   :  { %6149 = vmatpush.msrb.mxu3 %v4447_v13  ;;  %v2897_v13 = vld [vmem:[#allocation2 + $0x131] sm:$0xff] }
 0x607   :  { %2671 = vrot.lane.b32.xlu1 %v2586_v15, %s6222_s21  ;;  %v4446_v15 = vld [vmem:[%s10222_s2] sm:$0xff] }
 0x608   :  { %2685 = vrot.lane.b32.xlu2 %v2593_v7, %s6222_s21  ;;  %4497 = vmatpush.msra.mxu1 %v4446_v15 }
 0x609   :  { %2669 = vrot.lane.b32.xlu0 %v2585_v23, %s6222_s21  ;;  %v2443_v37 = vpop.permute.xlu1 %2442  ;;  %6150 = vmatpush.msrb.mxu3 %v4446_v15 }
 0x60a   :  { %2544 = vst.msk [vmem:[#allocation3 + $0x70] sm:$0xff] %vm2536_vm14, %v2443_v37  ;;  %v2469_v19 = vpop.permute.xlu2 %2468 }
 0x60b   :  { %v2441_v18 = vpop.permute.xlu0 %2440  ;;  %2557 = vst.msk [vmem:[#allocation3 + $0x140] sm:$0xff] %vm2536_vm14, %v2469_v19  ;;  %v2863_v19 = vld [vmem:[#allocation2 + $0x21] sm:$0xff] }
 0x60c   :  { %2543 = vst.msk [vmem:[#allocation3 + $0x60] sm:$0xff] %vm2536_vm14, %v2441_v18  ;;  %v2873_v18 = vld [vmem:[#allocation2 + $0x71] sm:$0xff] }
 0x60f   :  { %2677 = vrot.lane.b32.xlu1 %v2589_v32, %s6222_s21  ;;  %v2862_v32 = vld [vmem:[#allocation2 + $0x19] sm:$0xff] }
 0x610   :  { %2691 = vrot.lane.b32.xlu2 %v2596_v30, %s6222_s21 }
 0x611   :  { %2675 = vrot.lane.b32.xlu0 %v2588_v3, %s6222_s21  ;;  %v2449_v2 = vpop.permute.xlu1 %2448 }
 0x612   :  { %2547 = vst.msk [vmem:[#allocation3 + $0xa0] sm:$0xff] %vm2536_vm14, %v2449_v2  ;;  %v2475_v22 = vpop.permute.xlu2 %2474 }
 0x613   :  { %v2447_v51 = vpop.permute.xlu0 %2446  ;;  %2560 = vst.msk [vmem:[#allocation3 + $0x170] sm:$0xff] %vm2536_vm14, %v2475_v22  ;;  %v2866_v22 = vld [vmem:[#allocation2 + $0x39] sm:$0xff] }
 0x614   :  { %2546 = vst.msk [vmem:[#allocation3 + $0x90] sm:$0xff] %vm2536_vm14, %v2447_v51  ;;  %v2876_v51 = vld [vmem:[#allocation2 + $0x89] sm:$0xff] }
 0x617   :  { %2683 = vrot.lane.b32.xlu1 %v2592_v61, %s6222_s21  ;;  %v2865_v61 = vld [vmem:[#allocation2 + $0x31] sm:$0xff] }
 0x618   :  { %2697 = vrot.lane.b32.xlu2 %v2599_v34, %s6222_s21 }
 0x619   :  { %2681 = vrot.lane.b32.xlu0 %v2591_v4, %s6222_s21  ;;  %v2455_v35 = vpop.permute.xlu1 %2454 }
 0x61a   :  { %2550 = vst.msk [vmem:[#allocation3 + $0xd0] sm:$0xff] %vm2536_vm14, %v2455_v35  ;;  %v2481_v52 = vpop.permute.xlu2 %2480 }
 0x61b   :  { %v2453_v33 = vpop.permute.xlu0 %2452  ;;  %2563 = vst.msk [vmem:[#allocation3 + $0x1a0] sm:$0xff] %vm2536_vm14, %v2481_v52  ;;  %v2869_v52 = vld [vmem:[#allocation2 + $0x51] sm:$0xff] }
 0x61c   :  { %2549 = vst.msk [vmem:[#allocation3 + $0xc0] sm:$0xff] %vm2536_vm14, %v2453_v33  ;;  %v2879_v33 = vld [vmem:[#allocation2 + $0xa1] sm:$0xff] }
 0x61f   :  { %2689 = vrot.lane.b32.xlu1 %v2595_v59, %s6222_s21  ;;  %v2868_v59 = vld [vmem:[#allocation2 + $0x49] sm:$0xff] }
 0x620   :  { %2703 = vrot.lane.b32.xlu2 %v2602_v48, %s6222_s21 }
 0x621   :  { %2687 = vrot.lane.b32.xlu0 %v2594_v6, %s6222_s21  ;;  %v2461_v28 = vpop.permute.xlu1 %2460 }
 0x622   :  { %2553 = vst.msk [vmem:[#allocation3 + $0x100] sm:$0xff] %vm2536_vm14, %v2461_v28  ;;  %v2487_v47 = vpop.permute.xlu2 %2486 }
 0x623   :  { %v2459_v21 = vpop.permute.xlu0 %2458  ;;  %2566 = vst.msk [vmem:[#allocation3 + $0x1d0] sm:$0xff] %vm2536_vm14, %v2487_v47  ;;  %v2872_v47 = vld [vmem:[#allocation2 + $0x69] sm:$0xff] }
 0x624   :  { %2552 = vst.msk [vmem:[#allocation3 + $0xf0] sm:$0xff] %vm2536_vm14, %v2459_v21  ;;  %v2882_v21 = vld [vmem:[#allocation2 + $0xb9] sm:$0xff] }
 0x627   :  { %2695 = vrot.lane.b32.xlu1 %v2598_v26, %s6222_s21 }
 0x628   :  { %2709 = vrot.lane.b32.xlu2 %v2605_v45, %s6222_s21 }
 0x629   :  { %2693 = vrot.lane.b32.xlu0 %v2597_v24, %s6222_s21  ;;  %v2467_v31 = vpop.permute.xlu1 %2466  ;;  %v2875_v24 = vld [vmem:[#allocation2 + $0x81] sm:$0xff] }
 0x62a   :  { %2556 = vst.msk [vmem:[#allocation3 + $0x130] sm:$0xff] %vm2536_vm14, %v2467_v31  ;;  %v2493_v29 = vpop.permute.xlu2 %2492  ;;  %v2874_v31 = vld [vmem:[#allocation2 + $0x79] sm:$0xff] }
 0x62b   :  { %v2465_v12 = vpop.permute.xlu0 %2464  ;;  %2569 = vst.msk [vmem:[#allocation3 + $0x200] sm:$0xff] %vm2536_vm14, %v2493_v29 }
 0x62c   :  { %2555 = vst.msk [vmem:[#allocation3 + $0x120] sm:$0xff] %vm2536_vm14, %v2465_v12 }
 0x62f   :  { %2701 = vrot.lane.b32.xlu1 %v2601_v60, %s6222_s21  ;;  %v2878_v60 = vld [vmem:[#allocation2 + $0x99] sm:$0xff] }
 0x630   :  { %2938 = vrot.lane.b32.xlu2 %v2864_v16, %s6225_s24  ;;  %v2877_v16 = vld [vmem:[#allocation2 + $0x91] sm:$0xff] }
 0x631   :  { %2699 = vrot.lane.b32.xlu0 %v2600_v56, %s6222_s21  ;;  %v2473_v1 = vpop.permute.xlu1 %2472 }
 0x632   :  { %2559 = vst.msk [vmem:[#allocation3 + $0x160] sm:$0xff] %vm2536_vm14, %v2473_v1  ;;  %v2650_v57 = vpop.permute.xlu2 %2649 }
 0x633   :  { %v2471_v49 = vpop.permute.xlu0 %2470  ;;  %2756 = vst.msk [vmem:[#allocation3 + $0x20] sm:$0xff] %vm2753_vm15, %v2650_v57 }
 0x634   :  { %2558 = vst.msk [vmem:[#allocation3 + $0x150] sm:$0xff] %vm2536_vm14, %v2471_v49  ;;  %v2881_v49 = vld [vmem:[#allocation2 + $0xb1] sm:$0xff] }
 0x637   :  { %2707 = vrot.lane.b32.xlu1 %v2604_v53, %s6222_s21 }
 0x638   :  { %2944 = vrot.lane.b32.xlu2 %v2867_v62, %s6225_s24 }
 0x639   :  { %2705 = vrot.lane.b32.xlu0 %v2603_v50, %s6222_s21  ;;  %v2479_v11 = vpop.permute.xlu1 %2478 }
 0x63a   :  { %2562 = vst.msk [vmem:[#allocation3 + $0x190] sm:$0xff] %vm2536_vm14, %v2479_v11  ;;  %v2656_v8 = vpop.permute.xlu2 %2655  ;;  %v4378_v57 = vld [vmem:[#allocation3 + $0x20] sm:$0xff]  ;;  %v2894_v11 = vld [vmem:[#allocation2 + $0x119] sm:$0xff] }
 0x63b   :  { %v2477_v63 = vpop.permute.xlu0 %2476  ;;  %2759 = vst.msk [vmem:[#allocation3 + $0x50] sm:$0xff] %vm2753_vm15, %v2656_v8  ;;  %v2883_v8 = vld [vmem:[#allocation2 + $0xc1] sm:$0xff] }
 0x63c   :  { %2561 = vst.msk [vmem:[#allocation3 + $0x180] sm:$0xff] %vm2536_vm14, %v2477_v63 }
 0x63f   :  { %2713 = vrot.lane.b32.xlu1 %v2607_v10, %s6222_s21 }
 0x640   :  { %2950 = vrot.lane.b32.xlu2 %v2870_v14, %s6225_s24  ;;  %v2887_v14 = vld [vmem:[#allocation2 + $0xe1] sm:$0xff] }
 0x641   :  { %2711 = vrot.lane.b32.xlu0 %v2606_v20, %s6222_s21  ;;  %v2485_v7 = vpop.permute.xlu1 %2484  ;;  %v2886_v20 = vld [vmem:[#allocation2 + $0xd9] sm:$0xff] }
 0x642   :  { %2565 = vst.msk [vmem:[#allocation3 + $0x1c0] sm:$0xff] %vm2536_vm14, %v2485_v7  ;;  %v2662_v23 = vpop.permute.xlu2 %2661 }
 0x643   :  { %v2483_v37 = vpop.permute.xlu0 %2482  ;;  %2762 = vst.msk [vmem:[#allocation3 + $0x80] sm:$0xff] %vm2753_vm15, %v2662_v23 }
 0x644   :  { %2564 = vst.msk [vmem:[#allocation3 + $0x1b0] sm:$0xff] %vm2536_vm14, %v2483_v37  ;;  %v4384_v37 = vld [vmem:[#allocation3 + $0x50] sm:$0xff] }
 0x647   :  { %2936 = vrot.lane.b32.xlu1 %v2863_v19, %s6225_s24  ;;  %v2890_v19 = vld [vmem:[#allocation2 + $0xf9] sm:$0xff] }
 0x648   :  { %2956 = vrot.lane.b32.xlu2 %v2873_v18, %s6225_s24  ;;  %v3080_v18 = vld [vmem:[#allocation2 + $0x2a] sm:$0xff] }
 0x649   :  { %2934 = vrot.lane.b32.xlu0 %v2862_v32, %s6225_s24  ;;  %v2491_v30 = vpop.permute.xlu1 %2490  ;;  %v2889_v32 = vld [vmem:[#allocation2 + $0xf1] sm:$0xff] }
 0x64a   :  { %2568 = vst.msk [vmem:[#allocation3 + $0x1f0] sm:$0xff] %vm2536_vm14, %v2491_v30  ;;  %v2668_v3 = vpop.permute.xlu2 %2667 }
 0x64b   :  { %v2489_v2 = vpop.permute.xlu0 %2488  ;;  %2765 = vst.msk [vmem:[#allocation3 + $0xb0] sm:$0xff] %vm2753_vm15, %v2668_v3 }
 0x64c   :  { %2567 = vst.msk [vmem:[#allocation3 + $0x1e0] sm:$0xff] %vm2536_vm14, %v2489_v2 }
 0x64f   :  { %2942 = vrot.lane.b32.xlu1 %v2866_v22, %s6225_s24 }
 0x650   :  { %2962 = vrot.lane.b32.xlu2 %v2876_v51, %s6225_s24  ;;  %v2893_v51 = vld [vmem:[#allocation2 + $0x111] sm:$0xff] }
 0x651   :  { %2940 = vrot.lane.b32.xlu0 %v2865_v61, %s6225_s24  ;;  %v2497_v34 = vpop.permute.xlu1 %2496  ;;  %v3083_v61 = vld [vmem:[#allocation2 + $0x42] sm:$0xff] }
 0x652   :  { %2571 = vst.msk [vmem:[#allocation3 + $0x220] sm:$0xff] %vm2536_vm14, %v2497_v34  ;;  %v2674_v4 = vpop.permute.xlu2 %2673  ;;  %v2892_v34 = vld [vmem:[#allocation2 + $0x109] sm:$0xff] }
 0x653   :  { %v2495_v35 = vpop.permute.xlu0 %2494  ;;  %2768 = vst.msk [vmem:[#allocation3 + $0xe0] sm:$0xff] %vm2753_vm15, %v2674_v4 }
 0x654   :  { %2570 = vst.msk [vmem:[#allocation3 + $0x210] sm:$0xff] %vm2536_vm14, %v2495_v35 }
 0x657   :  { %2948 = vrot.lane.b32.xlu1 %v2869_v52, %s6225_s24 }
 0x658   :  { %2968 = vrot.lane.b32.xlu2 %v2879_v33, %s6225_s24 }
 0x659   :  { %2946 = vrot.lane.b32.xlu0 %v2868_v59, %s6225_s24  ;;  %v2648_v48 = vpop.permute.xlu1 %2647  ;;  %v2896_v59 = vld [vmem:[#allocation2 + $0x129] sm:$0xff] }
 0x65a   :  { %2755 = vst.msk [vmem:[#allocation3 + $0x10] sm:$0xff] %vm2753_vm15, %v2648_v48  ;;  %v2680_v6 = vpop.permute.xlu2 %2679  ;;  %v2895_v48 = vld [vmem:[#allocation2 + $0x121] sm:$0xff] }
 0x65b   :  { %v2646_v28 = vpop.permute.xlu0 %2645  ;;  %2771 = vst.msk [vmem:[#allocation3 + $0x110] sm:$0xff] %vm2753_vm15, %v2680_v6  ;;  %v3086_v6 = vld [vmem:[#allocation2 + $0x5a] sm:$0xff] }
 0x65c   :  { %2754 = vst.msk [vmem:[#allocation3] sm:$0xff] %vm2753_vm15, %v2646_v28 }
 0x65f   :  { %2954 = vrot.lane.b32.xlu1 %v2872_v47, %s6225_s24 }
 0x660   :  { %2974 = vrot.lane.b32.xlu2 %v2882_v21, %s6225_s24 }
 0x661   :  { %2952 = vrot.lane.b32.xlu0 %v2871_v39, %s6225_s24  ;;  %v2654_v40 = vpop.permute.xlu1 %2653  ;;  %v4376_v41 = vld [vmem:[#allocation3 + $0x10] sm:$0xff]  ;;  %v4390_v39 = vld [vmem:[#allocation3 + $0x80] sm:$0xff] }
 0x662   :  { %2758 = vst.msk [vmem:[#allocation3 + $0x40] sm:$0xff] %vm2753_vm15, %v2654_v40  ;;  %v2686_v26 = vpop.permute.xlu2 %2685  ;;  %v3079_v40 = vld [vmem:[#allocation2 + $0x22] sm:$0xff] }
 0x663   :  { %v2652_v42 = vpop.permute.xlu0 %2651  ;;  %2774 = vst.msk [vmem:[#allocation3 + $0x140] sm:$0xff] %vm2753_vm15, %v2686_v26  ;;  %v4374_v45 = vld [vmem:[#allocation3] sm:$0xff] }
 0x664   :  { %2757 = vst.msk [vmem:[#allocation3 + $0x30] sm:$0xff] %vm2753_vm15, %v2652_v42  ;;  %4498 = vmatmul.f32.vlgmr.msra.gmra.mxu1 %v4374_v45  ;;  %v3726_v26 = vld [vmem:[#allocation2 + $0x25] sm:$0xff]  ;;  %v3078_v42 = vld [vmem:[#allocation2 + $0x1a] sm:$0xff] }
 0x667   :  { %2960 = vrot.lane.b32.xlu1 %v2875_v24, %s6225_s24 }
 0x668   :  { %2980 = vrot.lane.b32.xlu2 %v2885_v5, %s6225_s24 }
 0x669   :  { %2958 = vrot.lane.b32.xlu0 %v2874_v31, %s6225_s24  ;;  %v2660_v29 = vpop.permute.xlu1 %2659  ;;  %v4382_v10 = vld [vmem:[#allocation3 + $0x40] sm:$0xff] }
 0x66a   :  { %2761 = vst.msk [vmem:[#allocation3 + $0x70] sm:$0xff] %vm2753_vm15, %v2660_v29  ;;  %v2692_v12 = vpop.permute.xlu2 %2691 }
 0x66b   :  { %v2658_v44 = vpop.permute.xlu0 %2657  ;;  %2777 = vst.msk [vmem:[#allocation3 + $0x170] sm:$0xff] %vm2753_vm15, %v2692_v12  ;;  %v4380_v50 = vld [vmem:[#allocation3 + $0x30] sm:$0xff] }
 0x66c   :  { %2760 = vst.msk [vmem:[#allocation3 + $0x60] sm:$0xff] %vm2753_vm15, %v2658_v44  ;;  %4501 = vmatmul.f32.gmra.mxu1 %v4376_v41  ;;  %v3082_v12 = vld [vmem:[#allocation2 + $0x3a] sm:$0xff]  ;;  %v3295_v44 = vld [vmem:[#allocation2 + $0x23] sm:$0xff]  ;;  %v3081_v41 = vld [vmem:[#allocation2 + $0x32] sm:$0xff] }
 0x66f   :  { %2966 = vrot.lane.b32.xlu1 %v2878_v60, %s6225_s24 }
 0x670   :  { %2986 = vrot.lane.b32.xlu2 %v2888_v25, %s6225_s24 }
 0x671   :  { %2964 = vrot.lane.b32.xlu0 %v2877_v16, %s6225_s24  ;;  %v2666_v56 = vpop.permute.xlu1 %2665  ;;  %v4388_v33 = vld [vmem:[#allocation3 + $0x70] sm:$0xff] }
 0x672   :  { %2764 = vst.msk [vmem:[#allocation3 + $0xa0] sm:$0xff] %vm2753_vm15, %v2666_v56  ;;  %v2698_v9 = vpop.permute.xlu2 %2697 }
 0x673   :  { %v2664_v1 = vpop.permute.xlu0 %2663  ;;  %2780 = vst.msk [vmem:[#allocation3 + $0x1a0] sm:$0xff] %vm2753_vm15, %v2698_v9  ;;  %v4386_v22 = vld [vmem:[#allocation3 + $0x60] sm:$0xff] }
 0x674   :  { %2763 = vst.msk [vmem:[#allocation3 + $0x90] sm:$0xff] %vm2753_vm15, %v2664_v1  ;;  %4504 = vmatmul.f32.gmra.mxu1 %v4378_v57  ;;  %v3085_v1 = vld [vmem:[#allocation2 + $0x52] sm:$0xff] }
 0x675   :  { %v3943_v57 = vld [vmem:[#allocation2 + $0x2e] sm:$0xff] }
 0x677   :  { %2972 = vrot.lane.b32.xlu1 %v2881_v49, %s6225_s24  ;;  %v3084_v49 = vld [vmem:[#allocation2 + $0x4a] sm:$0xff] }
 0x678   :  { %2992 = vrot.lane.b32.xlu2 %v2891_v58, %s6225_s24 }
 0x679   :  { %2970 = vrot.lane.b32.xlu0 %v2880_v0, %s6225_s24  ;;  %v2672_v53 = vpop.permute.xlu1 %2671  ;;  %v4394_v9 = vld [vmem:[#allocation3 + $0xa0] sm:$0xff] }
 0x67a   :  { %2767 = vst.msk [vmem:[#allocation3 + $0xd0] sm:$0xff] %vm2753_vm15, %v2672_v53  ;;  %v2704_v54 = vpop.permute.xlu2 %2703 }
 0x67b   :  { %v2670_v62 = vpop.permute.xlu0 %2669  ;;  %2783 = vst.msk [vmem:[#allocation3 + $0x1d0] sm:$0xff] %vm2753_vm15, %v2704_v54  ;;  %v4392_v29 = vld [vmem:[#allocation3 + $0x90] sm:$0xff] }
 0x67c   :  { %2766 = vst.msk [vmem:[#allocation3 + $0xc0] sm:$0xff] %vm2753_vm15, %v2670_v62  ;;  %4507 = vmatmul.f32.gmra.mxu1 %v4380_v50  ;;  %v4396_v62 = vld [vmem:[#allocation3 + $0xb0] sm:$0xff]  ;;  %v3510_v50 = vld [vmem:[#allocation2 + $0x24] sm:$0xff] }
 0x67f   :  { %2978 = vrot.lane.b32.xlu1 %v2884_v38, %s6225_s24  ;;  %v3512_v38 = vld [vmem:[#allocation2 + $0x34] sm:$0xff] }
 0x680   :  { %2998 = vrot.lane.b32.xlu2 %v2894_v11, %s6225_s24  ;;  %v3294_v11 = vld [vmem:[#allocation2 + $0x1b] sm:$0xff] }
 0x681   :  { %2976 = vrot.lane.b32.xlu0 %v2883_v8, %s6225_s24  ;;  %v2678_v63 = vpop.permute.xlu1 %2677 }
 0x682   :  { %2770 = vst.msk [vmem:[#allocation3 + $0x100] sm:$0xff] %vm2753_vm15, %v2678_v63  ;;  %v2710_v27 = vpop.permute.xlu2 %2709  ;;  %v4432_v25 = vld [vmem:[#allocation3 + $0x1d0] sm:$0xff] }
 0x683   :  { %v2676_v36 = vpop.permute.xlu0 %2675  ;;  %2786 = vst.msk [vmem:[#allocation3 + $0x200] sm:$0xff] %vm2753_vm15, %v2710_v27 }
 0x684   :  { %2769 = vst.msk [vmem:[#allocation3 + $0xf0] sm:$0xff] %vm2753_vm15, %v2676_v36  ;;  %4510 = vmatmul.f32.gmra.mxu1 %v4382_v10  ;;  %v2825_v10 = vld [vmem:[#allocation2 + $0x130] sm:$0xff] }
 0x685   :  { %2861 = vst.msk [vmem:[#allocation3 + $0x238] sm:$0xff] %vm597_vm3, %v2825_v10  ;;  %v3947_v10 = vld [vmem:[#allocation2 + $0x4e] sm:$0xff] }
 0x687   :  { %2984 = vrot.lane.b32.xlu1 %v2887_v14, %s6225_s24  ;;  %v3942_v14 = vld [vmem:[#allocation2 + $0x26] sm:$0xff] }
 0x688   :  { %3004 = vrot.lane.b32.xlu2 %v2897_v13, %s6225_s24  ;;  %v4398_v13 = vld [vmem:[#allocation3 + $0xc0] sm:$0xff] }
 0x689   :  { %2982 = vrot.lane.b32.xlu0 %v2886_v20, %s6225_s24  ;;  %v2684_v15 = vpop.permute.xlu1 %2683 }
 0x68a   :  { %2773 = vst.msk [vmem:[#allocation3 + $0x130] sm:$0xff] %vm2753_vm15, %v2684_v15  ;;  %v2939_v7 = vpop.permute.xlu2 %2938  ;;  %v4438_v15 = vld [vmem:[#allocation3 + $0x200] sm:$0xff] }
 0x68b   :  { %v2682_v23 = vpop.permute.xlu0 %2681  ;;  %3044 = vst.msk [vmem:[#allocation3 + $0x28] sm:$0xff] %vm1451_vm9, %v2939_v7 }
 0x68c   :  { %2772 = vst.msk [vmem:[#allocation3 + $0x120] sm:$0xff] %vm2753_vm15, %v2682_v23  ;;  %4513 = vmatmul.f32.gmra.mxu1 %v4384_v37  ;;  %v4400_v37 = vld [vmem:[#allocation3 + $0xd0] sm:$0xff] }
 0x68f   :  { %2990 = vrot.lane.b32.xlu1 %v2890_v19, %s6225_s24  ;;  %v3729_v19 = vld [vmem:[#allocation2 + $0x3d] sm:$0xff] }
 0x690   :  { %3154 = vrot.lane.b32.xlu2 %v3080_v18, %s6224_s23 }
 0x691   :  { %2988 = vrot.lane.b32.xlu0 %v2889_v32, %s6225_s24  ;;  %v2690_v30 = vpop.permute.xlu1 %2689 }
 0x692   :  { %2776 = vst.msk [vmem:[#allocation3 + $0x160] sm:$0xff] %vm2753_vm15, %v2690_v30  ;;  %v2945_v3 = vpop.permute.xlu2 %2944 }
 0x693   :  { %v2688_v2 = vpop.permute.xlu0 %2687  ;;  %3047 = vst.msk [vmem:[#allocation3 + $0x58] sm:$0xff] %vm1451_vm9, %v2945_v3 }
 0x694   :  { %2775 = vst.msk [vmem:[#allocation3 + $0x150] sm:$0xff] %vm2753_vm15, %v2688_v2  ;;  %4516 = vmatmul.f32.gmra.mxu1 %v4386_v22  ;;  %v4402_v2 = vld [vmem:[#allocation3 + $0xe0] sm:$0xff] }
 0x695   :  { %v3296_v22 = vld [vmem:[#allocation2 + $0x2b] sm:$0xff] }
 0x697   :  { %2996 = vrot.lane.b32.xlu1 %v2893_v51, %s6225_s24  ;;  %v3298_v51 = vld [vmem:[#allocation2 + $0x3b] sm:$0xff] }
 0x698   :  { %3160 = vrot.lane.b32.xlu2 %v3083_v61, %s6224_s23 }
 0x699   :  { %2994 = vrot.lane.b32.xlu0 %v2892_v34, %s6225_s24  ;;  %v2696_v4 = vpop.permute.xlu1 %2695 }
 0x69a   :  { %2779 = vst.msk [vmem:[#allocation3 + $0x190] sm:$0xff] %vm2753_vm15, %v2696_v4  ;;  %v2951_v35 = vpop.permute.xlu2 %2950 }
 0x69b   :  { %v2694_v52 = vpop.permute.xlu0 %2693  ;;  %3050 = vst.msk [vmem:[#allocation3 + $0x88] sm:$0xff] %vm1451_vm9, %v2951_v35 }
 0x69c   :  { %2778 = vst.msk [vmem:[#allocation3 + $0x180] sm:$0xff] %vm2753_vm15, %v2694_v52  ;;  %4519 = vmatmul.f32.gmra.mxu1 %v4388_v33  ;;  %v4404_v52 = vld [vmem:[#allocation3 + $0xf0] sm:$0xff] }
 0x69d   :  { %v3944_v33 = vld [vmem:[#allocation2 + $0x36] sm:$0xff] }
 0x69f   :  { %3002 = vrot.lane.b32.xlu1 %v2896_v59, %s6225_s24  ;;  %v3946_v59 = vld [vmem:[#allocation2 + $0x46] sm:$0xff] }
 0x6a0   :  { %3166 = vrot.lane.b32.xlu2 %v3086_v6, %s6224_s23  ;;  %v4444_v6 = vld [vmem:[#allocation3 + $0x230] sm:$0xff] }
 0x6a1   :  { %3000 = vrot.lane.b32.xlu0 %v2895_v48, %s6225_s24  ;;  %v2702_v28 = vpop.permute.xlu1 %2701  ;;  %v3728_v48 = vld [vmem:[#allocation2 + $0x35] sm:$0xff] }
 0x6a2   :  { %2782 = vst.msk [vmem:[#allocation3 + $0x1c0] sm:$0xff] %vm2753_vm15, %v2702_v28  ;;  %v2957_v47 = vpop.permute.xlu2 %2956 }
 0x6a3   :  { %v2700_v21 = vpop.permute.xlu0 %2699  ;;  %3053 = vst.msk [vmem:[#allocation3 + $0xb8] sm:$0xff] %vm1451_vm9, %v2957_v47 }
 0x6a4   :  { %2781 = vst.msk [vmem:[#allocation3 + $0x1b0] sm:$0xff] %vm2753_vm15, %v2700_v21  ;;  %4522 = vmatmul.f32.gmra.mxu1 %v4390_v39  ;;  %v4406_v21 = vld [vmem:[#allocation3 + $0x100] sm:$0xff]  ;;  %v3513_v39 = vld [vmem:[#allocation2 + $0x3c] sm:$0xff] }
 0x6a7   :  { %3152 = vrot.lane.b32.xlu1 %v3079_v40, %s6224_s23  ;;  %v3515_v40 = vld [vmem:[#allocation2 + $0x4c] sm:$0xff] }
 0x6a8   :  { %3798 = vrot.lane.b32.xlu2 %v3726_v26, %s6220_s20  ;;  %v3297_v26 = vld [vmem:[#allocation2 + $0x33] sm:$0xff] }
 0x6a9   :  { %3150 = vrot.lane.b32.xlu0 %v3078_v42, %s6224_s23  ;;  %v2708_v45 = vpop.permute.xlu1 %2707  ;;  %v4430_v24 = vld [vmem:[#allocation3 + $0x1c0] sm:$0xff] }
 0x6aa   :  { %2785 = vst.msk [vmem:[#allocation3 + $0x1f0] sm:$0xff] %vm2753_vm15, %v2708_v45  ;;  %v2963_v5 = vpop.permute.xlu2 %2962  ;;  %4582 = vmatmul.f32.vlgmr.msrb.gmra.mxu3 %v4430_v24 }
 0x6ab   :  { %v2706_v31 = vpop.permute.xlu0 %2705  ;;  %3056 = vst.msk [vmem:[#allocation3 + $0xe8] sm:$0xff] %vm1451_vm9, %v2963_v5  ;;  %v4408_v5 = vld [vmem:[#allocation3 + $0x110] sm:$0xff] }
 0x6ac   :  { %2784 = vst.msk [vmem:[#allocation3 + $0x1e0] sm:$0xff] %vm2753_vm15, %v2706_v31  ;;  %4525 = vmatmul.f32.gmra.mxu1 %v4392_v29  ;;  %v4161_v31 = vld [vmem:[#allocation2 + $0x3f] sm:$0xff]  ;;  %v4163_v29 = vld [vmem:[#allocation2 + $0x4f] sm:$0xff] }
 0x6af   :  { %3158 = vrot.lane.b32.xlu1 %v3082_v12, %s6224_s23  ;;  %v3945_v12 = vld [vmem:[#allocation2 + $0x3e] sm:$0xff] }
 0x6b0   :  { %3368 = vrot.lane.b32.xlu2 %v3295_v44, %s6223_s22 }
 0x6b1   :  { %3156 = vrot.lane.b32.xlu0 %v3081_v41, %s6224_s23  ;;  %v2714_v60 = vpop.permute.xlu1 %2713  ;;  %v4436_v63 = vld [vmem:[#allocation3 + $0x1f0] sm:$0xff] }
 0x6b2   :  { %2788 = vst.msk [vmem:[#allocation3 + $0x220] sm:$0xff] %vm2753_vm15, %v2714_v60  ;;  %v2969_v16 = vpop.permute.xlu2 %2968  ;;  %4585 = vmatmul.f32.gmra.mxu3 %v4432_v25  ;;  %v2824_v25 = vld [vmem:[#allocation2 + $0x128] sm:$0xff] }
 0x6b3   :  { %v2712_v56 = vpop.permute.xlu0 %2711  ;;  %3059 = vst.msk [vmem:[#allocation3 + $0x118] sm:$0xff] %vm1451_vm9, %v2969_v16  ;;  %v4434_v0 = vld [vmem:[#allocation3 + $0x1e0] sm:$0xff] }
 0x6b4   :  { %2787 = vst.msk [vmem:[#allocation3 + $0x210] sm:$0xff] %vm2753_vm15, %v2712_v56  ;;  %4528 = vmatmul.f32.gmra.mxu1 %v4394_v9  ;;  %v4410_v16 = vld [vmem:[#allocation3 + $0x120] sm:$0xff]  ;;  %v2823_v56 = vld [vmem:[#allocation2 + $0x120] sm:$0xff] }
 0x6b5   :  { %2860 = vst.msk [vmem:[#allocation3 + $0x228] sm:$0xff] %vm597_vm3, %v2824_v25  ;;  %v3730_v9 = vld [vmem:[#allocation2 + $0x45] sm:$0xff] }
 0x6b6   :  { %2859 = vst.msk [vmem:[#allocation3 + $0x218] sm:$0xff] %vm597_vm3, %v2823_v56  ;;  %v4165_v56 = vld [vmem:[#allocation2 + $0x5f] sm:$0xff] }
 0x6b7   :  { %3164 = vrot.lane.b32.xlu1 %v3085_v1, %s6224_s23  ;;  %v3732_v1 = vld [vmem:[#allocation2 + $0x55] sm:$0xff] }
 0x6b8   :  { %4016 = vrot.lane.b32.xlu2 %v3943_v57, %s6221_s1  ;;  %v3514_v57 = vld [vmem:[#allocation2 + $0x44] sm:$0xff] }
 0x6b9   :  { %3162 = vrot.lane.b32.xlu0 %v3084_v49, %s6224_s23  ;;  %v2937_v58 = vpop.permute.xlu1 %2936  ;;  %v4442_v34 = vld [vmem:[#allocation3 + $0x220] sm:$0xff] }
 0x6ba   :  { %3043 = vst.msk [vmem:[#allocation3 + $0x18] sm:$0xff] %vm1451_vm9, %v2937_v58  ;;  %v2975_v53 = vpop.permute.xlu2 %2974  ;;  %4588 = vmatmul.f32.gmra.mxu3 %v4434_v0 }
 0x6bb   :  { %v2935_v54 = vpop.permute.xlu0 %2934  ;;  %3062 = vst.msk [vmem:[#allocation3 + $0x148] sm:$0xff] %vm1451_vm9, %v2975_v53  ;;  %v4440_v32 = vld [vmem:[#allocation3 + $0x210] sm:$0xff] }
 0x6bc   :  { %3042 = vst.msk [vmem:[#allocation3 + $0x8] sm:$0xff] %vm1451_vm9, %v2935_v54  ;;  %4531 = vmatmul.f32.gmra.mxu1 %v4396_v62  ;;  %v4412_v53 = vld [vmem:[#allocation3 + $0x130] sm:$0xff]  ;;  %v3299_v54 = vld [vmem:[#allocation2 + $0x43] sm:$0xff] }
 0x6bd   :  { %v3301_v62 = vld [vmem:[#allocation2 + $0x53] sm:$0xff] }
 0x6bf   :  { %3582 = vrot.lane.b32.xlu1 %v3510_v50, %s6219_s0  ;;  %v4162_v50 = vld [vmem:[#allocation2 + $0x47] sm:$0xff] }
 0x6c0   :  { %3586 = vrot.lane.b32.xlu2 %v3512_v38, %s6219_s0 }
 0x6c1   :  { %3366 = vrot.lane.b32.xlu0 %v3294_v11, %s6223_s22  ;;  %v2943_v8 = vpop.permute.xlu1 %2942 }
 0x6c2   :  { %3046 = vst.msk [vmem:[#allocation3 + $0x48] sm:$0xff] %vm1451_vm9, %v2943_v8  ;;  %v2981_v27 = vpop.permute.xlu2 %2980  ;;  %4591 = vmatmul.f32.gmra.mxu3 %v4436_v63  ;;  %v4414_v63 = vld [vmem:[#allocation3 + $0x140] sm:$0xff] }
 0x6c3   :  { %v2941_v36 = vpop.permute.xlu0 %2940  ;;  %3065 = vst.msk [vmem:[#allocation3 + $0x178] sm:$0xff] %vm1451_vm9, %v2981_v27  ;;  %v4477_v27 = vld [vmem:[%s10222_s2 + $0xf8] sm:$0xff] }
 0x6c4   :  { %3045 = vst.msk [vmem:[#allocation3 + $0x38] sm:$0xff] %vm1451_vm9, %v2941_v36  ;;  %4534 = vmatmul.f32.gmra.mxu1 %v4398_v13  ;;  %v4476_v36 = vld [vmem:[%s10222_s2 + $0xf0] sm:$0xff]  ;;  %4607 = vmatpush.msra.mxu2 %v4477_v27  ;;  %v3949_v13 = vld [vmem:[#allocation2 + $0x5e] sm:$0xff] }
 0x6c5   :  { %6151 = vmatpush.msra.mxu3 %v4477_v27  ;;  %v4168_v27 = vld [vmem:[#allocation2 + $0x77] sm:$0xff] }
 0x6c6   :  { %4608 = vmatpush.msra.mxu2 %v4476_v36 }
 0x6c7   :  { %4230 = vrot.lane.b32.xlu1 %v7811_v17, %s6222_s21  ;;  %v3727_v17 = vld [vmem:[#allocation2 + $0x2d] sm:$0xff]  ;;  %6152 = vmatpush.msra.mxu3 %v4476_v36  ;;  %v3087_v36 = vld [vmem:[#allocation2 + $0x62] sm:$0xff] }
 0x6c8   :  { %4234 = vrot.lane.b32.xlu2 %v7793_v43, %s6222_s21  ;;  %v3511_v43 = vld [vmem:[#allocation2 + $0x2c] sm:$0xff] }
 0x6c9   :  { %4014 = vrot.lane.b32.xlu0 %v3942_v14, %s6221_s1  ;;  %v2949_v20 = vpop.permute.xlu1 %2948  ;;  %v3731_v14 = vld [vmem:[#allocation2 + $0x4d] sm:$0xff] }
 0x6ca   :  { %3049 = vst.msk [vmem:[#allocation3 + $0x78] sm:$0xff] %vm1451_vm9, %v2949_v20  ;;  %v2987_v7 = vpop.permute.xlu2 %2986  ;;  %4594 = vmatmul.f32.gmra.mxu3 %v4438_v15 }
 0x6cb   :  { %v2947_v23 = vpop.permute.xlu0 %2946  ;;  %3068 = vst.msk [vmem:[#allocation3 + $0x1a8] sm:$0xff] %vm1451_vm9, %v2987_v7 }
 0x6cc   :  { %3048 = vst.msk [vmem:[#allocation3 + $0x68] sm:$0xff] %vm1451_vm9, %v2947_v23  ;;  %4537 = vmatmul.f32.gmra.mxu1 %v4400_v37  ;;  %v4475_v23 = vld [vmem:[%s10222_s2 + $0xe8] sm:$0xff]  ;;  %v4416_v37 = vld [vmem:[#allocation3 + $0x150] sm:$0xff] }
 0x6cd   :  { %4609 = vmatpush.msra.mxu2 %v4475_v23  ;;  %6153 = vmatpush.msra.mxu3 %v4475_v23  ;;  %v3735_v23 = vld [vmem:[#allocation2 + $0x6d] sm:$0xff] }
 0x6cf   :  { %3800 = vrot.lane.b32.xlu1 %v3727_v17, %s6220_s20  ;;  %v4474_v17 = vld [vmem:[%s10222_s2 + $0xe0] sm:$0xff] }
 0x6d0   :  { %3804 = vrot.lane.b32.xlu2 %v3729_v19, %s6220_s20  ;;  %v4473_v19 = vld [vmem:[%s10222_s2 + $0xd8] sm:$0xff]  ;;  %4610 = vmatpush.msra.mxu2 %v4474_v17 }
 0x6d1   :  { %3584 = vrot.lane.b32.xlu0 %v3511_v43, %s6219_s0  ;;  %v2955_v18 = vpop.permute.xlu1 %2954  ;;  %6154 = vmatpush.msra.mxu3 %v4474_v17  ;;  %v3516_v43 = vld [vmem:[#allocation2 + $0x54] sm:$0xff] }
 0x6d2   :  { %3052 = vst.msk [vmem:[#allocation3 + $0xa8] sm:$0xff] %vm1451_vm9, %v2955_v18  ;;  %v2993_v30 = vpop.permute.xlu2 %2992  ;;  %4597 = vmatmul.f32.gmra.mxu3 %v4440_v32  ;;  %v4472_v18 = vld [vmem:[%s10222_s2 + $0xd0] sm:$0xff]  ;;  %v3518_v32 = vld [vmem:[#allocation2 + $0x64] sm:$0xff]  ;;  %4611 = vmatpush.msra.mxu2 %v4473_v19 }
 0x6d3   :  { %v2953_v3 = vpop.permute.xlu0 %2952  ;;  %3071 = vst.msk [vmem:[#allocation3 + $0x1d8] sm:$0xff] %vm1451_vm9, %v2993_v30  ;;  %v3300_v30 = vld [vmem:[#allocation2 + $0x4b] sm:$0xff]  ;;  %6155 = vmatpush.msra.mxu3 %v4473_v19 }
 0x6d4   :  { %3051 = vst.msk [vmem:[#allocation3 + $0x98] sm:$0xff] %vm1451_vm9, %v2953_v3  ;;  %4540 = vmatmul.f32.gmra.mxu1 %v4402_v2  ;;  %4612 = vmatpush.msra.mxu2 %v4472_v18 }
 0x6d5   :  { %6156 = vmatpush.msra.mxu3 %v4472_v18  ;;  %v3304_v18 = vld [vmem:[#allocation2 + $0x6b] sm:$0xff] }
 0x6d7   :  { %3370 = vrot.lane.b32.xlu1 %v3296_v22, %s6223_s22 }
 0x6d8   :  { %3374 = vrot.lane.b32.xlu2 %v3298_v51, %s6223_s22  ;;  %v4471_v51 = vld [vmem:[%s10222_s2 + $0xc8] sm:$0xff] }
 0x6d9   :  { %4232 = vrot.lane.b32.xlu0 %v7807_v55, %s6222_s21  ;;  %v2961_v61 = vpop.permute.xlu1 %2960  ;;  %4613 = vmatpush.msra.mxu2 %v4471_v51 }
 0x6da   :  { %3055 = vst.msk [vmem:[#allocation3 + $0xd8] sm:$0xff] %vm1451_vm9, %v2961_v61  ;;  %v2999_v4 = vpop.permute.xlu2 %2998  ;;  %4600 = vmatmul.f32.gmra.mxu3 %v4442_v34  ;;  %v4418_v61 = vld [vmem:[#allocation3 + $0x160] sm:$0xff]  ;;  %v4164_v34 = vld [vmem:[#allocation2 + $0x57] sm:$0xff] }
 0x6db   :  { %v2959_v35 = vpop.permute.xlu0 %2958  ;;  %3074 = vst.msk [vmem:[#allocation3 + $0x208] sm:$0xff] %vm1451_vm9, %v2999_v4  ;;  %6157 = vmatpush.msra.mxu3 %v4471_v51  ;;  %v4470_v4 = vld [vmem:[%s10222_s2 + $0xc0] sm:$0xff] }
 0x6dc   :  { %3054 = vst.msk [vmem:[#allocation3 + $0xc8] sm:$0xff] %vm1451_vm9, %v2959_v35  ;;  %4543 = vmatmul.f32.gmra.mxu1 %v4404_v52  ;;  %v4469_v35 = vld [vmem:[%s10222_s2 + $0xb8] sm:$0xff]  ;;  %v4166_v52 = vld [vmem:[#allocation2 + $0x67] sm:$0xff]  ;;  %4614 = vmatpush.msra.mxu2 %v4470_v4 }
 0x6dd   :  { %6158 = vmatpush.msra.mxu3 %v4470_v4 }
 0x6de   :  { %4615 = vmatpush.msra.mxu2 %v4469_v35 }
 0x6df   :  { %4018 = vrot.lane.b32.xlu1 %v3944_v33, %s6221_s1  ;;  %v3948_v33 = vld [vmem:[#allocation2 + $0x56] sm:$0xff]  ;;  %6159 = vmatpush.msra.mxu3 %v4469_v35 }
 0x6e0   :  { %4022 = vrot.lane.b32.xlu2 %v3946_v59, %s6221_s1  ;;  %v4468_v59 = vld [vmem:[%s10222_s2 + $0xb0] sm:$0xff] }
 0x6e1   :  { %3802 = vrot.lane.b32.xlu0 %v3728_v48, %s6220_s20  ;;  %v2967_v55 = vpop.permute.xlu1 %2966  ;;  %4616 = vmatpush.msra.mxu2 %v4468_v59 }
 0x6e2   :  { %3058 = vst.msk [vmem:[#allocation3 + $0x108] sm:$0xff] %vm1451_vm9, %v2967_v55  ;;  %v3005_v28 = vpop.permute.xlu2 %3004  ;;  %4603 = vmatmul.f32.gmra.mxu3 %v4444_v6 }
 0x6e3   :  { %v2965_v47 = vpop.permute.xlu0 %2964  ;;  %3077 = vst.msk [vmem:[#allocation3 + $0x238] sm:$0xff] %vm1451_vm9, %v3005_v28  ;;  %v4467_v28 = vld [vmem:[%s10222_s2 + $0xa8] sm:$0xff]  ;;  %6160 = vmatpush.msra.mxu3 %v4468_v59  ;;  %v3305_v59 = vld [vmem:[#allocation2 + $0x73] sm:$0xff] }
 0x6e4   :  { %3057 = vst.msk [vmem:[#allocation3 + $0xf8] sm:$0xff] %vm1451_vm9, %v2965_v47  ;;  %4546 = vmatmul.f32.gmra.mxu1 %v4406_v21  ;;  %v4420_v47 = vld [vmem:[#allocation3 + $0x170] sm:$0xff]  ;;  %v4466_v21 = vld [vmem:[%s10222_s2 + $0xa0] sm:$0xff]  ;;  %4617 = vmatpush.msra.mxu2 %v4467_v28 }
 0x6e5   :  { %6161 = vmatpush.msra.mxu3 %v4467_v28 }
 0x6e6   :  { %4618 = vmatpush.msra.mxu2 %v4466_v21 }
 0x6e7   :  { %3588 = vrot.lane.b32.xlu1 %v3513_v39, %s6219_s0  ;;  %v8134_v39 = vpop.f32.mrf.mxu1  ;;  %6162 = vmatpush.msra.mxu3 %v4466_v21 }
 0x6e8   :  { %3592 = vrot.lane.b32.xlu2 %v3515_v40, %s6219_s0  ;;  %v3733_v40 = vld [vmem:[#allocation2 + $0x5d] sm:$0xff] }
 0x6e9   :  { %3372 = vrot.lane.b32.xlu0 %v3297_v26, %s6223_s22  ;;  %v2973_v42 = vpop.permute.xlu1 %2972  ;;  %v4465_v26 = vld [vmem:[%s10222_s2 + $0x98] sm:$0xff] }
 0x6ea   :  { %3061 = vst.msk [vmem:[#allocation3 + $0x138] sm:$0xff] %vm1451_vm9, %v2973_v42  ;;  %v3155_v45 = vpop.permute.xlu2 %3154  ;;  %v3519_v42 = vld [vmem:[#allocation2 + $0x6c] sm:$0xff]  ;;  %4619 = vmatpush.msra.mxu2 %v4465_v26  ;;  %6163 = vmatpush.msra.mxu3 %v4465_v26 }
 0x6eb   :  { %v2971_v24 = vpop.permute.xlu0 %2970  ;;  %3260 = vst.msk [vmem:[#allocation3 + $0x28] sm:$0xff] %vm1668_vm10, %v3155_v45  ;;  %v3517_v45 = vld [vmem:[#allocation2 + $0x5c] sm:$0xff]  ;;  %v3523_v26 = vld [vmem:[#allocation2 + $0x8c] sm:$0xff] }
 0x6ec   :  { %3060 = vst.msk [vmem:[#allocation3 + $0x128] sm:$0xff] %vm1451_vm9, %v2971_v24  ;;  %4549 = vmatmul.f32.gmra.mxu1 %v4408_v5  ;;  %v4464_v24 = vld [vmem:[%s10222_s2 + $0x90] sm:$0xff] }
 0x6ed   :  { %4620 = vmatpush.msra.mxu2 %v4464_v24  ;;  %6164 = vmatpush.msra.mxu3 %v4464_v24 }
 0x6ef   :  { %4236 = vrot.lane.b32.xlu1 %v4161_v31, %s6222_s21  ;;  %v8155_v25 = vpop.f32.mrf.mxu1 }
 0x6f0   :  { %4240 = vrot.lane.b32.xlu2 %v4163_v29, %s6222_s21 }
 0x6f1   :  { %4020 = vrot.lane.b32.xlu0 %v3945_v12, %s6221_s1  ;;  %v2979_v44 = vpop.permute.xlu1 %2978  ;;  %v4463_v12 = vld [vmem:[%s10222_s2 + $0x88] sm:$0xff] }
 0x6f2   :  { %3064 = vst.msk [vmem:[#allocation3 + $0x168] sm:$0xff] %vm1451_vm9, %v2979_v44  ;;  %v3161_v41 = vpop.permute.xlu2 %3160  ;;  %v4422_v44 = vld [vmem:[#allocation3 + $0x180] sm:$0xff]  ;;  %4621 = vmatpush.msra.mxu2 %v4463_v12  ;;  %6165 = vmatpush.msra.mxu3 %v4463_v12  ;;  %v3090_v12 = vld [vmem:[#allocation2 + $0x7a] sm:$0xff] }
 0x6f3   :  { %v2977_v60 = vpop.permute.xlu0 %2976  ;;  %3263 = vst.msk [vmem:[#allocation3 + $0x58] sm:$0xff] %vm1668_vm10, %v3161_v41  ;;  %v4462_v41 = vld [vmem:[%s10222_s2 + $0x80] sm:$0xff] }
 0x6f4   :  { %3063 = vst.msk [vmem:[#allocation3 + $0x158] sm:$0xff] %vm1451_vm9, %v2977_v60  ;;  %4552 = vmatmul.f32.gmra.mxu1 %v4410_v16  ;;  %v3302_v60 = vld [vmem:[#allocation2 + $0x5b] sm:$0xff]  ;;  %v4167_v16 = vld [vmem:[#allocation2 + $0x6f] sm:$0xff]  ;;  %4622 = vmatpush.msra.mxu2 %v4462_v41 }
 0x6f5   :  { %6166 = vmatpush.msra.mxu3 %v4462_v41 }
 0x6f7   :  { %3806 = vrot.lane.b32.xlu1 %v3730_v9, %s6220_s20 }
 0x6f8   :  { %3810 = vrot.lane.b32.xlu2 %v3732_v1, %s6220_s20 }
 0x6f9   :  { %3590 = vrot.lane.b32.xlu0 %v3514_v57, %s6219_s0  ;;  %v2985_v49 = vpop.permute.xlu1 %2984 }
 0x6fa   :  { %3067 = vst.msk [vmem:[#allocation3 + $0x198] sm:$0xff] %vm1451_vm9, %v2985_v49  ;;  %v3167_v58 = vpop.permute.xlu2 %3166  ;;  %v4424_v49 = vld [vmem:[#allocation3 + $0x190] sm:$0xff] }
 0x6fb   :  { %v2983_v0 = vpop.permute.xlu0 %2982  ;;  %3266 = vst.msk [vmem:[#allocation3 + $0x88] sm:$0xff] %vm1668_vm10, %v3167_v58  ;;  %v3950_v58 = vld [vmem:[#allocation2 + $0x66] sm:$0xff] }
 0x6fc   :  { %3066 = vst.msk [vmem:[#allocation3 + $0x188] sm:$0xff] %vm1451_vm9, %v2983_v0  ;;  %4555 = vmatmul.f32.gmra.mxu1 %v4412_v53  ;;  %v3520_v0 = vld [vmem:[#allocation2 + $0x74] sm:$0xff]  ;;  %v3734_v53 = vld [vmem:[#allocation2 + $0x65] sm:$0xff] }
 0x6ff   :  { %3376 = vrot.lane.b32.xlu1 %v3299_v54, %s6223_s22  ;;  %v8167_v54 = vpop.f32.mrf.mxu1 }
 0x700   :  { %3380 = vrot.lane.b32.xlu2 %v3301_v62, %s6223_s22 }
 0x701   :  { %4238 = vrot.lane.b32.xlu0 %v4162_v50, %s6222_s21  ;;  %v2991_v38 = vpop.permute.xlu1 %2990 }
 0x702   :  { %3070 = vst.msk [vmem:[#allocation3 + $0x1c8] sm:$0xff] %vm1451_vm9, %v2991_v38  ;;  %v8075_v11 = vpop.permute.xlu2 %3798 }
 0x703   :  { %v2989_v8 = vpop.permute.xlu0 %2988 }
 0x704   :  { %3069 = vst.msk [vmem:[#allocation3 + $0x1b8] sm:$0xff] %vm1451_vm9, %v2989_v8  ;;  %4558 = vmatmul.f32.gmra.mxu1 %v4414_v63  ;;  %v4426_v8 = vld [vmem:[#allocation3 + $0x1a0] sm:$0xff] }
 0x705   :  { %v3303_v63 = vld [vmem:[#allocation2 + $0x63] sm:$0xff] }
 0x707   :  { %4024 = vrot.lane.b32.xlu1 %v3947_v10, %s6221_s1 }
 0x708   :  { %4028 = vrot.lane.b32.xlu2 %v3949_v13, %s6221_s1 }
 0x709   :  { %3808 = vrot.lane.b32.xlu0 %v3731_v14, %s6220_s20  ;;  %v2997_v20 = vpop.permute.xlu1 %2996 }
 0x70a   :  { %3073 = vst.msk [vmem:[#allocation3 + $0x1f8] sm:$0xff] %vm1451_vm9, %v2997_v20  ;;  %v3369_v15 = vpop.permute.xlu2 %3368  ;;  %v4428_v20 = vld [vmem:[#allocation3 + $0x1b0] sm:$0xff] }
 0x70b   :  { %v2995_v7 = vpop.permute.xlu0 %2994 }
 0x70c   :  { %3072 = vst.msk [vmem:[#allocation3 + $0x1e8] sm:$0xff] %vm1451_vm9, %v2995_v7  ;;  %4561 = vmatmul.f32.gmra.mxu1 %v4416_v37  ;;  %v3521_v7 = vld [vmem:[#allocation2 + $0x7c] sm:$0xff] }
 0x70f   :  { %3594 = vrot.lane.b32.xlu1 %v3516_v43, %s6219_s0 }
 0x710   :  { %3598 = vrot.lane.b32.xlu2 %v3518_v32, %s6219_s0  ;;  %v4169_v32 = vld [vmem:[#allocation2 + $0x7f] sm:$0xff] }
 0x711   :  { %3378 = vrot.lane.b32.xlu0 %v3300_v30, %s6223_s22  ;;  %v3003_v3 = vpop.permute.xlu1 %3002  ;;  %v3088_v30 = vld [vmem:[#allocation2 + $0x6a] sm:$0xff] }
 0x712   :  { %3076 = vst.msk [vmem:[#allocation3 + $0x228] sm:$0xff] %vm1451_vm9, %v3003_v3  ;;  %v8105_v2 = vpop.permute.xlu2 %4016 }
 0x713   :  { %v3001_v22 = vpop.permute.xlu0 %3000 }
 0x714   :  { %3075 = vst.msk [vmem:[#allocation3 + $0x218] sm:$0xff] %vm1451_vm9, %v3001_v22  ;;  %4564 = vmatmul.f32.gmra.mxu1 %v4418_v61  ;;  %v3522_v61 = vld [vmem:[#allocation2 + $0x84] sm:$0xff] }
 0x717   :  { %4242 = vrot.lane.b32.xlu1 %v4164_v34, %s6222_s21  ;;  %v3736_v34 = vld [vmem:[#allocation2 + $0x75] sm:$0xff] }
 0x718   :  { %4246 = vrot.lane.b32.xlu2 %v4166_v52, %s6222_s21 }
 0x719   :  { %4026 = vrot.lane.b32.xlu0 %v3948_v33, %s6221_s1  ;;  %v3153_v48 = vpop.permute.xlu1 %3152 }
 0x71a   :  { %3259 = vst.msk [vmem:[#allocation3 + $0x18] sm:$0xff] %vm1668_vm10, %v3153_v48  ;;  %v8124_v55 = vpop.permute.xlu2 %3586  ;;  %v4170_v48 = vld [vmem:[#allocation2 + $0x87] sm:$0xff] }
 0x71b   :  { %v3151_v6 = vpop.permute.xlu0 %3150  ;;  %3475 = vst.msk [vmem:[#allocation3 + $0x18] sm:$0xff] %vm1885_vm11, %v3369_v15  ;;  %v8180_v15 = vpop.f32.mrf.mxu1 }
 0x71c   :  { %3258 = vst.msk [vmem:[#allocation3 + $0x8] sm:$0xff] %vm1668_vm10, %v3151_v6  ;;  %4567 = vmatmul.f32.gmra.mxu1 %v4420_v47 }
 0x71f   :  { %3812 = vrot.lane.b32.xlu1 %v3733_v40, %s6220_s20  ;;  %v3953_v40 = vld [vmem:[#allocation2 + $0x7e] sm:$0xff] }
 0x720   :  { %3600 = vrot.lane.b32.xlu2 %v3519_v42, %s6219_s0  ;;  %v3737_v42 = vld [vmem:[#allocation2 + $0x7d] sm:$0xff] }
 0x721   :  { %3596 = vrot.lane.b32.xlu0 %v3517_v45, %s6219_s0  ;;  %v3159_v5 = vpop.permute.xlu1 %3158 }
 0x722   :  { %3262 = vst.msk [vmem:[#allocation3 + $0x48] sm:$0xff] %vm1668_vm10, %v3159_v5  ;;  %v8146_v31 = vpop.permute.xlu2 %4234 }
 0x723   :  { %v3157_v29 = vpop.permute.xlu0 %3156 }
 0x724   :  { %3261 = vst.msk [vmem:[#allocation3 + $0x38] sm:$0xff] %vm1668_vm10, %v3157_v29  ;;  %4570 = vmatmul.f32.gmra.mxu1 %v4422_v44  ;;  %v4171_v29 = vld [vmem:[#allocation2 + $0x8f] sm:$0xff] }
 0x727   :  { %3382 = vrot.lane.b32.xlu1 %v3302_v60, %s6223_s22 }
 0x728   :  { %4248 = vrot.lane.b32.xlu2 %v4167_v16, %s6222_s21 }
 0x729   :  { %4244 = vrot.lane.b32.xlu0 %v4165_v56, %s6222_s21  ;;  %v3165_v9 = vpop.permute.xlu1 %3164  ;;  %v3954_v56 = vld [vmem:[#allocation2 + $0x86] sm:$0xff] }
 0x72a   :  { %3265 = vst.msk [vmem:[#allocation3 + $0x78] sm:$0xff] %vm1668_vm10, %v3165_v9  ;;  %v8161_v1 = vpop.permute.xlu2 %3804  ;;  %v3524_v9 = vld [vmem:[#allocation2 + $0x94] sm:$0xff] }
 0x72b   :  { %v3163_v57 = vpop.permute.xlu0 %3162 }
 0x72c   :  { %3264 = vst.msk [vmem:[#allocation3 + $0x68] sm:$0xff] %vm1668_vm10, %v3163_v57  ;;  %4573 = vmatmul.f32.gmra.mxu1 %v4424_v49 }
 0x72f   :  { %4030 = vrot.lane.b32.xlu1 %v3950_v58, %s6221_s1 }
 0x730   :  { %3602 = vrot.lane.b32.xlu2 %v3520_v0, %s6219_s0  ;;  %v3307_v0 = vld [vmem:[#allocation2 + $0x83] sm:$0xff] }
 0x731   :  { %3814 = vrot.lane.b32.xlu0 %v3734_v53, %s6220_s20  ;;  %v3583_v62 = vpop.permute.xlu1 %3582  ;;  %v4172_v53 = vld [vmem:[#allocation2 + $0x97] sm:$0xff] }
 0x732   :  { %v3375_v50 = vpop.permute.xlu2 %3374 }
 0x733   :  { %v3367_v38 = vpop.permute.xlu0 %3366  ;;  %3478 = vst.msk [vmem:[#allocation3 + $0x48] sm:$0xff] %vm1885_vm11, %v3375_v50 }
 0x734   :  { %3474 = vst.msk [vmem:[#allocation3 + $0x8] sm:$0xff] %vm1885_vm11, %v3367_v38  ;;  %4576 = vmatmul.f32.gmra.mxu1 %v4426_v8 }
 0x735   :  { %3690 = vst.msk [vmem:[#allocation3 + $0x8] sm:$0xff] %vm2102_vm12, %v3583_v62  ;;  %v3091_v62 = vld [vmem:[#allocation2 + $0x82] sm:$0xff] }
 0x736   :  { %3906 = vst.msk [vmem:[#allocation3 + $0x8] sm:$0xff] %vm2319_vm13, %v8075_v11  ;;  %v3951_v11 = vld [vmem:[#allocation2 + $0x6e] sm:$0xff] }
 0x737   :  { %3384 = vrot.lane.b32.xlu1 %v3303_v63, %s6223_s22 }
 0x738   :  { %4250 = vrot.lane.b32.xlu2 %v4168_v27, %s6222_s21  ;;  %v3955_v27 = vld [vmem:[#allocation2 + $0x8e] sm:$0xff] }
 0x739   :  { %3168 = vrot.lane.b32.xlu0 %v3087_v36, %s6224_s23  ;;  %v4231_v10 = vpop.permute.xlu1 %4230  ;;  %v3525_v36 = vld [vmem:[#allocation2 + $0x9c] sm:$0xff] }
 0x73a   :  { %v8177_v13 = vpop.permute.xlu2 %4022 }
 0x73b   :  { %v4015_v14 = vpop.permute.xlu0 %4014 }
 0x73c   :  { %4122 = vst.msk [vmem:[#allocation3 + $0x8] sm:$0xff] %vm2536_vm14, %v4015_v14  ;;  %4579 = vmatmul.f32.gmra.mxu1 %v4428_v20 }
 0x73d   :  { %4338 = vst.msk [vmem:[#allocation3 + $0x8] sm:$0xff] %vm2753_vm15, %v4231_v10  ;;  %v3739_v10 = vld [vmem:[#allocation2 + $0x8d] sm:$0xff] }
 0x73f   :  { %4032 = vrot.lane.b32.xlu1 %v3951_v11, %s6221_s1 }
 0x740   :  { %3604 = vrot.lane.b32.xlu2 %v3521_v7, %s6219_s0  ;;  %v3308_v7 = vld [vmem:[#allocation2 + $0x8b] sm:$0xff] }
 0x741   :  { %3816 = vrot.lane.b32.xlu0 %v3735_v23, %s6220_s20  ;;  %v3801_v37 = vpop.permute.xlu1 %3800  ;;  %v4173_v23 = vld [vmem:[#allocation2 + $0x9f] sm:$0xff] }
 0x742   :  { %v8186_v17 = vpop.permute.xlu2 %3592 }
 0x743   :  { %v3585_v19 = vpop.permute.xlu0 %3584 }
 0x744   :  { %3691 = vst.msk [vmem:[#allocation3 + $0x18] sm:$0xff] %vm2102_vm12, %v3585_v19  ;;  %v4375_v43 = vld [vmem:[#allocation3 + $0x8] sm:$0xff] }
 0x745   :  { %3907 = vst.msk [vmem:[#allocation3 + $0x18] sm:$0xff] %vm2319_vm13, %v3801_v37  ;;  %4623 = vmatmul.f32.vlgmr.msra.gmra.mxu2 %v4375_v43  ;;  %v3092_v37 = vld [vmem:[#allocation2 + $0x8a] sm:$0xff] }
 0x746   :  { %4123 = vst.msk [vmem:[#allocation3 + $0x18] sm:$0xff] %vm2536_vm14, %v8105_v2  ;;  %v3952_v2 = vld [vmem:[#allocation2 + $0x76] sm:$0xff] }
 0x747   :  { %3386 = vrot.lane.b32.xlu1 %v3304_v18, %s6223_s22  ;;  %v3956_v18 = vld [vmem:[#allocation2 + $0x96] sm:$0xff] }
 0x748   :  { %4252 = vrot.lane.b32.xlu2 %v4169_v32, %s6222_s21  ;;  %v3526_v32 = vld [vmem:[#allocation2 + $0xa4] sm:$0xff] }
 0x749   :  { %3170 = vrot.lane.b32.xlu0 %v3088_v30, %s6224_s23  ;;  %v3371_v3 = vpop.permute.xlu1 %3370  ;;  %v3740_v30 = vld [vmem:[#allocation2 + $0x95] sm:$0xff] }
 0x74a   :  { %3476 = vst.msk [vmem:[#allocation3 + $0x28] sm:$0xff] %vm1885_vm11, %v3371_v3  ;;  %v8196_v22 = vpop.permute.xlu2 %4240 }
 0x74b   :  { %v4233_v51 = vpop.permute.xlu0 %4232  ;;  %3692 = vst.msk [vmem:[#allocation3 + $0x28] sm:$0xff] %vm2102_vm12, %v8124_v55  ;;  %v3089_v55 = vld [vmem:[#allocation2 + $0x72] sm:$0xff] }
 0x74c   :  { %4339 = vst.msk [vmem:[#allocation3 + $0x18] sm:$0xff] %vm2753_vm15, %v4233_v51 }
 0x74f   :  { %4034 = vrot.lane.b32.xlu1 %v3952_v2, %s6221_s1 }
 0x750   :  { %3606 = vrot.lane.b32.xlu2 %v3522_v61, %s6219_s0  ;;  %v3309_v61 = vld [vmem:[#allocation2 + $0x93] sm:$0xff] }
 0x751   :  { %3818 = vrot.lane.b32.xlu0 %v3736_v34, %s6220_s20  ;;  %v4019_v4 = vpop.permute.xlu1 %4018  ;;  %v4174_v34 = vld [vmem:[#allocation2 + $0xa7] sm:$0xff] }
 0x752   :  { %v8204_v35 = vpop.permute.xlu2 %3810 }
 0x753   :  { %v3803_v52 = vpop.permute.xlu0 %3802  ;;  %v4377_v33 = vld [vmem:[#allocation3 + $0x18] sm:$0xff] }
 0x754   :  { %3908 = vst.msk [vmem:[#allocation3 + $0x28] sm:$0xff] %vm2319_vm13, %v3803_v52  ;;  %4626 = vmatmul.f32.gmra.mxu2 %v4377_v33 }
 0x755   :  { %4124 = vst.msk [vmem:[#allocation3 + $0x28] sm:$0xff] %vm2536_vm14, %v4019_v4  ;;  %v3093_v4 = vld [vmem:[#allocation2 + $0x92] sm:$0xff] }
 0x756   :  { %4340 = vst.msk [vmem:[#allocation3 + $0x28] sm:$0xff] %vm2753_vm15, %v8146_v31  ;;  %v3306_v31 = vld [vmem:[#allocation2 + $0x7b] sm:$0xff] }
 0x757   :  { %3388 = vrot.lane.b32.xlu1 %v3305_v59, %s6223_s22  ;;  %v3957_v59 = vld [vmem:[#allocation2 + $0x9e] sm:$0xff] }
 0x758   :  { %4254 = vrot.lane.b32.xlu2 %v4170_v48, %s6222_s21  ;;  %v3527_v48 = vld [vmem:[#allocation2 + $0xac] sm:$0xff] }
 0x759   :  { %3172 = vrot.lane.b32.xlu0 %v3089_v55, %s6224_s23  ;;  %v3589_v6 = vpop.permute.xlu1 %3588  ;;  %v3741_v55 = vld [vmem:[#allocation2 + $0x9d] sm:$0xff] }
 0x75a   :  { %v3381_v28 = vpop.permute.xlu2 %3380 }
 0x75b   :  { %v3373_v47 = vpop.permute.xlu0 %3372  ;;  %3481 = vst.msk [vmem:[#allocation3 + $0x78] sm:$0xff] %vm1885_vm11, %v3381_v28 }
 0x75c   :  { %3477 = vst.msk [vmem:[#allocation3 + $0x38] sm:$0xff] %vm1885_vm11, %v3373_v47 }
 0x75d   :  { %v4379_v21 = vld [vmem:[#allocation3 + $0x28] sm:$0xff]  ;;  %3693 = vst.msk [vmem:[#allocation3 + $0x38] sm:$0xff] %vm2102_vm12, %v3589_v6 }
 0x75e   :  { %4629 = vmatmul.f32.gmra.mxu2 %v4379_v21  ;;  %3909 = vst.msk [vmem:[#allocation3 + $0x38] sm:$0xff] %vm2319_vm13, %v8161_v1  ;;  %v3738_v1 = vld [vmem:[#allocation2 + $0x85] sm:$0xff] }
 0x75f   :  { %4036 = vrot.lane.b32.xlu1 %v3953_v40, %s6221_s1  ;;  %v3310_v40 = vld [vmem:[#allocation2 + $0x9b] sm:$0xff] }
 0x760   :  { %3608 = vrot.lane.b32.xlu2 %v3523_v26, %s6219_s0  ;;  %v4175_v26 = vld [vmem:[#allocation2 + $0xaf] sm:$0xff] }
 0x761   :  { %3820 = vrot.lane.b32.xlu0 %v3737_v42, %s6220_s20  ;;  %v4237_v45 = vpop.permute.xlu1 %4236  ;;  %v3094_v42 = vld [vmem:[#allocation2 + $0x9a] sm:$0xff] }
 0x762   :  { %v8221_v24 = vpop.permute.xlu2 %4028 }
 0x763   :  { %v4021_v5 = vpop.permute.xlu0 %4020 }
 0x764   :  { %4125 = vst.msk [vmem:[#allocation3 + $0x38] sm:$0xff] %vm2536_vm14, %v4021_v5 }
 0x765   :  { %4341 = vst.msk [vmem:[#allocation3 + $0x38] sm:$0xff] %vm2753_vm15, %v4237_v45 }
 0x767   :  { %3390 = vrot.lane.b32.xlu1 %v3306_v31, %s6223_s22 }
 0x768   :  { %4256 = vrot.lane.b32.xlu2 %v4171_v29, %s6222_s21  ;;  %v3958_v29 = vld [vmem:[#allocation2 + $0xa6] sm:$0xff] }
 0x769   :  { %3174 = vrot.lane.b32.xlu0 %v3090_v12, %s6224_s23  ;;  %v3807_v44 = vpop.permute.xlu1 %3806  ;;  %v3528_v12 = vld [vmem:[#allocation2 + $0xb4] sm:$0xff] }
 0x76a   :  { %v8228_v41 = vpop.permute.xlu2 %3598 }
 0x76b   :  { %v3591_v60 = vpop.permute.xlu0 %3590 }
 0x76c   :  { %3694 = vst.msk [vmem:[#allocation3 + $0x48] sm:$0xff] %vm2102_vm12, %v3591_v60  ;;  %v4381_v16 = vld [vmem:[#allocation3 + $0x38] sm:$0xff] }
 0x76d   :  { %3910 = vst.msk [vmem:[#allocation3 + $0x48] sm:$0xff] %vm2319_vm13, %v3807_v44  ;;  %4632 = vmatmul.f32.gmra.mxu2 %v4381_v16  ;;  %v3742_v44 = vld [vmem:[#allocation2 + $0xa5] sm:$0xff] }
 0x76e   :  { %4126 = vst.msk [vmem:[#allocation3 + $0x48] sm:$0xff] %vm2536_vm14, %v8177_v13 }
 0x76f   :  { %4038 = vrot.lane.b32.xlu1 %v3954_v56, %s6221_s1  ;;  %v3311_v56 = vld [vmem:[#allocation2 + $0xa3] sm:$0xff] }
 0x770   :  { %3610 = vrot.lane.b32.xlu2 %v3524_v9, %s6219_s0  ;;  %v4176_v9 = vld [vmem:[#allocation2 + $0xb7] sm:$0xff] }
 0x771   :  { %3822 = vrot.lane.b32.xlu0 %v3738_v1, %s6220_s20  ;;  %v3377_v57 = vpop.permute.xlu1 %3376  ;;  %v3095_v1 = vld [vmem:[#allocation2 + $0xa2] sm:$0xff] }
 0x772   :  { %3479 = vst.msk [vmem:[#allocation3 + $0x58] sm:$0xff] %vm1885_vm11, %v3377_v57  ;;  %v8238_v49 = vpop.permute.xlu2 %4246 }
 0x773   :  { %v4239_v58 = vpop.permute.xlu0 %4238  ;;  %3695 = vst.msk [vmem:[#allocation3 + $0x58] sm:$0xff] %vm2102_vm12, %v8186_v17 }
 0x774   :  { %4342 = vst.msk [vmem:[#allocation3 + $0x48] sm:$0xff] %vm2753_vm15, %v4239_v58 }
 0x777   :  { %3392 = vrot.lane.b32.xlu1 %v3307_v0, %s6223_s22 }
 0x778   :  { %4258 = vrot.lane.b32.xlu2 %v4172_v53, %s6222_s21  ;;  %v3959_v53 = vld [vmem:[#allocation2 + $0xae] sm:$0xff] }
 0x779   :  { %3176 = vrot.lane.b32.xlu0 %v3091_v62, %s6224_s23  ;;  %v4025_v50 = vpop.permute.xlu1 %4024  ;;  %v3529_v62 = vld [vmem:[#allocation2 + $0xbc] sm:$0xff] }
 0x77a   :  { %v8246_v38 = vpop.permute.xlu2 %3600 }
 0x77b   :  { %v3809_v8 = vpop.permute.xlu0 %3808  ;;  %v4383_v63 = vld [vmem:[#allocation3 + $0x48] sm:$0xff] }
 0x77c   :  { %3911 = vst.msk [vmem:[#allocation3 + $0x58] sm:$0xff] %vm2319_vm13, %v3809_v8  ;;  %4635 = vmatmul.f32.gmra.mxu2 %v4383_v63 }
 0x77d   :  { %4127 = vst.msk [vmem:[#allocation3 + $0x58] sm:$0xff] %vm2536_vm14, %v4025_v50  ;;  %v3743_v50 = vld [vmem:[#allocation2 + $0xad] sm:$0xff] }
 0x77e   :  { %4343 = vst.msk [vmem:[#allocation3 + $0x58] sm:$0xff] %vm2753_vm15, %v8196_v22 }
 0x77f   :  { %4040 = vrot.lane.b32.xlu1 %v3955_v27, %s6221_s1  ;;  %v3312_v27 = vld [vmem:[#allocation2 + $0xab] sm:$0xff] }
 0x780   :  { %3612 = vrot.lane.b32.xlu2 %v3525_v36, %s6219_s0  ;;  %v4177_v36 = vld [vmem:[#allocation2 + $0xbf] sm:$0xff] }
 0x781   :  { %3824 = vrot.lane.b32.xlu0 %v3739_v10, %s6220_s20  ;;  %v3595_v13 = vpop.permute.xlu1 %3594  ;;  %v3096_v10 = vld [vmem:[#allocation2 + $0xaa] sm:$0xff] }
 0x782   :  { %v8255_v14 = vpop.permute.xlu2 %4248 }
 0x783   :  { %v3379_v20 = vpop.permute.xlu0 %3378 }
 0x784   :  { %3480 = vst.msk [vmem:[#allocation3 + $0x68] sm:$0xff] %vm1885_vm11, %v3379_v20 }
 0x785   :  { %3696 = vst.msk [vmem:[#allocation3 + $0x68] sm:$0xff] %vm2102_vm12, %v3595_v13  ;;  %v4385_v11 = vld [vmem:[#allocation3 + $0x58] sm:$0xff] }
 0x786   :  { %3912 = vst.msk [vmem:[#allocation3 + $0x68] sm:$0xff] %vm2319_vm13, %v8204_v35  ;;  %4638 = vmatmul.f32.gmra.mxu2 %v4385_v11 }
 0x787   :  { %3394 = vrot.lane.b32.xlu1 %v3308_v7, %s6223_s22  ;;  %v3960_v7 = vld [vmem:[#allocation2 + $0xb6] sm:$0xff] }
 0x788   :  { %4260 = vrot.lane.b32.xlu2 %v4173_v23, %s6222_s21  ;;  %v3530_v23 = vld [vmem:[#allocation2 + $0xc4] sm:$0xff] }
 0x789   :  { %3178 = vrot.lane.b32.xlu0 %v3092_v37, %s6224_s23  ;;  %v4243_v17 = vpop.permute.xlu1 %4242  ;;  %v3744_v37 = vld [vmem:[#allocation2 + $0xb5] sm:$0xff] }
 0x78a   :  { %v8264_v19 = vpop.permute.xlu2 %3602 }
 0x78b   :  { %v4027_v43 = vpop.permute.xlu0 %4026 }
 0x78c   :  { %4128 = vst.msk [vmem:[#allocation3 + $0x68] sm:$0xff] %vm2536_vm14, %v4027_v43 }
 0x78d   :  { %4344 = vst.msk [vmem:[#allocation3 + $0x68] sm:$0xff] %vm2753_vm15, %v4243_v17 }
 0x78f   :  { %4042 = vrot.lane.b32.xlu1 %v3956_v18, %s6221_s1  ;;  %v3313_v18 = vld [vmem:[#allocation2 + $0xb3] sm:$0xff] }
 0x790   :  { %3614 = vrot.lane.b32.xlu2 %v3526_v32, %s6219_s0  ;;  %v4178_v32 = vld [vmem:[#allocation2 + $0xc7] sm:$0xff] }
 0x791   :  { %3826 = vrot.lane.b32.xlu0 %v3740_v30, %s6220_s20  ;;  %v3813_v3 = vpop.permute.xlu1 %3812  ;;  %v3097_v30 = vld [vmem:[#allocation2 + $0xb2] sm:$0xff] }
 0x792   :  { %v8271_v22 = vpop.permute.xlu2 %4250 }
 0x793   :  { %v3597_v51 = vpop.permute.xlu0 %3596 }
 0x794   :  { %3697 = vst.msk [vmem:[#allocation3 + $0x78] sm:$0xff] %vm2102_vm12, %v3597_v51  ;;  %v4387_v2 = vld [vmem:[#allocation3 + $0x68] sm:$0xff] }
 0x795   :  { %3913 = vst.msk [vmem:[#allocation3 + $0x78] sm:$0xff] %vm2319_vm13, %v3813_v3  ;;  %4641 = vmatmul.f32.gmra.mxu2 %v4387_v2 }
 0x796   :  { %4129 = vst.msk [vmem:[#allocation3 + $0x78] sm:$0xff] %vm2536_vm14, %v8221_v24 }
 0x797   :  { %3396 = vrot.lane.b32.xlu1 %v3309_v61, %s6223_s22  ;;  %v3961_v61 = vld [vmem:[#allocation2 + $0xbe] sm:$0xff] }
 0x798   :  { %4262 = vrot.lane.b32.xlu2 %v4174_v34, %s6222_s21 }
 0x799   :  { %3180 = vrot.lane.b32.xlu0 %v3093_v4, %s6224_s23  ;;  %v3383_v35 = vpop.permute.xlu1 %3382  ;;  %v3531_v4 = vld [vmem:[#allocation2 + $0xcc] sm:$0xff] }
 0x79a   :  { %3482 = vst.msk [vmem:[#allocation3 + $0x88] sm:$0xff] %vm1885_vm11, %v3383_v35  ;;  %v8281_v52 = vpop.permute.xlu2 %3604  ;;  %v3745_v35 = vld [vmem:[#allocation2 + $0xbd] sm:$0xff] }
 0x79b   :  { %v4245_v33 = vpop.permute.xlu0 %4244  ;;  %3698 = vst.msk [vmem:[#allocation3 + $0x88] sm:$0xff] %vm2102_vm12, %v8228_v41 }
 0x79c   :  { %4345 = vst.msk [vmem:[#allocation3 + $0x78] sm:$0xff] %vm2753_vm15, %v4245_v33 }
 0x79f   :  { %4044 = vrot.lane.b32.xlu1 %v3957_v59, %s6221_s1 }
 0x7a0   :  { %3616 = vrot.lane.b32.xlu2 %v3527_v48, %s6219_s0  ;;  %v3314_v48 = vld [vmem:[#allocation2 + $0xbb] sm:$0xff] }
 0x7a1   :  { %3828 = vrot.lane.b32.xlu0 %v3741_v55, %s6220_s20  ;;  %v4031_v6 = vpop.permute.xlu1 %4030 }
 0x7a2   :  { %v8289_v28 = vpop.permute.xlu2 %4252 }
 0x7a3   :  { %v3815_v47 = vpop.permute.xlu0 %3814  ;;  %v4389_v21 = vld [vmem:[#allocation3 + $0x78] sm:$0xff] }
 0x7a4   :  { %3914 = vst.msk [vmem:[#allocation3 + $0x88] sm:$0xff] %vm2319_vm13, %v3815_v47  ;;  %4644 = vmatmul.f32.gmra.mxu2 %v4389_v21 }
 0x7a5   :  { %4130 = vst.msk [vmem:[#allocation3 + $0x88] sm:$0xff] %vm2536_vm14, %v4031_v6  ;;  %v4179_v6 = vld [vmem:[#allocation2 + $0xcf] sm:$0xff] }
 0x7a6   :  { %4346 = vst.msk [vmem:[#allocation3 + $0x88] sm:$0xff] %vm2753_vm15, %v8238_v49 }
 0x7a7   :  { %3398 = vrot.lane.b32.xlu1 %v3310_v40, %s6223_s22 }
 0x7a8   :  { %4264 = vrot.lane.b32.xlu2 %v4175_v26, %s6222_s21 }
 0x7a9   :  { %3182 = vrot.lane.b32.xlu0 %v3094_v42, %s6224_s23  ;;  %v3385_v45 = vpop.permute.xlu1 %3384  ;;  %v3962_v42 = vld [vmem:[#allocation2 + $0xc6] sm:$0xff] }
 0x7aa   :  { %v8298_v24 = vpop.permute.xlu2 %3606 }
 0x7ab   :  { %v3169_v5 = vpop.permute.xlu0 %3168 }
 0x7ac   :  { %3267 = vst.msk [vmem:[#allocation3 + $0x98] sm:$0xff] %vm1668_vm10, %v3169_v5  ;;  %v3746_v5 = vld [vmem:[#allocation2 + $0xc5] sm:$0xff] }
 0x7ad   :  { %3483 = vst.msk [vmem:[#allocation3 + $0x98] sm:$0xff] %vm1885_vm11, %v3385_v45  ;;  %v4391_v31 = vld [vmem:[#allocation3 + $0x88] sm:$0xff] }
 0x7ae   :  { %3699 = vst.msk [vmem:[#allocation3 + $0x98] sm:$0xff] %vm2102_vm12, %v8246_v38  ;;  %4647 = vmatmul.f32.gmra.mxu2 %v4391_v31 }
 0x7af   :  { %4046 = vrot.lane.b32.xlu1 %v3958_v29, %s6221_s1 }
 0x7b0   :  { %3618 = vrot.lane.b32.xlu2 %v3528_v12, %s6219_s0 }
 0x7b1   :  { %3830 = vrot.lane.b32.xlu0 %v3742_v44, %s6220_s20  ;;  %v4033_v41 = vpop.permute.xlu1 %4032  ;;  %v3315_v44 = vld [vmem:[#allocation2 + $0xc3] sm:$0xff] }
 0x7b2   :  { %v8307_v60 = vpop.permute.xlu2 %4254 }
 0x7b3   :  { %v3817_v16 = vpop.permute.xlu0 %3816 }
 0x7b4   :  { %3915 = vst.msk [vmem:[#allocation3 + $0x98] sm:$0xff] %vm2319_vm13, %v3817_v16  ;;  %v3099_v16 = vld [vmem:[#allocation2 + $0xc2] sm:$0xff] }
 0x7b5   :  { %4131 = vst.msk [vmem:[#allocation3 + $0x98] sm:$0xff] %vm2536_vm14, %v4033_v41 }
 0x7b6   :  { %4347 = vst.msk [vmem:[#allocation3 + $0x98] sm:$0xff] %vm2753_vm15, %v8255_v14 }
 0x7b7   :  { %3400 = vrot.lane.b32.xlu1 %v3311_v56, %s6223_s22  ;;  %v4511_v56 = vpop.f32.mrf.mxu1 }
 0x7b8   :  { %4266 = vrot.lane.b32.xlu2 %v4176_v9, %s6222_s21 }
 0x7b9   :  { %3184 = vrot.lane.b32.xlu0 %v3095_v1, %s6224_s23  ;;  %v3387_v57 = vpop.permute.xlu1 %3386 }
 0x7ba   :  { %v8316_v49 = vpop.permute.xlu2 %3608 }
 0x7bb   :  { %v3171_v58 = vpop.permute.xlu0 %3170 }
 0x7bc   :  { %3268 = vst.msk [vmem:[#allocation3 + $0xa8] sm:$0xff] %vm1668_vm10, %v3171_v58 }
 0x7bd   :  { %3484 = vst.msk [vmem:[#allocation3 + $0xa8] sm:$0xff] %vm1885_vm11, %v3387_v57  ;;  %v4393_v0 = vld [vmem:[#allocation3 + $0x98] sm:$0xff] }
 0x7be   :  { %3700 = vst.msk [vmem:[#allocation3 + $0xa8] sm:$0xff] %vm2102_vm12, %v8264_v19  ;;  %4650 = vmatmul.f32.gmra.mxu2 %v4393_v0 }
 0x7bf   :  { %4048 = vrot.lane.b32.xlu1 %v3959_v53, %s6221_s1  ;;  %v3963_v53 = vld [vmem:[#allocation2 + $0xce] sm:$0xff] }
 0x7c0   :  { %3620 = vrot.lane.b32.xlu2 %v3529_v62, %s6219_s0 }
 0x7c1   :  { %3832 = vrot.lane.b32.xlu0 %v3743_v50, %s6220_s20  ;;  %v4035_v38 = vpop.permute.xlu1 %4034  ;;  %v3964_v50 = vld [vmem:[#allocation2 + $0xd6] sm:$0xff] }
 0x7c2   :  { %v8325_v8 = vpop.permute.xlu2 %4256 }
 0x7c3   :  { %v3819_v63 = vpop.permute.xlu0 %3818 }
 0x7c4   :  { %3916 = vst.msk [vmem:[#allocation3 + $0xa8] sm:$0xff] %vm2319_vm13, %v3819_v63 }
 0x7c5   :  { %4132 = vst.msk [vmem:[#allocation3 + $0xa8] sm:$0xff] %vm2536_vm14, %v4035_v38  ;;  %v3747_v38 = vld [vmem:[#allocation2 + $0xcd] sm:$0xff] }
 0x7c6   :  { %4348 = vst.msk [vmem:[#allocation3 + $0xa8] sm:$0xff] %vm2753_vm15, %v8271_v22 }
 0x7c7   :  { %3402 = vrot.lane.b32.xlu1 %v3312_v27, %s6223_s22 }
 0x7c8   :  { %4268 = vrot.lane.b32.xlu2 %v4177_v36, %s6222_s21  ;;  %v8358_v34 = vpop.f32.mrf.mxu2 }
 0x7c9   :  { %3186 = vrot.lane.b32.xlu0 %v3096_v10, %s6224_s23  ;;  %v3389_v13 = vpop.permute.xlu1 %3388  ;;  %v4514_v10 = vpop.f32.mrf.mxu1 }
 0x7ca   :  { %v8334_v14 = vpop.permute.xlu2 %3610 }
 0x7cb   :  { %v3173_v20 = vpop.permute.xlu0 %3172 }
 0x7cc   :  { %3269 = vst.msk [vmem:[#allocation3 + $0xb8] sm:$0xff] %vm1668_vm10, %v3173_v20  ;;  %v4186_v20 = vld [vmem:[#allocation2 + $0x107] sm:$0xff] }
 0x7cd   :  { %3485 = vst.msk [vmem:[#allocation3 + $0xb8] sm:$0xff] %vm1885_vm11, %v3389_v13  ;;  %v4395_v11 = vld [vmem:[#allocation3 + $0xa8] sm:$0xff]  ;;  %v3106_v13 = vld [vmem:[#allocation2 + $0xfa] sm:$0xff] }
 0x7ce   :  { %3701 = vst.msk [vmem:[#allocation3 + $0xb8] sm:$0xff] %vm2102_vm12, %v8281_v52  ;;  %4653 = vmatmul.f32.gmra.mxu2 %v4395_v11  ;;  %v3100_v11 = vld [vmem:[#allocation2 + $0xca] sm:$0xff] }
 0x7cf   :  { %4050 = vrot.lane.b32.xlu1 %v3960_v7, %s6221_s1 }
 0x7d0   :  { %3622 = vrot.lane.b32.xlu2 %v3530_v23, %s6219_s0 }
 0x7d1   :  { %3834 = vrot.lane.b32.xlu0 %v3744_v37, %s6220_s20  ;;  %v4037_v17 = vpop.permute.xlu1 %4036 }
 0x7d2   :  { %v8343_v19 = vpop.permute.xlu2 %4258 }
 0x7d3   :  { %v3821_v43 = vpop.permute.xlu0 %3820 }
 0x7d4   :  { %3917 = vst.msk [vmem:[#allocation3 + $0xb8] sm:$0xff] %vm2319_vm13, %v3821_v43 }
 0x7d5   :  { %4133 = vst.msk [vmem:[#allocation3 + $0xb8] sm:$0xff] %vm2536_vm14, %v4037_v17 }
 0x7d6   :  { %4349 = vst.msk [vmem:[#allocation3 + $0xb8] sm:$0xff] %vm2753_vm15, %v8289_v28  ;;  %v3098_v28 = vld [vmem:[#allocation2 + $0xba] sm:$0xff] }
 0x7d7   :  { %3404 = vrot.lane.b32.xlu1 %v3313_v18, %s6223_s22  ;;  %v8369_v55 = vpop.f32.mrf.mxu2  ;;  %v3532_v18 = vld [vmem:[#allocation2 + $0xd4] sm:$0xff] }
 0x7d8   :  { %4270 = vrot.lane.b32.xlu2 %v4178_v32, %s6222_s21  ;;  %v3317_v32 = vld [vmem:[#allocation2 + $0xd3] sm:$0xff] }
 0x7d9   :  { %3188 = vrot.lane.b32.xlu0 %v3097_v30, %s6224_s23  ;;  %v3391_v3 = vpop.permute.xlu1 %3390  ;;  %v3322_v30 = vld [vmem:[#allocation2 + $0xfb] sm:$0xff] }
 0x7da   :  { %v8352_v22 = vpop.permute.xlu2 %3612 }
 0x7db   :  { %v3175_v51 = vpop.permute.xlu0 %3174 }
 0x7dc   :  { %3270 = vst.msk [vmem:[#allocation3 + $0xc8] sm:$0xff] %vm1668_vm10, %v3175_v51 }
 0x7dd   :  { %3486 = vst.msk [vmem:[#allocation3 + $0xc8] sm:$0xff] %vm1885_vm11, %v3391_v3  ;;  %v4397_v2 = vld [vmem:[#allocation3 + $0xb8] sm:$0xff] }
 0x7de   :  { %3702 = vst.msk [vmem:[#allocation3 + $0xc8] sm:$0xff] %vm2102_vm12, %v8298_v24  ;;  %4656 = vmatmul.f32.gmra.mxu2 %v4397_v2  ;;  %v3316_v24 = vld [vmem:[#allocation2 + $0xcb] sm:$0xff] }
 0x7df   :  { %4052 = vrot.lane.b32.xlu1 %v3961_v61, %s6221_s1  ;;  %v4517_v61 = vpop.f32.mrf.mxu1 }
 0x7e0   :  { %3624 = vrot.lane.b32.xlu2 %v3531_v4, %s6219_s0  ;;  %v3754_v4 = vld [vmem:[#allocation2 + $0x105] sm:$0xff] }
 0x7e1   :  { %3836 = vrot.lane.b32.xlu0 %v3745_v35, %s6220_s20  ;;  %v4039_v52 = vpop.permute.xlu1 %4038  ;;  %v8380_v45 = vpop.f32.mrf.mxu2 }
 0x7e2   :  { %v8363_v33 = vpop.permute.xlu2 %4260 }
 0x7e3   :  { %v3823_v59 = vpop.permute.xlu0 %3822 }
 0x7e4   :  { %3918 = vst.msk [vmem:[#allocation3 + $0xc8] sm:$0xff] %vm2319_vm13, %v3823_v59  ;;  %v3748_v59 = vld [vmem:[#allocation2 + $0xd5] sm:$0xff] }
 0x7e5   :  { %4134 = vst.msk [vmem:[#allocation3 + $0xc8] sm:$0xff] %vm2536_vm14, %v4039_v52  ;;  %v3539_v52 = vld [vmem:[#allocation2 + $0x10c] sm:$0xff] }
 0x7e6   :  { %4350 = vst.msk [vmem:[#allocation3 + $0xc8] sm:$0xff] %vm2753_vm15, %v8307_v60  ;;  %v3538_v60 = vld [vmem:[#allocation2 + $0x104] sm:$0xff] }
 0x7e7   :  { %3406 = vrot.lane.b32.xlu1 %v3314_v48, %s6223_s22 }
 0x7e8   :  { %4272 = vrot.lane.b32.xlu2 %v4179_v6, %s6222_s21 }
 0x7e9   :  { %3190 = vrot.lane.b32.xlu0 %v3098_v28, %s6224_s23  ;;  %v3393_v47 = vpop.permute.xlu1 %3392 }
 0x7ea   :  { %v8374_v21 = vpop.permute.xlu2 %3614 }
 0x7eb   :  { %v3177_v40 = vpop.permute.xlu0 %3176 }
 0x7ec   :  { %3271 = vst.msk [vmem:[#allocation3 + $0xd8] sm:$0xff] %vm1668_vm10, %v3177_v40  ;;  %v4180_v40 = vld [vmem:[#allocation2 + $0xd7] sm:$0xff] }
 0x7ed   :  { %3487 = vst.msk [vmem:[#allocation3 + $0xd8] sm:$0xff] %vm1885_vm11, %v3393_v47  ;;  %v4399_v26 = vld [vmem:[#allocation3 + $0xc8] sm:$0xff] }
 0x7ee   :  { %3703 = vst.msk [vmem:[#allocation3 + $0xd8] sm:$0xff] %vm2102_vm12, %v8316_v49  ;;  %4659 = vmatmul.f32.gmra.mxu2 %v4399_v26  ;;  %v8402_v49 = vld [vmem:[%s10223_s3] ss:$0 sm:$0xff] }
 0x7ef   :  { %4054 = vrot.lane.b32.xlu1 %v3962_v42, %s6221_s1  ;;  %v4512_v0 = vadd.f32 %v8402_v49, %v4511_v56  ;;  %v3965_v26 = vld [vmem:[#allocation2 + $0xde] sm:$0xff]  ;;  %v3970_v42 = vld [vmem:[#allocation2 + $0x106] sm:$0xff]  ;;  %v3101_v56 = vld [vmem:[#allocation2 + $0xd2] sm:$0xff] }
 0x7f0   :  { %3410 = vrot.lane.b32.xlu2 %v3316_v24, %s6223_s22  ;;  %v8391_v41 = vpop.f32.mrf.mxu2  ;;  %v4520_v24 = vpop.f32.mrf.mxu1 }
 0x7f1   :  { %3838 = vrot.lane.b32.xlu0 %v3746_v5, %s6220_s20  ;;  %v4041_v31 = vpop.permute.xlu1 %4040 }
 0x7f2   :  { %v8385_v29 = vpop.permute.xlu2 %4262 }
 0x7f3   :  { %v3825_v12 = vpop.permute.xlu0 %3824 }
 0x7f4   :  { %3919 = vst.msk [vmem:[#allocation3 + $0xd8] sm:$0xff] %vm2319_vm13, %v3825_v12 }
 0x7f5   :  { %4135 = vst.msk [vmem:[#allocation3 + $0xd8] sm:$0xff] %vm2536_vm14, %v4041_v31 }
 0x7f6   :  { %4351 = vst.msk [vmem:[#allocation3 + $0xd8] sm:$0xff] %vm2753_vm15, %v8325_v8 }
 0x7f7   :  { %3408 = vrot.lane.b32.xlu1 %v3315_v44, %s6223_s22  ;;  %v3107_v44 = vld [vmem:[#allocation2 + $0x102] sm:$0xff] }
 0x7f8   :  { %3638 = vrot.lane.b32.xlu2 %v3538_v60, %s6219_s0 }
 0x7f9   :  { %3192 = vrot.lane.b32.xlu0 %v3099_v16, %s6224_s23  ;;  %v3395_v9 = vpop.permute.xlu1 %3394  ;;  %v4187_v16 = vld [vmem:[#allocation2 + $0x10f] sm:$0xff] }
 0x7fa   :  { %v8396_v1 = vpop.permute.xlu2 %3616 }
 0x7fb   :  { %v3179_v57 = vpop.permute.xlu0 %3178 }
 0x7fc   :  { %3272 = vst.msk [vmem:[#allocation3 + $0xe8] sm:$0xff] %vm1668_vm10, %v3179_v57 }
 0x7fd   :  { %3488 = vst.msk [vmem:[#allocation3 + $0xe8] sm:$0xff] %vm1885_vm11, %v3395_v9  ;;  %v4401_v58 = vld [vmem:[#allocation3 + $0xd8] sm:$0xff] }
 0x7fe   :  { %3704 = vst.msk [vmem:[#allocation3 + $0xe8] sm:$0xff] %vm2102_vm12, %v8334_v14  ;;  %4662 = vmatmul.f32.gmra.mxu2 %v4401_v58  ;;  %v4515_v14 = vadd.f32 %v8402_v49, %v4514_v10 }
 0x7ff   :  { %v4636_v62 = vpop.f32.mrf.mxu2  ;;  %4056 = vrot.lane.b32.xlu1 %v3963_v53, %s6221_s1 }
 0x800   :  { %v8409_v8 = vadd.f32 %v4636_v62, %v4512_v0  ;;  %4058 = vrot.lane.b32.xlu2 %v3964_v50, %s6221_s1  ;;  %v3533_v62 = vld [vmem:[#allocation2 + $0xdc] sm:$0xff] }
 0x801   :  { %3840 = vrot.lane.b32.xlu0 %v3747_v38, %s6220_s20  ;;  %v4043_v63 = vpop.permute.xlu1 %4042  ;;  %v3318_v38 = vld [vmem:[#allocation2 + $0xdb] sm:$0xff] }
 0x802   :  { %10253 = vst [vmem:[#allocation8_spill] sm:$0xff] %v8409_v8  ;;  %v8413_v27 = vpop.permute.xlu2 %4264 }
 0x803   :  { %v3827_v36 = vpop.permute.xlu0 %3826 }
 0x804   :  { %3920 = vst.msk [vmem:[#allocation3 + $0xe8] sm:$0xff] %vm2319_vm13, %v3827_v36 }
 0x805   :  { %4136 = vst.msk [vmem:[#allocation3 + $0xe8] sm:$0xff] %vm2536_vm14, %v4043_v63  ;;  %v3323_v63 = vld [vmem:[#allocation2 + $0x103] sm:$0xff] }
 0x806   :  { %4352 = vst.msk [vmem:[#allocation3 + $0xe8] sm:$0xff] %vm2753_vm15, %v8343_v19 }
 0x807   :  { %3206 = vrot.lane.b32.xlu1 %v3106_v13, %s6224_s23 }
 0x808   :  { %4286 = vrot.lane.b32.xlu2 %v4186_v20, %s6222_s21 }
 0x809   :  { %3194 = vrot.lane.b32.xlu0 %v3100_v11, %s6224_s23  ;;  %v4639_v7 = vpop.f32.mrf.mxu2  ;;  %v3397_v37 = vpop.permute.xlu1 %3396  ;;  %v3540_v11 = vld [vmem:[#allocation2 + $0x114] sm:$0xff] }
 0x80a   :  { %v8423_v23 = vadd.f32 %v4639_v7, %v4515_v14  ;;  %v8425_v17 = vpop.permute.xlu2 %3618  ;;  %v3749_v7 = vld [vmem:[#allocation2 + $0xdd] sm:$0xff] }
 0x80b   :  { %v3181_v43 = vpop.permute.xlu0 %3180 }
 0x80c   :  { %10254 = vst [vmem:[#allocation9_spill] sm:$0xff] %v8423_v23 }
 0x80d   :  { %3273 = vst.msk [vmem:[#allocation3 + $0xf8] sm:$0xff] %vm1668_vm10, %v3181_v43  ;;  %v4403_v19 = vld [vmem:[#allocation3 + $0xe8] sm:$0xff] }
 0x80e   :  { %3489 = vst.msk [vmem:[#allocation3 + $0xf8] sm:$0xff] %vm1885_vm11, %v3397_v37  ;;  %4665 = vmatmul.f32.gmra.mxu2 %v4403_v19 }
 0x80f   :  { %3705 = vst.msk [vmem:[#allocation3 + $0xf8] sm:$0xff] %vm2102_vm12, %v8352_v22  ;;  %3626 = vrot.lane.b32.xlu1 %v3532_v18, %s6219_s0  ;;  %v4518_v22 = vadd.f32 %v8402_v49, %v4517_v61 }
 0x810   :  { %3412 = vrot.lane.b32.xlu2 %v3317_v32, %s6223_s22 }
 0x811   :  { %3422 = vrot.lane.b32.xlu0 %v3322_v30, %s6223_s22  ;;  %v4045_v3 = vpop.permute.xlu1 %4044 }
 0x812   :  { %v8434_v51 = vpop.permute.xlu2 %4266 }
 0x813   :  { %v3829_v2 = vpop.permute.xlu0 %3828 }
 0x814   :  { %3921 = vst.msk [vmem:[#allocation3 + $0xf8] sm:$0xff] %vm2319_vm13, %v3829_v2  ;;  %v3971_v2 = vld [vmem:[#allocation2 + $0x10e] sm:$0xff] }
 0x815   :  { %4137 = vst.msk [vmem:[#allocation3 + $0xf8] sm:$0xff] %vm2536_vm14, %v4045_v3  ;;  %v3966_v3 = vld [vmem:[#allocation2 + $0xe6] sm:$0xff] }
 0x816   :  { %4353 = vst.msk [vmem:[#allocation3 + $0xf8] sm:$0xff] %vm2753_vm15, %v8363_v33 }
 0x817   :  { %3854 = vrot.lane.b32.xlu1 %v3754_v4, %s6220_s20 }
 0x818   :  { %v4642_v35 = vpop.f32.mrf.mxu2  ;;  %3640 = vrot.lane.b32.xlu2 %v3539_v52, %s6219_s0 }
 0x819   :  { %v8442_v48 = vadd.f32 %v4642_v35, %v4518_v22  ;;  %3842 = vrot.lane.b32.xlu0 %v3748_v59, %s6220_s20  ;;  %v3399_v6 = vpop.permute.xlu1 %3398  ;;  %v4188_v59 = vld [vmem:[#allocation2 + $0x117] sm:$0xff] }
 0x81a   :  { %v8446_v28 = vpop.permute.xlu2 %3620 }
 0x81b   :  { %10255 = vst [vmem:[#allocation10_spill] sm:$0xff] %v8442_v48  ;;  %v3183_v47 = vpop.permute.xlu0 %3182 }
 0x81c   :  { %3274 = vst.msk [vmem:[#allocation3 + $0x108] sm:$0xff] %vm1668_vm10, %v3183_v47 }
 0x81d   :  { %3490 = vst.msk [vmem:[#allocation3 + $0x108] sm:$0xff] %vm1885_vm11, %v3399_v6  ;;  %v4405_v33 = vld [vmem:[#allocation3 + $0xf8] sm:$0xff] }
 0x81e   :  { %3706 = vst.msk [vmem:[#allocation3 + $0x108] sm:$0xff] %vm2102_vm12, %v8374_v21  ;;  %4668 = vmatmul.f32.gmra.mxu2 %v4405_v33  ;;  %v4521_v21 = vadd.f32 %v8402_v49, %v4520_v24  ;;  %v3102_v6 = vld [vmem:[#allocation2 + $0xda] sm:$0xff] }
 0x81f   :  { %4274 = vrot.lane.b32.xlu1 %v4180_v40, %s6222_s21 }
 0x820   :  { %4060 = vrot.lane.b32.xlu2 %v3965_v26, %s6221_s1 }
 0x821   :  { %4070 = vrot.lane.b32.xlu0 %v3970_v42, %s6221_s1  ;;  %v4047_v5 = vpop.permute.xlu1 %4046 }
 0x822   :  { %v8455_v31 = vpop.permute.xlu2 %4268 }
 0x823   :  { %v3831_v12 = vpop.permute.xlu0 %3830 }
 0x824   :  { %3922 = vst.msk [vmem:[#allocation3 + $0x108] sm:$0xff] %vm2319_vm13, %v3831_v12  ;;  %v3324_v12 = vld [vmem:[#allocation2 + $0x10b] sm:$0xff] }
 0x825   :  { %4138 = vst.msk [vmem:[#allocation3 + $0x108] sm:$0xff] %vm2536_vm14, %v4047_v5  ;;  %v3319_v5 = vld [vmem:[#allocation2 + $0xe3] sm:$0xff] }
 0x826   :  { %4354 = vst.msk [vmem:[#allocation3 + $0x108] sm:$0xff] %vm2753_vm15, %v8385_v29  ;;  %v4523_v29 = vpop.f32.mrf.mxu1 }
 0x827   :  { %v4645_v60 = vpop.f32.mrf.mxu2  ;;  %3208 = vrot.lane.b32.xlu1 %v3107_v44, %s6224_s23  ;;  %v4524_v50 = vadd.f32 %v8402_v49, %v4523_v29 }
 0x828   :  { %v8463_v9 = vadd.f32 %v4645_v60, %v4521_v21  ;;  %4288 = vrot.lane.b32.xlu2 %v4187_v16, %s6222_s21 }
 0x829   :  { %3196 = vrot.lane.b32.xlu0 %v3101_v56, %s6224_s23  ;;  %v3401_v57 = vpop.permute.xlu1 %3400 }
 0x82a   :  { %10256 = vst [vmem:[#allocation11_spill] sm:$0xff] %v8463_v9  ;;  %v8467_v58 = vpop.permute.xlu2 %3622 }
 0x82b   :  { %v3185_v0 = vpop.permute.xlu0 %3184 }
 0x82c   :  { %3275 = vst.msk [vmem:[#allocation3 + $0x118] sm:$0xff] %vm1668_vm10, %v3185_v0  ;;  %v3750_v0 = vld [vmem:[#allocation2 + $0xe5] sm:$0xff] }
 0x82d   :  { %3491 = vst.msk [vmem:[#allocation3 + $0x118] sm:$0xff] %vm1885_vm11, %v3401_v57  ;;  %v4407_v53 = vld [vmem:[#allocation3 + $0x108] sm:$0xff]  ;;  %v3541_v57 = vld [vmem:[#allocation2 + $0x11c] sm:$0xff] }
 0x82e   :  { %3707 = vst.msk [vmem:[#allocation3 + $0x118] sm:$0xff] %vm2102_vm12, %v8396_v1  ;;  %4671 = vmatmul.f32.gmra.mxu2 %v4407_v53  ;;  %v3755_v1 = vld [vmem:[#allocation2 + $0x10d] sm:$0xff]  ;;  %v4526_v18 = vpop.f32.mrf.mxu1 }
 0x82f   :  { %3628 = vrot.lane.b32.xlu1 %v3533_v62, %s6219_s0  ;;  %v4527_v30 = vadd.f32 %v8402_v49, %v4526_v18  ;;  %v3103_v18 = vld [vmem:[#allocation2 + $0xe2] sm:$0xff] }
 0x830   :  { %3414 = vrot.lane.b32.xlu2 %v3318_v38, %s6223_s22 }
 0x831   :  { %3424 = vrot.lane.b32.xlu0 %v3323_v63, %s6223_s22  ;;  %v4648_v36 = vpop.f32.mrf.mxu2  ;;  %v4049_v13 = vpop.permute.xlu1 %4048 }
 0x832   :  { %v8477_v10 = vadd.f32 %v4648_v36, %v4524_v50  ;;  %v8479_v14 = vpop.permute.xlu2 %4270  ;;  %v3967_v36 = vld [vmem:[#allocation2 + $0xee] sm:$0xff] }
 0x833   :  { %v3833_v20 = vpop.permute.xlu0 %3832 }
 0x834   :  { %10257 = vst [vmem:[#allocation12_spill] sm:$0xff] %v8477_v10 }
 0x835   :  { %3923 = vst.msk [vmem:[#allocation3 + $0x118] sm:$0xff] %vm2319_vm13, %v3833_v20 }
 0x836   :  { %4139 = vst.msk [vmem:[#allocation3 + $0x118] sm:$0xff] %vm2536_vm14, %v4049_v13  ;;  %v4529_v26 = vpop.f32.mrf.mxu1  ;;  %v3972_v13 = vld [vmem:[#allocation2 + $0x116] sm:$0xff] }
 0x837   :  { %4355 = vst.msk [vmem:[#allocation3 + $0x118] sm:$0xff] %vm2753_vm15, %v8413_v27  ;;  %3856 = vrot.lane.b32.xlu1 %v3755_v1, %s6220_s20  ;;  %v4181_v27 = vld [vmem:[#allocation2 + $0xdf] sm:$0xff]  ;;  %v4530_v24 = vadd.f32 %v8402_v49, %v4529_v26  ;;  %v3751_v26 = vld [vmem:[#allocation2 + $0xed] sm:$0xff] }
 0x838   :  { %3642 = vrot.lane.b32.xlu2 %v3540_v11, %s6219_s0 }
 0x839   :  { %3844 = vrot.lane.b32.xlu0 %v3749_v7, %s6220_s20  ;;  %v3403_v37 = vpop.permute.xlu1 %3402 }
 0x83a   :  { %v8488_v43 = vpop.permute.xlu2 %3624 }
 0x83b   :  { %v3187_v19 = vpop.permute.xlu0 %3186 }
 0x83c   :  { %3276 = vst.msk [vmem:[#allocation3 + $0x128] sm:$0xff] %vm1668_vm10, %v3187_v19  ;;  %v4189_v19 = vld [vmem:[#allocation2 + $0x11f] sm:$0xff] }
 0x83d   :  { %3492 = vst.msk [vmem:[#allocation3 + $0x128] sm:$0xff] %vm1885_vm11, %v3403_v37  ;;  %v3109_v37 = vld [vmem:[#allocation2 + $0x112] sm:$0xff] }
 0x83e   :  { %v4409_v32 = vld [vmem:[#allocation3 + $0x118] sm:$0xff]  ;;  %3708 = vst.msk [vmem:[#allocation3 + $0x128] sm:$0xff] %vm2102_vm12, %v8425_v17  ;;  %v3108_v17 = vld [vmem:[#allocation2 + $0x10a] sm:$0xff]  ;;  %v4532_v50 = vpop.f32.mrf.mxu1 }
 0x83f   :  { %4674 = vmatmul.f32.gmra.mxu2 %v4409_v32  ;;  %4276 = vrot.lane.b32.xlu1 %v4181_v27, %s6222_s21  ;;  %v4533_v63 = vadd.f32 %v8402_v49, %v4532_v50  ;;  %v3110_v50 = vld [vmem:[#allocation2 + $0x11a] sm:$0xff] }
 0x840   :  { %4062 = vrot.lane.b32.xlu2 %v3966_v3, %s6221_s1 }
 0x841   :  { %4072 = vrot.lane.b32.xlu0 %v3971_v2, %s6221_s1  ;;  %v4651_v61 = vpop.f32.mrf.mxu2  ;;  %v4051_v4 = vpop.permute.xlu1 %4050  ;;  %v3535_v2 = vld [vmem:[#allocation2 + $0xec] sm:$0xff] }
 0x842   :  { %v8498_v22 = vadd.f32 %v4651_v61, %v4527_v30  ;;  %v8500_v35 = vpop.permute.xlu2 %4272 }
 0x843   :  { %v3835_v52 = vpop.permute.xlu0 %3834 }
 0x844   :  { %10258 = vst [vmem:[#allocation13_spill] sm:$0xff] %v8498_v22 }
 0x845   :  { %3924 = vst.msk [vmem:[#allocation3 + $0x128] sm:$0xff] %vm2319_vm13, %v3835_v52  ;;  %v3325_v52 = vld [vmem:[#allocation2 + $0x113] sm:$0xff] }
 0x846   :  { %4140 = vst.msk [vmem:[#allocation3 + $0x128] sm:$0xff] %vm2536_vm14, %v4051_v4  ;;  %v4535_v30 = vpop.f32.mrf.mxu1  ;;  %v3320_v4 = vld [vmem:[#allocation2 + $0xeb] sm:$0xff] }
 0x847   :  { %4356 = vst.msk [vmem:[#allocation3 + $0x128] sm:$0xff] %vm2753_vm15, %v8434_v51  ;;  %3210 = vrot.lane.b32.xlu1 %v3108_v17, %s6224_s23  ;;  %v3534_v51 = vld [vmem:[#allocation2 + $0xe4] sm:$0xff]  ;;  %v4536_v61 = vadd.f32 %v8402_v49, %v4535_v30 }
 0x848   :  { %4290 = vrot.lane.b32.xlu2 %v4188_v59, %s6222_s21 }
 0x849   :  { %3198 = vrot.lane.b32.xlu0 %v3102_v6, %s6224_s23  ;;  %v3405_v47 = vpop.permute.xlu1 %3404 }
 0x84a   :  { %v8509_v33 = vpop.permute.xlu2 %3410 }
 0x84b   :  { %v3189_v40 = vpop.permute.xlu0 %3188 }
 0x84c   :  { %3277 = vst.msk [vmem:[#allocation3 + $0x138] sm:$0xff] %vm1668_vm10, %v3189_v40  ;;  %v3757_v40 = vld [vmem:[#allocation2 + $0x11d] sm:$0xff] }
 0x84d   :  { %3493 = vst.msk [vmem:[#allocation3 + $0x138] sm:$0xff] %vm1885_vm11, %v3405_v47 }
 0x84e   :  { %v4411_v42 = vld [vmem:[#allocation3 + $0x128] sm:$0xff]  ;;  %3709 = vst.msk [vmem:[#allocation3 + $0x138] sm:$0xff] %vm2102_vm12, %v8446_v28 }
 0x84f   :  { %4677 = vmatmul.f32.gmra.mxu2 %v4411_v42  ;;  %3630 = vrot.lane.b32.xlu1 %v3534_v51, %s6219_s0  ;;  %v3756_v28 = vld [vmem:[#allocation2 + $0x115] sm:$0xff] }
 0x850   :  { %3416 = vrot.lane.b32.xlu2 %v3319_v5, %s6223_s22  ;;  %v4538_v5 = vpop.f32.mrf.mxu1 }
 0x851   :  { %3426 = vrot.lane.b32.xlu0 %v3324_v12, %s6223_s22  ;;  %v4654_v21 = vpop.f32.mrf.mxu2  ;;  %v4053_v60 = vpop.permute.xlu1 %4052  ;;  %v4183_v12 = vld [vmem:[#allocation2 + $0xef] sm:$0xff] }
 0x852   :  { %v8519_v44 = vadd.f32 %v4654_v21, %v4530_v24  ;;  %v8521_v16 = vpop.permute.xlu2 %3638  ;;  %v4539_v21 = vadd.f32 %v8402_v49, %v4538_v5  ;;  %v3111_v5 = vld [vmem:[#allocation2 + $0x122] sm:$0xff] }
 0x853   :  { %v3837_v56 = vpop.permute.xlu0 %3836 }
 0x854   :  { %10259 = vst [vmem:[#allocation14_spill] sm:$0xff] %v8519_v44 }
 0x855   :  { %3925 = vst.msk [vmem:[#allocation3 + $0x138] sm:$0xff] %vm2319_vm13, %v3837_v56  ;;  %v3973_v56 = vld [vmem:[#allocation2 + $0x11e] sm:$0xff] }
 0x856   :  { %4141 = vst.msk [vmem:[#allocation3 + $0x138] sm:$0xff] %vm2536_vm14, %v4053_v60  ;;  %v3968_v60 = vld [vmem:[#allocation2 + $0xf6] sm:$0xff] }
 0x857   :  { %4357 = vst.msk [vmem:[#allocation3 + $0x138] sm:$0xff] %vm2753_vm15, %v8455_v31  ;;  %3858 = vrot.lane.b32.xlu1 %v3756_v28, %s6220_s20  ;;  %v4182_v31 = vld [vmem:[#allocation2 + $0xe7] sm:$0xff] }
 0x858   :  { %3644 = vrot.lane.b32.xlu2 %v3541_v57, %s6219_s0 }
 0x859   :  { %3846 = vrot.lane.b32.xlu0 %v3750_v0, %s6220_s20  ;;  %v3407_v29 = vpop.permute.xlu1 %3406 }
 0x85a   :  { %v8530_v53 = vpop.permute.xlu2 %4058 }
 0x85b   :  { %v3191_v62 = vpop.permute.xlu0 %3190 }
 0x85c   :  { %3278 = vst.msk [vmem:[#allocation3 + $0x148] sm:$0xff] %vm1668_vm10, %v3191_v62  ;;  %v4190_v62 = vld [vmem:[#allocation2 + $0x127] sm:$0xff] }
 0x85d   :  { %3494 = vst.msk [vmem:[#allocation3 + $0x148] sm:$0xff] %vm1885_vm11, %v3407_v29 }
 0x85e   :  { %v4413_v38 = vld [vmem:[#allocation3 + $0x138] sm:$0xff]  ;;  %3710 = vst.msk [vmem:[#allocation3 + $0x148] sm:$0xff] %vm2102_vm12, %v8467_v58 }
 0x85f   :  { %4680 = vmatmul.f32.gmra.mxu2 %v4413_v38  ;;  %4278 = vrot.lane.b32.xlu1 %v4182_v31, %s6222_s21  ;;  %v3104_v38 = vld [vmem:[#allocation2 + $0xea] sm:$0xff] }
 0x860   :  { %4064 = vrot.lane.b32.xlu2 %v3967_v36, %s6221_s1  ;;  %v4541_v36 = vpop.f32.mrf.mxu1 }
 0x861   :  { %4074 = vrot.lane.b32.xlu0 %v3972_v13, %s6221_s1  ;;  %v4657_v20 = vpop.f32.mrf.mxu2  ;;  %v4055_v11 = vpop.permute.xlu1 %4054 }
 0x862   :  { %v8540_v1 = vadd.f32 %v4657_v20, %v4533_v63  ;;  %v8543_v58 = vpop.permute.xlu2 %4286  ;;  %v4542_v20 = vadd.f32 %v8402_v49, %v4541_v36 }
 0x863   :  { %v3839_v7 = vpop.permute.xlu0 %3838 }
 0x864   :  { %10260 = vst [vmem:[#allocation15_spill] sm:$0xff] %v8540_v1 }
 0x865   :  { %3926 = vst.msk [vmem:[#allocation3 + $0x148] sm:$0xff] %vm2319_vm13, %v3839_v7  ;;  %v3326_v7 = vld [vmem:[#allocation2 + $0x11b] sm:$0xff] }
 0x866   :  { %4142 = vst.msk [vmem:[#allocation3 + $0x148] sm:$0xff] %vm2536_vm14, %v4055_v11  ;;  %v3321_v11 = vld [vmem:[#allocation2 + $0xf3] sm:$0xff] }
 0x867   :  { %4358 = vst.msk [vmem:[#allocation3 + $0x148] sm:$0xff] %vm2753_vm15, %v8479_v14  ;;  %3212 = vrot.lane.b32.xlu1 %v3109_v37, %s6224_s23 }
 0x868   :  { %4292 = vrot.lane.b32.xlu2 %v4189_v19, %s6222_s21 }
 0x869   :  { %3200 = vrot.lane.b32.xlu0 %v3103_v18, %s6224_s23  ;;  %v3409_v32 = vpop.permute.xlu1 %3408 }
 0x86a   :  { %v8555_v14 = vpop.permute.xlu2 %3412 }
 0x86b   :  { %v3193_v27 = vpop.permute.xlu0 %3192 }
 0x86c   :  { %3279 = vst.msk [vmem:[#allocation3 + $0x158] sm:$0xff] %vm1668_vm10, %v3193_v27  ;;  %v3543_v27 = vld [vmem:[#allocation2 + $0x12c] sm:$0xff] }
 0x86d   :  { %3495 = vst.msk [vmem:[#allocation3 + $0x158] sm:$0xff] %vm1885_vm11, %v3409_v32 }
 0x86e   :  { %v4415_v3 = vld [vmem:[#allocation3 + $0x148] sm:$0xff]  ;;  %3711 = vst.msk [vmem:[#allocation3 + $0x158] sm:$0xff] %vm2102_vm12, %v8488_v43  ;;  %v3542_v43 = vld [vmem:[#allocation2 + $0x124] sm:$0xff] }
 0x86f   :  { %4683 = vmatmul.f32.gmra.mxu2 %v4415_v3  ;;  %3632 = vrot.lane.b32.xlu1 %v3535_v2, %s6219_s0  ;;  %v3752_v3 = vld [vmem:[#allocation2 + $0xf5] sm:$0xff] }
 0x870   :  { %3418 = vrot.lane.b32.xlu2 %v3320_v4, %s6223_s22 }
 0x871   :  { %3428 = vrot.lane.b32.xlu0 %v3325_v52, %s6223_s22  ;;  %v4660_v17 = vpop.f32.mrf.mxu2  ;;  %v4057_v6 = vpop.permute.xlu1 %4056 }
 0x872   :  { %v8561_v59 = vadd.f32 %v4660_v17, %v4536_v61  ;;  %v8568_v42 = vpop.permute.xlu2 %3640  ;;  %v4544_v52 = vpop.f32.mrf.mxu1  ;;  %v3974_v17 = vld [vmem:[#allocation2 + $0x126] sm:$0xff] }
 0x873   :  { %v3841_v47 = vpop.permute.xlu0 %3840 }
 0x874   :  { %3927 = vst.msk [vmem:[#allocation3 + $0x158] sm:$0xff] %vm2319_vm13, %v3841_v47  ;;  %v4545_v47 = vadd.f32 %v8402_v49, %v4544_v52  ;;  %v4192_v52 = vld [vmem:[#allocation2 + $0x137] sm:$0xff] }
 0x875   :  { %4143 = vst.msk [vmem:[#allocation3 + $0x158] sm:$0xff] %vm2536_vm14, %v4057_v6  ;;  %v4184_v6 = vld [vmem:[#allocation2 + $0xf7] sm:$0xff] }
 0x876   :  { %4359 = vst.msk [vmem:[#allocation3 + $0x158] sm:$0xff] %vm2753_vm15, %v8500_v35 }
 0x877   :  { %3860 = vrot.lane.b32.xlu1 %v3757_v40, %s6220_s20 }
 0x878   :  { %3646 = vrot.lane.b32.xlu2 %v3542_v43, %s6219_s0  ;;  %v3969_v43 = vld [vmem:[#allocation2 + $0xfe] sm:$0xff] }
 0x879   :  { %3848 = vrot.lane.b32.xlu0 %v3751_v26, %s6220_s20  ;;  %v3207_v51 = vpop.permute.xlu1 %3206 }
 0x87a   :  { %3286 = vst.msk [vmem:[#allocation3 + $0x1c8] sm:$0xff] %vm1668_vm10, %v3207_v51  ;;  %v8582_v29 = vpop.permute.xlu2 %4060 }
 0x87b   :  { %v3195_v24 = vpop.permute.xlu0 %3194 }
 0x87c   :  { %3280 = vst.msk [vmem:[#allocation3 + $0x168] sm:$0xff] %vm1668_vm10, %v3195_v24 }
 0x87d   :  { %3496 = vst.msk [vmem:[#allocation3 + $0x168] sm:$0xff] %vm1885_vm11, %v8509_v33  ;;  %v4417_v35 = vld [vmem:[#allocation3 + $0x158] sm:$0xff] }
 0x87e   :  { %4686 = vmatmul.f32.gmra.mxu2 %v4417_v35  ;;  %v3105_v35 = vld [vmem:[#allocation2 + $0xf2] sm:$0xff] }
 0x87f   :  { %4280 = vrot.lane.b32.xlu1 %v4183_v12, %s6222_s21 }
 0x880   :  { %4066 = vrot.lane.b32.xlu2 %v3968_v60, %s6221_s1 }
 0x881   :  { %4076 = vrot.lane.b32.xlu0 %v3973_v56, %s6221_s1  ;;  %v4663_v28 = vpop.f32.mrf.mxu2  ;;  %v3627_v0 = vpop.permute.xlu1 %3626 }
 0x882   :  { %v8580_v57 = vadd.f32 %v4663_v28, %v4539_v21  ;;  %3712 = vst.msk [vmem:[#allocation3 + $0x168] sm:$0xff] %vm2102_vm12, %v3627_v0  ;;  %v8593_v13 = vpop.permute.xlu2 %4288  ;;  %v4547_v56 = vpop.f32.mrf.mxu1  ;;  %v3327_v28 = vld [vmem:[#allocation2 + $0x123] sm:$0xff] }
 0x883   :  { %v3423_v33 = vpop.permute.xlu0 %3422  ;;  %v3537_v0 = vld [vmem:[#allocation2 + $0xfc] sm:$0xff] }
 0x884   :  { %3502 = vst.msk [vmem:[#allocation3 + $0x1c8] sm:$0xff] %vm1885_vm11, %v3423_v33 }
 0x885   :  { %3718 = vst.msk [vmem:[#allocation3 + $0x1c8] sm:$0xff] %vm2102_vm12, %v8521_v16  ;;  %v3536_v16 = vld [vmem:[#allocation2 + $0xf4] sm:$0xff] }
 0x887   :  { %3214 = vrot.lane.b32.xlu1 %v3110_v50, %s6224_s23 }
 0x888   :  { %4294 = vrot.lane.b32.xlu2 %v4190_v62, %s6222_s21 }
 0x889   :  { %3202 = vrot.lane.b32.xlu0 %v3104_v38, %s6224_s23  ;;  %v3855_v31 = vpop.permute.xlu1 %3854 }
 0x88a   :  { %3934 = vst.msk [vmem:[#allocation3 + $0x1c8] sm:$0xff] %vm2319_vm13, %v3855_v31  ;;  %v8607_v30 = vpop.permute.xlu2 %3414 }
 0x88b   :  { %v3843_v63 = vpop.permute.xlu0 %3842 }
 0x88c   :  { %3928 = vst.msk [vmem:[#allocation3 + $0x168] sm:$0xff] %vm2319_vm13, %v3843_v63 }
 0x88d   :  { %4144 = vst.msk [vmem:[#allocation3 + $0x168] sm:$0xff] %vm2536_vm14, %v8530_v53  ;;  %v3758_v53 = vld [vmem:[#allocation2 + $0x125] sm:$0xff] }
 0x88f   :  { %3634 = vrot.lane.b32.xlu1 %v3536_v16, %s6219_s0  ;;  %v4191_v16 = vld [vmem:[#allocation2 + $0x12f] sm:$0xff] }
 0x890   :  { %3420 = vrot.lane.b32.xlu2 %v3321_v11, %s6223_s22 }
 0x891   :  { %3430 = vrot.lane.b32.xlu0 %v3326_v7, %s6223_s22  ;;  %v4666_v37 = vpop.f32.mrf.mxu2  ;;  %v4275_v18 = vpop.permute.xlu1 %4274 }
 0x892   :  { %v8601_v19 = vadd.f32 %v4666_v37, %v4542_v20  ;;  %4360 = vst.msk [vmem:[#allocation3 + $0x168] sm:$0xff] %vm2753_vm15, %v4275_v18  ;;  %v3643_v40 = vpop.permute.xlu2 %3642  ;;  %v4185_v37 = vld [vmem:[#allocation2 + $0xff] sm:$0xff] }
 0x893   :  { %v4071_v32 = vpop.permute.xlu0 %4070 }
 0x894   :  { %4150 = vst.msk [vmem:[#allocation3 + $0x1c8] sm:$0xff] %vm2536_vm14, %v4071_v32 }
 0x895   :  { %4366 = vst.msk [vmem:[#allocation3 + $0x1c8] sm:$0xff] %vm2753_vm15, %v8543_v58 }
 0x897   :  { %3862 = vrot.lane.b32.xlu1 %v3758_v53, %s6220_s20  ;;  %v3328_v53 = vld [vmem:[#allocation2 + $0x12b] sm:$0xff] }
 0x898   :  { %3648 = vrot.lane.b32.xlu2 %v3543_v27, %s6219_s0  ;;  %v3112_v27 = vld [vmem:[#allocation2 + $0x12a] sm:$0xff] }
 0x899   :  { %3850 = vrot.lane.b32.xlu0 %v3752_v3, %s6220_s20  ;;  %v3209_v2 = vpop.permute.xlu1 %3208  ;;  %v4419_v61 = vld [vmem:[#allocation3 + $0x168] sm:$0xff] }
 0x89a   :  { %3287 = vst.msk [vmem:[#allocation3 + $0x1d8] sm:$0xff] %vm1668_vm10, %v3209_v2  ;;  %4689 = vmatmul.f32.gmra.mxu2 %v4419_v61  ;;  %v4063_v21 = vpop.permute.xlu2 %4062  ;;  %v3544_v3 = vld [vmem:[#allocation2 + $0x134] sm:$0xff] }
 0x89b   :  { %v3197_v4 = vpop.permute.xlu0 %3196 }
 0x89c   :  { %3281 = vst.msk [vmem:[#allocation3 + $0x178] sm:$0xff] %vm1668_vm10, %v3197_v4  ;;  %v4431_v58 = vld [vmem:[#allocation3 + $0x1c8] sm:$0xff] }
 0x89d   :  { %3497 = vst.msk [vmem:[#allocation3 + $0x178] sm:$0xff] %vm1885_vm11, %v8555_v14  ;;  %4707 = vmatmul.f32.vlgmr.msra.gmra.mxu3 %v4431_v58  ;;  %v3976_v4 = vld [vmem:[#allocation2 + $0x136] sm:$0xff] }
 0x89e   :  { %v3760_v58 = vld [vmem:[#allocation2 + $0x135] sm:$0xff] }
 0x89f   :  { %4282 = vrot.lane.b32.xlu1 %v4184_v6, %s6222_s21 }
 0x8a0   :  { %4068 = vrot.lane.b32.xlu2 %v3969_v43, %s6221_s1  ;;  %v3329_v43 = vld [vmem:[#allocation2 + $0x133] sm:$0xff] }
 0x8a1   :  { %4078 = vrot.lane.b32.xlu0 %v3974_v17, %s6221_s1  ;;  %v4669_v26 = vpop.f32.mrf.mxu2  ;;  %v3629_v24 = vpop.permute.xlu1 %3628 }
 0x8a2   :  { %v8620_v51 = vadd.f32 %v4669_v26, %v4545_v47  ;;  %3713 = vst.msk [vmem:[#allocation3 + $0x178] sm:$0xff] %vm2102_vm12, %v3629_v24  ;;  %v4291_v31 = vpop.permute.xlu2 %4290  ;;  %v3545_v26 = vld [vmem:[#allocation2 + $0x13c] sm:$0xff] }
 0x8a3   :  { %v3425_v14 = vpop.permute.xlu0 %3424 }
 0x8a4   :  { %3503 = vst.msk [vmem:[#allocation3 + $0x1d8] sm:$0xff] %vm1885_vm11, %v3425_v14 }
 0x8a5   :  { %3719 = vst.msk [vmem:[#allocation3 + $0x1d8] sm:$0xff] %vm2102_vm12, %v8568_v42  ;;  %v4548_v42 = vadd.f32 %v8402_v49, %v4547_v56  ;;  %v3753_v49 = vld [vmem:[#allocation2 + $0xfd] sm:$0xff] }
 0x8a6   :  { %v4193_v56 = vld [vmem:[#allocation2 + $0x13f] sm:$0xff] }
 0x8a7   :  { %3216 = vrot.lane.b32.xlu1 %v3111_v5, %s6224_s23 }
 0x8a8   :  { %4296 = vrot.lane.b32.xlu2 %v4191_v16, %s6222_s21 }
 0x8a9   :  { %3204 = vrot.lane.b32.xlu0 %v3105_v35, %s6224_s23  ;;  %v3857_v12 = vpop.permute.xlu1 %3856 }
 0x8aa   :  { %3935 = vst.msk [vmem:[#allocation3 + $0x1d8] sm:$0xff] %vm2319_vm13, %v3857_v12  ;;  %v3417_v7 = vpop.permute.xlu2 %3416 }
 0x8ab   :  { %v3845_v60 = vpop.permute.xlu0 %3844 }
 0x8ac   :  { %3929 = vst.msk [vmem:[#allocation3 + $0x178] sm:$0xff] %vm2319_vm13, %v3845_v60  ;;  %v3761_v60 = vld [vmem:[#allocation2 + $0x13d] sm:$0xff] }
 0x8ad   :  { %4145 = vst.msk [vmem:[#allocation3 + $0x178] sm:$0xff] %vm2536_vm14, %v8582_v29  ;;  %v3759_v29 = vld [vmem:[#allocation2 + $0x12d] sm:$0xff] }
 0x8af   :  { %3636 = vrot.lane.b32.xlu1 %v3537_v0, %s6219_s0 }
 0x8b0   :  { %3650 = vrot.lane.b32.xlu2 %v3544_v3, %s6219_s0 }
 0x8b1   :  { %3432 = vrot.lane.b32.xlu0 %v3327_v28, %s6223_s22  ;;  %v4672_v33 = vpop.f32.mrf.mxu2  ;;  %v4277_v50 = vpop.permute.xlu1 %4276 }
 0x8b2   :  { %v8635_v62 = vadd.f32 %v4672_v33, %v4548_v42  ;;  %4361 = vst.msk [vmem:[#allocation3 + $0x178] sm:$0xff] %vm2753_vm15, %v4277_v50  ;;  %v4732_v42 = vlaneseq }
 0x8b3   :  { %v4073_v38 = vpop.permute.xlu0 %4072 }
 0x8b4   :  { %4151 = vst.msk [vmem:[#allocation3 + $0x1d8] sm:$0xff] %vm2536_vm14, %v4073_v38  ;;  %v8677_v50 = vshrl.u32 %v4732_v42, 7 }
 0x8b5   :  { %4367 = vst.msk [vmem:[#allocation3 + $0x1d8] sm:$0xff] %vm2753_vm15, %v8593_v13  ;;  %v3975_v13 = vld [vmem:[#allocation2 + $0x12e] sm:$0xff] }
 0x8b7   :  { %3864 = vrot.lane.b32.xlu1 %v3759_v29, %s6220_s20  ;;  %v4734_v29 = vadd.s32 8, %v8677_v50 }
 0x8b8   :  { %4298 = vrot.lane.b32.xlu2 %v4192_v52, %s6222_s21  ;;  %v4736_v52 = vadd.s32 24, %v8677_v50 }
 0x8b9   :  { %3852 = vrot.lane.b32.xlu0 %v3753_v49, %s6220_s20  ;;  %v3211_v63 = vpop.permute.xlu1 %3210  ;;  %v4421_v36 = vld [vmem:[#allocation3 + $0x178] sm:$0xff]  ;;  %v4769_v49 = vcvt.s32.f32 %v8677_v50 }
 0x8ba   :  { %3288 = vst.msk [vmem:[#allocation3 + $0x1e8] sm:$0xff] %vm1668_vm10, %v3211_v63  ;;  %4692 = vmatmul.f32.gmra.mxu2 %v4421_v36  ;;  %v4770_v63 = vcvt.s32.f32 %v4734_v29 }
 0x8bb   :  { %v3199_v20 = vpop.permute.xlu0 %3198  ;;  %v4805_v16 = vadd.f32 0.5, %v4769_v49 }
 0x8bc   :  { %3282 = vst.msk [vmem:[#allocation3 + $0x188] sm:$0xff] %vm1668_vm10, %v3199_v20  ;;  %v4433_v11 = vld [vmem:[#allocation3 + $0x1d8] sm:$0xff] }
 0x8bd   :  { %3498 = vst.msk [vmem:[#allocation3 + $0x188] sm:$0xff] %vm1885_vm11, %v8607_v30  ;;  %4710 = vmatmul.f32.gmra.mxu3 %v4433_v11  ;;  %v3645_v30 = vpop.permute.xlu2 %3644 }
 0x8bf   :  { %4284 = vrot.lane.b32.xlu1 %v4185_v37, %s6222_s21  ;;  %v4841_v37 = vmul.f32 0.0069444445, %v4805_v16 }
 0x8c0   :  { %3652 = vrot.lane.b32.xlu2 %v3545_v26, %s6219_s0 }
 0x8c1   :  { %4080 = vrot.lane.b32.xlu0 %v3975_v13, %s6221_s1  ;;  %v3631_v18 = vpop.permute.xlu1 %3630  ;;  %v4806_v13 = vadd.f32 0.5, %v4770_v63 }
 0x8c2   :  { %3714 = vst.msk [vmem:[#allocation3 + $0x188] sm:$0xff] %vm2102_vm12, %v3631_v18 }
 0x8c3   :  { %v3427_v32 = vpop.permute.xlu0 %3426  ;;  %v4842_v18 = vmul.f32 0.0069444445, %v4806_v13 }
 0x8c4   :  { %3504 = vst.msk [vmem:[#allocation3 + $0x1e8] sm:$0xff] %vm1885_vm11, %v3427_v32 }
 0x8c5   :  { %3720 = vst.msk [vmem:[#allocation3 + $0x1e8] sm:$0xff] %vm2102_vm12, %v3643_v40  ;;  %v4065_v6 = vpop.permute.xlu2 %4064  ;;  %v3113_v40 = vld [vmem:[#allocation2 + $0x132] sm:$0xff] }
 0x8c7   :  { %3434 = vrot.lane.b32.xlu1 %v3328_v53, %s6223_s22  ;;  %v4877_v53 = vfloor.f32 %v4841_v37 }
 0x8c8   :  { %4300 = vrot.lane.b32.xlu2 %v4193_v56, %s6222_s21 }
 0x8c9   :  { %3218 = vrot.lane.b32.xlu0 %v3112_v27, %s6224_s23  ;;  %v3859_v2 = vpop.permute.xlu1 %3858 }
 0x8ca   :  { %3936 = vst.msk [vmem:[#allocation3 + $0x1e8] sm:$0xff] %vm2319_vm13, %v3859_v2 }
 0x8cb   :  { %v3847_v61 = vpop.permute.xlu0 %3846 }
 0x8cc   :  { %3930 = vst.msk [vmem:[#allocation3 + $0x188] sm:$0xff] %vm2319_vm13, %v3847_v61  ;;  %v4878_v61 = vfloor.f32 %v4842_v18 }
 0x8cd   :  { %4146 = vst.msk [vmem:[#allocation3 + $0x188] sm:$0xff] %vm2536_vm14, %v4063_v21  ;;  %v4293_v12 = vpop.permute.xlu2 %4292  ;;  %v3977_v21 = vld [vmem:[#allocation2 + $0x13e] sm:$0xff] }
 0x8cf   :  { %4082 = vrot.lane.b32.xlu1 %v3976_v4, %s6221_s1 }
 0x8d1   :  { %3866 = vrot.lane.b32.xlu0 %v3760_v58, %s6220_s20  ;;  %v4279_v17 = vpop.permute.xlu1 %4278 }
 0x8d2   :  { %4362 = vst.msk [vmem:[#allocation3 + $0x188] sm:$0xff] %vm2753_vm15, %v4279_v17  ;;  %v4913_v17 = vmul.f32 144.0, %v4877_v53 }
 0x8d3   :  { %v4075_v47 = vpop.permute.xlu0 %4074 }
 0x8d4   :  { %4152 = vst.msk [vmem:[#allocation3 + $0x1e8] sm:$0xff] %vm2536_vm14, %v4075_v47  ;;  %v4949_v26 = vsub.f32 %v4769_v49, %v4913_v17  ;;  %v8703_v49 = vadd.s32 48, %v8677_v50 }
 0x8d5   :  { %4368 = vst.msk [vmem:[#allocation3 + $0x1e8] sm:$0xff] %vm2753_vm15, %v4291_v31  ;;  %v3419_v33 = vpop.permute.xlu2 %3418 }
 0x8d6   :  { %v4985_v56 = vadd.f32 0.5, %v4949_v26  ;;  %v4775_v37 = vcvt.s32.f32 %v8703_v49 }
 0x8d7   :  { %3436 = vrot.lane.b32.xlu1 %v3329_v43, %s6223_s22  ;;  %v4737_v43 = vadd.s32 32, %v8677_v50 }
 0x8d9   :  { %3220 = vrot.lane.b32.xlu0 %v3113_v40, %s6224_s23  ;;  %v3213_v24 = vpop.permute.xlu1 %3212  ;;  %v4423_v14 = vld [vmem:[#allocation3 + $0x188] sm:$0xff]  ;;  %v4772_v40 = vcvt.s32.f32 %v4736_v52  ;;  %v8718_v52 = vadd.s32 56, %v8677_v50 }
 0x8da   :  { %3289 = vst.msk [vmem:[#allocation3 + $0x1f8] sm:$0xff] %vm1668_vm10, %v3213_v24  ;;  %4695 = vmatmul.f32.gmra.mxu2 %v4423_v14 }
 0x8db   :  { %v3201_v5 = vpop.permute.xlu0 %3200 }
 0x8dc   :  { %3283 = vst.msk [vmem:[#allocation3 + $0x198] sm:$0xff] %vm1668_vm10, %v3201_v5  ;;  %v4435_v35 = vld [vmem:[#allocation3 + $0x1e8] sm:$0xff] }
 0x8dd   :  { %3499 = vst.msk [vmem:[#allocation3 + $0x198] sm:$0xff] %vm1885_vm11, %v3417_v7  ;;  %4713 = vmatmul.f32.gmra.mxu3 %v4435_v35  ;;  %v3647_v36 = vpop.permute.xlu2 %3646  ;;  %v4735_v7 = vadd.s32 16, %v8677_v50 }
 0x8df   :  { %4084 = vrot.lane.b32.xlu1 %v3977_v21, %s6221_s1  ;;  %v4771_v32 = vcvt.s32.f32 %v4735_v7  ;;  %v4808_v21 = vadd.f32 0.5, %v4772_v40 }
 0x8e1   :  { %3868 = vrot.lane.b32.xlu0 %v3761_v60, %s6220_s20  ;;  %v3633_v28 = vpop.permute.xlu1 %3632  ;;  %v4807_v4 = vadd.f32 0.5, %v4771_v32 }
 0x8e2   :  { %3715 = vst.msk [vmem:[#allocation3 + $0x198] sm:$0xff] %vm2102_vm12, %v3633_v28 }
 0x8e3   :  { %v3429_v0 = vpop.permute.xlu0 %3428  ;;  %v4843_v47 = vmul.f32 0.0069444445, %v4807_v4 }
 0x8e4   :  { %3505 = vst.msk [vmem:[#allocation3 + $0x1f8] sm:$0xff] %vm1885_vm11, %v3429_v0 }
 0x8e5   :  { %3721 = vst.msk [vmem:[#allocation3 + $0x1f8] sm:$0xff] %vm2102_vm12, %v3645_v30  ;;  %v4067_v3 = vpop.permute.xlu2 %4066  ;;  %v4879_v35 = vfloor.f32 %v4843_v47 }
 0x8e7   :  { %v4915_v0 = vmul.f32 144.0, %v4879_v35 }
 0x8e9   :  { %v3861_v38 = vpop.permute.xlu1 %3860 }
 0x8ea   :  { %3937 = vst.msk [vmem:[#allocation3 + $0x1f8] sm:$0xff] %vm2319_vm13, %v3861_v38  ;;  %v8700_v38 = vadd.s32 40, %v8677_v50 }
 0x8eb   :  { %v3849_v31 = vpop.permute.xlu0 %3848 }
 0x8ec   :  { %3931 = vst.msk [vmem:[#allocation3 + $0x198] sm:$0xff] %vm2319_vm13, %v3849_v31  ;;  %v5021_v31 = vmul.f32 0.083333336, %v4985_v56  ;;  %v4774_v13 = vcvt.s32.f32 %v8700_v38  ;;  %v4776_v56 = vcvt.s32.f32 %v8718_v52 }
 0x8ed   :  { %4147 = vst.msk [vmem:[#allocation3 + $0x198] sm:$0xff] %vm2536_vm14, %v4065_v6  ;;  %v4914_v6 = vmul.f32 144.0, %v4878_v61  ;;  %v4295_v60 = vpop.permute.xlu2 %4294 }
 0x8ee   :  { %v5057_v7 = vfloor.f32 %v5021_v31 }
 0x8ef   :  { %v8694_v5 = vsub.f32 %v4770_v63, %v4914_v6 }
 0x8f0   :  { %v5093_v61 = vmul.f32 12.0, %v5057_v7  ;;  %vm8737_vm0 = vcmp.lt.f32.partialorder %v5057_v7, 8.5 }
 0x8f1   :  { %v4281_v20 = vpop.permute.xlu1 %4280  ;;  %v4986_v28 = vadd.f32 0.5, %v8694_v5 }
 0x8f2   :  { %4363 = vst.msk [vmem:[#allocation3 + $0x198] sm:$0xff] %vm2753_vm15, %v4281_v20  ;;  %v8706_v20 = vsub.f32 %v4771_v32, %v4915_v0  ;;  %v4810_v32 = vadd.f32 0.5, %v4774_v13  ;;  %v5129_v35 = vsub.f32 %v4949_v26, %v5093_v61 }
 0x8f3   :  { %v4077_v11 = vpop.permute.xlu0 %4076  ;;  %v5022_v16 = vmul.f32 0.083333336, %v4986_v28 }
 0x8f4   :  { %4153 = vst.msk [vmem:[#allocation3 + $0x1f8] sm:$0xff] %vm2536_vm14, %v4077_v11  ;;  %vm8741_vm1 = vcmp.lt.f32.partialorder %v5129_v35, 8.5 }
 0x8f5   :  { %4369 = vst.msk [vmem:[#allocation3 + $0x1f8] sm:$0xff] %vm2753_vm15, %v4293_v12  ;;  %v4773_v12 = vcvt.s32.f32 %v4737_v43  ;;  %v3421_v18 = vpop.permute.xlu2 %3420  ;;  %v5058_v53 = vfloor.f32 %v5022_v16  ;;  %v8724_v43 = vadd.s32 64, %v8677_v50  ;;  %vm5237_vm6 = vmand %vm8737_vm0, %vm8741_vm1 }
 0x8f7   :  { %v4809_v42 = vadd.f32 0.5, %v4773_v12  ;;  %v5094_v17 = vmul.f32 12.0, %v5058_v53  ;;  %vm8745_vm4 = vcmp.lt.f32.partialorder %v5058_v53, 8.5 }
 0x8f9   :  { %v3215_v27 = vpop.permute.xlu1 %3214  ;;  %v4425_v30 = vld [vmem:[#allocation3 + $0x198] sm:$0xff]  ;;  %v5130_v28 = vsub.f32 %v8694_v5, %v5094_v17 }
 0x8fa   :  { %3290 = vst.msk [vmem:[#allocation3 + $0x208] sm:$0xff] %vm1668_vm10, %v3215_v27  ;;  %4698 = vmatmul.f32.gmra.mxu2 %v4425_v30  ;;  %v4987_v27 = vadd.f32 0.5, %v8706_v20 }
 0x8fb   :  { %v3203_v2 = vpop.permute.xlu0 %3202  ;;  %vm8755_vm5 = vcmp.lt.f32.partialorder %v5130_v28, 8.5 }
 0x8fc   :  { %3284 = vst.msk [vmem:[#allocation3 + $0x1a8] sm:$0xff] %vm1668_vm10, %v3203_v2  ;;  %v4437_v58 = vld [vmem:[#allocation3 + $0x1f8] sm:$0xff]  ;;  %v8721_v6 = vmul.f32 0.083333336, %v4987_v27  ;;  %vm5238_vm9 = vmand %vm8745_vm4, %vm8755_vm5  ;;  %v8823_v27 = vadd.s32 88, %v8677_v50  ;;  %vm5345_vm4 = vcmask 64512  }
 0x8fd   :  { %3500 = vst.msk [vmem:[#allocation3 + $0x1a8] sm:$0xff] %vm1885_vm11, %v3419_v33  ;;  %4716 = vmatmul.f32.gmra.mxu3 %v4437_v58  ;;  %v4844_v33 = vmul.f32 0.0069444445, %v4808_v21  ;;  %v4811_v58 = vadd.f32 0.5, %v4775_v37 }
 0x8fe   :  { %v5059_v0 = vfloor.f32 %v8721_v6  ;;  %v8778_v6 = vld [vmem:[%s10223_s3] ss:$0 sm:$0xff] }
 0x8ff   :  { %v4880_v11 = vfloor.f32 %v4844_v33  ;;  %v4847_v21 = vmul.f32 0.0069444445, %v4811_v58  ;;  %v4777_v33 = vcvt.s32.f32 %v8724_v43 }
 0x900   :  { %vm8810_vm0 = vcmp.lt.f32.partialorder %v5059_v0, 8.5 }
 0x901   :  { %v3635_v24 = vpop.permute.xlu1 %3634  ;;  %v4916_v2 = vmul.f32 144.0, %v4880_v11  ;;  %v8752_v11 = vadd.s32 72, %v8677_v50 }
 0x902   :  { %3716 = vst.msk [vmem:[#allocation3 + $0x1a8] sm:$0xff] %vm2102_vm12, %v3635_v24 }
 0x903   :  { %v3431_v14 = vpop.permute.xlu0 %3430  ;;  %v8727_v24 = vsub.f32 %v4772_v40, %v4916_v2  ;;  %v3649_v40 = vpop.permute.xlu2 %3648  ;;  %v4813_v2 = vadd.f32 0.5, %v4777_v33  ;;  %v4778_v17 = vcvt.s32.f32 %v8752_v11 }
 0x904   :  { %3506 = vst.msk [vmem:[#allocation3 + $0x208] sm:$0xff] %vm1885_vm11, %v3431_v14  ;;  %v4846_v14 = vmul.f32 0.0069444445, %v4810_v32 }
 0x905   :  { %3722 = vst.msk [vmem:[#allocation3 + $0x208] sm:$0xff] %vm2102_vm12, %v3647_v36  ;;  %v4845_v36 = vmul.f32 0.0069444445, %v4809_v42  ;;  %v4988_v31 = vadd.f32 0.5, %v8727_v24  ;;  %v4849_v35 = vmul.f32 0.0069444445, %v4813_v2 }
 0x907   :  { %v4881_v30 = vfloor.f32 %v4845_v36  ;;  %v4812_v36 = vadd.f32 0.5, %v4776_v56  ;;  %v8763_v61 = vmul.f32 0.083333336, %v4988_v31  ;;  %v4885_v49 = vfloor.f32 %v4849_v35 }
 0x909   :  { %v3863_v29 = vpop.permute.xlu1 %3862  ;;  %v4917_v47 = vmul.f32 144.0, %v4881_v30  ;;  %v5095_v30 = vmul.f32 12.0, %v5059_v0  ;;  %v5060_v28 = vfloor.f32 %v8763_v61  ;;  %v4506_v0 = vadd.f32 %v8778_v6, %v8167_v54 }
 0x90a   :  { %3938 = vst.msk [vmem:[#allocation3 + $0x208] sm:$0xff] %vm2319_vm13, %v3863_v29  ;;  %v4882_v29 = vfloor.f32 %v4846_v14  ;;  %v8838_v54 = vadd.s32 96, %v8677_v50 }
 0x90b   :  { %v3851_v63 = vpop.permute.xlu0 %3850  ;;  %v8733_v42 = vsub.f32 %v4773_v12, %v4917_v47  ;;  %v4883_v12 = vfloor.f32 %v4847_v21  ;;  %v5131_v47 = vsub.f32 %v8706_v20, %v5095_v30  ;;  %v4503_v21 = vadd.f32 %v8778_v6, %v8155_v25 }
 0x90c   :  { %3932 = vst.msk [vmem:[#allocation3 + $0x1a8] sm:$0xff] %vm2319_vm13, %v3851_v63  ;;  %v5274_v20 = vsel %vm5238_vm9, 1.0, %v10231_v46 }
 0x90d   :  { %4148 = vst.msk [vmem:[#allocation3 + $0x1a8] sm:$0xff] %vm2536_vm14, %v4067_v3  ;;  %v4989_v53 = vadd.f32 0.5, %v8733_v42  ;;  %v4919_v58 = vmul.f32 144.0, %v4883_v12  ;;  %vm8814_vm1 = vcmp.lt.f32.partialorder %v5131_v47, 8.5 }
 0x90e   :  { %vm5239_vm5 = vmand %vm8810_vm0, %vm8814_vm1 }
 0x90f   :  { %v8783_v14 = vmul.f32 0.083333336, %v4989_v53  ;;  %v8805_v25 = vsub.f32 %v4775_v37, %v4919_v58  ;;  %v5096_v37 = vmul.f32 12.0, %v5060_v28  ;;  %v4921_v58 = vmul.f32 144.0, %v4885_v49 }
 0x911   :  { %v4283_v4 = vpop.permute.xlu1 %4282  ;;  %v4991_v2 = vadd.f32 0.5, %v8805_v25  ;;  %v8867_v49 = vsub.f32 %v4777_v33, %v4921_v58 }
 0x912   :  { %4364 = vst.msk [vmem:[#allocation3 + $0x1a8] sm:$0xff] %vm2753_vm15, %v4283_v4  ;;  %v4918_v4 = vmul.f32 144.0, %v4882_v29  ;;  %v8793_v29 = vadd.s32 80, %v8677_v50 }
 0x913   :  { %v4079_v3 = vpop.permute.xlu0 %4078 }
 0x914   :  { %4154 = vst.msk [vmem:[#allocation3 + $0x208] sm:$0xff] %vm2536_vm14, %v4079_v3  ;;  %v4848_v3 = vmul.f32 0.0069444445, %v4812_v36  ;;  %v8790_v31 = vsub.f32 %v4774_v13, %v4918_v4  ;;  %v4814_v13 = vadd.f32 0.5, %v4778_v17 }
 0x915   :  { %4370 = vst.msk [vmem:[#allocation3 + $0x208] sm:$0xff] %vm2753_vm15, %v4295_v60 }
 0x916   :  { %v4884_v38 = vfloor.f32 %v4848_v3  ;;  %v4990_v36 = vadd.f32 0.5, %v8790_v31  ;;  %v4850_v61 = vmul.f32 0.0069444445, %v4814_v13  ;;  %v5132_v3 = vsub.f32 %v8727_v24, %v5096_v37 }
 0x917   :  { %v8853_v24 = vmul.f32 0.083333336, %v4991_v2  ;;  %v4781_v37 = vcvt.s32.f32 %v8838_v54 }
 0x918   :  { %v4886_v13 = vfloor.f32 %v4850_v61  ;;  %vm8871_vm9 = vcmp.lt.f32.partialorder %v5132_v3, 8.5 }
 0x919   :  { %v3217_v60 = vpop.permute.xlu1 %3216  ;;  %v4427_v5 = vld [vmem:[#allocation3 + $0x1a8] sm:$0xff]  ;;  %v5063_v2 = vfloor.f32 %v8853_v24  ;;  %v4817_v58 = vadd.f32 0.5, %v4781_v37 }
 0x91a   :  { %3291 = vst.msk [vmem:[#allocation3 + $0x218] sm:$0xff] %vm1668_vm10, %v3217_v60  ;;  %4701 = vmatmul.f32.gmra.mxu2 %v4427_v5  ;;  %v8801_v60 = vadd.f32 %v8369_v55, %v4503_v21  ;;  %v4069_v5 = vpop.permute.xlu2 %4068  ;;  %v5061_v55 = vfloor.f32 %v8783_v14  ;;  %v4780_v14 = vcvt.s32.f32 %v8823_v27  ;;  %v4922_v61 = vmul.f32 144.0, %v4886_v13 }
 0x91b   :  { %v3205_v7 = vpop.permute.xlu0 %3204 }
 0x91c   :  { %3285 = vst.msk [vmem:[#allocation3 + $0x1b8] sm:$0xff] %vm1668_vm10, %v3205_v7  ;;  %v4439_v32 = vld [vmem:[#allocation3 + $0x208] sm:$0xff]  ;;  %v4779_v7 = vcvt.s32.f32 %v8793_v29  ;;  %v5310_v53 = vmul.f32 %v5274_v20, %v8801_v60  ;;  %v5097_v4 = vmul.f32 12.0, %v5061_v55  ;;  %vm8892_vm1 = vcmp.lt.f32.partialorder %v5061_v55, 8.5 }
 0x91d   :  { %3501 = vst.msk [vmem:[#allocation3 + $0x1b8] sm:$0xff] %vm1885_vm11, %v3421_v18  ;;  %4719 = vmatmul.f32.gmra.mxu3 %v4439_v32  ;;  %v4500_v18 = vadd.f32 %v8778_v6, %v8134_v39  ;;  %v5273_v39 = vsel %vm5237_vm6, 1.0, %v10231_v46  ;;  %v4920_v32 = vmul.f32 144.0, %v4884_v38  ;;  %vm8860_vm6 = vcmp.lt.f32.partialorder %v5060_v28, 8.5 }
 0x91e   :  { %v4815_v47 = vadd.f32 0.5, %v4779_v7  ;;  %vm5240_vm0 = vmand %vm8860_vm6, %vm8871_vm9  ;;  %v9098_v29 = vadd.s32 144, %v8677_v50 }
 0x91f   :  { %v8796_v63 = vadd.f32 %v8358_v34, %v4500_v18  ;;  %v8841_v18 = vmul.f32 0.083333336, %v4990_v36  ;;  %v8857_v38 = vsub.f32 %v4776_v56, %v4920_v32  ;;  %v4816_v36 = vadd.f32 0.5, %v4780_v14 }
 0x920   :  { %v4851_v28 = vmul.f32 0.0069444445, %v4815_v47  ;;  %v5276_v13 = vsel %vm5240_vm0, 1.0, %v10231_v46 }
 0x921   :  { %v3637_v26 = vpop.permute.xlu1 %3636  ;;  %v5309_v30 = vmul.f32 %v5273_v39, %v8796_v63  ;;  %v5275_v39 = vsel %vm5239_vm5, 1.0, %v10231_v46  ;;  %v5062_v56 = vfloor.f32 %v8841_v18  ;;  %v4992_v32 = vadd.f32 0.5, %v8857_v38 }
 0x922   :  { %3717 = vst.msk [vmem:[#allocation3 + $0x1b8] sm:$0xff] %vm2102_vm12, %v3637_v26  ;;  %v5425_v26 = vmul.f32 %v5310_v53, %v8801_v60  ;;  %v4297_v16 = vpop.permute.xlu2 %4296  ;;  %v4887_v18 = vfloor.f32 %v4851_v28  ;;  %v4852_v47 = vmul.f32 0.0069444445, %v4816_v36  ;;  %v8920_v28 = vpop.f32.mrf.mxu3 }
 0x923   :  { %v3433_v34 = vpop.permute.xlu0 %3432  ;;  %v5346_v35 = vsel %vm5345_vm4, %v5309_v30, 0.0  ;;  %v5424_v21 = vmul.f32 %v5309_v30, %v8796_v63  ;;  %v5098_v3 = vmul.f32 12.0, %v5062_v56  ;;  %v8913_v12 = vmul.f32 0.083333336, %v4992_v32 }
 0x924   :  { %3507 = vst.msk [vmem:[#allocation3 + $0x218] sm:$0xff] %vm1885_vm11, %v3433_v34  ;;  %v5461_v30 = vsel %vm5345_vm4, %v5425_v26, 0.0  ;;  %v4888_v32 = vfloor.f32 %v4852_v47  ;;  %vm8940_vm9 = vcmp.lt.f32.partialorder %v5062_v56, 8.5  ;;  %v8946_v47 = vadd.s32 120, %v8677_v50 }
 0x925   :  { %3723 = vst.msk [vmem:[#allocation3 + $0x218] sm:$0xff] %vm2102_vm12, %v3649_v40  ;;  %v4509_v40 = vadd.f32 %v8778_v6, %v8180_v15  ;;  %v8849_v15 = vadd.f32 %v8380_v45, %v4506_v0  ;;  %v5133_v45 = vsub.f32 %v8733_v42, %v5097_v4  ;;  %v5460_v43 = vsel %vm5345_vm4, %v5424_v21, 0.0 }
 0x926   :  { %v5347_v42 = vsel %vm5345_vm4, %v5310_v53, 0.0  ;;  %v8883_v0 = vadd.s32 104, %v8677_v50  ;;  %v4993_v4 = vadd.f32 0.5, %v8867_v49  ;;  %v8904_v21 = vadd.s32 112, %v8677_v50 }
 0x927   :  { %v5311_v33 = vmul.f32 %v5275_v39, %v8849_v15  ;;  %vm8896_vm5 = vcmp.lt.f32.partialorder %v5133_v45, 8.5  ;;  %v8917_v45 = vsub.f32 %v4778_v17, %v4922_v61  ;;  %v5348_v36 = vadd.f32 %v5347_v42, %v5346_v35 }
 0x928   :  { %v10228_v26 = vcvt.s32.f32 %v8883_v0  ;;  %vm5241_vm6 = vmand %vm8892_vm1, %vm8896_vm5  ;;  %v5134_v11 = vsub.f32 %v8790_v31, %v5098_v3  ;;  %v4923_v17 = vmul.f32 144.0, %v4887_v18  ;;  %v10227_v61 = vcvt.s32.f32 %v8904_v21 }
 0x929   :  { %v3865_v20 = vpop.permute.xlu1 %3864  ;;  %v5349_v55 = vsel %vm5345_vm4, %v5311_v33, 0.0  ;;  %v5426_v39 = vmul.f32 %v5311_v33, %v8849_v15  ;;  %v4853_v33 = vmul.f32 0.0069444445, %v4817_v58  ;;  %v5277_v53 = vsel %vm5241_vm6, 1.0, %v10231_v46 }
 0x92a   :  { %3939 = vst.msk [vmem:[#allocation3 + $0x218] sm:$0xff] %vm2319_vm13, %v3865_v20  ;;  %v8909_v20 = vadd.f32 %v8391_v41, %v4509_v40  ;;  %v5462_v41 = vadd.f32 %v5461_v30, %v5460_v43  ;;  %v8926_v40 = vmul.f32 0.083333336, %v4993_v4  ;;  %v3651_v35 = vpop.permute.xlu2 %3650  ;;  %v5350_v43 = vadd.f32 %v5349_v55, %v5348_v36 }
 0x92b   :  { %v3853_v34 = vpop.permute.xlu0 %3852  ;;  %v5463_v42 = vsel %vm5345_vm4, %v5426_v39, 0.0  ;;  %v5064_v31 = vfloor.f32 %v8913_v12  ;;  %v4994_v58 = vadd.f32 0.5, %v8917_v45  ;;  %v4889_v18 = vfloor.f32 %v4853_v33 }
 0x92c   :  { %3933 = vst.msk [vmem:[#allocation3 + $0x1b8] sm:$0xff] %vm2319_vm13, %v3853_v34  ;;  %v5099_v34 = vmul.f32 12.0, %v5063_v2  ;;  %v5312_v30 = vmul.f32 %v5276_v13, %v8909_v20  ;;  %vm8948_vm0 = vcmp.lt.f32.partialorder %v5134_v11, 8.5  ;;  %v4924_v39 = vmul.f32 144.0, %v4888_v32 }
 0x92d   :  { %4149 = vst.msk [vmem:[#allocation3 + $0x1b8] sm:$0xff] %vm2536_vm14, %v4069_v5  ;;  %v4818_v5 = vadd.f32 0.5, %v10228_v26  ;;  %v4819_v56 = vadd.f32 0.5, %v10227_v61  ;;  %vm8961_vm1 = vcmp.lt.f32.partialorder %v5063_v2, 8.5  ;;  %v8969_v33 = vmul.f32 0.083333336, %v4994_v58  ;;  %vm5242_vm6 = vmand %vm8940_vm9, %vm8948_vm0 }
 0x92e   :  { %v5135_v4 = vsub.f32 %v8805_v25, %v5099_v34  ;;  %v8954_v25 = vsub.f32 %v4779_v7, %v4923_v17  ;;  %v5427_v13 = vmul.f32 %v5312_v30, %v8909_v20  ;;  %v5313_v34 = vmul.f32 %v5277_v53, %v8409_v8 }
 0x92f   :  { %v4854_v12 = vmul.f32 0.0069444445, %v4818_v5  ;;  %v5100_v7 = vmul.f32 12.0, %v5064_v31  ;;  %v4925_v32 = vmul.f32 144.0, %v4889_v18  ;;  %v4855_v58 = vmul.f32 0.0069444445, %v4819_v56 }
 0x930   :  { %vm8965_vm5 = vcmp.lt.f32.partialorder %v5135_v4, 8.5  ;;  %v4995_v53 = vadd.f32 0.5, %v8954_v25  ;;  %v8983_v4 = vsub.f32 %v4780_v14, %v4924_v39  ;;  %v5464_v18 = vadd.f32 %v5463_v42, %v5462_v41 }
 0x931   :  { %v4285_v24 = vpop.permute.xlu1 %4284  ;;  %v5428_v26 = vmul.f32 %v5313_v34, %v8409_v8  ;;  %v4890_v2 = vfloor.f32 %v4854_v12  ;;  %v5278_v27 = vsel %vm5242_vm6, 1.0, %v10231_v46  ;;  %vm5243_vm2 = vmand %vm8961_vm1, %vm8965_vm5  ;;  %v5136_v14 = vsub.f32 %v8857_v38, %v5100_v7 }
 0x932   :  { %4365 = vst.msk [vmem:[#allocation3 + $0x1b8] sm:$0xff] %vm2753_vm15, %v4285_v24  ;;  %v5351_v24 = vsel %vm5345_vm4, %v5312_v30, 0.0  ;;  %v8977_v30 = vadd.s32 128, %v8677_v50  ;;  %v5066_v41 = vfloor.f32 %v8969_v33  ;;  %v9006_v42 = vsub.f32 %v4781_v37, %v4925_v32 }
 0x933   :  { %v4081_v52 = vpop.permute.xlu0 %4080  ;;  %v5352_v61 = vadd.f32 %v5351_v24, %v5350_v43  ;;  %v4299_v43 = vpop.permute.xlu2 %4298  ;;  %v10289_v3 = vcvt.s32.f32 %v8946_v47  ;;  %v5353_v56 = vsel %vm5345_vm4, %v5313_v34, 0.0  ;;  %v9012_v24 = vmul.f32 0.083333336, %v4995_v53 }
 0x934   :  { %4155 = vst.msk [vmem:[#allocation3 + $0x218] sm:$0xff] %vm2536_vm14, %v4081_v52  ;;  %v10230_v39 = vcvt.s32.f32 %v8977_v30  ;;  %v4996_v38 = vadd.f32 0.5, %v8983_v4  ;;  %v5467_v12 = vsel %vm5345_vm4, %v5428_v26, 0.0  ;;  %v5279_v54 = vsel %vm5243_vm2, 1.0, %v10231_v46 }
 0x935   :  { %4371 = vst.msk [vmem:[#allocation3 + $0x218] sm:$0xff] %vm2753_vm15, %v4297_v16  ;;  %v5065_v16 = vfloor.f32 %v8926_v40  ;;  %v4820_v55 = vadd.f32 0.5, %v10289_v3  ;;  %v4926_v37 = vmul.f32 144.0, %v4890_v2  ;;  %v9018_v40 = vpop.f32.mrf.mxu1  ;;  %vm9020_vm9 = vcmp.lt.f32.partialorder %v5064_v31, 8.5 }
 0x936   :  { %vm9024_vm0 = vcmp.lt.f32.partialorder %v5136_v14, 8.5  ;;  %v5102_v26 = vmul.f32 12.0, %v5066_v41  ;;  %v4997_v32 = vadd.f32 0.5, %v9006_v42  ;;  %v4821_v2 = vadd.f32 0.5, %v10230_v39 }
 0x937   :  { %v5101_v17 = vmul.f32 12.0, %v5065_v16  ;;  %vm9028_vm1 = vcmp.lt.f32.partialorder %v5065_v16, 8.5  ;;  %v4856_v31 = vmul.f32 0.0069444445, %v4820_v55  ;;  %v9041_v16 = vmul.f32 0.083333336, %v4996_v38  ;;  %vm5244_vm2 = vmand %vm9020_vm9, %vm9024_vm0 }
 0x938   :  { %v10298_v3 = vcvt.s32.f32 %v8883_v0  ;;  %v5354_v38 = vadd.f32 %v5353_v56, %v5352_v61  ;;  %v9069_v0 = vmul.f32 0.083333336, %v4997_v32 }
 0x939   :  { %v3435_v52 = vpop.permute.xlu1 %3434  ;;  %v4429_v36 = vld [vmem:[#allocation3 + $0x1b8] sm:$0xff]  ;;  %v5068_v56 = vfloor.f32 %v9041_v16 }
 0x93a   :  { %4704 = vmatmul.f32.gmra.mxu2 %v4429_v36  ;;  %v8986_v36 = vpop.f32.mrf.mxu3  ;;  %v9051_v55 = vsub.f32 %v10298_v3, %v4926_v37  ;;  %v5069_v16 = vfloor.f32 %v9069_v0 }
 0x93b   :  { %v3219_v11 = vpop.permute.xlu0 %3218  ;;  %vm9149_vm9 = vcmp.lt.f32.partialorder %v5068_v56, 8.5 }
 0x93c   :  { %3292 = vst.msk [vmem:[#allocation3 + $0x228] sm:$0xff] %vm1668_vm10, %v3219_v11  ;;  %v4441_v5 = vld [vmem:[#allocation3 + $0x218] sm:$0xff]  ;;  %v5465_v11 = vsel %vm5345_vm4, %v5427_v13, 0.0  ;;  %v4891_v13 = vfloor.f32 %v4855_v58  ;;  %v9044_v58 = vadd.s32 136, %v8677_v50 }
 0x93d   :  { %3508 = vst.msk [vmem:[#allocation3 + $0x228] sm:$0xff] %vm1885_vm11, %v3435_v52  ;;  %4722 = vmatmul.f32.gmra.mxu3 %v4441_v5  ;;  %v5067_v5 = vfloor.f32 %v9012_v24  ;;  %v9056_v24 = vadd.f32 %v8778_v6, %v8920_v28  ;;  %v4892_v28 = vfloor.f32 %v4856_v31  ;;  %v9101_v34 = vpop.f32.mrf.mxu1  ;;  %v10312_v31 = vcvt.s32.f32 %v8977_v30 }
 0x93e   :  { %3724 = vst.msk [vmem:[#allocation3 + $0x228] sm:$0xff] %vm2102_vm12, %v3651_v35  ;;  %v5137_v35 = vsub.f32 %v8867_v49, %v5101_v17  ;;  %v5314_v49 = vmul.f32 %v5278_v27, %v8423_v23  ;;  %v4927_v53 = vmul.f32 144.0, %v4891_v13  ;;  %v5466_v27 = vadd.f32 %v5465_v11, %v5464_v18 }
 0x93f   :  { %v5138_v18 = vsub.f32 %v8917_v45, %v5102_v26  ;;  %v5103_v61 = vmul.f32 12.0, %v5067_v5  ;;  %v10233_v45 = vcvt.s32.f32 %v9044_v58 }
 0x940   :  { %vm9032_vm5 = vcmp.lt.f32.partialorder %v5137_v35, 8.5  ;;  %v5429_v14 = vmul.f32 %v5314_v49, %v8423_v23  ;;  %v5315_v35 = vmul.f32 %v5279_v54, %v8442_v48  ;;  %v5468_v13 = vadd.f32 %v5467_v12, %v5466_v27 }
 0x941   :  { %v4083_v52 = vpop.permute.xlu1 %4082  ;;  %vm5245_vm6 = vmand %vm9028_vm1, %vm9032_vm5  ;;  %v10299_v54 = vcvt.s32.f32 %v8904_v21  ;;  %v5355_v12 = vsel %vm5345_vm4, %v5314_v49, 0.0  ;;  %v5280_v21 = vsel %vm5244_vm2, 1.0, %v10231_v46  ;;  %vm9088_vm1 = vcmp.lt.f32.partialorder %v5066_v41, 8.5 }
 0x942   :  { %v9063_v11 = vpop.f32.mrf.mxu3  ;;  %v5469_v26 = vsel %vm5345_vm4, %v5429_v14, 0.0  ;;  %v5430_v7 = vmul.f32 %v5315_v35, %v8442_v48  ;;  %v5281_v32 = vsel %vm5245_vm6, 1.0, %v10231_v46  ;;  %vm9092_vm5 = vcmp.lt.f32.partialorder %v5138_v18, 8.5 }
 0x943   :  { %v3867_v33 = vpop.permute.xlu0 %3866  ;;  %v9074_v37 = vsub.f32 %v10299_v54, %v4927_v53  ;;  %v4928_v53 = vmul.f32 144.0, %v4892_v28  ;;  %v5139_v41 = vsub.f32 %v8954_v25, %v5103_v61  ;;  %v5104_v14 = vmul.f32 12.0, %v5068_v56 }
 0x944   :  { %3940 = vst.msk [vmem:[#allocation3 + $0x228] sm:$0xff] %vm2319_vm13, %v3867_v33  ;;  %v4998_v33 = vadd.f32 0.5, %v9051_v55  ;;  %v4822_v18 = vadd.f32 0.5, %v10233_v45  ;;  %v5356_v28 = vadd.f32 %v5355_v12, %v5354_v38  ;;  %v5316_v39 = vmul.f32 %v5280_v21, %v8463_v9 }
 0x945   :  { %4156 = vst.msk [vmem:[#allocation3 + $0x228] sm:$0xff] %vm2536_vm14, %v4083_v52  ;;  %v3653_v52 = vpop.permute.xlu2 %3652  ;;  %v4999_v3 = vadd.f32 0.5, %v9074_v37  ;;  %v5357_v25 = vsel %vm5345_vm4, %v5315_v35, 0.0  ;;  %v5471_v61 = vsel %vm5345_vm4, %v5430_v7, 0.0  ;;  %v5105_v38 = vmul.f32 12.0, %v5069_v16 }
 0x946   :  { %4372 = vst.msk [vmem:[#allocation3 + $0x228] sm:$0xff] %vm2753_vm15, %v4299_v43  ;;  %v4857_v43 = vmul.f32 0.0069444445, %v4821_v2  ;;  %v9109_v46 = vmul.f32 0.083333336, %v4998_v33  ;;  %v10235_v12 = vcvt.s32.f32 %v9098_v29  ;;  %v5358_v21 = vadd.f32 %v5357_v25, %v5356_v28 }
 0x947   :  { %v9135_v7 = vmul.f32 0.083333336, %v4999_v3  ;;  %v4858_v33 = vmul.f32 0.0069444445, %v4822_v18 }
 0x948   :  { %v4893_v27 = vfloor.f32 %v4857_v43  ;;  %v5470_v43 = vadd.f32 %v5469_v26, %v5468_v13  ;;  %v10306_v13 = vcvt.s32.f32 %v8946_v47  ;;  %v5140_v26 = vsub.f32 %v8983_v4, %v5104_v14 }
 0x949   :  { %v3437_v17 = vpop.permute.xlu1 %3436  ;;  %v5431_v47 = vmul.f32 %v5316_v39, %v8463_v9  ;;  %v4823_v56 = vadd.f32 0.5, %v10235_v12  ;;  %v4894_v25 = vfloor.f32 %v4858_v33 }
 0x94a   :  { %v4929_v35 = vmul.f32 144.0, %v4893_v27  ;;  %vm9166_vm2 = vcmp.lt.f32.partialorder %v5140_v26, 8.5  ;;  %v9178_v26 = vpop.f32.mrf.mxu1 }
 0x94b   :  { %v3221_v2 = vpop.permute.xlu0 %3220  ;;  %v4930_v0 = vmul.f32 144.0, %v4894_v25 }
 0x94c   :  { %3293 = vst.msk [vmem:[#allocation3 + $0x238] sm:$0xff] %vm1668_vm10, %v3221_v2  ;;  %v5317_v2 = vmul.f32 %v5281_v32, %v8477_v10  ;;  %vm9115_vm10 = vcmp.lt.f32.partialorder %v5067_v5, 8.5  ;;  %v5472_v32 = vadd.f32 %v5471_v61, %v5470_v43  ;;  %v9161_v49 = vsub.f32 %v10312_v31, %v4929_v35 }
 0x94d   :  { %3509 = vst.msk [vmem:[#allocation3 + $0x238] sm:$0xff] %vm1885_vm11, %v3437_v17  ;;  %v4443_v54 = vld [vmem:[#allocation3 + $0x228] sm:$0xff]  ;;  %vm5246_vm11 = vmand %vm9088_vm1, %vm9092_vm5  ;;  %v9137_v17 = vpop.f32.mrf.mxu3  ;;  %v4301_v18 = vpop.permute.xlu2 %4300  ;;  %v5071_v43 = vfloor.f32 %v9135_v7  ;;  %v5473_v61 = vsel %vm5345_vm4, %v5431_v47, 0.0  ;;  %v4859_v47 = vmul.f32 0.0069444445, %v4823_v56  ;;  %v9218_v56 = vadd.s32 168, %v8677_v50 }
 0x94e   :  { %3725 = vst.msk [vmem:[#allocation3 + $0x238] sm:$0xff] %vm2102_vm12, %v3653_v52  ;;  %4725 = vmatmul.f32.gmra.mxu3 %v4443_v54  ;;  %v9127_v52 = vsub.f32 %v10306_v13, %v4928_v53  ;;  %vm9130_vm12 = vcmp.lt.f32.partialorder %v5139_v41, 8.5  ;;  %v5070_v53 = vfloor.f32 %v9109_v46  ;;  %v5359_v54 = vsel %vm5345_vm4, %v5316_v39, 0.0 }
 0x94f   :  { %v5432_v41 = vmul.f32 %v5317_v2, %v8477_v10  ;;  %v10309_v13 = vmov 0.0   ;;  %vm5247_vm0 = vmand %vm9115_vm10, %vm9130_vm12  ;;  %v5141_v46 = vsub.f32 %v9006_v42, %v5105_v38  ;;  %v9172_v42 = vadd.s32 152, %v8677_v50 }
 0x950   :  { %v5282_v4 = vsel %vm5246_vm11, 1.0, %v10309_v13  ;;  %v5000_v39 = vadd.f32 0.5, %v9127_v52  ;;  %v5360_v30 = vadd.f32 %v5359_v54, %v5358_v21  ;;  %v5361_v38 = vsel %vm5345_vm4, %v5317_v2, 0.0 }
 0x951   :  { %v4085_v27 = vpop.permute.xlu1 %4084  ;;  %v5106_v35 = vmul.f32 12.0, %v5070_v53  ;;  %v5318_v7 = vmul.f32 %v5282_v4, %v8498_v22  ;;  %v5283_v33 = vsel %vm5247_vm0, 1.0, %v10309_v13  ;;  %v5001_v5 = vadd.f32 0.5, %v9161_v49 }
 0x952   :  { %v9202_v45 = vmul.f32 0.083333336, %v5000_v39  ;;  %v9207_v54 = vadd.s32 160, %v8677_v50  ;;  %v5474_v4 = vadd.f32 %v5473_v61, %v5472_v32  ;;  %v5362_v14 = vadd.f32 %v5361_v38, %v5360_v30 }
 0x953   :  { %v3869_v3 = vpop.permute.xlu0 %3868  ;;  %v5319_v39 = vmul.f32 %v5283_v33, %v8519_v44  ;;  %v9225_v32 = vmul.f32 0.083333336, %v5001_v5  ;;  %v10319_v61 = vcvt.s32.f32 %v9044_v58  ;;  %vm9237_vm1 = vcmp.lt.f32.partialorder %v5070_v53, 8.5 }
 0x954   :  { %3941 = vst.msk [vmem:[#allocation3 + $0x238] sm:$0xff] %vm2319_vm13, %v3869_v3  ;;  %v5475_v3 = vsel %vm5345_vm4, %v5432_v41, 0.0  ;;  %vm9190_vm13 = vcmp.lt.f32.partialorder %v5069_v16, 8.5  ;;  %v10234_v16 = vcvt.s32.f32 %v9172_v42  ;;  %v9211_v41 = vadd.f32 %v8778_v6, %v8986_v36 }
 0x955   :  { %4157 = vst.msk [vmem:[#allocation3 + $0x238] sm:$0xff] %vm2536_vm14, %v4085_v27  ;;  %vm5248_vm14 = vmand %vm9149_vm9, %vm9166_vm2  ;;  %v5107_v27 = vmul.f32 12.0, %v5071_v43  ;;  %v5476_v28 = vadd.f32 %v5475_v3, %v5474_v4  ;;  %v5072_v36 = vfloor.f32 %v9202_v45  ;;  %v4595_v25 = vpop.f32.mrf.mxu3  ;;  %v9230_v38 = vsub.f32 %v10319_v61, %v4930_v0 }
 0x956   :  { %4373 = vst.msk [vmem:[#allocation3 + $0x238] sm:$0xff] %vm2753_vm15, %v4301_v18  ;;  %vm9198_vm15 = vcmp.lt.f32.partialorder %v5141_v46, 8.5  ;;  %v5142_v18 = vsub.f32 %v9051_v55, %v5106_v35  ;;  %v5433_v46 = vmul.f32 %v5318_v7, %v8498_v22  ;;  %v5284_v31 = vsel %vm5248_vm14, 1.0, %v10309_v13 }
 0x957   :  { %vm5249_vm6 = vmand %vm9190_vm13, %vm9198_vm15  ;;  %v4895_v55 = vfloor.f32 %v4859_v47  ;;  %v5143_v30 = vsub.f32 %v9074_v37, %v5107_v27  ;;  %v4824_v35 = vadd.f32 0.5, %v10234_v16  ;;  %v10237_v3 = vcvt.s32.f32 %v9207_v54 }
 0x958   :  { %v5363_v4 = vsel %vm5345_vm4, %v5318_v7, 0.0  ;;  %v5320_v45 = vmul.f32 %v5284_v31, %v8540_v1  ;;  %vm9241_vm5 = vcmp.lt.f32.partialorder %v5142_v18, 8.5  ;;  %v5477_v58 = vsel %vm5345_vm4, %v5433_v46, 0.0  ;;  %v9259_v46 = vpop.f32.mrf.mxu1 }
 0x959   :  { %v5434_v47 = vmul.f32 %v5319_v39, %v8519_v44  ;;  %v5285_v7 = vsel %vm5249_vm6, 1.0, %v10309_v13  ;;  %v10236_v53 = vcvt.s32.f32 %v9218_v56  ;;  %vm9254_vm10 = vcmp.lt.f32.partialorder %v5071_v43, 8.5  ;;  %vm5250_vm11 = vmand %vm9237_vm1, %vm9241_vm5 }
 0x95a   :  { %v5108_v0 = vmul.f32 12.0, %v5072_v36  ;;  %v5073_v18 = vfloor.f32 %v9225_v32  ;;  %v4931_v31 = vmul.f32 144.0, %v4895_v55  ;;  %vm9265_vm12 = vcmp.lt.f32.partialorder %v5143_v30, 8.5 }
 0x95b   :  { %v5002_v43 = vadd.f32 0.5, %v9230_v38  ;;  %v4860_v21 = vmul.f32 0.0069444445, %v4824_v35  ;;  %v4825_v61 = vadd.f32 0.5, %v10237_v3  ;;  %v9274_v32 = vadd.f32 %v8778_v6, %v9063_v11  ;;  %vm5251_vm9 = vmand %vm9254_vm10, %vm9265_vm12 }
 0x95c   :  { %v5364_v55 = vadd.f32 %v5363_v4, %v5362_v14  ;;  %v5435_v37 = vmul.f32 %v5320_v45, %v8540_v1  ;;  %v5365_v5 = vsel %vm5345_vm4, %v5319_v39, 0.0  ;;  %v5479_v30 = vsel %vm5345_vm4, %v5434_v47, 0.0 }
 0x95d   :  { %v4445_v33 = vld [vmem:[#allocation3 + $0x238] sm:$0xff]  ;;  %v5321_v16 = vmul.f32 %v5285_v7, %v8561_v59  ;;  %v4826_v35 = vadd.f32 0.5, %v10236_v53  ;;  %v5286_v12 = vsel %vm5250_vm11, 1.0, %v10309_v13  ;;  %v5144_v11 = vsub.f32 %v9127_v52, %v5108_v0  ;;  %v4598_v52 = vpop.f32.mrf.mxu3 }
 0x95e   :  { %4728 = vmatmul.f32.gmra.mxu3 %v4445_v33  ;;  %v5478_v33 = vadd.f32 %v5477_v58, %v5476_v28  ;;  %v5109_v14 = vmul.f32 12.0, %v5073_v18  ;;  %v10328_v28 = vcvt.s32.f32 %v9098_v29  ;;  %v9294_v4 = vadd.f32 %v8778_v6, %v9137_v17 }
 0x95f   :  { %v9296_v58 = vmul.f32 0.083333336, %v5002_v43  ;;  %v4896_v47 = vfloor.f32 %v4860_v21  ;;  %v4861_v7 = vmul.f32 0.0069444445, %v4825_v61  ;;  %v5366_v53 = vadd.f32 %v5365_v5, %v5364_v55 }
 0x960   :  { %v9290_v39 = vsub.f32 %v10328_v28, %v4931_v31  ;;  %v5480_v2 = vadd.f32 %v5479_v30, %v5478_v33  ;;  %v5367_v27 = vsel %vm5345_vm4, %v5320_v45, 0.0  ;;  %v5481_v3 = vsel %vm5345_vm4, %v5435_v37, 0.0  ;;  %v9323_v30 = vpop.f32.mrf.mxu2 }
 0x961   :  { %v5436_v0 = vmul.f32 %v5321_v16, %v8561_v59  ;;  %v5322_v29 = vmul.f32 %v5286_v12, %v8580_v57  ;;  %v5287_v31 = vsel %vm5251_vm9, 1.0, %v10309_v13  ;;  %v4862_v28 = vmul.f32 0.0069444445, %v4826_v35 }
 0x962   :  { %vm9303_vm0 = vcmp.lt.f32.partialorder %v5072_v36, 8.5  ;;  %vm9307_vm2 = vcmp.lt.f32.partialorder %v5144_v11, 8.5  ;;  %v5145_v45 = vsub.f32 %v9161_v49, %v5109_v14  ;;  %v5003_v21 = vadd.f32 0.5, %v9290_v39  ;;  %v9325_v49 = vpop.f32.mrf.mxu1 }
 0x963   :  { %v5074_v61 = vfloor.f32 %v9296_v58  ;;  %v4932_v59 = vmul.f32 144.0, %v4896_v47  ;;  %v4897_v55 = vfloor.f32 %v4861_v7  ;;  %v9315_v12 = vadd.s32 176, %v8677_v50  ;;  %vm5252_vm13 = vmand %vm9303_vm0, %vm9307_vm2 }
 0x964   :  { %v9318_v36 = vadd.f32 %v8778_v6, %v4595_v25  ;;  %v9321_v33 = vadd.f32 %v8778_v6, %v4598_v52  ;;  %v5368_v37 = vadd.f32 %v5367_v27, %v5366_v53  ;;  %v5482_v5 = vadd.f32 %v5481_v3, %v5480_v2 }
 0x965   :  { %v5369_v35 = vsel %vm5345_vm4, %v5321_v16, 0.0  ;;  %v5483_v11 = vsel %vm5345_vm4, %v5436_v0, 0.0  ;;  %v5437_v14 = vmul.f32 %v5322_v29, %v8580_v57  ;;  %v4898_v58 = vfloor.f32 %v4862_v28 }
 0x966   :  { %v5323_v47 = vmul.f32 %v5287_v31, %v8601_v19  ;;  %vm9335_vm14 = vcmp.lt.f32.partialorder %v5073_v18, 8.5  ;;  %vm9339_vm15 = vcmp.lt.f32.partialorder %v5145_v45, 8.5  ;;  %v9343_v16 = vmul.f32 0.083333336, %v5003_v21 }
 0x967   :  { %v5110_v53 = vmul.f32 12.0, %v5074_v61  ;;  %v10337_v57 = vcvt.s32.f32 %v9172_v42  ;;  %v4933_v2 = vmul.f32 144.0, %v4897_v55  ;;  %v10240_v27 = vcvt.s32.f32 %v9315_v12  ;;  %vm5253_vm6 = vmand %vm9335_vm14, %vm9339_vm15 }
 0x968   :  { %v4551_v18 = vadd.f32 %v8778_v6, %v9018_v40  ;;  %v9354_v52 = vadd.f32 %v8778_v6, %v9101_v34  ;;  %v5370_v0 = vadd.f32 %v5369_v35, %v5368_v37  ;;  %v9357_v31 = vadd.s32 224, %v8677_v50 }
 0x969   :  { %v9347_v7 = vsub.f32 %v10337_v57, %v4932_v59  ;;  %v5484_v28 = vadd.f32 %v5483_v11, %v5482_v5  ;;  %v5371_v17 = vsel %vm5345_vm4, %v5322_v29, 0.0  ;;  %v5288_v42 = vsel %vm5252_vm13, 1.0, %v10309_v13 }
 0x96a   :  { %v4934_v43 = vmul.f32 144.0, %v4898_v58  ;;  %v5485_v45 = vsel %vm5345_vm4, %v5437_v14, 0.0  ;;  %v5438_v21 = vmul.f32 %v5323_v47, %v8601_v19  ;;  %v5075_v40 = vfloor.f32 %v9343_v16  ;;  %v9384_v14 = vpop.f32.mrf.mxu2 }
 0x96b   :  { %v9369_v34 = vadd.s32 184, %v8677_v50  ;;  %v5146_v59 = vsub.f32 %v9230_v38, %v5110_v53  ;;  %v5004_v29 = vadd.f32 0.5, %v9347_v7  ;;  %v10338_v55 = vcvt.s32.f32 %v9207_v54 }
 0x96c   :  { %v4827_v19 = vadd.f32 0.5, %v10240_v27  ;;  %v9381_v5 = vadd.f32 %v8778_v6, %v9178_v26  ;;  %v5372_v35 = vadd.f32 %v5371_v17, %v5370_v0  ;;  %v5324_v11 = vmul.f32 %v5288_v42, %v8620_v51  ;;  %v9399_v0 = vpop.f32.mrf.mxu1 }
 0x96d   :  { %v9375_v37 = vsub.f32 %v10338_v55, %v4933_v2  ;;  %v10238_v38 = vcvt.s32.f32 %v9357_v31  ;;  %v5486_v58 = vadd.f32 %v5485_v45, %v5484_v28  ;;  %v5373_v25 = vsel %vm5345_vm4, %v5323_v47, 0.0 }
 0x96e   :  { %v5289_v54 = vsel %vm5253_vm6, 1.0, %v10309_v13  ;;  %v10339_v3 = vcvt.s32.f32 %v9218_v56  ;;  %v5487_v53 = vsel %vm5345_vm4, %v5438_v21, 0.0  ;;  %vm9394_vm1 = vcmp.lt.f32.partialorder %v5074_v61, 8.5 }
 0x96f   :  { %v5111_v57 = vmul.f32 12.0, %v5075_v40  ;;  %v10239_v2 = vcvt.s32.f32 %v9369_v34  ;;  %vm9401_vm5 = vcmp.lt.f32.partialorder %v5146_v59, 8.5  ;;  %v5040_v47 = vmul.f32 0.083333336, %v5004_v29 }
 0x970   :  { %v9391_v16 = vsub.f32 %v10339_v3, %v4934_v43  ;;  %v5005_v56 = vadd.f32 0.5, %v9375_v37  ;;  %v4863_v17 = vmul.f32 0.0069444445, %v4827_v19  ;;  %v5375_v42 = vsel %vm5345_vm4, %v5324_v11, 0.0  ;;  %vm5254_vm10 = vmand %vm9394_vm1, %vm9401_vm5 }
 0x971   :  { %v5439_v61 = vmul.f32 %v5324_v11, %v8620_v51  ;;  %v5325_v43 = vmul.f32 %v5289_v54, %v8635_v62  ;;  %v4833_v45 = vadd.f32 0.5, %v10238_v38  ;;  %v9413_v21 = vadd.f32 %v8778_v6, %v9259_v46 }
 0x972   :  { %v5374_v59 = vadd.f32 %v5373_v25, %v5372_v35  ;;  %v5006_v55 = vadd.f32 0.5, %v9391_v16  ;;  %v9417_v29 = vadd.s32 232, %v8677_v50  ;;  %v5488_v19 = vadd.f32 %v5487_v53, %v5486_v58  ;;  %v9432_v26 = vpop.f32.mrf.mxu2 }
 0x973   :  { %v5147_v51 = vsub.f32 %v9290_v39, %v5111_v57  ;;  %v4828_v11 = vadd.f32 0.5, %v10239_v2  ;;  %v9427_v46 = vadd.s32 192, %v8677_v50  ;;  %v5076_v25 = vfloor.f32 %v5040_v47 }
 0x974   :  { %v5376_v35 = vadd.f32 %v5375_v42, %v5374_v59  ;;  %v5041_v54 = vmul.f32 0.083333336, %v5005_v56  ;;  %v4899_v3 = vfloor.f32 %v4863_v17  ;;  %v5489_v38 = vsel %vm5345_vm4, %v5439_v61, 0.0 }
 0x975   :  { %v5377_v58 = vsel %vm5345_vm4, %v5325_v43, 0.0  ;;  %v4676_v53 = vadd.f32 %v9323_v30, %v4551_v18  ;;  %v4869_v28 = vmul.f32 0.0069444445, %v4833_v45  ;;  %v5440_v39 = vmul.f32 %v5325_v43, %v8635_v62 }
 0x976   :  { %v5290_v57 = vsel %vm5254_vm10, 1.0, %v10309_v13  ;;  %v9436_v2 = vmul.f32 0.083333336, %v5006_v55  ;;  %v10241_v42 = vcvt.s32.f32 %v9417_v29  ;;  %vm9439_vm11 = vcmp.lt.f32.partialorder %v5075_v40, 8.5 }
 0x977   :  { %vm9443_vm12 = vcmp.lt.f32.partialorder %v5147_v51, 8.5  ;;  %v4864_v30 = vmul.f32 0.0069444445, %v4828_v11  ;;  %v5112_v17 = vmul.f32 12.0, %v5076_v25  ;;  %v5077_v61 = vfloor.f32 %v5041_v54  ;;  %v9455_v51 = vpop.f32.mrf.mxu1 }
 0x978   :  { %v4935_v62 = vmul.f32 144.0, %v4899_v3  ;;  %v9449_v43 = vadd.s32 200, %v8677_v50  ;;  %v9453_v45 = vadd.f32 %v8778_v6, %v9325_v49  ;;  %v5490_v40 = vadd.f32 %v5489_v38, %v5488_v19  ;;  %vm5255_vm9 = vmand %vm9439_vm11, %vm9443_vm12 }
 0x979   :  { %v5326_v59 = vmul.f32 %v5290_v57, %v4676_v53  ;;  %v4905_v55 = vfloor.f32 %v4869_v28  ;;  %v5378_v27 = vadd.f32 %v5377_v58, %v5376_v35  ;;  %v5491_v11 = vsel %vm5345_vm4, %v5440_v39, 0.0  ;;  %v9510_v39 = vpop.f32.mrf.mxu3 }
 0x97a   :  { %v5078_v18 = vfloor.f32 %v9436_v2  ;;  %v4834_v54 = vadd.f32 0.5, %v10241_v42  ;;  %v4900_v6 = vfloor.f32 %v4864_v30  ;;  %v10348_v49 = vcvt.s32.f32 %v9427_v46  ;;  %v4684_v30 = vpop.f32.mrf.mxu2 }
 0x97b   :  { %v9468_v19 = vadd.s32 240, %v8677_v50  ;;  %v9471_v35 = vadd.s32 208, %v8677_v50  ;;  %v5148_v2 = vsub.f32 %v9347_v7, %v5112_v17  ;;  %v5113_v3 = vmul.f32 12.0, %v5077_v61 }
 0x97c   :  { %v4829_v38 = vadd.f32 0.5, %v10348_v49  ;;  %v10349_v58 = vcvt.s32.f32 %v9315_v12  ;;  %v5379_v57 = vsel %vm5345_vm4, %v5326_v59, 0.0  ;;  %v5441_v47 = vmul.f32 %v5326_v59, %v4676_v53 }
 0x97d   :  { %v9482_v56 = vadd.f32 %v9384_v14, %v9354_v52  ;;  %v4941_v49 = vmul.f32 144.0, %v4905_v55  ;;  %v5291_v42 = vsel %vm5255_vm9, 1.0, %v10309_v13  ;;  %vm9485_vm0 = vcmp.lt.f32.partialorder %v5076_v25, 8.5 }
 0x97e   :  { %v9476_v28 = vsub.f32 %v10349_v58, %v4935_v62  ;;  %v5114_v12 = vmul.f32 12.0, %v5078_v18  ;;  %v4870_v17 = vmul.f32 0.0069444445, %v4834_v54  ;;  %v4936_v62 = vmul.f32 144.0, %v4900_v6 }
 0x97f   :  { %v4865_v58 = vmul.f32 0.0069444445, %v4829_v38  ;;  %vm9491_vm2 = vcmp.lt.f32.partialorder %v5148_v2, 8.5  ;;  %v5149_v52 = vsub.f32 %v9375_v37, %v5113_v3  ;;  %v10354_v25 = vcvt.s32.f32 %v9449_v43 }
 0x980   :  { %v5007_v14 = vadd.f32 0.5, %v9476_v28  ;;  %v5492_v1 = vadd.f32 %v5491_v11, %v5490_v40  ;;  %v5380_v10 = vadd.f32 %v5379_v57, %v5378_v27  ;;  %v5327_v54 = vmul.f32 %v5291_v42, %v9482_v56  ;;  %vm5256_vm14 = vmand %vm9485_vm0, %vm9491_vm2 }
 0x981   :  { %v4830_v55 = vadd.f32 0.5, %v10354_v25  ;;  %v10355_v6 = vcvt.s32.f32 %v9357_v31  ;;  %v5493_v2 = vsel %vm5345_vm4, %v5441_v47, 0.0  ;;  %vm9505_vm13 = vcmp.lt.f32.partialorder %v5077_v61, 8.5 }
 0x982   :  { %v5150_v37 = vsub.f32 %v9391_v16, %v5114_v12  ;;  %v4906_v3 = vfloor.f32 %v4870_v17  ;;  %v10358_v27 = vcvt.s32.f32 %v9369_v34  ;;  %v4901_v42 = vfloor.f32 %v4865_v58  ;;  %v9524_v16 = vpop.f32.mrf.mxu1  ;;  %v4687_v58 = vpop.f32.mrf.mxu2 }
 0x983   :  { %v9502_v38 = vsub.f32 %v10355_v6, %v4941_v49  ;;  %v10359_v61 = vcvt.s32.f32 %v9468_v19  ;;  %v10360_v11 = vcvt.s32.f32 %v9471_v35  ;;  %vm9526_vm15 = vcmp.lt.f32.partialorder %v5149_v52, 8.5 }
 0x984   :  { %v9518_v31 = vsub.f32 %v10358_v27, %v4936_v62  ;;  %v9530_v49 = vmul.f32 0.083333336, %v5007_v14  ;;  %v4866_v7 = vmul.f32 0.0069444445, %v4830_v55  ;;  %v9533_v34 = vadd.s32 248, %v8677_v50  ;;  %vm5257_vm5 = vmand %vm9505_vm13, %vm9526_vm15 }
 0x985   :  { %v4835_v40 = vadd.f32 0.5, %v10359_v61  ;;  %v4831_v57 = vadd.f32 0.5, %v10360_v11  ;;  %v5381_v12 = vsel %vm5345_vm4, %v5327_v54, 0.0  ;;  %v5442_v17 = vmul.f32 %v5327_v54, %v9482_v56 }
 0x986   :  { %v9539_v62 = vadd.f32 %v9432_v26, %v9381_v5  ;;  %v5013_v59 = vadd.f32 0.5, %v9502_v38  ;;  %v5292_v52 = vsel %vm5256_vm14, 1.0, %v10309_v13  ;;  %vm9543_vm6 = vcmp.lt.f32.partialorder %v5078_v18, 8.5 }
 0x987   :  { %vm9547_vm1 = vcmp.lt.f32.partialorder %v5150_v37, 8.5  ;;  %v4942_v55 = vmul.f32 144.0, %v4906_v3  ;;  %v5008_v5 = vadd.f32 0.5, %v9518_v31  ;;  %v4937_v26 = vmul.f32 144.0, %v4901_v42 }
 0x988   :  { %v4871_v54 = vmul.f32 0.0069444445, %v4835_v40  ;;  %v4867_v6 = vmul.f32 0.0069444445, %v4831_v57  ;;  %v5079_v18 = vfloor.f32 %v9530_v49  ;;  %v4902_v27 = vfloor.f32 %v4866_v7  ;;  %vm5258_vm10 = vmand %vm9543_vm6, %vm9547_vm1 }
 0x989   :  { %v10245_v61 = vcvt.s32.f32 %v9533_v34  ;;  %v9559_v37 = vadd.s32 256, %v8677_v50  ;;  %v5494_v11 = vadd.f32 %v5493_v2, %v5492_v1  ;;  %v5328_v3 = vmul.f32 %v5292_v52, %v9539_v62 }
 0x98a   :  { %v9563_v47 = vadd.f32 %v4684_v30, %v9413_v21  ;;  %v9565_v53 = vmul.f32 0.083333336, %v5013_v59  ;;  %v5382_v44 = vadd.f32 %v5381_v12, %v5380_v10  ;;  %v5495_v42 = vsel %vm5345_vm4, %v5442_v17, 0.0  ;;  %v9586_v59 = vpop.f32.mrf.mxu3 }
 0x98b   :  { %v5293_v40 = vsel %vm5257_vm5, 1.0, %v10309_v13  ;;  %v10367_v57 = vcvt.s32.f32 %v9417_v29  ;;  %v9577_v1 = vmul.f32 0.083333336, %v5008_v5  ;;  %v10368_v21 = vcvt.s32.f32 %v9427_v46 }
 0x98c   :  { %v4907_v10 = vfloor.f32 %v4871_v54  ;;  %v4903_v2 = vfloor.f32 %v4867_v6  ;;  %v5115_v7 = vmul.f32 12.0, %v5079_v18  ;;  %v4938_v12 = vmul.f32 144.0, %v4902_v27 }
 0x98d   :  { %v9571_v49 = vsub.f32 %v10367_v57, %v4942_v55  ;;  %v9581_v30 = vsub.f32 %v10368_v21, %v4937_v26  ;;  %v4836_v29 = vadd.f32 0.5, %v10245_v61  ;;  %v10249_v17 = vcvt.s32.f32 %v9559_v37  ;;  %v4690_v57 = vpop.f32.mrf.mxu2  ;;  %v9591_v26 = vpop.f32.mrf.mxu1 }
 0x98e   :  { %v5496_v52 = vadd.f32 %v5495_v42, %v5494_v11  ;;  %v5443_v55 = vmul.f32 %v5328_v3, %v9539_v62  ;;  %v5329_v5 = vmul.f32 %v5293_v40, %v9563_v47  ;;  %v5085_v46 = vfloor.f32 %v9565_v53 }
 0x98f   :  { %v5383_v54 = vsel %vm5345_vm4, %v5328_v3, 0.0  ;;  %v9595_v6 = vadd.f32 %v4687_v58, %v9453_v45  ;;  %v5294_v27 = vsel %vm5258_vm10, 1.0, %v10309_v13  ;;  %v5014_v11 = vadd.f32 0.5, %v9571_v49 }
 0x990   :  { %v5080_v42 = vfloor.f32 %v9577_v1  ;;  %v5009_v53 = vadd.f32 0.5, %v9581_v30  ;;  %v4943_v40 = vmul.f32 144.0, %v4907_v10  ;;  %v4939_v21 = vmul.f32 144.0, %v4903_v2 }
 0x991   :  { %10369 = vst [vmem:[#allocation16_spill] sm:$0xff] %v9595_v6  ;;  %v5151_v3 = vsub.f32 %v9476_v28, %v5115_v7  ;;  %v10370_v45 = vcvt.s32.f32 %v9449_v43  ;;  %v4872_v61 = vmul.f32 0.0069444445, %v4836_v29  ;;  %v4837_v14 = vadd.f32 0.5, %v10249_v17 }
 0x992   :  { %v5384_v25 = vadd.f32 %v5383_v54, %v5382_v44  ;;  %v5497_v22 = vsel %vm5345_vm4, %v5443_v55, 0.0  ;;  %v5385_v9 = vsel %vm5345_vm4, %v5329_v5, 0.0  ;;  %v5121_v1 = vmul.f32 12.0, %v5085_v46 }
 0x993   :  { %v9609_v58 = vsub.f32 %v10370_v45, %v4938_v12  ;;  %v5444_v48 = vmul.f32 %v5329_v5, %v9563_v47  ;;  %v5330_v10 = vmul.f32 %v5294_v27, %v9595_v6  ;;  %vm9617_vm11 = vcmp.lt.f32.partialorder %v5079_v18, 8.5 }
 0x994   :  { %v9621_v43 = vmul.f32 0.083333336, %v5014_v11  ;;  %v5116_v2 = vmul.f32 12.0, %v5080_v42  ;;  %v9623_v7 = vmul.f32 0.083333336, %v5009_v53  ;;  %v10373_v44 = vcvt.s32.f32 %v9468_v19 }
 0x995   :  { %v10374_v29 = vcvt.s32.f32 %v9471_v35  ;;  %vm9633_vm12 = vcmp.lt.f32.partialorder %v5151_v3, 8.5  ;;  %v5010_v18 = vadd.f32 0.5, %v9609_v58  ;;  %v4908_v54 = vfloor.f32 %v4872_v61  ;;  %v9641_v11 = vld [vmem:[%s10223_s3] ss:$0 sm:$0xff]  ;;  %v4693_v61 = vpop.f32.mrf.mxu2  ;;  %s6226_s3 = smov 24  }
 0x996   :  { %v9627_v12 = vsub.f32 %v10373_v44, %v4943_v40  ;;  %v4873_v27 = vmul.f32 0.0069444445, %v4837_v14  ;;  %v4566_v19 = vadd.f32 %v9641_v11, %v9399_v0  ;;  %v4569_v35 = vadd.f32 %v9641_v11, %v9455_v51  ;;  %v4708_v40 = vpop.f32.mrf.mxu3  ;;  %vm5259_vm9 = vmand %vm9617_vm11, %vm9633_vm12 }
 0x997   :  { %v9631_v55 = vsub.f32 %v10374_v29, %v4939_v21  ;;  %v9649_v53 = vadd.f32 %v9641_v11, %v9524_v16  ;;  %v5157_v21 = vsub.f32 %v9502_v38, %v5121_v1  ;;  %v5498_v3 = vadd.f32 %v5497_v22, %v5496_v52  ;;  %v4577_v1 = vpop.f32.mrf.mxu1 }
 0x998   :  { %v5386_v45 = vadd.f32 %v5385_v9, %v5384_v25  ;;  %v5499_v14 = vsel %vm5345_vm4, %v5444_v48, 0.0  ;;  %v5086_v44 = vfloor.f32 %v9621_v43  ;;  %v5152_v0 = vsub.f32 %v9518_v31, %v5116_v2 }
 0x999   :  { %v5081_v51 = vfloor.f32 %v9623_v7  ;;  %v5015_v16 = vadd.f32 0.5, %v9627_v12  ;;  %v5011_v38 = vadd.f32 0.5, %v9631_v55  ;;  %v5387_v9 = vsel %vm5345_vm4, %v5330_v10, 0.0 }
 0x99a   :  { %v9663_v22 = vmul.f32 0.083333336, %v5010_v18  ;;  %v4944_v48 = vmul.f32 144.0, %v4908_v54  ;;  %v4909_v52 = vfloor.f32 %v4873_v27  ;;  %v5445_v25 = vmul.f32 %v5330_v10, %v9595_v6 }
 0x99b   :  { %v9666_v43 = vadd.f32 %v4690_v57, %v4566_v19  ;;  %vm9668_vm0 = vcmp.lt.f32.partialorder %v5085_v46, 8.5  ;;  %vm9672_vm2 = vcmp.lt.f32.partialorder %v5157_v21, 8.5  ;;  %v5295_v2 = vsel %vm5259_vm9, 1.0, %v10309_v13 }
 0x99c   :  { %vm9677_vm13 = vcmp.lt.f32.partialorder %v5080_v42, 8.5  ;;  %v5122_v29 = vmul.f32 12.0, %v5086_v44  ;;  %v4760_v5 = vadd.s32 216, %v8677_v50  ;;  %vm9682_vm14 = vcmp.lt.f32.partialorder %v5152_v0, 8.5  ;;  %vm5265_vm15 = vmand %vm9668_vm0, %vm9672_vm2 }
 0x99d   :  { %v5117_v46 = vmul.f32 12.0, %v5081_v51  ;;  %v9686_v10 = vmul.f32 0.083333336, %v5015_v16  ;;  %v9688_v18 = vmul.f32 0.083333336, %v5011_v38  ;;  %v5082_v42 = vfloor.f32 %v9663_v22  ;;  %v4696_v6 = vpop.f32.mrf.mxu2  ;;  %vm5260_vm6 = vmand %vm9677_vm13, %vm9682_vm14 }
 0x99e   :  { %v10385_v54 = vcvt.s32.f32 %v9533_v34  ;;  %v4945_v19 = vmul.f32 144.0, %v4909_v52  ;;  %v4796_v21 = vcvt.s32.f32 %v4760_v5  ;;  %v9701_v0 = vadd.f32 %v9641_v11, %v9591_v26  ;;  %v4711_v8 = vpop.f32.mrf.mxu3 }
 0x99f   :  { %v9704_v16 = vadd.f32 %v9641_v11, %v4577_v1  ;;  %v5500_v38 = vadd.f32 %v5499_v14, %v5498_v3  ;;  %v5331_v17 = vmul.f32 %v5295_v2, %v9666_v43  ;;  %v5388_v23 = vadd.f32 %v5387_v9, %v5386_v45  ;;  %v4580_v7 = vpop.f32.mrf.mxu1 }
 0x9a0   :  { %v9697_v27 = vsub.f32 %v10385_v54, %v4944_v48  ;;  %v5501_v22 = vsel %vm5345_vm4, %v5445_v25, 0.0  ;;  %v5158_v34 = vsub.f32 %v9571_v49, %v5122_v29  ;;  %v4832_v26 = vadd.f32 0.5, %v4796_v21 }
 0x9a1   :  { %v5301_v3 = vsel %vm5265_vm15, 1.0, %v10309_v13  ;;  %v5153_v14 = vsub.f32 %v9581_v30, %v5117_v46  ;;  %v5087_v45 = vfloor.f32 %v9686_v10  ;;  %v5083_v1 = vfloor.f32 %v9688_v18 }
 0x9a2   :  { %v5118_v9 = vmul.f32 12.0, %v5082_v42  ;;  %v5016_v48 = vadd.f32 0.5, %v9697_v27  ;;  %v10386_v52 = vcvt.s32.f32 %v9559_v37  ;;  %v4868_v25 = vmul.f32 0.0069444445, %v4832_v26 }
 0x9a3   :  { %v5389_v28 = vsel %vm5345_vm4, %v5331_v17, 0.0  ;;  %v5446_v31 = vmul.f32 %v5331_v17, %v9666_v43  ;;  %v9730_v2 = vadd.f32 %v4708_v40, %v9056_v24  ;;  %v5296_v30 = vsel %vm5260_vm6, 1.0, %v10309_v13 }
 0x9a4   :  { %v9725_v49 = vsub.f32 %v10386_v52, %v4945_v19  ;;  %v9733_v29 = vadd.f32 %v4693_v61, %v4569_v35  ;;  %vm9735_vm1 = vcmp.lt.f32.partialorder %v5086_v44, 8.5  ;;  %vm9739_vm5 = vcmp.lt.f32.partialorder %v5158_v34, 8.5 }
 0x9a5   :  { %v4904_v57 = vfloor.f32 %v4868_v25  ;;  %vm9743_vm10 = vcmp.lt.f32.partialorder %v5081_v51, 8.5  ;;  %vm9747_vm11 = vcmp.lt.f32.partialorder %v5153_v14, 8.5  ;;  %v5123_v17 = vmul.f32 12.0, %v5087_v45  ;;  %v4699_v34 = vpop.f32.mrf.mxu2  ;;  %vm5266_vm12 = vmand %vm9735_vm1, %vm9739_vm5 }
 0x9a6   :  { %v5119_v35 = vmul.f32 12.0, %v5083_v1  ;;  %v5154_v40 = vsub.f32 %v9609_v58, %v5118_v9  ;;  %v9752_v61 = vmul.f32 0.083333336, %v5016_v48  ;;  %v5017_v44 = vadd.f32 0.5, %v9725_v49  ;;  %v4714_v19 = vpop.f32.mrf.mxu3  ;;  %vm5261_vm9 = vmand %vm9743_vm10, %vm9747_vm11 }
 0x9a7   :  { %v4940_v10 = vmul.f32 144.0, %v4904_v57  ;;  %v9756_v18 = vadd.f32 %v9641_v11, %v4580_v7  ;;  %v5502_v51 = vadd.f32 %v5501_v22, %v5500_v38  ;;  %v9759_v54 = vmul.f32 %v5301_v3, %v9730_v2 }
 0x9a8   :  { %v4766_v26 = vadd.s32 264, %v8677_v50  ;;  %v9762_v14 = vadd.f32 %v5389_v28, %v5388_v23  ;;  %v5503_v58 = vsel %vm5345_vm4, %v5446_v31, 0.0  ;;  %v5332_v9 = vmul.f32 %v5296_v30, %v9733_v29 }
 0x9a9   :  { %v4976_v48 = vsub.f32 %v4796_v21, %v4940_v10  ;;  %v5159_v38 = vsub.f32 %v9627_v12, %v5123_v17  ;;  %vm9775_vm0 = vcmp.lt.f32.partialorder %v5082_v42, 8.5  ;;  %v5155_v22 = vsub.f32 %v9631_v55, %v5119_v35 }
 0x9aa   :  { %v4802_v3 = vcvt.s32.f32 %v4766_v26  ;;  %vm9780_vm2 = vcmp.lt.f32.partialorder %v5154_v40, 8.5  ;;  %v5088_v21 = vfloor.f32 %v9752_v61  ;;  %v9785_v25 = vmul.f32 0.083333336, %v5017_v44 }
 0x9ab   :  { %v5012_v28 = vadd.f32 0.5, %v4976_v48  ;;  %v9789_v31 = vsel %vm5345_vm4, %v9759_v54, 0.0  ;;  %v9792_v12 = vadd.f32 %v4711_v8, %v9211_v41  ;;  %v5302_v42 = vsel %vm5266_vm12, 1.0, %v10309_v13  ;;  %vm5262_vm14 = vmand %vm9775_vm0, %vm9780_vm2 }
 0x9ac   :  { %v4838_v55 = vadd.f32 0.5, %v4802_v3  ;;  %v5447_v30 = vmul.f32 %v5332_v9, %v9733_v29  ;;  %v9797_v7 = vadd.f32 %v4696_v6, %v9649_v53  ;;  %v5297_v5 = vsel %vm5261_vm9, 1.0, %v10309_v13 }
 0x9ad   :  { %v5048_v37 = vmul.f32 0.083333336, %v5012_v28  ;;  %vm9800_vm13 = vcmp.lt.f32.partialorder %v5087_v45, 8.5  ;;  %vm9808_vm15 = vcmp.lt.f32.partialorder %v5083_v1, 8.5  ;;  %vm9812_vm6 = vcmp.lt.f32.partialorder %v5155_v22, 8.5  ;;  %v4702_v40 = vpop.f32.mrf.mxu2 }
 0x9ae   :  { %v4874_v6 = vmul.f32 0.0069444445, %v4838_v55  ;;  %vm9816_vm1 = vcmp.lt.f32.partialorder %v5159_v38, 8.5  ;;  %v5124_v45 = vmul.f32 12.0, %v5088_v21  ;;  %v5089_v46 = vfloor.f32 %v9785_v25  ;;  %v9824_v1 = vpop.f32.mrf.mxu3  ;;  %vm5263_vm5 = vmand %vm9808_vm15, %vm9812_vm6 }
 0x9af   :  { %v5084_v24 = vfloor.f32 %v5048_v37  ;;  %v5504_v17 = vadd.f32 %v5503_v58, %v5502_v51  ;;  %v9822_v35 = vadd.f32 %v4699_v34, %v9701_v0  ;;  %v4767_v44 = vadd.s32 272, %v8677_v50  ;;  %vm5267_vm10 = vmand %vm9800_vm13, %vm9816_vm1 }
 0x9b0   :  { %v4910_v61 = vfloor.f32 %v4874_v6  ;;  %v5391_v10 = vsel %vm5345_vm4, %v5332_v9, 0.0  ;;  %v5333_v26 = vmul.f32 %v5297_v5, %v9797_v7  ;;  %v5298_v51 = vsel %vm5262_vm14, 1.0, %v10309_v13 }
 0x9b1   :  { %v5120_v0 = vmul.f32 12.0, %v5084_v24  ;;  %v5505_v34 = vsel %vm5345_vm4, %v5447_v30, 0.0  ;;  %v9841_v58 = vmul.f32 %v5302_v42, %v9792_v12  ;;  %v4803_v38 = vcvt.s32.f32 %v4767_v44 }
 0x9b2   :  { %v4946_v9 = vmul.f32 144.0, %v4910_v61  ;;  %v5160_v23 = vsub.f32 %v9697_v27, %v5124_v45  ;;  %v9849_v22 = vadd.f32 %v4702_v40, %v9704_v16  ;;  %v5125_v52 = vmul.f32 12.0, %v5089_v46 }
 0x9b3   :  { %v5156_v25 = vsub.f32 %v4976_v48, %v5120_v0  ;;  %v5334_v28 = vmul.f32 %v5298_v51, %v9822_v35  ;;  %v5299_v55 = vsel %vm5263_vm5, 1.0, %v10309_v13  ;;  %v4839_v30 = vadd.f32 0.5, %v4803_v38 }
 0x9b4   :  { %v4982_v42 = vsub.f32 %v4802_v3, %v4946_v9  ;;  %v5393_v5 = vsel %vm5345_vm4, %v5333_v26, 0.0  ;;  %v5448_v37 = vmul.f32 %v5333_v26, %v9797_v7  ;;  %v4715_v57 = vadd.f32 %v4714_v19, %v9274_v32 }
 0x9b5   :  { %v5303_v8 = vsel %vm5267_vm10, 1.0, %v10309_v13  ;;  %vm9857_vm11 = vcmp.lt.f32.partialorder %v5084_v24, 8.5  ;;  %vm9861_vm12 = vcmp.lt.f32.partialorder %v5156_v25, 8.5  ;;  %v4875_v41 = vmul.f32 0.0069444445, %v4839_v30 }
 0x9b6   :  { %v5018_v48 = vadd.f32 0.5, %v4982_v42  ;;  %vm9865_vm9 = vcmp.lt.f32.partialorder %v5088_v21, 8.5  ;;  %vm9869_vm0 = vcmp.lt.f32.partialorder %v5160_v23, 8.5  ;;  %v5335_v32 = vmul.f32 %v5299_v55, %v9849_v22  ;;  %v4720_v24 = vpop.f32.mrf.mxu3  ;;  %vm5264_vm2 = vmand %vm9857_vm11, %vm9861_vm12 }
 0x9b7   :  { %v5161_v19 = vsub.f32 %v9725_v49, %v5125_v52  ;;  %v5392_v53 = vadd.f32 %v5391_v10, %v9762_v14  ;;  %v5449_v45 = vmul.f32 %v5334_v28, %v9822_v35  ;;  %v4911_v61 = vfloor.f32 %v4875_v41  ;;  %vm5268_vm13 = vmand %vm9865_vm9, %vm9869_vm0 }
 0x9b8   :  { %v5054_v40 = vmul.f32 0.083333336, %v5018_v48  ;;  %v5452_v21 = vmul.f32 %v9759_v54, %v9730_v2  ;;  %v5506_v44 = vadd.f32 %v5505_v34, %v5504_v17  ;;  %v5453_v26 = vmul.f32 %v9841_v58, %v9792_v12 }
 0x9b9   :  { %v5339_v51 = vmul.f32 %v5303_v8, %v4715_v57  ;;  %v5394_v49 = vadd.f32 %v5393_v5, %v5392_v53  ;;  %v5507_v14 = vsel %vm5345_vm4, %v5448_v37, 0.0  ;;  %v4947_v54 = vmul.f32 144.0, %v4911_v61 }
 0x9ba   :  { %v5090_v10 = vfloor.f32 %v5054_v40  ;;  %v5395_v17 = vsel %vm5345_vm4, %v5334_v28, 0.0  ;;  %v5450_v0 = vmul.f32 %v5335_v32, %v9849_v22  ;;  %vm9892_vm14 = vcmp.lt.f32.partialorder %v5089_v46, 8.5 }
 0x9bb   :  { %vm9896_vm15 = vcmp.lt.f32.partialorder %v5161_v19, 8.5  ;;  %v5509_v23 = vsel %vm5345_vm4, %v5449_v45, 0.0  ;;  %v5300_v25 = vsel %vm5264_vm2, 1.0, %v10309_v13  ;;  %v4983_v30 = vsub.f32 %v4803_v38, %v4947_v54 }
 0x9bc   :  { %v5126_v55 = vmul.f32 12.0, %v5090_v10  ;;  %v5508_v5 = vadd.f32 %v5507_v14, %v5506_v44  ;;  %v5304_v28 = vsel %vm5268_vm13, 1.0, %v10309_v13  ;;  %v5397_v37 = vsel %vm5345_vm4, %v5335_v32, 0.0  ;;  %vm5269_vm6 = vmand %vm9892_vm14, %vm9896_vm15 }
 0x9bd   :  { %v4705_v52 = vpop.f32.mrf.mxu2  ;;  %v5396_v8 = vadd.f32 %v5395_v17, %v5394_v49  ;;  %vm9911_vm1 = vcmp.lt.f32.partialorder %v5090_v10, 8.5  ;;  %v5019_v38 = vadd.f32 0.5, %v4983_v30  ;;  %v4718_v41 = vadd.f32 %v9824_v1, %v9294_v4 }
 0x9be   :  { %v9905_v46 = vadd.f32 %v4705_v52, %v9756_v18  ;;  %v5162_v27 = vsub.f32 %v4982_v42, %v5126_v55  ;;  %v5510_v48 = vadd.f32 %v5509_v23, %v5508_v5  ;;  %v5511_v3 = vsel %vm5345_vm4, %v5450_v0, 0.0 }
 0x9bf   :  { %v5398_v6 = vadd.f32 %v5397_v37, %v5396_v8  ;;  %v5055_v42 = vmul.f32 0.083333336, %v5019_v38  ;;  %v4768_v53 = vadd.s32 280, %v8677_v50  ;;  %v4721_v45 = vadd.f32 %v4720_v24, %v9318_v36 }
 0x9c0   :  { %v5336_v18 = vmul.f32 %v5300_v25, %v9905_v46  ;;  %v4723_v32 = vpop.f32.mrf.mxu3  ;;  %vm9919_vm5 = vcmp.lt.f32.partialorder %v5162_v27, 8.5  ;;  %v5305_v40 = vsel %vm5269_vm6, 1.0, %v10309_v13  ;;  %v5512_v1 = vadd.f32 %v5511_v3, %v5510_v48 }
 0x9c1   :  { %vm5270_vm10 = vmand %vm9911_vm1, %vm9919_vm5  ;;  %v5091_v49 = vfloor.f32 %v5055_v42  ;;  %v4804_v14 = vcvt.s32.f32 %v4768_v53  ;;  %v5454_v10 = vmul.f32 %v5339_v51, %v4715_v57  ;;  %v5340_v54 = vmul.f32 %v5304_v28, %v4718_v41 }
 0x9c2   :  { %v5399_v61 = vsel %vm5345_vm4, %v5336_v18, 0.0  ;;  %v5451_v4 = vmul.f32 %v5336_v18, %v9905_v46  ;;  %v4724_v36 = vadd.f32 %v4723_v32, %v9321_v33  ;;  %v5306_v0 = vsel %vm5270_vm10, 1.0, %v10309_v13 }
 0x9c3   :  { %v5400_v44 = vadd.f32 %v5399_v61, %v5398_v6  ;;  %v5127_v34 = vmul.f32 12.0, %v5091_v49  ;;  %v5515_v9 = vsel %vm5345_vm4, %v5452_v21, 0.0  ;;  %v5403_v23 = vsel %vm5345_vm4, %v9841_v58, 0.0 }
 0x9c4   :  { %v5513_v50 = vsel %vm5345_vm4, %v5451_v4, 0.0  ;;  %v5341_v52 = vmul.f32 %v5305_v40, %v4721_v45  ;;  %v4840_v25 = vadd.f32 0.5, %v4804_v14  ;;  %v5517_v57 = vsel %vm5345_vm4, %v5453_v26, 0.0 }
 0x9c5   :  { %v5402_v24 = vadd.f32 %v9789_v31, %v5400_v44  ;;  %v5514_v17 = vadd.f32 %v5513_v50, %v5512_v1  ;;  %v5163_v28 = vsub.f32 %v4983_v30, %v5127_v34  ;;  %v5405_v33 = vsel %vm5345_vm4, %v5339_v51, 0.0 }
 0x9c6   :  { %v5455_v37 = vmul.f32 %v5340_v54, %v4718_v41  ;;  %v5342_v31 = vmul.f32 %v5306_v0, %v4724_v36  ;;  %v4876_v8 = vmul.f32 0.0069444445, %v4840_v25  ;;  %v5519_v27 = vsel %vm5345_vm4, %v5454_v10, 0.0 }
 0x9c7   :  { %v5404_v55 = vadd.f32 %v5403_v23, %v5402_v24  ;;  %v5516_v5 = vadd.f32 %v5515_v9, %v5514_v17  ;;  %v5407_v16 = vsel %vm5345_vm4, %v5340_v54, 0.0  ;;  %v5456_v48 = vmul.f32 %v5341_v52, %v4721_v45 }
 0x9c8   :  { %vm9943_vm11 = vcmp.lt.f32.partialorder %v5091_v49, 8.5  ;;  %vm9947_vm12 = vcmp.lt.f32.partialorder %v5163_v28, 8.5  ;;  %v4912_v30 = vfloor.f32 %v4876_v8  ;;  %v5521_v3 = vsel %vm5345_vm4, %v5455_v37, 0.0 }
 0x9c9   :  { %v5518_v21 = vadd.f32 %v5517_v57, %v5516_v5  ;;  %v5406_v38 = vadd.f32 %v5405_v33, %v5404_v55  ;;  %v5409_v18 = vsel %vm5345_vm4, %v5341_v52, 0.0  ;;  %v5457_v6 = vmul.f32 %v5342_v31, %v4724_v36  ;;  %vm5271_vm9 = vmand %vm9943_vm11, %vm9947_vm12 }
 0x9ca   :  { %v4948_v32 = vmul.f32 144.0, %v4912_v30  ;;  %v5523_v53 = vsel %vm5345_vm4, %v5456_v48, 0.0  ;;  %v5411_v45 = vsel %vm5345_vm4, %v5342_v31, 0.0  ;;  %v4602_v61 = vadd.f32 %v9641_v11, %v9510_v39 }
 0x9cb   :  { %v5408_v51 = vadd.f32 %v5407_v16, %v5406_v38  ;;  %v5520_v41 = vadd.f32 %v5519_v27, %v5518_v21  ;;  %v5525_v44 = vsel %vm5345_vm4, %v5457_v6, 0.0  ;;  %v5307_v10 = vsel %vm5271_vm9, 1.0, %v10309_v13 }
 0x9cc   :  { %v4984_v40 = vsub.f32 %v4804_v14, %v4948_v32  ;;  %v4605_v57 = vadd.f32 %v9641_v11, %v9586_v59 }
 0x9cd   :  { %v5410_v19 = vadd.f32 %v5409_v18, %v5408_v51  ;;  %v5522_v42 = vadd.f32 %v5521_v3, %v5520_v41 }
 0x9ce   :  { %v5020_v54 = vadd.f32 0.5, %v4984_v40 }
 0x9cf   :  { %v5412_v4 = vadd.f32 %v5411_v45, %v5410_v19  ;;  %v5524_v1 = vadd.f32 %v5523_v53, %v5522_v42 }
 0x9d0   :  { %v5056_v24 = vmul.f32 0.083333336, %v5020_v54 }
 0x9d1   :  { %v4726_v49 = vpop.f32.mrf.mxu3  ;;  %v5526_v50 = vadd.f32 %v5525_v44, %v5524_v1 }
 0x9d2   :  { %v4727_v36 = vadd.f32 %v4726_v49, %v4602_v61  ;;  %v5092_v0 = vfloor.f32 %v5056_v24 }
 0x9d4   :  { %v5343_v17 = vmul.f32 %v5307_v10, %v4727_v36  ;;  %v5128_v23 = vmul.f32 12.0, %v5092_v0  ;;  %vm5200_vm0 = vcmp.lt.f32.partialorder %v5092_v0, 8.5 }
 0x9d6   :  { %v5413_v34 = vsel %vm5345_vm4, %v5343_v17, 0.0  ;;  %v5458_v9 = vmul.f32 %v5343_v17, %v4727_v36  ;;  %v5164_v25 = vsub.f32 %v4984_v40, %v5128_v23 }
 0x9d7   :  { %v5414_v14 = vadd.f32 %v5413_v34, %v5412_v4 }
 0x9d8   :  { %v5527_v39 = vsel %vm5345_vm4, %v5458_v9, 0.0  ;;  %vm5236_vm2 = vcmp.lt.f32.partialorder %v5164_v25, 8.5 }
 0x9d9   :  { %v5528_v52 = vadd.f32 %v5527_v39, %v5526_v50  ;;  %vm5272_vm13 = vmand %vm5200_vm0, %vm5236_vm2 }
 0x9da   :  { %v5308_v5 = vsel %vm5272_vm13, 1.0, %v10309_v13 }
 0x9e1   :  { %v4729_v55 = vpop.f32.mrf.mxu3 }
 0x9e2   :  { %v4730_v28 = vadd.f32 %v4729_v55, %v4605_v57 }
 0x9e4   :  { %v5344_v33 = vmul.f32 %v5308_v5, %v4730_v28 }
 0x9e6   :  { %v5415_v37 = vsel %vm5345_vm4, %v5344_v33, 0.0  ;;  %v5459_v31 = vmul.f32 %v5344_v33, %v4730_v28 }
 0x9e7   :  { %v5416_v8 = vadd.f32 %v5415_v37, %v5414_v14 }
 0x9e8   :  { %v5529_v27 = vsel %vm5345_vm4, %v5459_v31, 0.0  ;;  %v10429_v31 = vld [vmem:[#allocation8_spill] sm:$0xff] }
 0x9e9   :  { %v5417_v16 = vrot.slane %v5416_v8, 4  ;;  %v5530_v21 = vadd.f32 %v5529_v27, %v5528_v52 }
 0x9eb   :  { %v5418_v38 = vadd.f32 %v5417_v16, %v5416_v8  ;;  %v5531_v48 = vrot.slane %v5530_v21, 4 }
 0x9ed   :  { %v5419_v58 = vrot.slane %v5418_v38, 2  ;;  %v5532_v26 = vadd.f32 %v5531_v48, %v5530_v21 }
 0x9ef   :  { %v5420_v30 = vadd.f32 %v5419_v58, %v5418_v38  ;;  %v5533_v51 = vrot.slane %v5532_v26, 2 }
 0x9f1   :  { %v5421_v59 = vrot.slane %v5420_v30, 1  ;;  %v5534_v11 = vadd.f32 %v5533_v51, %v5532_v26 }
 0x9f3   :  { %v5422_v41 = vadd.f32 %v5421_v59, %v5420_v30  ;;  %v5535_v13 = vrot.slane %v5534_v11, 1 }
 0x9f5   :  { %v9970_v3 = vmul.f32 0.0061728396, %v5422_v41  ;;  %v5536_v18 = vadd.f32 %v5535_v13, %v5534_v11  ;;  %v10430_v13 = vld [vmem:[#allocation10_spill] sm:$0xff] }
 0x9f7   :  { %v5537_v6 = vmul.f32 0.0061728396, %v5536_v18  ;;  %v5538_v32 = vmul.f32 %v9970_v3, %v9970_v3  ;;  %v5540_v49 = vsub.f32 %v8796_v63, %v9970_v3  ;;  %v5542_v10 = vsub.f32 %v8849_v15, %v9970_v3 }
 0x9f8   :  { %v5558_v54 = vsub.f32 %v9482_v56, %v9970_v3  ;;  %v5560_v50 = vsub.f32 %v9563_v47, %v9970_v3  ;;  %v5541_v63 = vsub.f32 %v8801_v60, %v9970_v3  ;;  %v5559_v56 = vsub.f32 %v9539_v62, %v9970_v3  ;;  %v10427_v60 = vld [vmem:[#allocation9_spill] sm:$0xff]  ;;  %v10428_v62 = vld [vmem:[#allocation16_spill] sm:$0xff] }
 0x9f9   :  { %v5539_v19 = vsub.f32 %v5537_v6, %v5538_v32  ;;  %v5543_v52 = vsub.f32 %v8909_v20, %v9970_v3  ;;  %v5545_v25 = vsub.f32 %v10427_v60, %v9970_v3  ;;  %v5561_v55 = vsub.f32 %v10428_v62, %v9970_v3  ;;  %v10431_v6 = vld [vmem:[#allocation11_spill] sm:$0xff] }
 0x9fa   :  { %v5563_v5 = vsub.f32 %v9733_v29, %v9970_v3  ;;  %v5544_v8 = vsub.f32 %v10429_v31, %v9970_v3  ;;  %v5562_v21 = vsub.f32 %v9666_v43, %v9970_v3  ;;  %v5546_v18 = vsub.f32 %v10430_v13, %v9970_v3  ;;  %v10434_v31 = vld [vmem:[#allocation12_spill] sm:$0xff] }
 0x9fb   :  { %v5576_v42 = vadd.f32 0.0001, %v5539_v19  ;;  %v5547_v32 = vsub.f32 %v10431_v6, %v9970_v3 }
 0x9fd   :  { %6188 = vrsqrt.f32 %v5576_v42  ;;  %vm5583_vm15 = vweird.f32 %v5576_v42 }
 0xa03   :  { %v6189_v53 = vpop.eup %6188 }
 0xa04   :  { %v5578_v45 = vmul.f32 %v6189_v53, %v5576_v42  ;;  %vm5584_vm14 = vweird.f32 %v6189_v53  ;;  %v5564_v42 = vsub.f32 %v9797_v7, %v9970_v3 }
 0xa05   :  { %vm5585_vm6 = vmor %vm5583_vm15, %vm5584_vm14 }
 0xa06   :  { %v5579_v40 = vmul.f32 %v6189_v53, %v5578_v45 }
 0xa08   :  { %v5580_v61 = vmul.f32 0.5, %v5579_v40 }
 0xa0a   :  { %v5581_v4 = vsub.f32 1.5, %v5580_v61 }
 0xa0c   :  { %v5582_v1 = vmul.f32 %v6189_v53, %v5581_v4 }
 0xa0e   :  { %v9974_v44 = vsel %vm5585_vm6, %v6189_v53, %v5582_v1  ;;  %v5565_v53 = vsub.f32 %v9822_v35, %v9970_v3  ;;  %v10432_v35 = vld [vmem:[#allocation13_spill] sm:$0xff] }
 0xa0f   :  { %v5587_v36 = vmul.f32 %v9974_v44, %v5540_v49  ;;  %v5589_v24 = vmul.f32 %v9974_v44, %v5542_v10  ;;  %v5605_v17 = vmul.f32 %v9974_v44, %v5558_v54  ;;  %v5607_v0 = vmul.f32 %v9974_v44, %v5560_v50  ;;  %v10433_v54 = vld [vmem:[#allocation14_spill] sm:$0xff] }
 0xa10   :  { %v5588_v47 = vmul.f32 %v9974_v44, %v5541_v63  ;;  %v5606_v14 = vmul.f32 %v9974_v44, %v5559_v56  ;;  %v5590_v33 = vmul.f32 %v9974_v44, %v5543_v52  ;;  %v5592_v37 = vmul.f32 %v9974_v44, %v5545_v25 }
 0xa11   :  { %v5659_v34 = vmul.f32 0.01, %v5587_v36  ;;  %vm5623_vm1 = vcmp.ge.f32.partialorder %v5587_v36, 0.0  ;;  %v5661_v15 = vmul.f32 0.01, %v5589_v24  ;;  %vm5625_vm5 = vcmp.ge.f32.partialorder %v5589_v24, 0.0 }
 0xa12   :  { %vm5641_vm10 = vcmp.ge.f32.partialorder %v5605_v17, 0.0  ;;  %vm5643_vm11 = vcmp.ge.f32.partialorder %v5607_v0, 0.0  ;;  %v5677_v9 = vmul.f32 0.01, %v5605_v17  ;;  %v5679_v23 = vmul.f32 0.01, %v5607_v0 }
 0xa13   :  { %v5695_v39 = vsel %vm5623_vm1, %v5587_v36, %v5659_v34  ;;  %v5697_v57 = vsel %vm5625_vm5, %v5589_v24, %v5661_v15  ;;  %vm5624_vm12 = vcmp.ge.f32.partialorder %v5588_v47, 0.0  ;;  %v5660_v28 = vmul.f32 0.01, %v5588_v47 }
 0xa14   :  { %v5678_v20 = vmul.f32 0.01, %v5606_v14  ;;  %v5608_v27 = vmul.f32 %v9974_v44, %v5561_v55  ;;  %v10008_v16 = vmul.f32 %v9974_v44, %v5563_v5  ;;  %v5713_v38 = vsel %vm5641_vm10, %v5605_v17, %v5677_v9  ;;  %5731 = vst.msk [vmem:[#allocation4] sm:$0xff] %vm5345_vm4, %v5695_v39 }
 0xa15   :  { %vm5642_vm9 = vcmp.ge.f32.partialorder %v5606_v14, 0.0  ;;  %v5662_v29 = vmul.f32 0.01, %v5590_v33  ;;  %v10014_v48 = vmul.f32 %v9974_v44, %v5544_v8  ;;  %v5715_v58 = vsel %vm5643_vm11, %v5607_v0, %v5679_v23  ;;  %5733 = vst.msk [vmem:[#allocation4 + $0x10] sm:$0xff] %vm5345_vm4, %v5697_v57 }
 0xa16   :  { %vm5626_vm0 = vcmp.ge.f32.partialorder %v5590_v33, 0.0  ;;  %v5664_v26 = vmul.f32 0.01, %v5592_v37  ;;  %v10019_v30 = vmul.f32 %v9974_v44, %v5562_v21  ;;  %v5696_v43 = vsel %vm5624_vm12, %v5588_v47, %v5660_v28  ;;  %5749 = vst.msk [vmem:[#allocation4 + $0x90] sm:$0xff] %vm5345_vm4, %v5713_v38 }
 0xa17   :  { %vm5628_vm2 = vcmp.ge.f32.partialorder %v5592_v37, 0.0  ;;  %v5680_v51 = vmul.f32 0.01, %v5608_v27  ;;  %v5714_v59 = vsel %vm5642_vm9, %v5606_v14, %v5678_v20  ;;  %vm5644_vm13 = vcmp.ge.f32.partialorder %v5608_v27, 0.0  ;;  %5751 = vst.msk [vmem:[#allocation4 + $0xa0] sm:$0xff] %vm5345_vm4, %v5715_v58 }
 0xa18   :  { %vm5646_vm14 = vcmp.ge.f32.partialorder %v10008_v16, 0.0  ;;  %v5682_v11 = vmul.f32 0.01, %v10008_v16  ;;  %v5698_v41 = vsel %vm5626_vm0, %v5590_v33, %v5662_v29  ;;  %vm5627_vm15 = vcmp.ge.f32.partialorder %v10014_v48, 0.0  ;;  %5732 = vst.msk [vmem:[#allocation4 + $0x8] sm:$0xff] %vm5345_vm4, %v5696_v43 }
 0xa19   :  { %v5700_v19 = vsel %vm5628_vm2, %v5592_v37, %v5664_v26  ;;  %vm5645_vm6 = vcmp.ge.f32.partialorder %v10019_v30, 0.0  ;;  %5750 = vst.msk [vmem:[#allocation4 + $0x98] sm:$0xff] %vm5345_vm4, %v5714_v59  ;;  %v5716_v45 = vsel %vm5644_vm13, %v5608_v27, %v5680_v51  ;;  %v5663_v40 = vmul.f32 0.01, %v10014_v48 }
 0xa1a   :  { %v5593_v61 = vmul.f32 %v9974_v44, %v5546_v18  ;;  %v5594_v4 = vmul.f32 %v9974_v44, %v5547_v32  ;;  %5734 = vst.msk [vmem:[#allocation4 + $0x18] sm:$0xff] %vm5345_vm4, %v5698_v41  ;;  %v5681_v1 = vmul.f32 0.01, %v10019_v30  ;;  %v5611_v49 = vmul.f32 %v9974_v44, %v5564_v42  ;;  %v10435_v32 = vld [vmem:[#allocation15_spill] sm:$0xff] }
 0xa1b   :  { %v10046_v7 = vmul.f32 %v9974_v44, %v5565_v53  ;;  %v5549_v10 = vsub.f32 %v10432_v35, %v9970_v3  ;;  %5736 = vst.msk [vmem:[#allocation4 + $0x28] sm:$0xff] %vm5345_vm4, %v5700_v19  ;;  %v5550_v50 = vsub.f32 %v10433_v54, %v9970_v3  ;;  %v5567_v36 = vsub.f32 %v9905_v46, %v9970_v3 }
 0xa1c   :  { %vm5629_vm1 = vcmp.ge.f32.partialorder %v5593_v61, 0.0  ;;  %vm5630_vm5 = vcmp.ge.f32.partialorder %v5594_v4, 0.0  ;;  %5752 = vst.msk [vmem:[#allocation4 + $0xa8] sm:$0xff] %vm5345_vm4, %v5716_v45  ;;  %vm5647_vm10 = vcmp.ge.f32.partialorder %v5611_v49, 0.0  ;;  %v5665_v24 = vmul.f32 0.01, %v5593_v61 }
 0xa1d   :  { %v5666_v17 = vmul.f32 0.01, %v5594_v4  ;;  %v5568_v0 = vsub.f32 %v9730_v2, %v9970_v3  ;;  %v5800_v34 = vld [vmem:[#allocation4 + $0x6] ss:$144 sm:$0x3]  ;;  %v10059_v15 = vmul.f32 %v9974_v44, %v5549_v10  ;;  %v10062_v56 = vmul.f32 %v9974_v44, %v5550_v50 }
 0xa1e   :  { %v5802_v63 = vld [vmem:[#allocation4 + $0x7] ss:$144 sm:$0x3]  ;;  %v10065_v47 = vmul.f32 %v9974_v44, %v5567_v36  ;;  %v5804_v46 = vld [vmem:[#allocation4 + $0x12] ss:$144 sm:$0x3]  ;;  %v5718_v62 = vsel %vm5646_vm14, %v10008_v16, %v5682_v11  ;;  %v5699_v37 = vsel %vm5627_vm15, %v10014_v48, %v5663_v40  ;;  %v5548_v8 = vsub.f32 %v10434_v31, %v9970_v3 }
 0xa1f   :  { %v5806_v9 = vld [vmem:[#allocation4 + $0x13] ss:$144 sm:$0x3]  ;;  %v5807_v14 = vmax.f32 %v5800_v34, %v5802_v63  ;;  %v10068_v23 = vmul.f32 %v9974_v44, %v5568_v0  ;;  %v5789_v52 = vld [vmem:[#allocation4 + $0x4] ss:$144 sm:$0x3]  ;;  %v5717_v38 = vsel %vm5645_vm6, %v10019_v30, %v5681_v1  ;;  %v5566_v16 = vsub.f32 %v9849_v22, %v9970_v3 }
 0xa20   :  { %v5808_v39 = vmax.f32 %v5804_v46, %v5806_v9  ;;  %v5791_v2 = vld [vmem:[#allocation4 + $0x5] ss:$144 sm:$0x3]  ;;  %v5793_v60 = vld [vmem:[#allocation4 + $0x10] ss:$144 sm:$0x3]  ;;  %v10085_v43 = vmul.f32 %v9974_v44, %v5548_v8  ;;  %v5701_v30 = vsel %vm5629_vm1, %v5593_v61, %v5665_v24  ;;  %v5702_v41 = vsel %vm5630_vm5, %v5594_v4, %v5666_v17 }
 0xa21   :  { %v5795_v25 = vld [vmem:[#allocation4 + $0x11] ss:$144 sm:$0x3]  ;;  %v5796_v57 = vmax.f32 %v5789_v52, %v5791_v2  ;;  %v5778_v28 = vld [vmem:[#allocation4 + $0x2] ss:$144 sm:$0x3]  ;;  %v10091_v22 = vmul.f32 %v9974_v44, %v5566_v16  ;;  %v5551_v19 = vsub.f32 %v10435_v32, %v9970_v3  ;;  %v5569_v45 = vsub.f32 %v9792_v12, %v9970_v3 }
 0xa22   :  { %v5809_v55 = vmax.f32 %v5807_v14, %v5808_v39  ;;  %v5797_v5 = vmax.f32 %v5793_v60, %v5795_v25  ;;  %v5780_v33 = vld [vmem:[#allocation4 + $0x3] ss:$144 sm:$0x3]  ;;  %v5782_v20 = vld [vmem:[#allocation4 + $0xe] ss:$144 sm:$0x3] }
 0xa23   :  { %v5784_v27 = vld [vmem:[#allocation4 + $0xf] ss:$144 sm:$0x3]  ;;  %v5785_v21 = vmax.f32 %v5778_v28, %v5780_v33  ;;  %5754 = vst.msk [vmem:[#allocation4 + $0xb8] sm:$0xff] %vm5345_vm4, %v5718_v62  ;;  %v5683_v26 = vmul.f32 0.01, %v5611_v49  ;;  %v10108_v4 = vmul.f32 %v9974_v44, %v5551_v19  ;;  %v10115_v3 = vmul.f32 %v9974_v44, %v5569_v45 }
 0xa24   :  { %5951 = vrot.lane.b32.xlu2 %v5809_v55, %s6226_s3  ;;  %v5798_v29 = vmax.f32 %v5796_v57, %v5797_v5  ;;  %v5786_v58 = vmax.f32 %v5782_v20, %v5784_v27  ;;  %v5833_v48 = vld [vmem:[#allocation4 + $0x1c] ss:$144 sm:$0x3]  ;;  %v5835_v51 = vld [vmem:[#allocation4 + $0x1d] ss:$144 sm:$0x3] }
 0xa25   :  { %5735 = vst.msk [vmem:[#allocation4 + $0x20] sm:$0xff] %vm5345_vm4, %v5699_v37  ;;  %v5684_v59 = vmul.f32 0.01, %v10046_v7  ;;  %vm5648_vm11 = vcmp.ge.f32.partialorder %v10046_v7, 0.0  ;;  %v5719_v6 = vsel %vm5647_vm10, %v5611_v49, %v5683_v26  ;;  %v5840_v42 = vmax.f32 %v5833_v48, %v5835_v51  ;;  %v6041_v25 = vld [vmem:[%s10224_s4 + $0x70] sm:$0xff] }
 0xa26   :  { %5947 = vrot.lane.b32.xlu1 %v5798_v29, %s6225_s24  ;;  %v5787_v11 = vmax.f32 %v5785_v21, %v5786_v58  ;;  %5753 = vst.msk [vmem:[#allocation4 + $0xb0] sm:$0xff] %vm5345_vm4, %v5717_v38  ;;  %v5822_v13 = vld [vmem:[#allocation4 + $0x1a] ss:$144 sm:$0x3]  ;;  %vm5632_vm12 = vcmp.ge.f32.partialorder %v10059_v15, 0.0  ;;  %vm5633_vm9 = vcmp.ge.f32.partialorder %v10062_v56, 0.0 }
 0xa27   :  { %v5824_v18 = vld [vmem:[#allocation4 + $0x1b] ss:$144 sm:$0x3]  ;;  %v5811_v53 = vld [vmem:[#allocation4 + $0x18] ss:$144 sm:$0x3]  ;;  %v5720_v61 = vsel %vm5648_vm11, %v10046_v7, %v5684_v59 }
 0xa28   :  { %5943 = vrot.lane.b32.xlu0 %v5787_v11, %s6227_s13  ;;  %5737 = vst.msk [vmem:[#allocation4 + $0x30] sm:$0xff] %vm5345_vm4, %v5701_v30  ;;  %v5813_v40 = vld [vmem:[#allocation4 + $0x19] ss:$144 sm:$0x3]  ;;  %vm5650_vm0 = vcmp.ge.f32.partialorder %v10065_v47, 0.0  ;;  %vm5651_vm2 = vcmp.ge.f32.partialorder %v10068_v23, 0.0  ;;  %v5829_v7 = vmax.f32 %v5822_v13, %v5824_v18 }
 0xa29   :  { %5738 = vst.msk [vmem:[#allocation4 + $0x38] sm:$0xff] %vm5345_vm4, %v5702_v41  ;;  %v5668_v12 = vmul.f32 0.01, %v10059_v15  ;;  %v5669_v10 = vmul.f32 0.01, %v10062_v56  ;;  %vm5631_vm13 = vcmp.ge.f32.partialorder %v10085_v43, 0.0  ;;  %v5818_v24 = vmax.f32 %v5811_v53, %v5813_v40 }
 0xa2a   :  { %5755 = vst.msk [vmem:[#allocation4 + $0xc0] sm:$0xff] %vm5345_vm4, %v5719_v6  ;;  %v5837_v1 = vld [vmem:[#allocation4 + $0x28] ss:$144 sm:$0x3]  ;;  %v5686_v39 = vmul.f32 0.01, %v10065_v47 }
 0xa2b   :  { %v5839_v49 = vld [vmem:[#allocation4 + $0x29] ss:$144 sm:$0x3]  ;;  %5756 = vst.msk [vmem:[#allocation4 + $0xc8] sm:$0xff] %vm5345_vm4, %v5720_v61  ;;  %v5704_v54 = vsel %vm5632_vm12, %v10059_v15, %v5668_v12  ;;  %v5705_v63 = vsel %vm5633_vm9, %v10062_v56, %v5669_v10  ;;  %v5687_v60 = vmul.f32 0.01, %v10068_v23 }
 0xa2c   :  { %v5841_v35 = vmax.f32 %v5837_v1, %v5839_v49  ;;  %v5844_v9 = vld [vmem:[#allocation4 + $0x1e] ss:$144 sm:$0x3]  ;;  %v5846_v14 = vld [vmem:[#allocation4 + $0x1f] ss:$144 sm:$0x3]  ;;  %v5722_v37 = vsel %vm5650_vm0, %v10065_v47, %v5686_v39 }
 0xa2d   :  { %v5826_v50 = vld [vmem:[#allocation4 + $0x26] ss:$144 sm:$0x3]  ;;  %v5828_v36 = vld [vmem:[#allocation4 + $0x27] ss:$144 sm:$0x3]  ;;  %v5723_v20 = vsel %vm5651_vm2, %v10068_v23, %v5687_v60  ;;  %v5851_v29 = vmax.f32 %v5844_v9, %v5846_v14 }
 0xa2e   :  { %v5842_v17 = vmax.f32 %v5840_v42, %v5841_v35  ;;  %v5830_v0 = vmax.f32 %v5826_v50, %v5828_v36  ;;  %v5815_v34 = vld [vmem:[#allocation4 + $0x24] ss:$144 sm:$0x3]  ;;  %v5817_v44 = vld [vmem:[#allocation4 + $0x25] ss:$144 sm:$0x3] }
 0xa2f   :  { %v5819_v46 = vmax.f32 %v5815_v34, %v5817_v44  ;;  %5740 = vst.msk [vmem:[#allocation4 + $0x48] sm:$0xff] %vm5345_vm4, %v5704_v54  ;;  %v5848_v52 = vld [vmem:[#allocation4 + $0x2a] ss:$144 sm:$0x3]  ;;  %vm5649_vm14 = vcmp.ge.f32.partialorder %v10091_v22, 0.0  ;;  %v6042_v56 = vld [vmem:[%s10224_s4 + $0x78] sm:$0xff] }
 0xa30   :  { %5963 = vrot.lane.b32.xlu2 %v5842_v17, %s6223_s22  ;;  %v5831_v15 = vmax.f32 %v5829_v7, %v5830_v0  ;;  %v5850_v2 = vld [vmem:[#allocation4 + $0x2b] ss:$144 sm:$0x3]  ;;  %5741 = vst.msk [vmem:[#allocation4 + $0x50] sm:$0xff] %vm5345_vm4, %v5705_v63  ;;  %6047 = vmatpush.msrb.mxu3 %v6042_v56  ;;  %s6228_s22 = smov 40   ;;  %vm5634_vm15 = vcmp.ge.f32.partialorder %v10108_v4, 0.0 }
 0xa31   :  { %v5820_v57 = vmax.f32 %v5818_v24, %v5819_v46  ;;  %v5866_v62 = vld [vmem:[#allocation4 + $0x32] ss:$144 sm:$0x3]  ;;  %v5868_v55 = vld [vmem:[#allocation4 + $0x33] ss:$144 sm:$0x3]  ;;  %v5852_v48 = vmax.f32 %v5848_v52, %v5850_v2 }
 0xa32   :  { %5959 = vrot.lane.b32.xlu1 %v5831_v15, %s6228_s22  ;;  %v5873_v5 = vmax.f32 %v5866_v62, %v5868_v55  ;;  %v5855_v28 = vld [vmem:[#allocation4 + $0x30] ss:$144 sm:$0x3]  ;;  %v5857_v33 = vld [vmem:[#allocation4 + $0x31] ss:$144 sm:$0x3]  ;;  %6048 = vmatpush.msrb.mxu3 %v6041_v25 }
 0xa33   :  { %5955 = vrot.lane.b32.xlu0 %v5820_v57, %s6224_s23  ;;  %v5870_v31 = vld [vmem:[#allocation4 + $0x3e] ss:$144 sm:$0x3]  ;;  %v5872_v8 = vld [vmem:[#allocation4 + $0x3f] ss:$144 sm:$0x3]  ;;  %v5862_v16 = vmax.f32 %v5855_v28, %v5857_v33  ;;  %v5853_v41 = vmax.f32 %v5851_v29, %v5852_v48 }
 0xa34   :  { %v5874_v27 = vmax.f32 %v5870_v31, %v5872_v8  ;;  %v5859_v21 = vld [vmem:[#allocation4 + $0x3c] ss:$144 sm:$0x3]  ;;  %v5861_v38 = vld [vmem:[#allocation4 + $0x3d] ss:$144 sm:$0x3] }
 0xa35   :  { %v5863_v58 = vmax.f32 %v5859_v21, %v5861_v38  ;;  %5758 = vst.msk [vmem:[#allocation4 + $0xd8] sm:$0xff] %vm5345_vm4, %v5722_v37  ;;  %v5667_v47 = vmul.f32 0.01, %v10085_v43  ;;  %v5685_v26 = vmul.f32 0.01, %v10091_v22  ;;  %s6229_s23 = smov 72  }
 0xa36   :  { %v5875_v51 = vmax.f32 %v5873_v5, %v5874_v27  ;;  %5759 = vst.msk [vmem:[#allocation4 + $0xe0] sm:$0xff] %vm5345_vm4, %v5723_v20  ;;  %vm5652_vm6 = vcmp.ge.f32.partialorder %v10115_v3, 0.0  ;;  %v5670_v11 = vmul.f32 0.01, %v10108_v4  ;;  %v6040_v37 = vld [vmem:[%s10224_s4 + $0x68] sm:$0xff]  ;;  %v6039_v31 = vld [vmem:[%s10224_s4 + $0x60] sm:$0xff] }
 0xa37   :  { %v5703_v23 = vsel %vm5631_vm13, %v10085_v43, %v5667_v47  ;;  %v5721_v59 = vsel %vm5649_vm14, %v10091_v22, %v5685_v26  ;;  %v5864_v30 = vmax.f32 %v5862_v16, %v5863_v58  ;;  %v5688_v43 = vmul.f32 0.01, %v10115_v3  ;;  %v5888_v13 = vld [vmem:[#allocation4 + $0x36] ss:$144 sm:$0x3]  ;;  %6049 = vmatpush.msrb.mxu3 %v6040_v37  ;;  %v6037_v20 = vld [vmem:[%s10224_s4 + $0x50] sm:$0xff] }
 0xa38   :  { %5975 = vrot.lane.b32.xlu2 %v5875_v51, %s6229_s23  ;;  %5739 = vst.msk [vmem:[#allocation4 + $0x40] sm:$0xff] %vm5345_vm4, %v5703_v23  ;;  %v5890_v22 = vld [vmem:[#allocation4 + $0x37] ss:$144 sm:$0x3]  ;;  %v5706_v18 = vsel %vm5634_vm15, %v10108_v4, %v5670_v11  ;;  %v6035_v21 = vld [vmem:[%s10224_s4 + $0x40] sm:$0xff]  ;;  %v6033_v16 = vld [vmem:[%s10224_s4 + $0x30] sm:$0xff] }
 0xa39   :  { %5757 = vst.msk [vmem:[#allocation4 + $0xd0] sm:$0xff] %vm5345_vm4, %v5721_v59  ;;  %v5877_v6 = vld [vmem:[#allocation4 + $0x34] ss:$144 sm:$0x3]  ;;  %v5724_v19 = vsel %vm5652_vm6, %v10115_v3, %v5688_v43  ;;  %v5895_v1 = vmax.f32 %v5888_v13, %v5890_v22  ;;  %6050 = vmatpush.msrb.mxu3 %v6039_v31  ;;  %v6031_v58 = vld [vmem:[%s10224_s4 + $0x20] sm:$0xff]  ;;  %v6029_v47 = vld [vmem:[%s10224_s4 + $0x10] sm:$0xff] }
 0xa3a   :  { %5971 = vrot.lane.b32.xlu1 %v5864_v30, %s6219_s0  ;;  %v5879_v32 = vld [vmem:[#allocation4 + $0x35] ss:$144 sm:$0x3]  ;;  %5742 = vst.msk [vmem:[#allocation4 + $0x58] sm:$0xff] %vm5345_vm4, %v5706_v18  ;;  %s6231_s0 = smov 88   ;;  %v6027_v59 = vld [vmem:[%s10224_s4] sm:$0xff] }
 0xa3b   :  { %5967 = vrot.lane.b32.xlu0 %v5853_v41, %s6230_s17  ;;  %5760 = vst.msk [vmem:[#allocation4 + $0xe8] sm:$0xff] %vm5345_vm4, %v5724_v19  ;;  %v5884_v54 = vmax.f32 %v5877_v6, %v5879_v32  ;;  %v6038_v8 = vld [vmem:[%s10224_s4 + $0x58] sm:$0xff]  ;;  %v6036_v27 = vld [vmem:[%s10224_s4 + $0x48] sm:$0xff]  ;;  %v5771_v30 = vld [vmem:[#allocation4 + $0xc] ss:$144 sm:$0x3] }
 0xa3c   :  { %v5899_v42 = vld [vmem:[#allocation4 + $0x48] ss:$144 sm:$0x3]  ;;  %v5901_v53 = vld [vmem:[#allocation4 + $0x49] ss:$144 sm:$0x3]  ;;  %6051 = vmatpush.msrb.mxu3 %v6038_v8 }
 0xa3d   :  { %v5903_v45 = vld [vmem:[#allocation4 + $0x54] ss:$144 sm:$0x3]  ;;  %v5905_v40 = vld [vmem:[#allocation4 + $0x55] ss:$144 sm:$0x3]  ;;  %v5906_v61 = vmax.f32 %v5899_v42, %v5901_v53 }
 0xa3e   :  { %v5907_v12 = vmax.f32 %v5903_v45, %v5905_v40  ;;  %v5932_v49 = vld [vmem:[#allocation4 + $0x4e] ss:$144 sm:$0x3]  ;;  %v5934_v7 = vld [vmem:[#allocation4 + $0x4f] ss:$144 sm:$0x3]  ;;  %6052 = vmatpush.msrb.mxu3 %v6037_v20 }
 0xa3f   :  { %v5921_v17 = vld [vmem:[#allocation4 + $0x4c] ss:$144 sm:$0x3]  ;;  %v5923_v0 = vld [vmem:[#allocation4 + $0x4d] ss:$144 sm:$0x3]  ;;  %v5939_v9 = vmax.f32 %v5932_v49, %v5934_v7 }
 0xa40   :  { %v5908_v4 = vmax.f32 %v5906_v61, %v5907_v12  ;;  %v5892_v35 = vld [vmem:[#allocation4 + $0x42] ss:$144 sm:$0x3]  ;;  %v5894_v10 = vld [vmem:[#allocation4 + $0x43] ss:$144 sm:$0x3]  ;;  %v5928_v25 = vmax.f32 %v5921_v17, %v5923_v0  ;;  %6053 = vmatpush.msrb.mxu3 %v6036_v27 }
 0xa41   :  { %v5896_v50 = vmax.f32 %v5892_v35, %v5894_v10  ;;  %v5881_v36 = vld [vmem:[#allocation4 + $0x40] ss:$144 sm:$0x3]  ;;  %v5883_v3 = vld [vmem:[#allocation4 + $0x41] ss:$144 sm:$0x3] }
 0xa42   :  { %5987 = vrot.lane.b32.xlu2 %v5908_v4, %s6221_s1  ;;  %v5885_v24 = vmax.f32 %v5881_v36, %v5883_v3  ;;  %v5910_v44 = vld [vmem:[#allocation4 + $0x4a] ss:$144 sm:$0x3]  ;;  %v5912_v63 = vld [vmem:[#allocation4 + $0x4b] ss:$144 sm:$0x3]  ;;  %6054 = vmatpush.msrb.mxu3 %v6035_v21 }
 0xa43   :  { %v5897_v34 = vmax.f32 %v5895_v1, %v5896_v50  ;;  %v5914_v14 = vld [vmem:[#allocation4 + $0x56] ss:$144 sm:$0x3]  ;;  %v5916_v39 = vld [vmem:[#allocation4 + $0x57] ss:$144 sm:$0x3]  ;;  %v5917_v55 = vmax.f32 %v5910_v44, %v5912_v63 }
 0xa44   :  { %v5886_v46 = vmax.f32 %v5884_v54, %v5885_v24  ;;  %v5936_v15 = vld [vmem:[#allocation4 + $0x5a] ss:$144 sm:$0x3]  ;;  %v5938_v52 = vld [vmem:[#allocation4 + $0x5b] ss:$144 sm:$0x3]  ;;  %v5918_v5 = vmax.f32 %v5914_v14, %v5916_v39 }
 0xa45   :  { %5983 = vrot.lane.b32.xlu1 %v5897_v34, %s6231_s0  ;;  %v5940_v2 = vmax.f32 %v5936_v15, %v5938_v52  ;;  %v5925_v60 = vld [vmem:[#allocation4 + $0x58] ss:$144 sm:$0x3]  ;;  %v5927_v56 = vld [vmem:[#allocation4 + $0x59] ss:$144 sm:$0x3] }
 0xa46   :  { %5979 = vrot.lane.b32.xlu0 %v5886_v46, %s6220_s20  ;;  %v5929_v57 = vmax.f32 %v5925_v60, %v5927_v56  ;;  %s6232_s1 = smov 120   ;;  %v5919_v33 = vmax.f32 %v5917_v55, %v5918_v5  ;;  %v6034_v38 = vld [vmem:[%s10224_s4 + $0x38] sm:$0xff]  ;;  %v6032_v29 = vld [vmem:[%s10224_s4 + $0x28] sm:$0xff]  ;;  %v5773_v11 = vld [vmem:[#allocation4 + $0xd] ss:$144 sm:$0x3] }
 0xa47   :  { %v5941_v62 = vmax.f32 %v5939_v9, %v5940_v2  ;;  %6055 = vmatpush.msrb.mxu3 %v6034_v38  ;;  %v6030_v48 = vld [vmem:[%s10224_s4 + $0x18] sm:$0xff]  ;;  %v6028_v23 = vld [vmem:[%s10224_s4 + $0x8] sm:$0xff]  ;;  %v5775_v22 = vmax.f32 %v5771_v30, %v5773_v11  ;;  %vm6004_vm1 = vcmask 195584   ;;  %vm6007_vm5 = vcmask 326656   ;;  %v6185_v39 = vld [vmem:[%s10225_s5] ss:$0 sm:$0xff] }
 0xa48   :  { %v5930_v28 = vmax.f32 %v5928_v25, %v5929_v57  ;;  %v5767_v43 = vld [vmem:[#allocation4] ss:$144 sm:$0x3]  ;;  %v5769_v13 = vld [vmem:[#allocation4 + $0x1] ss:$144 sm:$0x3] }
 0xa49   :  { %6056 = vmatpush.msrb.mxu3 %v6033_v16  ;;  %v5774_v18 = vmax.f32 %v5767_v43, %v5769_v13  ;;  %vm6010_vm10 = vcmask 457728   ;;  %vm10436_vm11 = vcmask 523264   ;;  %vm6013_vm12 = vcmask 588800   ;;  %s6074_s20 = sshll.u32 %s6234_s25, 4  ;;  %s6075_s20 = int_to_ptr.vmem [resolvable:$true] %s6074_s20 }
 0xa4a   :  { %5999 = vrot.lane.b32.xlu2 %v5941_v62, %s6232_s1  ;;  %vm6021_vm9 = vcmask 850944   ;;  %vm6023_vm0 = vcmask 916480   ;;  %vm6025_vm2 = vcmask 982016  }
 0xa4b   :  { %6057 = vmatpush.msrb.mxu3 %v6032_v29  ;;  %v5776_v6 = vmax.f32 %v5774_v18, %v5775_v22 }
 0xa4d   :  { %5995 = vrot.lane.b32.xlu1 %v5930_v28, %s6222_s21  ;;  %6058 = vmatpush.msrb.mxu3 %v6031_v58 }
 0xa4e   :  { %5991 = vrot.lane.b32.xlu0 %v5919_v33, %s6233_s18 }
 0xa4f   :  { %6059 = vmatpush.msrb.mxu3 %v6030_v48 }
 0xa51   :  { %6060 = vmatpush.msrb.mxu3 %v6029_v47 }
 0xa53   :  { %6061 = vmatpush.msrb.mxu3 %v6028_v23 }
 0xa55   :  { %6062 = vmatpush.msrb.mxu3 %v6027_v59 }
 0xa7e   :  { %v5952_v26 = vpop.permute.xlu2 %5951 }
 0xa8a   :  { %v5964_v32 = vpop.permute.xlu2 %5963 }
 0xa92   :  { %v5976_v1 = vpop.permute.xlu2 %5975 }
 0xa98   :  { %v5948_v51 = vpop.permute.xlu1 %5947 }
 0xa9a   :  { %v5944_v41 = vpop.permute.xlu0 %5943 }
 0xa9b   :  { %v6002_v42 = vsel %vm5345_vm4, %v5776_v6, %v5944_v41  ;;  %vm6015_vm4 = vcmask 654336  }
 0xa9c   :  { %v6003_v45 = vsel %vm597_vm3, %v6002_v42, %v5948_v51  ;;  %v5988_v50 = vpop.permute.xlu2 %5987  ;;  %vm6017_vm3 = vcmask 719872  }
 0xa9d   :  { %v6005_v40 = vsel %vm6004_vm1, %v6003_v45, %v5952_v26 }
 0xaa4   :  { %v5960_v19 = vpop.permute.xlu1 %5959  ;;  %v6000_v46 = vpop.permute.xlu2 %5999 }
 0xaa5   :  { %v5956_v53 = vpop.permute.xlu0 %5955 }
 0xaa6   :  { %v6006_v61 = vsel %vm599_vm7, %v6005_v40, %v5956_v53  ;;  %vm6019_vm7 = vcmask 785408  }
 0xaa7   :  { %v6008_v7 = vsel %vm6007_vm5, %v6006_v61, %v5960_v19 }
 0xaa8   :  { %v6009_v4 = vsel %vm601_vm8, %v6008_v7, %v5964_v32  ;;  %vm6067_vm8 = vcmask 517120  }
 0xaac   :  { %v5972_v12 = vpop.permute.xlu1 %5971 }
 0xaad   :  { %v5968_v49 = vpop.permute.xlu0 %5967 }
 0xaae   :  { %v6011_v35 = vsel %vm6010_vm10, %v6009_v4, %v5968_v49 }
 0xaaf   :  { %v6012_v10 = vsel %vm10436_vm11, %v6011_v35, %v5972_v12 }
 0xab0   :  { %v6014_v3 = vsel %vm6013_vm12, %v6012_v10, %v5976_v1 }
 0xab7   :  { %v5984_v54 = vpop.permute.xlu1 %5983 }
 0xab8   :  { %v5980_v36 = vpop.permute.xlu0 %5979 }
 0xab9   :  { %v6016_v24 = vsel %vm6015_vm4, %v6014_v3, %v5980_v36 }
 0xaba   :  { %v6018_v17 = vsel %vm6017_vm3, %v6016_v24, %v5984_v54 }
 0xabb   :  { %v6020_v44 = vsel %vm6019_vm7, %v6018_v17, %v5988_v50 }
 0xabf   :  { %v5996_v0 = vpop.permute.xlu1 %5995 }
 0xac0   :  { %v5992_v34 = vpop.permute.xlu0 %5991 }
 0xac1   :  { %v6022_v63 = vsel %vm6021_vm9, %v6020_v44, %v5992_v34 }
 0xac2   :  { %v6024_v9 = vsel %vm6023_vm0, %v6022_v63, %v5996_v0 }
 0xac3   :  { %v6026_v14 = vsel %vm6025_vm2, %v6024_v9, %v6000_v46 }
 0xac4   :  { %6063 = vmatmul.f32.vlgmr.msrb.gmra.mxu3 %v6026_v14 }
 0xb47   :  { %v6064_v15 = vpop.f32.mrf.mxu3 }
 0xb48   :  { %v6065_v52 = vadd.f32 %v6185_v39, %v6064_v15 }
 0xb4a   :  { %6068 = vst.msk [vmem:[#allocation5] sm:$0x3] %vm6067_vm8, %v6065_v52 }
 0xb4b   :  { %6079 = dma.vmem_to_hbm [thread:$0]  %s6075_s20, 32, %s6077_s28, [#allocation6]  }
 0xb4c   :  { %6216 = dma.done.wait [#allocation6], 32  }
 0xb4d   :  { %6217 = vsyncadd [#allocation6], 4294967264 }
 0xb4e   :  { %6084 = vsyncpa [#allocation6], 1 }

</bundles_post_ra>
